<compile_context>
chip_gen: v7x
topology: tpu7x:2x2x1
jax: 0.10.0
libtpu: 0.0.40
codegen_flags: <defaults>
</compile_context>

<pallas_src>
import jax
import jax.numpy as jnp
from jax.experimental import pallas as pl
from jax.experimental.pallas import tpu as pltpu


def _shift_hw(x, dh, dw):
    """y[h, w, b] = x[h+dh, w+dw, b], zero padded outside (dh, dw are static ints)."""
    H, W, B = x.shape
    if dh > 0:
        x = jnp.concatenate([x[dh:], jnp.zeros((dh, W, B), x.dtype)], axis=0)
    elif dh < 0:
        x = jnp.concatenate([jnp.zeros((-dh, W, B), x.dtype), x[:dh]], axis=0)
    if dw > 0:
        x = jnp.concatenate([x[:, dw:, :], jnp.zeros((H, dw, B), x.dtype)], axis=1)
    elif dw < 0:
        x = jnp.concatenate([jnp.zeros((H, -dw, B), x.dtype), x[:, :dw, :]], axis=1)
    return x


def _conv3x3_relu(x, convw_ref, convb_ref, layer, dilation):
    """Conv2d(1,1,3,padding=1) + ReLU on the (H, W, B) slab, at the given dilation.

    With dilation=2 and inputs that are only valid at even (h, w) positions this is
    exactly the padding=1 conv on the 14x14 pooled grid, evaluated at those positions.
    """
    acc = jnp.zeros_like(x)
    for ki in range(3):
        for kj in range(3):
            w = convw_ref[layer, ki * 3 + kj]            # SMEM scalar
            acc = acc + _shift_hw(x, (ki - 1) * dilation, (kj - 1) * dilation) * w
    return jnp.maximum(acc + convb_ref[layer], 0.0)       # bias/ReLU hoisted out of taps


def _pool2_dilated(x, d):
    """MaxPool2d(2,2) as a dilated elementwise max: the result is meaningful at grid
    positions that are multiples of 2*d, which is all downstream code ever reads."""
    m = jnp.maximum(x, _shift_hw(x, 0, d))               # max over (w, w+d)
    return jnp.maximum(m, _shift_hw(m, d, 0))            # max over the 2x2 window


def cnn_kernel(x_ref, convw_ref, convb_ref, w1_ref, b1_ref, w2_ref, b2_ref, out_ref):
    x = x_ref[...]                                       # (28, 28, B) f32, lanes = batch
    a1 = _conv3x3_relu(x, convw_ref, convb_ref, 0, 1)    # conv1 + ReLU, full grid
    p1 = _pool2_dilated(a1, 1)                           # pool1: valid at (2i, 2j)
    a2 = _conv3x3_relu(p1, convw_ref, convb_ref, 1, 2)   # conv2 + ReLU on pooled grid
    p2 = _pool2_dilated(a2, 2)                           # pool2: valid at (4i, 4j)
    # Gather the 7 valid H-rows (stride 4); the stride-4 W gather is folded into w1
    # (zero columns wherever w % 4 != 0), so FC1 is one dense MXU matmul.
    feat = jnp.concatenate([p2[4 * i] for i in range(7)], axis=0)          # (196, B)
    h = jnp.dot(w1_ref[...], feat, preferred_element_type=jnp.float32) + b1_ref[...]
    h = jnp.maximum(h, 0.0)                              # (128, B)
    out = jnp.dot(w2_ref[...], h, preferred_element_type=jnp.float32) + b2_ref[...]
    out_ref[...] = out                                   # (10, B) lane-dense store


def cnn_forward(x_nchw, params, batch_tile=128):
    N, C, H, W = x_nchw.shape
    assert C == 1 and H == 28 and W == 28
    x = x_nchw[:, 0, :, :].astype(jnp.float32)           # (N, 28, 28)
    B = min(batch_tile, N)                               # images per grid step
    Np = ((N + B - 1) // B) * B
    if Np != N:
        x = jnp.concatenate([x, jnp.zeros((Np - N, 28, 28), jnp.float32)], axis=0)
    xt = jnp.transpose(x, (1, 2, 0))                     # (28, 28, Np): lanes carry batch
    out_t = pl.pallas_call(
        cnn_kernel,
        out_shape=jax.ShapeDtypeStruct((10, Np), jnp.float32),
        grid=(Np // B,),
        in_specs=[
            pl.BlockSpec((28, 28, B), lambda n: (0, 0, n)),                 # image tile
            pl.BlockSpec(memory_space=pltpu.MemorySpace.SMEM),              # conv weights (2, 9)
            pl.BlockSpec(memory_space=pltpu.MemorySpace.SMEM),              # conv biases  (2,)
            pl.BlockSpec((128, 196), lambda n: (0, 0)),                     # fc1 weight (gather folded)
            pl.BlockSpec((128, 1), lambda n: (0, 0)),                       # fc1 bias
            pl.BlockSpec((10, 128), lambda n: (0, 0)),                      # fc2 weight
            pl.BlockSpec((10, 1), lambda n: (0, 0)),                        # fc2 bias
        ],
        out_specs=pl.BlockSpec((10, B), lambda n: (0, n)),
        compiler_params=pltpu.CompilerParams(dimension_semantics=("parallel",)),
    )(xt, params["conv_w"], params["conv_b"], params["w1big"], params["b1"],
      params["w2"], params["b2"])
    return jnp.transpose(out_t)[:N]                      # (N, 10)


def init_params(key):
    """Deterministic, PyTorch-shaped parameters (uniform +/- 1/sqrt(fan_in))."""
    ks = jax.random.split(key, 8)

    def u(k, shape, fan_in):
        bound = 1.0 / jnp.sqrt(jnp.float32(fan_in))
        return jax.random.uniform(k, shape, jnp.float32, -bound, bound)

    conv1_w = u(ks[0], (3, 3), 9)        # Conv2d(1,1,3): weight (1,1,3,3) squeezed
    conv1_b = u(ks[1], (), 9)
    conv2_w = u(ks[2], (3, 3), 9)
    conv2_b = u(ks[3], (), 9)
    fc1_w = u(ks[4], (128, 49), 49)      # Linear(49,128): weight (out, in)
    fc1_b = u(ks[5], (128,), 49)
    fc2_w = u(ks[6], (10, 128), 128)     # Linear(128,10)
    fc2_b = u(ks[7], (10,), 128)

    # Fold the stride-4 spatial gather into FC1: feature row index = i*28 + w, where
    # i = pooled H index (0..6) and w = grid W position (0..27); only w = 4*j carries
    # real pooled data, everything else is multiplied by an exact zero.
    w1big = jnp.zeros((128, 7, 28), jnp.float32)
    w1big = w1big.at[:, :, 0:28:4].set(fc1_w.reshape(128, 7, 7))
    w1big = w1big.reshape(128, 196)

    return {
        "conv_w": jnp.stack([conv1_w.reshape(9), conv2_w.reshape(9)]),   # (2, 9)  SMEM
        "conv_b": jnp.stack([conv1_b, conv2_b]),                         # (2,)    SMEM
        "w1big": w1big,                                                  # (128, 196)
        "b1": fc1_b.reshape(128, 1),
        "w2": fc2_w,                                                     # (10, 128)
        "b2": fc2_b.reshape(10, 1),
    }


if __name__ == "__main__":
    key = jax.random.PRNGKey(0)
    kx, kp = jax.random.split(key)
    x = jax.random.normal(kx, (2, 1, 28, 28), jnp.float32)   # NCHW, like PyTorch
    params = init_params(kp)
    out = jax.jit(cnn_forward)(x, params)
    jax.block_until_ready(out)
    assert out.shape == (2, 10) and out.dtype == jnp.float32
    print("KERNEL_OK")
</pallas_src>

<mosaic_0001>
module attributes {stable_mosaic.version = 11 : i64} {
  func.func @cnn_kernel(%arg0: i32, %arg1: memref<28x28x2xf32, #tpu.memory_space<vmem>>, %arg2: memref<2x9xf32, #tpu.memory_space<smem>>, %arg3: memref<2xf32, #tpu.memory_space<smem>>, %arg4: memref<128x196xf32, #tpu.memory_space<vmem>>, %arg5: memref<128x1xf32, #tpu.memory_space<vmem>>, %arg6: memref<10x128xf32, #tpu.memory_space<vmem>>, %arg7: memref<10x1xf32, #tpu.memory_space<vmem>>, %arg8: memref<10x2xf32, #tpu.memory_space<vmem>>) attributes {dimension_semantics = [#tpu.dimension_semantics<parallel>], iteration_bounds = array<i64: 1>, scalar_prefetch = 0 : i64, scratch_operands = 0 : i64, tpu.core_type = #tpu.core_type<tc>, window_params = [{transform_indices = @transform_0, window_bounds = array<i64: 28, 28, 2>}, {transform_indices = @transform_1, window_bounds = array<i64: 2, 9>}, {transform_indices = @transform_2, window_bounds = array<i64: 2>}, {pipeline_mode = #tpu.pipeline_mode<synchronous>, transform_indices = @transform_3, window_bounds = array<i64: 128, 196>}, {pipeline_mode = #tpu.pipeline_mode<synchronous>, transform_indices = @transform_4, window_bounds = array<i64: 128, 1>}, {pipeline_mode = #tpu.pipeline_mode<synchronous>, transform_indices = @transform_5, window_bounds = array<i64: 10, 128>}, {pipeline_mode = #tpu.pipeline_mode<synchronous>, transform_indices = @transform_6, window_bounds = array<i64: 10, 1>}, {transform_indices = @transform_7, window_bounds = array<i64: 10, 2>}]} {
    %c0 = arith.constant 0 : index
    %c0_0 = arith.constant 0 : index
    %c0_1 = arith.constant 0 : index
    %0 = vector.load %arg1[%c0, %c0_0, %c0_1] : memref<28x28x2xf32, #tpu.memory_space<vmem>>, vector<28x28x2xf32>
    %cst = arith.constant 0.000000e+00 : f32
    %1 = vector.broadcast %cst : f32 to vector<28x28x2xf32>
    %c0_2 = arith.constant 0 : index
    %c0_3 = arith.constant 0 : index
    %2 = memref.load %arg2[%c0_2, %c0_3] : memref<2x9xf32, #tpu.memory_space<smem>>
    %cst_4 = arith.constant 0.000000e+00 : f32
    %3 = vector.broadcast %cst_4 : f32 to vector<1x28x2xf32>
    %4 = vector.extract_strided_slice %0 {offsets = [0, 0, 0], sizes = [27, 28, 2], strides = [1, 1, 1]} : vector<28x28x2xf32> to vector<27x28x2xf32>
    %5 = tpu.concatenate %3, %4 in 0 : vector<1x28x2xf32>, vector<27x28x2xf32> -> vector<28x28x2xf32>
    %cst_5 = arith.constant 0.000000e+00 : f32
    %6 = vector.broadcast %cst_5 : f32 to vector<28x1x2xf32>
    %7 = vector.extract_strided_slice %5 {offsets = [0, 0, 0], sizes = [28, 27, 2], strides = [1, 1, 1]} : vector<28x28x2xf32> to vector<28x27x2xf32>
    %8 = tpu.concatenate %6, %7 in 1 : vector<28x1x2xf32>, vector<28x27x2xf32> -> vector<28x28x2xf32>
    %9 = vector.broadcast %2 : f32 to vector<28x28x2xf32>
    %10 = arith.mulf %8, %9 : vector<28x28x2xf32>
    %11 = arith.addf %1, %10 : vector<28x28x2xf32>
    %c0_6 = arith.constant 0 : index
    %c1 = arith.constant 1 : index
    %12 = memref.load %arg2[%c0_6, %c1] : memref<2x9xf32, #tpu.memory_space<smem>>
    %cst_7 = arith.constant 0.000000e+00 : f32
    %13 = vector.broadcast %cst_7 : f32 to vector<1x28x2xf32>
    %14 = vector.extract_strided_slice %0 {offsets = [0, 0, 0], sizes = [27, 28, 2], strides = [1, 1, 1]} : vector<28x28x2xf32> to vector<27x28x2xf32>
    %15 = tpu.concatenate %13, %14 in 0 : vector<1x28x2xf32>, vector<27x28x2xf32> -> vector<28x28x2xf32>
    %16 = vector.broadcast %12 : f32 to vector<28x28x2xf32>
    %17 = arith.mulf %15, %16 : vector<28x28x2xf32>
    %18 = arith.addf %11, %17 : vector<28x28x2xf32>
    %c0_8 = arith.constant 0 : index
    %c2 = arith.constant 2 : index
    %19 = memref.load %arg2[%c0_8, %c2] : memref<2x9xf32, #tpu.memory_space<smem>>
    %cst_9 = arith.constant 0.000000e+00 : f32
    %20 = vector.broadcast %cst_9 : f32 to vector<1x28x2xf32>
    %21 = vector.extract_strided_slice %0 {offsets = [0, 0, 0], sizes = [27, 28, 2], strides = [1, 1, 1]} : vector<28x28x2xf32> to vector<27x28x2xf32>
    %22 = tpu.concatenate %20, %21 in 0 : vector<1x28x2xf32>, vector<27x28x2xf32> -> vector<28x28x2xf32>
    %23 = vector.extract_strided_slice %22 {offsets = [0, 1, 0], sizes = [28, 27, 2], strides = [1, 1, 1]} : vector<28x28x2xf32> to vector<28x27x2xf32>
    %cst_10 = arith.constant 0.000000e+00 : f32
    %24 = vector.broadcast %cst_10 : f32 to vector<28x1x2xf32>
    %25 = tpu.concatenate %23, %24 in 1 : vector<28x27x2xf32>, vector<28x1x2xf32> -> vector<28x28x2xf32>
    %26 = vector.broadcast %19 : f32 to vector<28x28x2xf32>
    %27 = arith.mulf %25, %26 : vector<28x28x2xf32>
    %28 = arith.addf %18, %27 : vector<28x28x2xf32>
    %c0_11 = arith.constant 0 : index
    %c3 = arith.constant 3 : index
    %29 = memref.load %arg2[%c0_11, %c3] : memref<2x9xf32, #tpu.memory_space<smem>>
    %cst_12 = arith.constant 0.000000e+00 : f32
    %30 = vector.broadcast %cst_12 : f32 to vector<28x1x2xf32>
    %31 = vector.extract_strided_slice %0 {offsets = [0, 0, 0], sizes = [28, 27, 2], strides = [1, 1, 1]} : vector<28x28x2xf32> to vector<28x27x2xf32>
    %32 = tpu.concatenate %30, %31 in 1 : vector<28x1x2xf32>, vector<28x27x2xf32> -> vector<28x28x2xf32>
    %33 = vector.broadcast %29 : f32 to vector<28x28x2xf32>
    %34 = arith.mulf %32, %33 : vector<28x28x2xf32>
    %35 = arith.addf %28, %34 : vector<28x28x2xf32>
    %c0_13 = arith.constant 0 : index
    %c4 = arith.constant 4 : index
    %36 = memref.load %arg2[%c0_13, %c4] : memref<2x9xf32, #tpu.memory_space<smem>>
    %37 = vector.broadcast %36 : f32 to vector<28x28x2xf32>
    %38 = arith.mulf %0, %37 : vector<28x28x2xf32>
    %39 = arith.addf %35, %38 : vector<28x28x2xf32>
    %c0_14 = arith.constant 0 : index
    %c5 = arith.constant 5 : index
    %40 = memref.load %arg2[%c0_14, %c5] : memref<2x9xf32, #tpu.memory_space<smem>>
    %41 = vector.extract_strided_slice %0 {offsets = [0, 1, 0], sizes = [28, 27, 2], strides = [1, 1, 1]} : vector<28x28x2xf32> to vector<28x27x2xf32>
    %cst_15 = arith.constant 0.000000e+00 : f32
    %42 = vector.broadcast %cst_15 : f32 to vector<28x1x2xf32>
    %43 = tpu.concatenate %41, %42 in 1 : vector<28x27x2xf32>, vector<28x1x2xf32> -> vector<28x28x2xf32>
    %44 = vector.broadcast %40 : f32 to vector<28x28x2xf32>
    %45 = arith.mulf %43, %44 : vector<28x28x2xf32>
    %46 = arith.addf %39, %45 : vector<28x28x2xf32>
    %c0_16 = arith.constant 0 : index
    %c6 = arith.constant 6 : index
    %47 = memref.load %arg2[%c0_16, %c6] : memref<2x9xf32, #tpu.memory_space<smem>>
    %48 = vector.extract_strided_slice %0 {offsets = [1, 0, 0], sizes = [27, 28, 2], strides = [1, 1, 1]} : vector<28x28x2xf32> to vector<27x28x2xf32>
    %cst_17 = arith.constant 0.000000e+00 : f32
    %49 = vector.broadcast %cst_17 : f32 to vector<1x28x2xf32>
    %50 = tpu.concatenate %48, %49 in 0 : vector<27x28x2xf32>, vector<1x28x2xf32> -> vector<28x28x2xf32>
    %cst_18 = arith.constant 0.000000e+00 : f32
    %51 = vector.broadcast %cst_18 : f32 to vector<28x1x2xf32>
    %52 = vector.extract_strided_slice %50 {offsets = [0, 0, 0], sizes = [28, 27, 2], strides = [1, 1, 1]} : vector<28x28x2xf32> to vector<28x27x2xf32>
    %53 = tpu.concatenate %51, %52 in 1 : vector<28x1x2xf32>, vector<28x27x2xf32> -> vector<28x28x2xf32>
    %54 = vector.broadcast %47 : f32 to vector<28x28x2xf32>
    %55 = arith.mulf %53, %54 : vector<28x28x2xf32>
    %56 = arith.addf %46, %55 : vector<28x28x2xf32>
    %c0_19 = arith.constant 0 : index
    %c7 = arith.constant 7 : index
    %57 = memref.load %arg2[%c0_19, %c7] : memref<2x9xf32, #tpu.memory_space<smem>>
    %58 = vector.extract_strided_slice %0 {offsets = [1, 0, 0], sizes = [27, 28, 2], strides = [1, 1, 1]} : vector<28x28x2xf32> to vector<27x28x2xf32>
    %cst_20 = arith.constant 0.000000e+00 : f32
    %59 = vector.broadcast %cst_20 : f32 to vector<1x28x2xf32>
    %60 = tpu.concatenate %58, %59 in 0 : vector<27x28x2xf32>, vector<1x28x2xf32> -> vector<28x28x2xf32>
    %61 = vector.broadcast %57 : f32 to vector<28x28x2xf32>
    %62 = arith.mulf %60, %61 : vector<28x28x2xf32>
    %63 = arith.addf %56, %62 : vector<28x28x2xf32>
    %c0_21 = arith.constant 0 : index
    %c8 = arith.constant 8 : index
    %64 = memref.load %arg2[%c0_21, %c8] : memref<2x9xf32, #tpu.memory_space<smem>>
    %65 = vector.extract_strided_slice %0 {offsets = [1, 0, 0], sizes = [27, 28, 2], strides = [1, 1, 1]} : vector<28x28x2xf32> to vector<27x28x2xf32>
    %cst_22 = arith.constant 0.000000e+00 : f32
    %66 = vector.broadcast %cst_22 : f32 to vector<1x28x2xf32>
    %67 = tpu.concatenate %65, %66 in 0 : vector<27x28x2xf32>, vector<1x28x2xf32> -> vector<28x28x2xf32>
    %68 = vector.extract_strided_slice %67 {offsets = [0, 1, 0], sizes = [28, 27, 2], strides = [1, 1, 1]} : vector<28x28x2xf32> to vector<28x27x2xf32>
    %cst_23 = arith.constant 0.000000e+00 : f32
    %69 = vector.broadcast %cst_23 : f32 to vector<28x1x2xf32>
    %70 = tpu.concatenate %68, %69 in 1 : vector<28x27x2xf32>, vector<28x1x2xf32> -> vector<28x28x2xf32>
    %71 = vector.broadcast %64 : f32 to vector<28x28x2xf32>
    %72 = arith.mulf %70, %71 : vector<28x28x2xf32>
    %73 = arith.addf %63, %72 : vector<28x28x2xf32>
    %c0_24 = arith.constant 0 : index
    %74 = memref.load %arg3[%c0_24] : memref<2xf32, #tpu.memory_space<smem>>
    %75 = vector.broadcast %74 : f32 to vector<28x28x2xf32>
    %76 = arith.addf %73, %75 : vector<28x28x2xf32>
    %cst_25 = arith.constant 0.000000e+00 : f32
    %77 = vector.broadcast %cst_25 : f32 to vector<28x28x2xf32>
    %78 = arith.maximumf %76, %77 : vector<28x28x2xf32>
    %79 = vector.extract_strided_slice %78 {offsets = [0, 1, 0], sizes = [28, 27, 2], strides = [1, 1, 1]} : vector<28x28x2xf32> to vector<28x27x2xf32>
    %cst_26 = arith.constant 0.000000e+00 : f32
    %80 = vector.broadcast %cst_26 : f32 to vector<28x1x2xf32>
    %81 = tpu.concatenate %79, %80 in 1 : vector<28x27x2xf32>, vector<28x1x2xf32> -> vector<28x28x2xf32>
    %82 = arith.maximumf %78, %81 : vector<28x28x2xf32>
    %83 = vector.extract_strided_slice %82 {offsets = [1, 0, 0], sizes = [27, 28, 2], strides = [1, 1, 1]} : vector<28x28x2xf32> to vector<27x28x2xf32>
    %cst_27 = arith.constant 0.000000e+00 : f32
    %84 = vector.broadcast %cst_27 : f32 to vector<1x28x2xf32>
    %85 = tpu.concatenate %83, %84 in 0 : vector<27x28x2xf32>, vector<1x28x2xf32> -> vector<28x28x2xf32>
    %86 = arith.maximumf %82, %85 : vector<28x28x2xf32>
    %cst_28 = arith.constant 0.000000e+00 : f32
    %87 = vector.broadcast %cst_28 : f32 to vector<28x28x2xf32>
    %c1_29 = arith.constant 1 : index
    %c0_30 = arith.constant 0 : index
    %88 = memref.load %arg2[%c1_29, %c0_30] : memref<2x9xf32, #tpu.memory_space<smem>>
    %cst_31 = arith.constant 0.000000e+00 : f32
    %89 = vector.broadcast %cst_31 : f32 to vector<2x28x2xf32>
    %90 = vector.extract_strided_slice %86 {offsets = [0, 0, 0], sizes = [26, 28, 2], strides = [1, 1, 1]} : vector<28x28x2xf32> to vector<26x28x2xf32>
    %91 = tpu.concatenate %89, %90 in 0 : vector<2x28x2xf32>, vector<26x28x2xf32> -> vector<28x28x2xf32>
    %cst_32 = arith.constant 0.000000e+00 : f32
    %92 = vector.broadcast %cst_32 : f32 to vector<28x2x2xf32>
    %93 = vector.extract_strided_slice %91 {offsets = [0, 0, 0], sizes = [28, 26, 2], strides = [1, 1, 1]} : vector<28x28x2xf32> to vector<28x26x2xf32>
    %94 = tpu.concatenate %92, %93 in 1 : vector<28x2x2xf32>, vector<28x26x2xf32> -> vector<28x28x2xf32>
    %95 = vector.broadcast %88 : f32 to vector<28x28x2xf32>
    %96 = arith.mulf %94, %95 : vector<28x28x2xf32>
    %97 = arith.addf %87, %96 : vector<28x28x2xf32>
    %c1_33 = arith.constant 1 : index
    %c1_34 = arith.constant 1 : index
    %98 = memref.load %arg2[%c1_33, %c1_34] : memref<2x9xf32, #tpu.memory_space<smem>>
    %cst_35 = arith.constant 0.000000e+00 : f32
    %99 = vector.broadcast %cst_35 : f32 to vector<2x28x2xf32>
    %100 = vector.extract_strided_slice %86 {offsets = [0, 0, 0], sizes = [26, 28, 2], strides = [1, 1, 1]} : vector<28x28x2xf32> to vector<26x28x2xf32>
    %101 = tpu.concatenate %99, %100 in 0 : vector<2x28x2xf32>, vector<26x28x2xf32> -> vector<28x28x2xf32>
    %102 = vector.broadcast %98 : f32 to vector<28x28x2xf32>
    %103 = arith.mulf %101, %102 : vector<28x28x2xf32>
    %104 = arith.addf %97, %103 : vector<28x28x2xf32>
    %c1_36 = arith.constant 1 : index
    %c2_37 = arith.constant 2 : index
    %105 = memref.load %arg2[%c1_36, %c2_37] : memref<2x9xf32, #tpu.memory_space<smem>>
    %cst_38 = arith.constant 0.000000e+00 : f32
    %106 = vector.broadcast %cst_38 : f32 to vector<2x28x2xf32>
    %107 = vector.extract_strided_slice %86 {offsets = [0, 0, 0], sizes = [26, 28, 2], strides = [1, 1, 1]} : vector<28x28x2xf32> to vector<26x28x2xf32>
    %108 = tpu.concatenate %106, %107 in 0 : vector<2x28x2xf32>, vector<26x28x2xf32> -> vector<28x28x2xf32>
    %109 = vector.extract_strided_slice %108 {offsets = [0, 2, 0], sizes = [28, 26, 2], strides = [1, 1, 1]} : vector<28x28x2xf32> to vector<28x26x2xf32>
    %cst_39 = arith.constant 0.000000e+00 : f32
    %110 = vector.broadcast %cst_39 : f32 to vector<28x2x2xf32>
    %111 = tpu.concatenate %109, %110 in 1 : vector<28x26x2xf32>, vector<28x2x2xf32> -> vector<28x28x2xf32>
    %112 = vector.broadcast %105 : f32 to vector<28x28x2xf32>
    %113 = arith.mulf %111, %112 : vector<28x28x2xf32>
    %114 = arith.addf %104, %113 : vector<28x28x2xf32>
    %c1_40 = arith.constant 1 : index
    %c3_41 = arith.constant 3 : index
    %115 = memref.load %arg2[%c1_40, %c3_41] : memref<2x9xf32, #tpu.memory_space<smem>>
    %cst_42 = arith.constant 0.000000e+00 : f32
    %116 = vector.broadcast %cst_42 : f32 to vector<28x2x2xf32>
    %117 = vector.extract_strided_slice %86 {offsets = [0, 0, 0], sizes = [28, 26, 2], strides = [1, 1, 1]} : vector<28x28x2xf32> to vector<28x26x2xf32>
    %118 = tpu.concatenate %116, %117 in 1 : vector<28x2x2xf32>, vector<28x26x2xf32> -> vector<28x28x2xf32>
    %119 = vector.broadcast %115 : f32 to vector<28x28x2xf32>
    %120 = arith.mulf %118, %119 : vector<28x28x2xf32>
    %121 = arith.addf %114, %120 : vector<28x28x2xf32>
    %c1_43 = arith.constant 1 : index
    %c4_44 = arith.constant 4 : index
    %122 = memref.load %arg2[%c1_43, %c4_44] : memref<2x9xf32, #tpu.memory_space<smem>>
    %123 = vector.broadcast %122 : f32 to vector<28x28x2xf32>
    %124 = arith.mulf %86, %123 : vector<28x28x2xf32>
    %125 = arith.addf %121, %124 : vector<28x28x2xf32>
    %c1_45 = arith.constant 1 : index
    %c5_46 = arith.constant 5 : index
    %126 = memref.load %arg2[%c1_45, %c5_46] : memref<2x9xf32, #tpu.memory_space<smem>>
    %127 = vector.extract_strided_slice %86 {offsets = [0, 2, 0], sizes = [28, 26, 2], strides = [1, 1, 1]} : vector<28x28x2xf32> to vector<28x26x2xf32>
    %cst_47 = arith.constant 0.000000e+00 : f32
    %128 = vector.broadcast %cst_47 : f32 to vector<28x2x2xf32>
    %129 = tpu.concatenate %127, %128 in 1 : vector<28x26x2xf32>, vector<28x2x2xf32> -> vector<28x28x2xf32>
    %130 = vector.broadcast %126 : f32 to vector<28x28x2xf32>
    %131 = arith.mulf %129, %130 : vector<28x28x2xf32>
    %132 = arith.addf %125, %131 : vector<28x28x2xf32>
    %c1_48 = arith.constant 1 : index
    %c6_49 = arith.constant 6 : index
    %133 = memref.load %arg2[%c1_48, %c6_49] : memref<2x9xf32, #tpu.memory_space<smem>>
    %134 = vector.extract_strided_slice %86 {offsets = [2, 0, 0], sizes = [26, 28, 2], strides = [1, 1, 1]} : vector<28x28x2xf32> to vector<26x28x2xf32>
    %cst_50 = arith.constant 0.000000e+00 : f32
    %135 = vector.broadcast %cst_50 : f32 to vector<2x28x2xf32>
    %136 = tpu.concatenate %134, %135 in 0 : vector<26x28x2xf32>, vector<2x28x2xf32> -> vector<28x28x2xf32>
    %cst_51 = arith.constant 0.000000e+00 : f32
    %137 = vector.broadcast %cst_51 : f32 to vector<28x2x2xf32>
    %138 = vector.extract_strided_slice %136 {offsets = [0, 0, 0], sizes = [28, 26, 2], strides = [1, 1, 1]} : vector<28x28x2xf32> to vector<28x26x2xf32>
    %139 = tpu.concatenate %137, %138 in 1 : vector<28x2x2xf32>, vector<28x26x2xf32> -> vector<28x28x2xf32>
    %140 = vector.broadcast %133 : f32 to vector<28x28x2xf32>
    %141 = arith.mulf %139, %140 : vector<28x28x2xf32>
    %142 = arith.addf %132, %141 : vector<28x28x2xf32>
    %c1_52 = arith.constant 1 : index
    %c7_53 = arith.constant 7 : index
    %143 = memref.load %arg2[%c1_52, %c7_53] : memref<2x9xf32, #tpu.memory_space<smem>>
    %144 = vector.extract_strided_slice %86 {offsets = [2, 0, 0], sizes = [26, 28, 2], strides = [1, 1, 1]} : vector<28x28x2xf32> to vector<26x28x2xf32>
    %cst_54 = arith.constant 0.000000e+00 : f32
    %145 = vector.broadcast %cst_54 : f32 to vector<2x28x2xf32>
    %146 = tpu.concatenate %144, %145 in 0 : vector<26x28x2xf32>, vector<2x28x2xf32> -> vector<28x28x2xf32>
    %147 = vector.broadcast %143 : f32 to vector<28x28x2xf32>
    %148 = arith.mulf %146, %147 : vector<28x28x2xf32>
    %149 = arith.addf %142, %148 : vector<28x28x2xf32>
    %c1_55 = arith.constant 1 : index
    %c8_56 = arith.constant 8 : index
    %150 = memref.load %arg2[%c1_55, %c8_56] : memref<2x9xf32, #tpu.memory_space<smem>>
    %151 = vector.extract_strided_slice %86 {offsets = [2, 0, 0], sizes = [26, 28, 2], strides = [1, 1, 1]} : vector<28x28x2xf32> to vector<26x28x2xf32>
    %cst_57 = arith.constant 0.000000e+00 : f32
    %152 = vector.broadcast %cst_57 : f32 to vector<2x28x2xf32>
    %153 = tpu.concatenate %151, %152 in 0 : vector<26x28x2xf32>, vector<2x28x2xf32> -> vector<28x28x2xf32>
    %154 = vector.extract_strided_slice %153 {offsets = [0, 2, 0], sizes = [28, 26, 2], strides = [1, 1, 1]} : vector<28x28x2xf32> to vector<28x26x2xf32>
    %cst_58 = arith.constant 0.000000e+00 : f32
    %155 = vector.broadcast %cst_58 : f32 to vector<28x2x2xf32>
    %156 = tpu.concatenate %154, %155 in 1 : vector<28x26x2xf32>, vector<28x2x2xf32> -> vector<28x28x2xf32>
    %157 = vector.broadcast %150 : f32 to vector<28x28x2xf32>
    %158 = arith.mulf %156, %157 : vector<28x28x2xf32>
    %159 = arith.addf %149, %158 : vector<28x28x2xf32>
    %c1_59 = arith.constant 1 : index
    %160 = memref.load %arg3[%c1_59] : memref<2xf32, #tpu.memory_space<smem>>
    %161 = vector.broadcast %160 : f32 to vector<28x28x2xf32>
    %162 = arith.addf %159, %161 : vector<28x28x2xf32>
    %cst_60 = arith.constant 0.000000e+00 : f32
    %163 = vector.broadcast %cst_60 : f32 to vector<28x28x2xf32>
    %164 = arith.maximumf %162, %163 : vector<28x28x2xf32>
    %165 = vector.extract_strided_slice %164 {offsets = [0, 2, 0], sizes = [28, 26, 2], strides = [1, 1, 1]} : vector<28x28x2xf32> to vector<28x26x2xf32>
    %cst_61 = arith.constant 0.000000e+00 : f32
    %166 = vector.broadcast %cst_61 : f32 to vector<28x2x2xf32>
    %167 = tpu.concatenate %165, %166 in 1 : vector<28x26x2xf32>, vector<28x2x2xf32> -> vector<28x28x2xf32>
    %168 = arith.maximumf %164, %167 : vector<28x28x2xf32>
    %169 = vector.extract_strided_slice %168 {offsets = [2, 0, 0], sizes = [26, 28, 2], strides = [1, 1, 1]} : vector<28x28x2xf32> to vector<26x28x2xf32>
    %cst_62 = arith.constant 0.000000e+00 : f32
    %170 = vector.broadcast %cst_62 : f32 to vector<2x28x2xf32>
    %171 = tpu.concatenate %169, %170 in 0 : vector<26x28x2xf32>, vector<2x28x2xf32> -> vector<28x28x2xf32>
    %172 = arith.maximumf %168, %171 : vector<28x28x2xf32>
    %173 = vector.extract_strided_slice %172 {offsets = [0, 0, 0], sizes = [1, 28, 2], strides = [1, 1, 1]} : vector<28x28x2xf32> to vector<1x28x2xf32>
    %174 = vector.shape_cast %173 : vector<1x28x2xf32> to vector<28x2xf32>
    %175 = vector.extract_strided_slice %172 {offsets = [4, 0, 0], sizes = [1, 28, 2], strides = [1, 1, 1]} : vector<28x28x2xf32> to vector<1x28x2xf32>
    %176 = vector.shape_cast %175 : vector<1x28x2xf32> to vector<28x2xf32>
    %177 = vector.extract_strided_slice %172 {offsets = [8, 0, 0], sizes = [1, 28, 2], strides = [1, 1, 1]} : vector<28x28x2xf32> to vector<1x28x2xf32>
    %178 = vector.shape_cast %177 : vector<1x28x2xf32> to vector<28x2xf32>
    %179 = vector.extract_strided_slice %172 {offsets = [12, 0, 0], sizes = [1, 28, 2], strides = [1, 1, 1]} : vector<28x28x2xf32> to vector<1x28x2xf32>
    %180 = vector.shape_cast %179 : vector<1x28x2xf32> to vector<28x2xf32>
    %181 = vector.extract_strided_slice %172 {offsets = [16, 0, 0], sizes = [1, 28, 2], strides = [1, 1, 1]} : vector<28x28x2xf32> to vector<1x28x2xf32>
    %182 = vector.shape_cast %181 : vector<1x28x2xf32> to vector<28x2xf32>
    %183 = vector.extract_strided_slice %172 {offsets = [20, 0, 0], sizes = [1, 28, 2], strides = [1, 1, 1]} : vector<28x28x2xf32> to vector<1x28x2xf32>
    %184 = vector.shape_cast %183 : vector<1x28x2xf32> to vector<28x2xf32>
    %185 = vector.extract_strided_slice %172 {offsets = [24, 0, 0], sizes = [1, 28, 2], strides = [1, 1, 1]} : vector<28x28x2xf32> to vector<1x28x2xf32>
    %186 = vector.shape_cast %185 : vector<1x28x2xf32> to vector<28x2xf32>
    %187 = tpu.concatenate %174, %176, %178, %180, %182, %184, %186 in 0 : vector<28x2xf32>, vector<28x2xf32>, vector<28x2xf32>, vector<28x2xf32>, vector<28x2xf32>, vector<28x2xf32>, vector<28x2xf32> -> vector<196x2xf32>
    %c0_63 = arith.constant 0 : index
    %c0_64 = arith.constant 0 : index
    %188 = vector.load %arg4[%c0_63, %c0_64] : memref<128x196xf32, #tpu.memory_space<vmem>>, vector<128x196xf32>
    %cst_65 = arith.constant dense<0.000000e+00> : vector<128x2xf32>
    %189 = tpu.matmul %188, %187, %cst_65 {dimension_numbers = #tpu.dot_dimension_numbers<[1], [0], [0], [1], [0, 0, 1, 1], [], []>} : vector<128x196xf32>, vector<196x2xf32>, vector<128x2xf32> -> vector<128x2xf32>
    %c0_66 = arith.constant 0 : index
    %c0_67 = arith.constant 0 : index
    %190 = vector.load %arg5[%c0_66, %c0_67] : memref<128x1xf32, #tpu.memory_space<vmem>>, vector<128x1xf32>
    %191 = vector.broadcast %190 : vector<128x1xf32> to vector<128x2xf32>
    %192 = arith.addf %189, %191 : vector<128x2xf32>
    %cst_68 = arith.constant 0.000000e+00 : f32
    %193 = vector.broadcast %cst_68 : f32 to vector<128x2xf32>
    %194 = arith.maximumf %192, %193 : vector<128x2xf32>
    %c0_69 = arith.constant 0 : index
    %c0_70 = arith.constant 0 : index
    %195 = vector.load %arg6[%c0_69, %c0_70] : memref<10x128xf32, #tpu.memory_space<vmem>>, vector<10x128xf32>
    %cst_71 = arith.constant dense<0.000000e+00> : vector<10x2xf32>
    %196 = tpu.matmul %195, %194, %cst_71 {dimension_numbers = #tpu.dot_dimension_numbers<[1], [0], [0], [1], [0, 0, 1, 1], [], []>} : vector<10x128xf32>, vector<128x2xf32>, vector<10x2xf32> -> vector<10x2xf32>
    %c0_72 = arith.constant 0 : index
    %c0_73 = arith.constant 0 : index
    %197 = vector.load %arg7[%c0_72, %c0_73] : memref<10x1xf32, #tpu.memory_space<vmem>>, vector<10x1xf32>
    %198 = vector.broadcast %197 : vector<10x1xf32> to vector<10x2xf32>
    %199 = arith.addf %196, %198 : vector<10x2xf32>
    %c0_74 = arith.constant 0 : index
    %c0_75 = arith.constant 0 : index
    %200 = vector.load %arg8[%c0_74, %c0_75] : memref<10x2xf32, #tpu.memory_space<vmem>>, vector<10x2xf32>
    tpu.vector_store %arg8[%c0_74, %c0_75], %199 {strides = array<i32>} : memref<10x2xf32, #tpu.memory_space<vmem>>, vector<10x2xf32>,
    return
  }
  func.func @transform_0(%arg0: i32) -> (i32, i32, i32) {
    %c0_i32 = arith.constant 0 : i32
    %c0_i32_0 = arith.constant 0 : i32
    %c0_i32_1 = arith.constant 0 : i32
    return %c0_i32, %c0_i32_0, %arg0 : i32, i32, i32
  }
  func.func @transform_1(%arg0: i32) -> (i32, i32) {
    %c0_i32 = arith.constant 0 : i32
    %c0_i32_0 = arith.constant 0 : i32
    %c0_i32_1 = arith.constant 0 : i32
    return %c0_i32, %c0_i32_0 : i32, i32
  }
  func.func @transform_2(%arg0: i32) -> i32 {
    %c0_i32 = arith.constant 0 : i32
    %c0_i32_0 = arith.constant 0 : i32
    return %c0_i32 : i32
  }
  func.func @transform_3(%arg0: i32) -> (i32, i32) {
    %c0_i32 = arith.constant 0 : i32
    %c0_i32_0 = arith.constant 0 : i32
    %c0_i32_1 = arith.constant 0 : i32
    return %c0_i32, %c0_i32_0 : i32, i32
  }
  func.func @transform_4(%arg0: i32) -> (i32, i32) {
    %c0_i32 = arith.constant 0 : i32
    %c0_i32_0 = arith.constant 0 : i32
    %c0_i32_1 = arith.constant 0 : i32
    return %c0_i32, %c0_i32_0 : i32, i32
  }
  func.func @transform_5(%arg0: i32) -> (i32, i32) {
    %c0_i32 = arith.constant 0 : i32
    %c0_i32_0 = arith.constant 0 : i32
    %c0_i32_1 = arith.constant 0 : i32
    return %c0_i32, %c0_i32_0 : i32, i32
  }
  func.func @transform_6(%arg0: i32) -> (i32, i32) {
    %c0_i32 = arith.constant 0 : i32
    %c0_i32_0 = arith.constant 0 : i32
    %c0_i32_1 = arith.constant 0 : i32
    return %c0_i32, %c0_i32_0 : i32, i32
  }
  func.func @transform_7(%arg0: i32) -> (i32, i32) {
    %c0_i32 = arith.constant 0 : i32
    %c0_i32_0 = arith.constant 0 : i32
    return %c0_i32, %arg0 : i32, i32
  }
}

</mosaic_0001>

<bundles_post_ra>
// kernel: cnn_forward.1
= control target key start
LH: loop header
LB: loop body
LE: loop exit
PB: predicated region body
PF: predicated region fallthrough
CT: control target
= control target key end

     0   :  { %12 = vsyncpa [#allocation3], 0  ;;  %s14510_s0 = inlined_call_operand.vmem [shape: f32[28,28,2], index: 0, kind: input, shape index: {}]   ;;  %s14511_s1 = inlined_call_operand.vmem [shape: f32[2,9], index: 1, kind: input, shape index: {}]   ;;  %s14512_s2 = inlined_call_operand.vmem [shape: f32[2], index: 2, kind: input, shape index: {}]   ;;  %s14513_s3 = inlined_call_operand.vmem [shape: f32[128,196], index: 3, kind: input, shape index: {}]   ;;  %s14514_s4 = inlined_call_operand.vmem [shape: f32[128,1], index: 4, kind: input, shape index: {}]   ;;  %s14515_s5 = inlined_call_operand.vmem [shape: f32[10,128], index: 5, kind: input, shape index: {}]   ;;  %s14516_s6 = inlined_call_operand.vmem [shape: f32[10,1], index: 6, kind: input, shape index: {}]   ;;  %s14517_s7 = inlined_call_operand.vmem [shape: f32[10,2], index: 7, kind: output, shape index: {}]  }
   0x1   :  { %s22_s26 = sshll.u32 %s14511_s1, 4  ;;  %s23_s26 = int_to_ptr.vmem [resolvable:$true] %s22_s26 }
   0x2   :  { %13 = vsyncpa [#allocation5], 0  ;;  %s32_s29 = sshll.u32 %s14512_s2, 4  ;;  %s6373_s30 = scalar_lea.vmem %s23_s26, 32  ;;  %s33_s29 = int_to_ptr.vmem [resolvable:$true] %s32_s29 }
   0x3   :  { %p6374_p0 = scmp.ne.s32.totalorder %s23_s26, %s6373_s30  ;;  %p6378_p1 = scmp.lt.s32.totalorder %s23_s26, %s23_s26 }
   0x4   :  { %p6379_p2 = scmp.lt.s32.totalorder %s6373_s30, %s6373_s30 }
   0x6   :  { %p6380_p3 = por %p6379_p2, %p6378_p1 }
   0x8   :  { %p6381_p4 = pnand %p6380_p3, %p6374_p0 }
   0xa   :  { %6384 = shalt.err (!%p6381_p4)
}
   0xb   :  { %s6401_s8 = smov [#allocation2]   ;;  %s6385_s9 = scalar_lea.vmem %s33_s29, 16 }
   0xc   :  { %25 = dma.vmem_to_smem %s23_s26, 32, %s6401_s8, [#allocation3]  }
   0xd   :  { %p6386_p5 = scmp.ne.s32.totalorder %s33_s29, %s6385_s9  ;;  %p6390_p6 = scmp.lt.s32.totalorder %s33_s29, %s33_s29 }
   0xe   :  { %p6391_p7 = scmp.lt.s32.totalorder %s6385_s9, %s6385_s9 }
  0x10   :  { %p6392_p8 = por %p6391_p7, %p6390_p6 }
  0x12   :  { %p6393_p9 = pnand %p6392_p8, %p6386_p5 }
  0x14   :  { %6396 = shalt.err (!%p6393_p9)
}
  0x15   :  { %s6402_s1 = smov [#allocation4]  }
  0x16   :  { %35 = dma.vmem_to_smem %s33_s29, 16, %s6402_s1, [#allocation5]  }
  0x17   :  { %6397 = dma.done.wait [#allocation3], 32  }
  0x18   :  { %6398 = vsyncadd [#allocation3], 4294967264 }
  0x19   :  { %6399 = dma.done.wait [#allocation5], 16  }
  0x1a   :  { %6400 = vsyncadd [#allocation5], 4294967280 }
  0x1b   :  { %50 = sfence }
  0x1c   :  { %v6455_v0 = vld [vmem:[%s14510_s0] sm:$0xff]  ;;  %v6460_v1 = vld [vmem:[%s14510_s0 + $0x8] sm:$0xff]  ;;  %v6465_v2 = vld [vmem:[%s14510_s0 + $0x10] sm:$0xff]  ;;  %v14518_v3 = vmov 0.0|0.0   ;;  %s6493_s25 = sld [smem:[#allocation2]]  ;;  %vm273_vm0 = vcmask 1040384  }
  0x1d   :  { %15395 = vst [vmem:[#allocation8_spill] sm:$0xff] %v6455_v0  ;;  %15396 = vst [vmem:[#allocation9_spill] sm:$0xff] %v6460_v1  ;;  %6228 = vmatprep.subr.bf16.mxu0 %v14518_v3  ;;  %v6471_v4 = vld [vmem:[%s14510_s0 + $0x18] sm:$0xf]  ;;  %v6476_v5 = vld [vmem:[%s14510_s0 + $0x20] sm:$0xff]  ;;  %v14525_v11 = vrot.slane %v6455_v0, 7 }
  0x1e   :  { %15397 = vst [vmem:[#allocation10_spill] sm:$0xff] %v6465_v2  ;;  %15398 = vst [vmem:[#allocation11_spill] sm:$0xff] %v6471_v4  ;;  %v6481_v6 = vld [vmem:[%s14510_s0 + $0x28] sm:$0xff]  ;;  %v6486_v7 = vld [vmem:[%s14510_s0 + $0x30] sm:$0xff]  ;;  %v277_v12 = vrot.slane %v6460_v1, 7  ;;  %v279_v13 = vrot.slane %v6465_v2, 7 }
  0x1f   :  { %15399 = vst [vmem:[#allocation12_spill] sm:$0xff] %v6476_v5  ;;  %15400 = vst [vmem:[#allocation13_spill] sm:$0xff] %v6481_v6  ;;  %v6491_v8 = vld [vmem:[%s14510_s0 + $0x38] sm:$0xf]  ;;  %v6498_v9 = vld [vmem:[%s14510_s0 + $0x40] sm:$0xff]  ;;  %v14520_v16 = vmov 0.0  }
  0x20   :  { %15401 = vst [vmem:[#allocation14_spill] sm:$0xff] %v6486_v7  ;;  %15402 = vst [vmem:[#allocation15_spill] sm:$0xff] %v6491_v8  ;;  %v6503_v10 = vld [vmem:[%s14510_s0 + $0x48] sm:$0xff]  ;;  %v6511_v14 = vld [vmem:[%s14510_s0 + $0x50] sm:$0xff]  ;;  %v6519_v17 = vrot.slane %v14520_v16, 7  ;;  %v281_v18 = vrot.slane %v6471_v4, 7  ;;  %v6561_v31 = vsel %vm273_vm0, %v14525_v11, %v277_v12  ;;  %v6564_v32 = vsel %vm273_vm0, %v277_v12, %v279_v13 }
  0x21   :  { %15403 = vst [vmem:[#allocation16_spill] sm:$0xff] %v6498_v9  ;;  %15404 = vst [vmem:[#allocation17_spill] sm:$0xff] %v6503_v10  ;;  %v6516_v15 = vld [vmem:[%s14510_s0 + $0x58] sm:$0xf]  ;;  %v6525_v19 = vld [vmem:[%s14510_s0 + $0x60] sm:$0xff]  ;;  %v14524_v22 = vrot.slane %v6476_v5, 7 }
  0x22   :  { %15405 = vst [vmem:[#allocation18_spill] sm:$0xff] %v6511_v14  ;;  %15406 = vst [vmem:[#allocation19_spill] sm:$0xff] %v6516_v15  ;;  %v6530_v20 = vld [vmem:[%s14510_s0 + $0x68] sm:$0xff]  ;;  %v6535_v21 = vld [vmem:[%s14510_s0 + $0x70] sm:$0xff]  ;;  %v284_v23 = vrot.slane %v6481_v6, 7  ;;  %v286_v24 = vrot.slane %v6486_v7, 7  ;;  %v6579_v37 = vsel %vm273_vm0, %v279_v13, %v281_v18 }
  0x23   :  { %15407 = vst [vmem:[#allocation20_spill] sm:$0xff] %v6519_v17  ;;  %15408 = vst [vmem:[#allocation21_spill] sm:$0xff] %v6525_v19  ;;  %v6543_v25 = vld [vmem:[%s14510_s0 + $0x78] sm:$0xf]  ;;  %v6548_v26 = vld [vmem:[%s14510_s0 + $0x80] sm:$0xff]  ;;  %v288_v27 = vrot.slane %v6491_v8, 7 }
  0x24   :  { %15409 = vst [vmem:[#allocation22_spill] sm:$0xff] %v6530_v20  ;;  %15410 = vst [vmem:[#allocation23_spill] sm:$0xff] %v6535_v21  ;;  %v14523_v28 = vrot.slane %v6498_v9, 7  ;;  %v291_v29 = vrot.slane %v6503_v10, 7  ;;  %v6556_v30 = vld [vmem:[%s14510_s0 + $0x88] sm:$0xff]  ;;  %v293_v33 = vrot.slane %v6511_v14, 7  ;;  %v6602_v44 = vsel %vm273_vm0, %v14524_v22, %v284_v23 }
  0x25   :  { %15411 = vst [vmem:[#allocation24_spill] sm:$0xff] %v6543_v25  ;;  %15412 = vst [vmem:[#allocation25_spill] sm:$0xff] %v6548_v26  ;;  %v295_v34 = vrot.slane %v6516_v15, 7  ;;  %v6571_v35 = vld [vmem:[%s14510_s0 + $0x90] sm:$0xff]  ;;  %v6576_v36 = vld [vmem:[%s14510_s0 + $0x98] sm:$0xf]  ;;  %v6605_v45 = vsel %vm273_vm0, %v284_v23, %v286_v24  ;;  %v6620_v50 = vsel %vm273_vm0, %v286_v24, %v288_v27 }
  0x26   :  { %15413 = vst [vmem:[#allocation26_spill] sm:$0xff] %v6556_v30  ;;  %15414 = vst [vmem:[#allocation27_spill] sm:$0xff] %v6561_v31  ;;  %v14522_v38 = vrot.slane %v6525_v19, 7  ;;  %v298_v39 = vrot.slane %v6530_v20, 7  ;;  %v300_v40 = vrot.slane %v6535_v21, 7  ;;  %v6587_v41 = vld [vmem:[%s14510_s0 + $0xa0] sm:$0xff]  ;;  %v6625_v51 = vsel %vm273_vm0, %v14523_v28, %v291_v29 }
  0x27   :  { %15415 = vst [vmem:[#allocation28_spill] sm:$0xff] %v6564_v32  ;;  %15416 = vst [vmem:[#allocation29_spill] sm:$0xff] %v6571_v35  ;;  %v6592_v42 = vld [vmem:[%s14510_s0 + $0xa8] sm:$0xff]  ;;  %v6597_v43 = vld [vmem:[%s14510_s0 + $0xb0] sm:$0xff]  ;;  %v302_v46 = vrot.slane %v6543_v25, 7  ;;  %v304_v47 = vrot.slane %v6548_v26, 7  ;;  %v6628_v52 = vsel %vm273_vm0, %v291_v29, %v293_v33  ;;  %v6647_v57 = vsel %vm273_vm0, %v293_v33, %v295_v34 }
  0x28   :  { %15417 = vst [vmem:[#allocation30_spill] sm:$0xff] %v6576_v36  ;;  %15418 = vst [vmem:[#allocation31_spill] sm:$0xff] %v6579_v37  ;;  %v6612_v48 = vld [vmem:[%s14510_s0 + $0xb8] sm:$0xf]  ;;  %v6617_v49 = vld [vmem:[%s14510_s0 + $0xc0] sm:$0xff]  ;;  %v305_v53 = vrot.slane %v6556_v30, 7  ;;  %v6652_v58 = vsel %vm273_vm0, %v14522_v38, %v298_v39  ;;  %v6667_v63 = vsel %vm273_vm0, %v298_v39, %v300_v40  ;;  %v6695_v39 = vstv %s6493_s25 }
  0x29   :  { %15419 = vst [vmem:[#allocation32_spill] sm:$0xff] %v6587_v41  ;;  %15420 = vst [vmem:[#allocation33_spill] sm:$0xff] %v6592_v42  ;;  %v6634_v54 = vld [vmem:[%s14510_s0 + $0xc8] sm:$0xff]  ;;  %v6639_v55 = vld [vmem:[%s14510_s0 + $0xd0] sm:$0xff]  ;;  %v307_v59 = vrot.slane %v6571_v35, 7  ;;  %v309_v60 = vrot.slane %v6576_v36, 7  ;;  %v6688_v29 = vsel %vm273_vm0, %v300_v40, %v302_v46 }
  0x2a   :  { %15421 = vst [vmem:[#allocation34_spill] sm:$0xff] %v6597_v43  ;;  %15422 = vst [vmem:[#allocation35_spill] sm:$0xff] %v6602_v44  ;;  %v6644_v56 = vld [vmem:[%s14510_s0 + $0xd8] sm:$0xf]  ;;  %v6659_v61 = vld [vmem:[%s14510_s0 + $0xe0] sm:$0xff]  ;;  %v311_v12 = vrot.slane %v6587_v41, 7  ;;  %v6691_v33 = vsel %vm273_vm0, %v304_v47, %v305_v53 }
  0x2b   :  { %15423 = vst [vmem:[#allocation36_spill] sm:$0xff] %v6605_v45  ;;  %15424 = vst [vmem:[#allocation37_spill] sm:$0xff] %v6612_v48  ;;  %v6664_v62 = vld [vmem:[%s14510_s0 + $0xe8] sm:$0xff]  ;;  %v312_v13 = vrot.slane %v6592_v42, 7  ;;  %v314_v18 = vrot.slane %v6597_v43, 7  ;;  %v6675_v23 = vld [vmem:[%s14510_s0 + $0xf0] sm:$0xff]  ;;  %v6717_v11 = vsel %vm273_vm0, %v305_v53, %v307_v59 }
  0x2c   :  { %15425 = vst [vmem:[#allocation38_spill] sm:$0xff] %v6617_v49  ;;  %15426 = vst [vmem:[#allocation39_spill] sm:$0xff] %v6620_v50  ;;  %v6680_v24 = vld [vmem:[%s14510_s0 + $0xf8] sm:$0xf]  ;;  %v6685_v27 = vld [vmem:[%s14510_s0 + $0x100] sm:$0xff]  ;;  %v316_v34 = vrot.slane %v6612_v48, 7  ;;  %v6720_v48 = vsel %vm273_vm0, %v307_v59, %v309_v60 }
  0x2d   :  { %15427 = vst [vmem:[#allocation40_spill] sm:$0xff] %v6625_v51  ;;  %15428 = vst [vmem:[#allocation41_spill] sm:$0xff] %v6628_v52  ;;  %v6700_v3 = vld [vmem:[%s14510_s0 + $0x108] sm:$0xff]  ;;  %v6705_v16 = vld [vmem:[%s14510_s0 + $0x110] sm:$0xff]  ;;  %v318_v40 = vrot.slane %v6617_v49, 7  ;;  %v319_v46 = vrot.slane %v6634_v54, 7 }
  0x2e   :  { %15429 = vst [vmem:[#allocation42_spill] sm:$0xff] %v6634_v54  ;;  %15430 = vst [vmem:[#allocation43_spill] sm:$0xff] %v6639_v55  ;;  %v321_v38 = vrot.slane %v6639_v55, 7  ;;  %v323_v28 = vrot.slane %v6644_v56, 7  ;;  %v6714_v22 = vld [vmem:[%s14510_s0 + $0x118] sm:$0xf]  ;;  %v6725_v54 = vsel %vm273_vm0, %v311_v12, %v312_v13  ;;  %v6733_v53 = vsel %vm273_vm0, %v314_v18, %v316_v34 }
  0x2f   :  { %15431 = vst [vmem:[#allocation44_spill] sm:$0xff] %v6644_v56  ;;  %15432 = vst [vmem:[#allocation45_spill] sm:$0xff] %v6647_v57  ;;  %v325_v43 = vrot.slane %v6659_v61, 7  ;;  %v326_v49 = vrot.slane %v6664_v62, 7  ;;  %v6728_v56 = vsel %vm273_vm0, %v312_v13, %v314_v18  ;;  %v328_v55 = vrot.slane %v6675_v23, 7  ;;  %s6821_s1 = sld [smem:[#allocation2 + $0x1]] }
  0x30   :  { %15433 = vst [vmem:[#allocation46_spill] sm:$0xff] %v6652_v58  ;;  %15434 = vst [vmem:[#allocation47_spill] sm:$0xff] %v6659_v61  ;;  %v330_v42 = vrot.slane %v6680_v24, 7  ;;  %v332_v59 = vrot.slane %v6685_v27, 7  ;;  %v333_v60 = vrot.slane %v6700_v3, 7  ;;  %v335_v61 = vrot.slane %v6705_v16, 7 }
  0x31   :  { %15435 = vst [vmem:[#allocation48_spill] sm:$0xff] %v6664_v62  ;;  %15436 = vst [vmem:[#allocation49_spill] sm:$0xff] %v6667_v63  ;;  %v6739_v62 = vsel %vm273_vm0, %v318_v40, %v319_v46  ;;  %v6742_v41 = vsel %vm273_vm0, %v319_v46, %v321_v38  ;;  %v6745_v13 = vsel %vm273_vm0, %v321_v38, %v323_v28  ;;  %v15460_v38 = vrot.slane %v6455_v0, 7  ;;  %s7192_s2 = sld [smem:[#allocation2 + $0x2]]  ;;  %s7402_s10 = sld [smem:[#allocation2 + $0x3]] }
  0x32   :  { %15437 = vst [vmem:[#allocation50_spill] sm:$0xff] %v6675_v23  ;;  %15438 = vst [vmem:[#allocation51_spill] sm:$0xff] %v6680_v24  ;;  %v337_v24 = vrot.slane %v6714_v22, 7  ;;  %v6749_v18 = vsel %vm273_vm0, %v325_v43, %v326_v49  ;;  %v6752_v34 = vsel %vm273_vm0, %v326_v49, %v328_v55  ;;  %v6762_v46 = vsel %vm273_vm0, %v332_v59, %v333_v60  ;;  %s7404_s11 = sld [smem:[#allocation2 + $0x4]]  ;;  %s7418_s12 = sld [smem:[#allocation2 + $0x5]] }
  0x33   :  { %15439 = vst [vmem:[#allocation52_spill] sm:$0xff] %v6685_v27  ;;  %15440 = vst [vmem:[#allocation53_spill] sm:$0xff] %v6688_v29  ;;  %v6755_v27 = vsel %vm273_vm0, %v328_v55, %v330_v42  ;;  %v6765_v28 = vsel %vm273_vm0, %v333_v60, %v335_v61  ;;  %v15462_v49 = vrot.slane %v6476_v5, 7  ;;  %v15467_v60 = vrot.slane %v6525_v19, 7  ;;  %s7420_s13 = sld [smem:[#allocation2 + $0x6]]  ;;  %s8088_s14 = sld [smem:[#allocation2 + $0x7]] }
  0x34   :  { %15441 = vst [vmem:[#allocation54_spill] sm:$0xff] %v6691_v33  ;;  %15442 = vst [vmem:[#allocation55_spill] sm:$0xff] %v6695_v39  ;;  %v6778_v55 = vsel %vm273_vm0, %v335_v61, %v337_v24  ;;  %v6794_v35 = vsel %vm273_vm0, 0.0, %v311_v12  ;;  %v6800_v61 = vsel %vm273_vm0, 0.0, %v325_v43  ;;  %v6825_v43 = vmul.f32 %v6695_v39, %v6564_v32  ;;  %s8102_s15 = sld [smem:[#allocation2 + $0x8]]  ;;  %s8834_s9 = sld [smem:[#allocation2 + $0x81]] }
  0x35   :  { %15443 = vst [vmem:[#allocation56_spill] sm:$0xff] %v6700_v3  ;;  %15444 = vst [vmem:[#allocation57_spill] sm:$0xff] %v6705_v16  ;;  %v6759_v16 = vsel %vm273_vm0, 0.0, %v6519_v17  ;;  %v6775_v42 = vsel %vm273_vm0, 0.0, %v15462_v49  ;;  %v15465_v3 = vrot.slane %v6498_v9, 7  ;;  %v6788_v36 = vsel %vm273_vm0, 0.0, %v15467_v60 }
  0x36   :  { %15445 = vst [vmem:[#allocation58_spill] sm:$0xff] %v6714_v22  ;;  %15446 = vst [vmem:[#allocation59_spill] sm:$0xff] %v6717_v11  ;;  %v6770_v22 = vsel %vm273_vm0, 0.0, %v15460_v38  ;;  %v6791_v38 = vsel %vm273_vm0, 0.0, %v304_v47  ;;  %v6797_v49 = vsel %vm273_vm0, 0.0, %v318_v40  ;;  %v6807_v24 = vmul.f32 %v6695_v39, %v6759_v16  ;;  %s8104_s16 = sld [smem:[#allocation4]] }
  0x37   :  { %15447 = vst [vmem:[#allocation60_spill] sm:$0xff] %v6720_v48  ;;  %15448 = vst [vmem:[#allocation61_spill] sm:$0xff] %v6725_v54  ;;  %v6783_v23 = vsel %vm273_vm0, 0.0, %v15465_v3  ;;  %v6803_v3 = vsel %vm273_vm0, 0.0, %v332_v59  ;;  %v6811_v47 = vmul.f32 %v6695_v39, %v6519_v17  ;;  %v6815_v12 = vmul.f32 %v6695_v39, %v6770_v22  ;;  %s8832_s25 = sld [smem:[#allocation2 + $0x80]] }
  0x38   :  { %15449 = vst [vmem:[#allocation62_spill] sm:$0xff] %v6728_v56  ;;  %15450 = vst [vmem:[#allocation63_spill] sm:$0xff] %v6733_v53  ;;  %v6819_v40 = vmul.f32 %v6695_v39, %v6561_v31  ;;  %v6829_v59 = vmul.f32 %v6695_v39, %v6579_v37  ;;  %v6833_v60 = vmul.f32 %v6695_v39, %v6775_v42  ;;  %v6948_v31 = vstv %s6821_s1  ;;  %s8967_s1 = sld [smem:[#allocation2 + $0x82]] }
  0x39   :  { %15451 = vst [vmem:[#allocation64_spill] sm:$0xff] %v6739_v62  ;;  %15452 = vst [vmem:[#allocation65_spill] sm:$0xff] %v6742_v41  ;;  %v6837_v17 = vmul.f32 %v6695_v39, %v6602_v44  ;;  %v6845_v32 = vmul.f32 %v6695_v39, %v6620_v50  ;;  %v6849_v37 = vmul.f32 %v6695_v39, %v6783_v23  ;;  %vm1046_vm1 = vcmask 1046528  }
  0x3a   :  { %15453 = vst [vmem:[#allocation66_spill] sm:$0xff] %v6745_v13  ;;  %15454 = vst [vmem:[#allocation67_spill] sm:$0xff] %v6749_v18  ;;  %v6857_v44 = vmul.f32 %v6695_v39, %v6628_v52  ;;  %v6865_v50 = vmul.f32 %v6695_v39, %v6788_v36  ;;  %v6877_v52 = vmul.f32 %v6695_v39, %v6688_v29  ;;  %vm1348_vm2 = vcmask 1042432  }
  0x3b   :  { %15455 = vst [vmem:[#allocation68_spill] sm:$0xff] %v6752_v34  ;;  %15456 = vst [vmem:[#allocation69_spill] sm:$0xff] %v6755_v27  ;;  %v6897_v29 = vmul.f32 %v6695_v39, %v6794_v35  ;;  %vm3871_vm3 = vcmask 1041408   ;;  %vm4252_vm4 = vcmask 1045504   ;;  %vm5655_vm5 = vcmask 1043456  }
  0x3c   :  { %15457 = vst [vmem:[#allocation70_spill] sm:$0xff] %v6759_v16  ;;  %15458 = vst [vmem:[#allocation71_spill] sm:$0xff] %v6762_v46  ;;  %v6841_v16 = vmul.f32 %v6695_v39, %v6605_v45  ;;  %v6861_v45 = vmul.f32 %v6695_v39, %v6647_v57  ;;  %v6881_v57 = vmul.f32 %v6695_v39, %v6791_v38  ;;  %vm5828_vm6 = vcmask 556032  }
  0x3d   :  { %15459 = vst [vmem:[#allocation72_spill] sm:$0xff] %v6765_v28  ;;  %15461 = vst [vmem:[#allocation73_spill] sm:$0xff] %v6770_v22  ;;  %v830_v22 = vmul.f32 %v6948_v31, %v6471_v4  ;;  %v837_v4 = vmul.f32 %v6948_v31, %v6511_v14  ;;  %v844_v14 = vmul.f32 %v6948_v31, %v6556_v30  ;;  %vm6132_vm7 = vcmask 9216  }
  0x3e   :  { %15463 = vst [vmem:[#allocation74_spill] sm:$0xff] %v6775_v42  ;;  %15464 = vst [vmem:[#allocation75_spill] sm:$0xff] %v6778_v55  ;;  %v6853_v42 = vmul.f32 %v6695_v39, %v6625_v51  ;;  %v6873_v51 = vmul.f32 %v6695_v39, %v6667_v63  ;;  %v6893_v63 = vmul.f32 %v6695_v39, %v6720_v48  ;;  %vm6130_vm8 = vcmask 15360  }
  0x3f   :  { %15466 = vst [vmem:[#allocation76_spill] sm:$0xff] %v6783_v23  ;;  %15468 = vst [vmem:[#allocation77_spill] sm:$0xff] %v6788_v36  ;;  %v6869_v23 = vmul.f32 %v6695_v39, %v6652_v58  ;;  %v6885_v36 = vmul.f32 %v6695_v39, %v6691_v33  ;;  %v6889_v58 = vmul.f32 %v6695_v39, %v6717_v11 }
  0x40   :  { %15469 = vst [vmem:[#allocation78_spill] sm:$0xff] %v6791_v38  ;;  %15470 = vst [vmem:[#allocation79_spill] sm:$0xff] %v6794_v35  ;;  %v6901_v38 = vmul.f32 %v6695_v39, %v6725_v54  ;;  %v6905_v33 = vmul.f32 %v6695_v39, %v6728_v56  ;;  %v6909_v11 = vmul.f32 %v6695_v39, %v6733_v53 }
  0x41   :  { %15471 = vst [vmem:[#allocation80_spill] sm:$0xff] %v6797_v49  ;;  %15472 = vst [vmem:[#allocation81_spill] sm:$0xff] %v6800_v61  ;;  %v6913_v48 = vmul.f32 %v6695_v39, %v6797_v49  ;;  %v6917_v35 = vmul.f32 %v6695_v39, %v6739_v62  ;;  %v6921_v54 = vmul.f32 %v6695_v39, %v6742_v41 }
  0x42   :  { %15473 = vst [vmem:[#allocation82_spill] sm:$0xff] %v6803_v3  ;;  %15474 = vst [vmem:[#allocation83_spill] sm:$0xff] %v6889_v58  ;;  %v6925_v56 = vmul.f32 %v6695_v39, %v6745_v13  ;;  %v6929_v53 = vmul.f32 %v6695_v39, %v6800_v61  ;;  %v6933_v49 = vmul.f32 %v6695_v39, %v6749_v18  ;;  %v15509_v58 = vld [vmem:[#allocation58_spill] sm:$0xff] }
  0x43   :  { %15475 = vst [vmem:[#allocation84_spill] sm:$0xff] %v6893_v63  ;;  %15476 = vst [vmem:[#allocation85_spill] sm:$0xff] %v6897_v29  ;;  %v6937_v62 = vmul.f32 %v6695_v39, %v6752_v34  ;;  %v6941_v41 = vmul.f32 %v6695_v39, %v6755_v27  ;;  %v6945_v13 = vmul.f32 %v6695_v39, %v6803_v3  ;;  %v826_v27 = vmul.f32 0.0, %v6948_v31  ;;  %v15507_v29 = vld [vmem:[#allocation56_spill] sm:$0xff]  ;;  %v15508_v63 = vld [vmem:[#allocation57_spill] sm:$0xff] }
  0x44   :  { %15477 = vst [vmem:[#allocation86_spill] sm:$0xff] %v6901_v38  ;;  %15478 = vst [vmem:[#allocation87_spill] sm:$0xff] %v6905_v33  ;;  %v6952_v61 = vmul.f32 %v6695_v39, %v6762_v46  ;;  %v6956_v18 = vmul.f32 %v6695_v39, %v6765_v28  ;;  %v6960_v34 = vmul.f32 %v6695_v39, %v6778_v55  ;;  %v15505_v33 = vld [vmem:[#allocation50_spill] sm:$0xff]  ;;  %v15506_v38 = vld [vmem:[#allocation51_spill] sm:$0xff] }
  0x45   :  { %15479 = vst [vmem:[#allocation88_spill] sm:$0xff] %v6909_v11  ;;  %15480 = vst [vmem:[#allocation89_spill] sm:$0xff] %v6913_v48  ;;  %v827_v3 = vmul.f32 %v6948_v31, %v6455_v0  ;;  %v829_v46 = vmul.f32 %v6948_v31, %v6465_v2  ;;  %v831_v28 = vmul.f32 %v6948_v31, %v6476_v5  ;;  %v15494_v0 = vld [vmem:[#allocation30_spill] sm:$0xff]  ;;  %v15503_v48 = vld [vmem:[#allocation47_spill] sm:$0xff] }
  0x46   :  { %15481 = vst [vmem:[#allocation90_spill] sm:$0xff] %v6917_v35  ;;  %15482 = vst [vmem:[#allocation91_spill] sm:$0xff] %v6921_v54  ;;  %v832_v39 = vmul.f32 %v6948_v31, %v6481_v6  ;;  %v833_v55 = vmul.f32 %v6948_v31, %v6486_v7  ;;  %v836_v2 = vmul.f32 %v6948_v31, %v6503_v10  ;;  %v15501_v54 = vld [vmem:[#allocation43_spill] sm:$0xff]  ;;  %v15502_v35 = vld [vmem:[#allocation44_spill] sm:$0xff] }
  0x47   :  { %15483 = vst [vmem:[#allocation92_spill] sm:$0xff] %v6925_v56  ;;  %15484 = vst [vmem:[#allocation93_spill] sm:$0xff] %v6929_v53  ;;  %v838_v5 = vmul.f32 %v6948_v31, %v6516_v15  ;;  %v839_v6 = vmul.f32 %v6948_v31, %v6525_v19  ;;  %v840_v7 = vmul.f32 %v6948_v31, %v6530_v20  ;;  %v15499_v53 = vld [vmem:[#allocation38_spill] sm:$0xff]  ;;  %v15504_v11 = vld [vmem:[#allocation48_spill] sm:$0xff] }
  0x48   :  { %15485 = vst [vmem:[#allocation94_spill] sm:$0xff] %v6933_v49  ;;  %15486 = vst [vmem:[#allocation95_spill] sm:$0xff] %v6937_v62  ;;  %v843_v10 = vmul.f32 %v6948_v31, %v6548_v26  ;;  %v846_v19 = vmul.f32 %v6948_v31, %v15494_v0  ;;  %v15497_v62 = vld [vmem:[#allocation34_spill] sm:$0xff]  ;;  %v15498_v49 = vld [vmem:[#allocation37_spill] sm:$0xff]  ;;  %v851_v30 = vmul.f32 %v6948_v31, %v15499_v53 }
  0x49   :  { %15487 = vst [vmem:[#allocation96_spill] sm:$0xff] %v6941_v41  ;;  %15488 = vst [vmem:[#allocation97_spill] sm:$0xff] %v6945_v13  ;;  %v828_v13 = vmul.f32 %v6948_v31, %v6460_v1  ;;  %v15493_v1 = vld [vmem:[#allocation29_spill] sm:$0xff]  ;;  %v850_v26 = vmul.f32 %v6948_v31, %v15498_v49  ;;  %v15500_v56 = vld [vmem:[#allocation42_spill] sm:$0xff]  ;;  %v853_v0 = vmul.f32 %v6948_v31, %v15501_v54 }
  0x4a   :  { %15489 = vst [vmem:[#allocation98_spill] sm:$0xff] %v6948_v31  ;;  %15490 = vst [vmem:[#allocation99_spill] sm:$0xff] %v6952_v61  ;;  %v845_v15 = vmul.f32 %v6948_v31, %v15493_v1  ;;  %v15495_v61 = vld [vmem:[#allocation32_spill] sm:$0xff]  ;;  %v15496_v41 = vld [vmem:[#allocation33_spill] sm:$0xff]  ;;  %v852_v1 = vmul.f32 %v6948_v31, %v15500_v56  ;;  %v857_v49 = vmul.f32 %v6948_v31, %v15505_v33 }
  0x4b   :  { %15491 = vst [vmem:[#allocation100_spill] sm:$0xff] %v6956_v18  ;;  %15492 = vst [vmem:[#allocation101_spill] sm:$0xff] %v6960_v34  ;;  %v834_v34 = vmul.f32 %v6948_v31, %v6491_v8  ;;  %v835_v18 = vmul.f32 %v6948_v31, %v6498_v9  ;;  %v841_v8 = vmul.f32 %v6948_v31, %v6535_v21 }
  0x4c   :  { %v842_v9 = vmul.f32 %v6948_v31, %v6543_v25  ;;  %v847_v20 = vmul.f32 %v6948_v31, %v15495_v61  ;;  %v848_v21 = vmul.f32 %v6948_v31, %v15496_v41  ;;  %v849_v25 = vmul.f32 %v6948_v31, %v15497_v62 }
  0x4d   :  { %v854_v61 = vmul.f32 %v6948_v31, %v15502_v35  ;;  %v855_v41 = vmul.f32 %v6948_v31, %v15503_v48  ;;  %v856_v62 = vmul.f32 %v6948_v31, %v15504_v11  ;;  %v858_v53 = vmul.f32 %v6948_v31, %v15506_v38 }
  0x4e   :  { %v860_v56 = vmul.f32 %v6948_v31, %v15507_v29  ;;  %v861_v54 = vmul.f32 %v6948_v31, %v15508_v63  ;;  %v862_v35 = vmul.f32 %v6948_v31, %v15509_v58  ;;  %v7034_v48 = vadd.f32 %v826_v27, %v6807_v24 }
  0x4f   :  { %v7037_v11 = vadd.f32 %v826_v27, %v6811_v47  ;;  %v7040_v33 = vadd.f32 %v827_v3, %v6815_v12  ;;  %v7043_v38 = vadd.f32 %v828_v13, %v6819_v40  ;;  %v7046_v29 = vadd.f32 %v829_v46, %v6825_v43  ;;  %v15543_v43 = vld [vmem:[#allocation9_spill] sm:$0xff] }
  0x50   :  { %v7049_v63 = vadd.f32 %v830_v22, %v6829_v59  ;;  %v7052_v31 = vadd.f32 %v831_v28, %v6833_v60  ;;  %v7055_v24 = vadd.f32 %v832_v39, %v6837_v17  ;;  %v7058_v27 = vadd.f32 %v833_v55, %v6841_v16  ;;  %v15544_v59 = vld [vmem:[#allocation10_spill] sm:$0xff] }
  0x51   :  { %v7061_v3 = vadd.f32 %v834_v34, %v6845_v32  ;;  %v7064_v13 = vadd.f32 %v835_v18, %v6849_v37  ;;  %v7067_v46 = vadd.f32 %v836_v2, %v6853_v42  ;;  %v7070_v22 = vadd.f32 %v837_v4, %v6857_v44 }
  0x52   :  { %v7073_v28 = vadd.f32 %v838_v5, %v6861_v45  ;;  %v7076_v17 = vadd.f32 %v839_v6, %v6865_v50  ;;  %v7079_v16 = vadd.f32 %v840_v7, %v6869_v23  ;;  %v7082_v32 = vadd.f32 %v841_v8, %v6873_v51  ;;  %v15512_v5 = vld [vmem:[#allocation83_spill] sm:$0xff]  ;;  %v15514_v6 = vld [vmem:[#allocation84_spill] sm:$0xff]  ;;  %v15516_v7 = vld [vmem:[#allocation85_spill] sm:$0xff] }
  0x53   :  { %v7085_v37 = vadd.f32 %v842_v9, %v6877_v52  ;;  %v7088_v2 = vadd.f32 %v843_v10, %v6881_v57  ;;  %v7091_v4 = vadd.f32 %v844_v14, %v6885_v36  ;;  %v7094_v44 = vadd.f32 %v845_v15, %v15512_v5  ;;  %v15518_v8 = vld [vmem:[#allocation86_spill] sm:$0xff]  ;;  %v15520_v9 = vld [vmem:[#allocation87_spill] sm:$0xff]  ;;  %v15522_v10 = vld [vmem:[#allocation88_spill] sm:$0xff] }
  0x54   :  { %v7097_v45 = vadd.f32 %v846_v19, %v15514_v6  ;;  %v7100_v50 = vadd.f32 %v847_v20, %v15516_v7  ;;  %v7103_v51 = vadd.f32 %v848_v21, %v15518_v8  ;;  %v7106_v52 = vadd.f32 %v849_v25, %v15520_v9  ;;  %v15524_v14 = vld [vmem:[#allocation89_spill] sm:$0xff]  ;;  %v15526_v15 = vld [vmem:[#allocation90_spill] sm:$0xff]  ;;  %v15528_v19 = vld [vmem:[#allocation91_spill] sm:$0xff] }
  0x55   :  { %15510 = vst [vmem:[#allocation58_spill] sm:$0xff] %v7088_v2  ;;  %15511 = vst [vmem:[#allocation102_spill] sm:$0xff] %v7091_v4  ;;  %v7109_v57 = vadd.f32 %v850_v26, %v15522_v10  ;;  %v7112_v36 = vadd.f32 %v851_v30, %v15524_v14  ;;  %v7115_v23 = vadd.f32 %v852_v1, %v15526_v15  ;;  %v15530_v20 = vld [vmem:[#allocation92_spill] sm:$0xff]  ;;  %v15532_v21 = vld [vmem:[#allocation93_spill] sm:$0xff]  ;;  %v1052_v60 = vrot.slane %v15544_v59, 1 }
  0x56   :  { %15513 = vst [vmem:[#allocation83_spill] sm:$0xff] %v7094_v44  ;;  %15515 = vst [vmem:[#allocation84_spill] sm:$0xff] %v7097_v45  ;;  %v7118_v39 = vadd.f32 %v853_v0, %v15528_v19  ;;  %v7121_v18 = vadd.f32 %v854_v61, %v15530_v20  ;;  %v7124_v34 = vadd.f32 %v855_v41, %v15532_v21  ;;  %v15534_v25 = vld [vmem:[#allocation94_spill] sm:$0xff]  ;;  %v15536_v26 = vld [vmem:[#allocation95_spill] sm:$0xff]  ;;  %v1050_v61 = vrot.slane %v15543_v43, 1 }
  0x57   :  { %15517 = vst [vmem:[#allocation85_spill] sm:$0xff] %v7100_v50  ;;  %15519 = vst [vmem:[#allocation86_spill] sm:$0xff] %v7103_v51  ;;  %v7127_v42 = vadd.f32 %v856_v62, %v15534_v25  ;;  %v7130_v55 = vadd.f32 %v857_v49, %v15536_v26  ;;  %v15538_v30 = vld [vmem:[#allocation96_spill] sm:$0xff]  ;;  %v15540_v1 = vld [vmem:[#allocation99_spill] sm:$0xff]  ;;  %v15554_v20 = vmov 0.0  }
  0x58   :  { %15521 = vst [vmem:[#allocation87_spill] sm:$0xff] %v7106_v52  ;;  %15523 = vst [vmem:[#allocation88_spill] sm:$0xff] %v7109_v57  ;;  %v7133_v47 = vadd.f32 %v858_v53, %v15538_v30  ;;  %v7136_v12 = vadd.f32 %v860_v56, %v15540_v1  ;;  %v15542_v0 = vld [vmem:[#allocation8_spill] sm:$0xff]  ;;  %v15545_v41 = vld [vmem:[#allocation11_spill] sm:$0xff]  ;;  %v7153_v21 = vrot.slane %v15554_v20, 1 }
  0x59   :  { %15525 = vst [vmem:[#allocation89_spill] sm:$0xff] %v7112_v36  ;;  %15527 = vst [vmem:[#allocation90_spill] sm:$0xff] %v7115_v23  ;;  %v1049_v40 = vrot.slane %v15542_v0, 1  ;;  %v15546_v6 = vld [vmem:[#allocation12_spill] sm:$0xff]  ;;  %v15547_v7 = vld [vmem:[#allocation13_spill] sm:$0xff] }
  0x5a   :  { %15529 = vst [vmem:[#allocation91_spill] sm:$0xff] %v7118_v39  ;;  %15531 = vst [vmem:[#allocation92_spill] sm:$0xff] %v7121_v18  ;;  %v1056_v62 = vrot.slane %v15546_v6, 1  ;;  %v1057_v8 = vrot.slane %v15547_v7, 1  ;;  %v15548_v49 = vld [vmem:[#allocation100_spill] sm:$0xff]  ;;  %v15550_v53 = vld [vmem:[#allocation101_spill] sm:$0xff] }
  0x5b   :  { %15533 = vst [vmem:[#allocation93_spill] sm:$0xff] %v7124_v34  ;;  %15535 = vst [vmem:[#allocation94_spill] sm:$0xff] %v7127_v42  ;;  %v7145_v9 = vadd.f32 %v861_v54, %v15548_v49  ;;  %v7148_v10 = vadd.f32 %v862_v35, %v15550_v53  ;;  %v15552_v56 = vld [vmem:[#allocation14_spill] sm:$0xff]  ;;  %v15553_v15 = vld [vmem:[#allocation15_spill] sm:$0xff]  ;;  %v7156_v25 = vsel %vm1046_vm1, %v1049_v40, %v1050_v61  ;;  %v15560_v35 = vrot.slane %v15545_v41, 1 }
  0x5c   :  { %15537 = vst [vmem:[#allocation95_spill] sm:$0xff] %v7130_v55  ;;  %15539 = vst [vmem:[#allocation96_spill] sm:$0xff] %v7133_v47  ;;  %v1059_v14 = vrot.slane %v15552_v56, 1  ;;  %v1061_v19 = vrot.slane %v15553_v15, 1  ;;  %v15557_v26 = vld [vmem:[#allocation16_spill] sm:$0xff]  ;;  %v15558_v1 = vld [vmem:[#allocation17_spill] sm:$0xff]  ;;  %v7161_v54 = vsel %vm1046_vm1, %v1050_v61, %v1052_v60  ;;  %v7171_v56 = vsel %vm1046_vm1, %v1056_v62, %v1057_v8 }
  0x5d   :  { %15541 = vst [vmem:[#allocation99_spill] sm:$0xff] %v7136_v12  ;;  %15549 = vst [vmem:[#allocation100_spill] sm:$0xff] %v7145_v9  ;;  %v1063_v30 = vrot.slane %v15557_v26, 1  ;;  %v1064_v5 = vrot.slane %v15558_v1, 1  ;;  %v7166_v49 = vsel %vm1046_vm1, %v1052_v60, %v15560_v35  ;;  %v15562_v53 = vld [vmem:[#allocation18_spill] sm:$0xff]  ;;  %v15563_v15 = vld [vmem:[#allocation19_spill] sm:$0xff] }
  0x5e   :  { %15551 = vst [vmem:[#allocation101_spill] sm:$0xff] %v7148_v10  ;;  %15555 = vst [vmem:[#allocation103_spill] sm:$0xff] %v7153_v21  ;;  %v1066_v34 = vrot.slane %v15562_v53, 1  ;;  %v1068_v20 = vrot.slane %v15563_v15, 1  ;;  %v15565_v40 = vld [vmem:[#allocation21_spill] sm:$0xff]  ;;  %v15566_v26 = vld [vmem:[#allocation22_spill] sm:$0xff]  ;;  %v7177_v61 = vsel %vm1046_vm1, %v1057_v8, %v1059_v14  ;;  %v7180_v43 = vsel %vm1046_vm1, %v1059_v14, %v1061_v19 }
  0x5f   :  { %15556 = vst [vmem:[#allocation104_spill] sm:$0xff] %v7156_v25  ;;  %15559 = vst [vmem:[#allocation105_spill] sm:$0xff] %v7161_v54  ;;  %v1070_v7 = vrot.slane %v15565_v40, 1  ;;  %v1071_v6 = vrot.slane %v15566_v26, 1  ;;  %v15567_v1 = vld [vmem:[#allocation23_spill] sm:$0xff]  ;;  %v15570_v60 = vld [vmem:[#allocation24_spill] sm:$0xff]  ;;  %v7185_v15 = vsel %vm1046_vm1, %v1063_v30, %v1064_v5 }
  0x60   :  { %15561 = vst [vmem:[#allocation106_spill] sm:$0xff] %v7166_v49  ;;  %15564 = vst [vmem:[#allocation107_spill] sm:$0xff] %v7171_v56  ;;  %v1073_v59 = vrot.slane %v15567_v1, 1  ;;  %v1075_v35 = vrot.slane %v15570_v60, 1  ;;  %v15571_v53 = vld [vmem:[#allocation25_spill] sm:$0xff]  ;;  %v7188_v62 = vsel %vm1046_vm1, %v1064_v5, %v1066_v34  ;;  %v15574_v40 = vld [vmem:[#allocation26_spill] sm:$0xff]  ;;  %v7195_v8 = vsel %vm1046_vm1, %v1066_v34, %v1068_v20 }
  0x61   :  { %15568 = vst [vmem:[#allocation108_spill] sm:$0xff] %v7177_v61  ;;  %15569 = vst [vmem:[#allocation109_spill] sm:$0xff] %v7180_v43  ;;  %v1077_v0 = vrot.slane %v15571_v53, 1  ;;  %v1078_v26 = vrot.slane %v15574_v40, 1  ;;  %v15575_v10 = vld [vmem:[#allocation29_spill] sm:$0xff]  ;;  %v15577_v14 = vld [vmem:[#allocation30_spill] sm:$0xff]  ;;  %v7201_v30 = vsel %vm1046_vm1, %v1070_v7, %v1071_v6 }
  0x62   :  { %15572 = vst [vmem:[#allocation110_spill] sm:$0xff] %v7185_v15  ;;  %15573 = vst [vmem:[#allocation111_spill] sm:$0xff] %v7188_v62  ;;  %v1080_v1 = vrot.slane %v15575_v10, 1  ;;  %v1082_v9 = vrot.slane %v15577_v14, 1  ;;  %v15578_v60 = vld [vmem:[#allocation32_spill] sm:$0xff]  ;;  %v15579_v53 = vld [vmem:[#allocation33_spill] sm:$0xff]  ;;  %v7204_v5 = vsel %vm1046_vm1, %v1071_v6, %v1073_v59  ;;  %v7209_v18 = vsel %vm1046_vm1, %v1073_v59, %v1075_v35 }
  0x63   :  { %15576 = vst [vmem:[#allocation112_spill] sm:$0xff] %v7195_v8  ;;  %v1084_v12 = vrot.slane %v15578_v60, 1  ;;  %v1085_v47 = vrot.slane %v15579_v53, 1  ;;  %15580 = vst [vmem:[#allocation113_spill] sm:$0xff] %v7201_v30  ;;  %v15582_v40 = vld [vmem:[#allocation34_spill] sm:$0xff]  ;;  %v15583_v10 = vld [vmem:[#allocation37_spill] sm:$0xff]  ;;  %v7212_v34 = vsel %vm1046_vm1, %v1077_v0, %v1078_v26 }
  0x64   :  { %15581 = vst [vmem:[#allocation114_spill] sm:$0xff] %v7204_v5  ;;  %v1087_v55 = vrot.slane %v15582_v40, 1  ;;  %v1089_v42 = vrot.slane %v15583_v10, 1  ;;  %15584 = vst [vmem:[#allocation115_spill] sm:$0xff] %v7209_v18  ;;  %v15586_v14 = vld [vmem:[#allocation38_spill] sm:$0xff]  ;;  %v7217_v7 = vsel %vm1046_vm1, %v1078_v26, %v1080_v1  ;;  %v7220_v6 = vsel %vm1046_vm1, %v1080_v1, %v1082_v9  ;;  %v15590_v23 = vld [vmem:[#allocation43_spill] sm:$0xff] }
  0x65   :  { %15585 = vst [vmem:[#allocation116_spill] sm:$0xff] %v7212_v34  ;;  %v1091_v60 = vrot.slane %v15586_v14, 1  ;;  %v15587_v39 = vld [vmem:[#allocation42_spill] sm:$0xff]  ;;  %15588 = vst [vmem:[#allocation117_spill] sm:$0xff] %v7217_v7  ;;  %v1094_v40 = vrot.slane %v15590_v23, 1  ;;  %v15591_v36 = vld [vmem:[#allocation44_spill] sm:$0xff]  ;;  %v7225_v59 = vsel %vm1046_vm1, %v1084_v12, %v1085_v47 }
  0x66   :  { %v1092_v53 = vrot.slane %v15587_v39, 1  ;;  %15589 = vst [vmem:[#allocation118_spill] sm:$0xff] %v7220_v6  ;;  %v1096_v10 = vrot.slane %v15591_v36, 1  ;;  %15592 = vst [vmem:[#allocation119_spill] sm:$0xff] %v7225_v59  ;;  %v15593_v57 = vld [vmem:[#allocation47_spill] sm:$0xff]  ;;  %v15594_v52 = vld [vmem:[#allocation48_spill] sm:$0xff]  ;;  %v7231_v26 = vsel %vm1046_vm1, %v1085_v47, %v1087_v55  ;;  %v7234_v1 = vsel %vm1046_vm1, %v1087_v55, %v1089_v42 }
  0x67   :  { %v1098_v0 = vrot.slane %v15593_v57, 1  ;;  %v1099_v51 = vrot.slane %v15594_v52, 1  ;;  %v15595_v14 = vld [vmem:[#allocation50_spill] sm:$0xff]  ;;  %15596 = vst [vmem:[#allocation120_spill] sm:$0xff] %v7231_v26  ;;  %15597 = vst [vmem:[#allocation121_spill] sm:$0xff] %v7234_v1  ;;  %v15598_v39 = vld [vmem:[#allocation51_spill] sm:$0xff] }
  0x68   :  { %v1101_v50 = vrot.slane %v15595_v14, 1  ;;  %v1103_v23 = vrot.slane %v15598_v39, 1  ;;  %v15599_v45 = vld [vmem:[#allocation52_spill] sm:$0xff]  ;;  %v7239_v12 = vsel %vm1046_vm1, %v1091_v60, %v1092_v53  ;;  %v7242_v57 = vsel %vm1046_vm1, %v1092_v53, %v1094_v40  ;;  %v15603_v14 = vld [vmem:[#allocation57_spill] sm:$0xff] }
  0x69   :  { %v1105_v36 = vrot.slane %v15599_v45, 1  ;;  %15600 = vst [vmem:[#allocation52_spill] sm:$0xff] %v7239_v12  ;;  %15601 = vst [vmem:[#allocation122_spill] sm:$0xff] %v7242_v57  ;;  %v15602_v52 = vld [vmem:[#allocation56_spill] sm:$0xff]  ;;  %v1108_v4 = vrot.slane %v15603_v14, 1  ;;  %v7247_v47 = vsel %vm1046_vm1, %v1094_v40, %v1096_v10  ;;  %v7250_v55 = vsel %vm1046_vm1, %v1098_v0, %v1099_v51 }
  0x6a   :  { %v1106_v44 = vrot.slane %v15602_v52, 1  ;;  %15604 = vst [vmem:[#allocation56_spill] sm:$0xff] %v7247_v47  ;;  %15605 = vst [vmem:[#allocation57_spill] sm:$0xff] %v7250_v55  ;;  %v1110_v39 = vrot.slane %v15509_v58, 1  ;;  %v7254_v45 = vsel %vm1046_vm1, %v1099_v51, %v1101_v50  ;;  %v7257_v60 = vsel %vm1046_vm1, %v1101_v50, %v1103_v23 }
  0x6b   :  { %15606 = vst [vmem:[#allocation123_spill] sm:$0xff] %v7254_v45  ;;  %15607 = vst [vmem:[#allocation124_spill] sm:$0xff] %v7257_v60  ;;  %v7263_v52 = vstv %s7192_s2  ;;  %v7273_v58 = vsel %vm1348_vm2, %v7153_v21, 0.0  ;;  %v15613_v51 = vrot.slane %v15545_v41, 1  ;;  %v7284_v0 = vsel %vm1348_vm2, %v1068_v20, 0.0  ;;  %s8969_s2 = sld [smem:[#allocation2 + $0x83]] }
  0x6c   :  { %v7260_v53 = vsel %vm1046_vm1, %v1105_v36, %v1106_v44  ;;  %15609 = vst [vmem:[#allocation126_spill] sm:$0xff] %v7263_v52  ;;  %v7266_v40 = vsel %vm1046_vm1, %v1106_v44, %v1108_v4  ;;  %v7269_v14 = vsel %vm1046_vm1, %v1108_v4, %v1110_v39  ;;  %15612 = vst [vmem:[#allocation129_spill] sm:$0xff] %v7273_v58  ;;  %v7281_v36 = vsel %vm1348_vm2, %v1061_v19, 0.0 }
  0x6d   :  { %15608 = vst [vmem:[#allocation125_spill] sm:$0xff] %v7260_v53  ;;  %15610 = vst [vmem:[#allocation127_spill] sm:$0xff] %v7266_v40  ;;  %v7278_v50 = vsel %vm1348_vm2, %v15613_v51, 0.0  ;;  %v7287_v44 = vsel %vm1348_vm2, %v1075_v35, 0.0  ;;  %v7290_v4 = vsel %vm1348_vm2, %v1082_v9, 0.0  ;;  %v7293_v2 = vsel %vm1348_vm2, %v1089_v42, 0.0 }
  0x6e   :  { %15611 = vst [vmem:[#allocation128_spill] sm:$0xff] %v7269_v14  ;;  %15614 = vst [vmem:[#allocation130_spill] sm:$0xff] %v7278_v50  ;;  %v7296_v41 = vsel %vm1348_vm2, %v1096_v10, 0.0  ;;  %v7299_v51 = vsel %vm1348_vm2, %v1103_v23, 0.0  ;;  %v7302_v19 = vsel %vm1348_vm2, %v1110_v39, 0.0  ;;  %v1378_v20 = vmul.f32 %v7263_v52, %v7153_v21 }
  0x6f   :  { %15615 = vst [vmem:[#allocation131_spill] sm:$0xff] %v7281_v36  ;;  %15616 = vst [vmem:[#allocation132_spill] sm:$0xff] %v7284_v0  ;;  %v1379_v35 = vmul.f32 %v7263_v52, %v7273_v58  ;;  %v1380_v9 = vmul.f32 %v7263_v52, %v7156_v25  ;;  %v1381_v42 = vmul.f32 %v7263_v52, %v7161_v54 }
  0x70   :  { %15617 = vst [vmem:[#allocation133_spill] sm:$0xff] %v7287_v44  ;;  %15618 = vst [vmem:[#allocation134_spill] sm:$0xff] %v7290_v4  ;;  %v1382_v10 = vmul.f32 %v7263_v52, %v7166_v49  ;;  %v1383_v23 = vmul.f32 %v7263_v52, %v7278_v50  ;;  %v1384_v39 = vmul.f32 %v7263_v52, %v7171_v56 }
  0x71   :  { %15619 = vst [vmem:[#allocation135_spill] sm:$0xff] %v7293_v2  ;;  %15620 = vst [vmem:[#allocation136_spill] sm:$0xff] %v7296_v41  ;;  %v1385_v21 = vmul.f32 %v7263_v52, %v7177_v61  ;;  %v1386_v58 = vmul.f32 %v7263_v52, %v7180_v43  ;;  %v1387_v25 = vmul.f32 %v7263_v52, %v7281_v36 }
  0x72   :  { %15621 = vst [vmem:[#allocation137_spill] sm:$0xff] %v7299_v51  ;;  %15622 = vst [vmem:[#allocation138_spill] sm:$0xff] %v7302_v19  ;;  %v1388_v54 = vmul.f32 %v7263_v52, %v7185_v15  ;;  %v1389_v49 = vmul.f32 %v7263_v52, %v7188_v62  ;;  %v1390_v50 = vmul.f32 %v7263_v52, %v7195_v8 }
  0x73   :  { %v1391_v56 = vmul.f32 %v7263_v52, %v7284_v0  ;;  %v1392_v61 = vmul.f32 %v7263_v52, %v7201_v30  ;;  %v1393_v43 = vmul.f32 %v7263_v52, %v7204_v5  ;;  %v1394_v36 = vmul.f32 %v7263_v52, %v7209_v18 }
  0x74   :  { %v1395_v15 = vmul.f32 %v7263_v52, %v7287_v44  ;;  %v1396_v62 = vmul.f32 %v7263_v52, %v7212_v34  ;;  %v1397_v8 = vmul.f32 %v7263_v52, %v7217_v7  ;;  %v1398_v0 = vmul.f32 %v7263_v52, %v7220_v6 }
  0x75   :  { %v1399_v30 = vmul.f32 %v7263_v52, %v7290_v4  ;;  %v1400_v5 = vmul.f32 %v7263_v52, %v7225_v59  ;;  %v1401_v18 = vmul.f32 %v7263_v52, %v7231_v26  ;;  %v1402_v44 = vmul.f32 %v7263_v52, %v7234_v1 }
  0x76   :  { %v1403_v34 = vmul.f32 %v7263_v52, %v7293_v2  ;;  %v1404_v7 = vmul.f32 %v7263_v52, %v7239_v12  ;;  %v1405_v6 = vmul.f32 %v7263_v52, %v7242_v57  ;;  %v1406_v4 = vmul.f32 %v7263_v52, %v7247_v47  ;;  %v15683_v47 = vld [vmem:[#allocation79_spill] sm:$0xff] }
  0x77   :  { %v1407_v59 = vmul.f32 %v7263_v52, %v7296_v41  ;;  %v7366_v26 = vmul.f32 %v7263_v52, %v7250_v55  ;;  %v1409_v1 = vmul.f32 %v7263_v52, %v7254_v45  ;;  %v1410_v2 = vmul.f32 %v7263_v52, %v7257_v60 }
  0x78   :  { %v1411_v12 = vmul.f32 %v7263_v52, %v7299_v51  ;;  %v7376_v57 = vmul.f32 %v7263_v52, %v7260_v53  ;;  %v1413_v41 = vmul.f32 %v7263_v52, %v7266_v40  ;;  %v1414_v55 = vmul.f32 %v7263_v52, %v7269_v14  ;;  %v15682_v40 = vld [vmem:[#allocation60_spill] sm:$0xff] }
  0x79   :  { %15623 = vst [vmem:[#allocation139_spill] sm:$0xff] %v7366_v26  ;;  %v1415_v26 = vmul.f32 %v7263_v52, %v7302_v19  ;;  %v7385_v45 = vadd.f32 %v1378_v20, %v7034_v48  ;;  %v7388_v60 = vadd.f32 %v1378_v20, %v7037_v11  ;;  %v7391_v51 = vadd.f32 %v1379_v35, %v7037_v11  ;;  %v15645_v35 = vld [vmem:[#allocation92_spill] sm:$0xff]  ;;  %v15681_v19 = vld [vmem:[#allocation59_spill] sm:$0xff] }
  0x7a   :  { %15624 = vst [vmem:[#allocation140_spill] sm:$0xff] %v7376_v57  ;;  %v7394_v57 = vadd.f32 %v1380_v9, %v7040_v33  ;;  %v7397_v53 = vadd.f32 %v1381_v42, %v7043_v38  ;;  %v7400_v14 = vadd.f32 %v1382_v10, %v7046_v29  ;;  %v7407_v48 = vadd.f32 %v1383_v23, %v7049_v63  ;;  %v15647_v9 = vld [vmem:[#allocation94_spill] sm:$0xff] }
  0x7b   :  { %v7410_v20 = vadd.f32 %v1384_v39, %v7052_v31  ;;  %v7413_v11 = vadd.f32 %v1385_v21, %v7055_v24  ;;  %v7416_v33 = vadd.f32 %v1386_v58, %v7058_v27  ;;  %v7423_v29 = vadd.f32 %v1387_v25, %v7061_v3  ;;  %v15639_v58 = vld [vmem:[#allocation89_spill] sm:$0xff] }
  0x7c   :  { %v7426_v38 = vadd.f32 %v1388_v54, %v7064_v13  ;;  %v7429_v63 = vadd.f32 %v1389_v49, %v7067_v46  ;;  %v7432_v31 = vadd.f32 %v1390_v50, %v7070_v22  ;;  %v7435_v24 = vadd.f32 %v1391_v56, %v7073_v28  ;;  %v15625_v46 = vld [vmem:[#allocation58_spill] sm:$0xff]  ;;  %v15627_v28 = vld [vmem:[#allocation83_spill] sm:$0xff] }
  0x7d   :  { %v7438_v27 = vadd.f32 %v1392_v61, %v7076_v17  ;;  %v7441_v21 = vadd.f32 %v1393_v43, %v7079_v16  ;;  %v7444_v3 = vadd.f32 %v1394_v36, %v7082_v32  ;;  %v7447_v13 = vadd.f32 %v1395_v15, %v7085_v37  ;;  %v15626_v22 = vld [vmem:[#allocation102_spill] sm:$0xff]  ;;  %v15629_v17 = vld [vmem:[#allocation84_spill] sm:$0xff]  ;;  %v15631_v16 = vld [vmem:[#allocation85_spill] sm:$0xff] }
  0x7e   :  { %v7450_v25 = vadd.f32 %v1396_v62, %v15625_v46  ;;  %v7453_v54 = vadd.f32 %v1397_v8, %v15626_v22  ;;  %v7456_v56 = vadd.f32 %v1398_v0, %v15627_v28  ;;  %v7459_v49 = vadd.f32 %v1399_v30, %v15629_v17  ;;  %v15633_v32 = vld [vmem:[#allocation86_spill] sm:$0xff]  ;;  %v15635_v15 = vld [vmem:[#allocation87_spill] sm:$0xff]  ;;  %v15637_v62 = vld [vmem:[#allocation88_spill] sm:$0xff] }
  0x7f   :  { %v7462_v43 = vadd.f32 %v1400_v5, %v15631_v16  ;;  %v7465_v37 = vadd.f32 %v1401_v18, %v15633_v32  ;;  %v7468_v61 = vadd.f32 %v1402_v44, %v15635_v15  ;;  %v7471_v8 = vadd.f32 %v1403_v34, %v15637_v62  ;;  %v15641_v30 = vld [vmem:[#allocation90_spill] sm:$0xff]  ;;  %v15643_v5 = vld [vmem:[#allocation91_spill] sm:$0xff]  ;;  %v15651_v34 = vld [vmem:[#allocation96_spill] sm:$0xff] }
  0x80   :  { %15628 = vst [vmem:[#allocation58_spill] sm:$0xff] %v7456_v56  ;;  %15630 = vst [vmem:[#allocation102_spill] sm:$0xff] %v7459_v49  ;;  %v7474_v50 = vadd.f32 %v1404_v7, %v15639_v58  ;;  %v7477_v36 = vadd.f32 %v1405_v6, %v15641_v30  ;;  %v7480_v0 = vadd.f32 %v1406_v4, %v15643_v5  ;;  %v15649_v44 = vld [vmem:[#allocation95_spill] sm:$0xff]  ;;  %v15655_v6 = vld [vmem:[#allocation100_spill] sm:$0xff]  ;;  %v7509_v17 = vstv %s7404_s11  ;;  %s9066_s11 = sld [smem:[#allocation2 + $0x85]] }
  0x81   :  { %15632 = vst [vmem:[#allocation83_spill] sm:$0xff] %v7462_v43  ;;  %15634 = vst [vmem:[#allocation84_spill] sm:$0xff] %v7465_v37  ;;  %v7483_v18 = vadd.f32 %v1407_v59, %v15645_v35  ;;  %v7486_v42 = vadd.f32 %v1409_v1, %v15647_v9  ;;  %v7489_v10 = vadd.f32 %v1410_v2, %v15649_v44  ;;  %v15653_v7 = vld [vmem:[#allocation99_spill] sm:$0xff]  ;;  %v15657_v4 = vld [vmem:[#allocation101_spill] sm:$0xff]  ;;  %v7504_v59 = vstv %s7402_s10  ;;  %s9064_s10 = sld [smem:[#allocation2 + $0x84]] }
  0x82   :  { %15636 = vst [vmem:[#allocation85_spill] sm:$0xff] %v7468_v61  ;;  %15638 = vst [vmem:[#allocation86_spill] sm:$0xff] %v7471_v8  ;;  %v7492_v23 = vadd.f32 %v1411_v12, %v15651_v34  ;;  %v7495_v39 = vadd.f32 %v1413_v41, %v15653_v7  ;;  %v7498_v46 = vadd.f32 %v1414_v55, %v15655_v6  ;;  %v15660_v28 = vld [vmem:[#allocation73_spill] sm:$0xff]  ;;  %v7512_v2 = vstv %s7418_s12  ;;  %v15664_v16 = vld [vmem:[#allocation27_spill] sm:$0xff]  ;;  %s9080_s12 = sld [smem:[#allocation2 + $0x86]] }
  0x83   :  { %15640 = vst [vmem:[#allocation87_spill] sm:$0xff] %v7474_v50  ;;  %15642 = vst [vmem:[#allocation88_spill] sm:$0xff] %v7477_v36  ;;  %v7501_v22 = vadd.f32 %v1415_v26, %v15657_v4  ;;  %v1617_v1 = vmul.f32 %v7504_v59, %v15660_v28  ;;  %v7515_v12 = vstv %s7420_s13  ;;  %v1618_v41 = vmul.f32 %v7504_v59, %v15664_v16  ;;  %v15665_v32 = vld [vmem:[#allocation28_spill] sm:$0xff]  ;;  %v15666_v15 = vld [vmem:[#allocation31_spill] sm:$0xff]  ;;  %s9128_s13 = sld [smem:[#allocation2 + $0x87]] }
  0x84   :  { %15644 = vst [vmem:[#allocation89_spill] sm:$0xff] %v7480_v0  ;;  %15646 = vst [vmem:[#allocation90_spill] sm:$0xff] %v7483_v18  ;;  %v1619_v55 = vmul.f32 %v7504_v59, %v15665_v32  ;;  %v1620_v26 = vmul.f32 %v7504_v59, %v15666_v15  ;;  %v15667_v62 = vld [vmem:[#allocation74_spill] sm:$0xff]  ;;  %v15668_v30 = vld [vmem:[#allocation35_spill] sm:$0xff] }
  0x85   :  { %15648 = vst [vmem:[#allocation91_spill] sm:$0xff] %v7486_v42  ;;  %15650 = vst [vmem:[#allocation92_spill] sm:$0xff] %v7489_v10  ;;  %v1621_v58 = vmul.f32 %v7504_v59, %v15667_v62  ;;  %v1622_v5 = vmul.f32 %v7504_v59, %v15668_v30  ;;  %v15669_v35 = vld [vmem:[#allocation36_spill] sm:$0xff]  ;;  %v15670_v44 = vld [vmem:[#allocation39_spill] sm:$0xff] }
  0x86   :  { %15652 = vst [vmem:[#allocation94_spill] sm:$0xff] %v7492_v23  ;;  %15654 = vst [vmem:[#allocation95_spill] sm:$0xff] %v7495_v39  ;;  %v1623_v9 = vmul.f32 %v7504_v59, %v15669_v35  ;;  %v1624_v34 = vmul.f32 %v7504_v59, %v15670_v44  ;;  %v15671_v7 = vld [vmem:[#allocation76_spill] sm:$0xff]  ;;  %v15673_v16 = vld [vmem:[#allocation41_spill] sm:$0xff] }
  0x87   :  { %15656 = vst [vmem:[#allocation96_spill] sm:$0xff] %v7498_v46  ;;  %15658 = vst [vmem:[#allocation99_spill] sm:$0xff] %v7501_v22  ;;  %v1625_v6 = vmul.f32 %v7504_v59, %v15671_v7  ;;  %v15672_v4 = vld [vmem:[#allocation40_spill] sm:$0xff]  ;;  %v1627_v32 = vmul.f32 %v7504_v59, %v15673_v16  ;;  %v15674_v15 = vld [vmem:[#allocation45_spill] sm:$0xff] }
  0x88   :  { %15659 = vst [vmem:[#allocation100_spill] sm:$0xff] %v7504_v59  ;;  %15661 = vst [vmem:[#allocation101_spill] sm:$0xff] %v7509_v17  ;;  %v1626_v28 = vmul.f32 %v7504_v59, %v15672_v4  ;;  %v1628_v22 = vmul.f32 %v7504_v59, %v15674_v15  ;;  %v15675_v46 = vld [vmem:[#allocation77_spill] sm:$0xff]  ;;  %v15676_v23 = vld [vmem:[#allocation46_spill] sm:$0xff]  ;;  %v1635_v15 = vmul.f32 %v7504_v59, %v15681_v19 }
  0x89   :  { %15662 = vst [vmem:[#allocation73_spill] sm:$0xff] %v7512_v2  ;;  %15663 = vst [vmem:[#allocation141_spill] sm:$0xff] %v7515_v12  ;;  %v1629_v39 = vmul.f32 %v7504_v59, %v15675_v46  ;;  %v1630_v52 = vmul.f32 %v7504_v59, %v15676_v23  ;;  %v15677_v35 = vld [vmem:[#allocation49_spill] sm:$0xff]  ;;  %v15679_v12 = vld [vmem:[#allocation78_spill] sm:$0xff]  ;;  %v1636_v46 = vmul.f32 %v7504_v59, %v15682_v40 }
  0x8a   :  { %v1631_v44 = vmul.f32 %v7504_v59, %v15677_v35  ;;  %v15678_v30 = vld [vmem:[#allocation53_spill] sm:$0xff]  ;;  %v1633_v4 = vmul.f32 %v7504_v59, %v15679_v12  ;;  %v15680_v62 = vld [vmem:[#allocation54_spill] sm:$0xff]  ;;  %v1637_v23 = vmul.f32 %v7504_v59, %v15683_v47  ;;  %v15686_v10 = vld [vmem:[#allocation63_spill] sm:$0xff] }
  0x8b   :  { %v1632_v7 = vmul.f32 %v7504_v59, %v15678_v30  ;;  %v1634_v16 = vmul.f32 %v7504_v59, %v15680_v62  ;;  %v15684_v2 = vld [vmem:[#allocation61_spill] sm:$0xff]  ;;  %v15685_v17 = vld [vmem:[#allocation62_spill] sm:$0xff]  ;;  %v1640_v12 = vmul.f32 %v7504_v59, %v15686_v10  ;;  %v15687_v42 = vld [vmem:[#allocation80_spill] sm:$0xff] }
  0x8c   :  { %v1638_v35 = vmul.f32 %v7504_v59, %v15684_v2  ;;  %v1639_v30 = vmul.f32 %v7504_v59, %v15685_v17  ;;  %v1641_v62 = vmul.f32 %v7504_v59, %v15687_v42  ;;  %v15688_v18 = vld [vmem:[#allocation64_spill] sm:$0xff]  ;;  %v15689_v0 = vld [vmem:[#allocation65_spill] sm:$0xff]  ;;  %v15690_v36 = vld [vmem:[#allocation66_spill] sm:$0xff] }
  0x8d   :  { %v1642_v19 = vmul.f32 %v7504_v59, %v15688_v18  ;;  %v1643_v40 = vmul.f32 %v7504_v59, %v15689_v0  ;;  %v1644_v47 = vmul.f32 %v7504_v59, %v15690_v36  ;;  %v15691_v50 = vld [vmem:[#allocation81_spill] sm:$0xff]  ;;  %v15692_v8 = vld [vmem:[#allocation67_spill] sm:$0xff]  ;;  %v15693_v61 = vld [vmem:[#allocation68_spill] sm:$0xff] }
  0x8e   :  { %v1645_v2 = vmul.f32 %v7504_v59, %v15691_v50  ;;  %v1646_v17 = vmul.f32 %v7504_v59, %v15692_v8  ;;  %v1647_v10 = vmul.f32 %v7504_v59, %v15693_v61  ;;  %v15694_v37 = vld [vmem:[#allocation69_spill] sm:$0xff]  ;;  %v15695_v43 = vld [vmem:[#allocation71_spill] sm:$0xff]  ;;  %v15696_v49 = vld [vmem:[#allocation72_spill] sm:$0xff]  ;;  %v7588_v50 = vadd.f32 %v1617_v1, %v7385_v45 }
  0x8f   :  { %v1648_v42 = vmul.f32 %v7504_v59, %v15694_v37  ;;  %v1650_v18 = vmul.f32 %v7504_v59, %v15695_v43  ;;  %v1651_v0 = vmul.f32 %v7504_v59, %v15696_v49  ;;  %v15697_v56 = vld [vmem:[#allocation75_spill] sm:$0xff]  ;;  %v7591_v8 = vadd.f32 %v1618_v41, %v7388_v60 }
  0x90   :  { %v7585_v36 = vmul.f32 %v7504_v59, %v15697_v56  ;;  %v7594_v61 = vadd.f32 %v1619_v55, %v7388_v60  ;;  %v7597_v37 = vadd.f32 %v1620_v26, %v7391_v51  ;;  %v7600_v43 = vadd.f32 %v1621_v58, %v7394_v57  ;;  %v15711_v26 = vld [vmem:[#allocation88_spill] sm:$0xff]  ;;  %v15744_v59 = vld [vmem:[#allocation34_spill] sm:$0xff]  ;;  %v15745_v56 = vld [vmem:[#allocation37_spill] sm:$0xff] }
  0x91   :  { %v7603_v49 = vadd.f32 %v1622_v5, %v7397_v53  ;;  %v7609_v45 = vadd.f32 %v1624_v34, %v7407_v48  ;;  %v7612_v1 = vadd.f32 %v1625_v6, %v7410_v20  ;;  %v7615_v60 = vadd.f32 %v1626_v28, %v7413_v11 }
  0x92   :  { %15698 = vst [vmem:[#allocation27_spill] sm:$0xff] %v7585_v36  ;;  %v7606_v36 = vadd.f32 %v1623_v9, %v7400_v14  ;;  %v7618_v51 = vadd.f32 %v1627_v32, %v7416_v33  ;;  %v7621_v57 = vadd.f32 %v1628_v22, %v7423_v29  ;;  %v7624_v53 = vadd.f32 %v1629_v39, %v7426_v38 }
  0x93   :  { %v7627_v14 = vadd.f32 %v1630_v52, %v7429_v63  ;;  %v7630_v48 = vadd.f32 %v1631_v44, %v7432_v31  ;;  %v7633_v20 = vadd.f32 %v1632_v7, %v7435_v24  ;;  %v7636_v11 = vadd.f32 %v1633_v4, %v7438_v27  ;;  %v15699_v31 = vld [vmem:[#allocation58_spill] sm:$0xff]  ;;  %v15722_v44 = vld [vmem:[#allocation101_spill] sm:$0xff] }
  0x94   :  { %v7639_v33 = vadd.f32 %v1634_v16, %v7441_v21  ;;  %v7642_v29 = vadd.f32 %v1635_v15, %v7444_v3  ;;  %v7645_v38 = vadd.f32 %v1636_v46, %v7447_v13  ;;  %v7648_v52 = vadd.f32 %v1637_v23, %v7450_v25  ;;  %v15700_v27 = vld [vmem:[#allocation102_spill] sm:$0xff]  ;;  %v15701_v21 = vld [vmem:[#allocation83_spill] sm:$0xff]  ;;  %v15703_v3 = vld [vmem:[#allocation84_spill] sm:$0xff] }
  0x95   :  { %v7651_v63 = vadd.f32 %v1638_v35, %v7453_v54  ;;  %v7654_v24 = vadd.f32 %v1639_v30, %v15699_v31  ;;  %v7657_v39 = vadd.f32 %v1640_v12, %v15700_v27  ;;  %v7660_v22 = vadd.f32 %v1641_v62, %v15701_v21  ;;  %v15705_v13 = vld [vmem:[#allocation85_spill] sm:$0xff]  ;;  %v15707_v25 = vld [vmem:[#allocation86_spill] sm:$0xff]  ;;  %v15709_v54 = vld [vmem:[#allocation87_spill] sm:$0xff] }
  0x96   :  { %v7663_v41 = vadd.f32 %v1642_v19, %v15703_v3  ;;  %v7666_v46 = vadd.f32 %v1643_v40, %v15705_v13  ;;  %v7669_v23 = vadd.f32 %v1644_v47, %v15707_v25  ;;  %v7672_v55 = vadd.f32 %v1645_v2, %v15709_v54  ;;  %v15713_v12 = vld [vmem:[#allocation89_spill] sm:$0xff]  ;;  %v15715_v62 = vld [vmem:[#allocation90_spill] sm:$0xff]  ;;  %v15717_v19 = vld [vmem:[#allocation91_spill] sm:$0xff] }
  0x97   :  { %15702 = vst [vmem:[#allocation28_spill] sm:$0xff] %v7660_v22  ;;  %v7675_v58 = vadd.f32 %v1646_v17, %v15711_v26  ;;  %v7678_v30 = vadd.f32 %v1647_v10, %v15713_v12  ;;  %v7681_v5 = vadd.f32 %v1648_v42, %v15715_v62  ;;  %v7684_v35 = vadd.f32 %v1650_v18, %v15717_v19  ;;  %v15719_v40 = vld [vmem:[#allocation92_spill] sm:$0xff]  ;;  %v15723_v2 = vld [vmem:[#allocation9_spill] sm:$0xff]  ;;  %v15724_v17 = vld [vmem:[#allocation10_spill] sm:$0xff] }
  0x98   :  { %15704 = vst [vmem:[#allocation31_spill] sm:$0xff] %v7663_v41  ;;  %15706 = vst [vmem:[#allocation58_spill] sm:$0xff] %v7666_v46  ;;  %v7687_v9 = vadd.f32 %v1651_v0, %v15719_v40  ;;  %v15721_v47 = vld [vmem:[#allocation8_spill] sm:$0xff]  ;;  %v1844_v7 = vmul.f32 %v15722_v44, %v15723_v2  ;;  %v1845_v6 = vmul.f32 %v15722_v44, %v15724_v17  ;;  %v15725_v10 = vld [vmem:[#allocation11_spill] sm:$0xff] }
  0x99   :  { %15708 = vst [vmem:[#allocation102_spill] sm:$0xff] %v7669_v23  ;;  %15710 = vst [vmem:[#allocation83_spill] sm:$0xff] %v7672_v55  ;;  %v1843_v34 = vmul.f32 %v15722_v44, %v15721_v47  ;;  %v1846_v4 = vmul.f32 %v15722_v44, %v15725_v10  ;;  %v15726_v42 = vld [vmem:[#allocation12_spill] sm:$0xff]  ;;  %v15727_v18 = vld [vmem:[#allocation13_spill] sm:$0xff] }
  0x9a   :  { %15712 = vst [vmem:[#allocation84_spill] sm:$0xff] %v7675_v58  ;;  %15714 = vst [vmem:[#allocation85_spill] sm:$0xff] %v7678_v30  ;;  %v1847_v28 = vmul.f32 %v15722_v44, %v15726_v42  ;;  %v1848_v16 = vmul.f32 %v15722_v44, %v15727_v18  ;;  %v15728_v0 = vld [vmem:[#allocation14_spill] sm:$0xff]  ;;  %v15729_v15 = vld [vmem:[#allocation15_spill] sm:$0xff] }
  0x9b   :  { %15716 = vst [vmem:[#allocation86_spill] sm:$0xff] %v7681_v5  ;;  %15718 = vst [vmem:[#allocation87_spill] sm:$0xff] %v7684_v35  ;;  %v1849_v32 = vmul.f32 %v15722_v44, %v15728_v0  ;;  %v1850_v31 = vmul.f32 %v15722_v44, %v15729_v15  ;;  %v15730_v27 = vld [vmem:[#allocation16_spill] sm:$0xff]  ;;  %v15731_v3 = vld [vmem:[#allocation17_spill] sm:$0xff] }
  0x9c   :  { %15720 = vst [vmem:[#allocation88_spill] sm:$0xff] %v7687_v9  ;;  %v1851_v21 = vmul.f32 %v15722_v44, %v15730_v27  ;;  %v1852_v13 = vmul.f32 %v15722_v44, %v15731_v3  ;;  %v15732_v25 = vld [vmem:[#allocation18_spill] sm:$0xff]  ;;  %v15733_v26 = vld [vmem:[#allocation19_spill] sm:$0xff]  ;;  %v15734_v62 = vld [vmem:[#allocation21_spill] sm:$0xff] }
  0x9d   :  { %v1853_v54 = vmul.f32 %v15722_v44, %v15732_v25  ;;  %v1854_v12 = vmul.f32 %v15722_v44, %v15733_v26  ;;  %v1855_v19 = vmul.f32 %v15722_v44, %v15734_v62  ;;  %v15735_v40 = vld [vmem:[#allocation22_spill] sm:$0xff]  ;;  %v15736_v2 = vld [vmem:[#allocation23_spill] sm:$0xff]  ;;  %v15737_v10 = vld [vmem:[#allocation24_spill] sm:$0xff] }
  0x9e   :  { %v1856_v47 = vmul.f32 %v15722_v44, %v15735_v40  ;;  %v1857_v17 = vmul.f32 %v15722_v44, %v15736_v2  ;;  %v1858_v42 = vmul.f32 %v15722_v44, %v15737_v10  ;;  %v15738_v18 = vld [vmem:[#allocation25_spill] sm:$0xff]  ;;  %v15739_v15 = vld [vmem:[#allocation26_spill] sm:$0xff]  ;;  %v15742_v9 = vld [vmem:[#allocation32_spill] sm:$0xff]  ;;  %v1865_v10 = vmul.f32 %v15722_v44, %v15744_v59 }
  0x9f   :  { %v1859_v0 = vmul.f32 %v15722_v44, %v15738_v18  ;;  %v1860_v27 = vmul.f32 %v15722_v44, %v15739_v15  ;;  %v15740_v3 = vld [vmem:[#allocation29_spill] sm:$0xff]  ;;  %v15741_v26 = vld [vmem:[#allocation30_spill] sm:$0xff]  ;;  %v1863_v40 = vmul.f32 %v15722_v44, %v15742_v9  ;;  %v1866_v18 = vmul.f32 %v15722_v44, %v15745_v56  ;;  %v15748_v58 = vld [vmem:[#allocation43_spill] sm:$0xff] }
  0xa0   :  { %v1861_v25 = vmul.f32 %v15722_v44, %v15740_v3  ;;  %v1862_v62 = vmul.f32 %v15722_v44, %v15741_v26  ;;  %v15743_v35 = vld [vmem:[#allocation33_spill] sm:$0xff]  ;;  %v15746_v5 = vld [vmem:[#allocation38_spill] sm:$0xff]  ;;  %v1869_v26 = vmul.f32 %v15722_v44, %v15748_v58  ;;  %v15749_v55 = vld [vmem:[#allocation44_spill] sm:$0xff]  ;;  %v7757_v58 = vadd.f32 %v1844_v7, %v7591_v8 }
  0xa1   :  { %v1864_v2 = vmul.f32 %v15722_v44, %v15743_v35  ;;  %v1867_v15 = vmul.f32 %v15722_v44, %v15746_v5  ;;  %v15747_v30 = vld [vmem:[#allocation42_spill] sm:$0xff]  ;;  %v1870_v9 = vmul.f32 %v15722_v44, %v15749_v55  ;;  %v15750_v23 = vld [vmem:[#allocation47_spill] sm:$0xff]  ;;  %v15751_v46 = vld [vmem:[#allocation48_spill] sm:$0xff]  ;;  %v7760_v55 = vadd.f32 %v1845_v6, %v7594_v61 }
  0xa2   :  { %v1868_v3 = vmul.f32 %v15722_v44, %v15747_v30  ;;  %v1871_v35 = vmul.f32 %v15722_v44, %v15750_v23  ;;  %v1872_v59 = vmul.f32 %v15722_v44, %v15751_v46  ;;  %v15752_v41 = vld [vmem:[#allocation50_spill] sm:$0xff]  ;;  %v15753_v22 = vld [vmem:[#allocation51_spill] sm:$0xff]  ;;  %v7754_v30 = vadd.f32 %v1843_v34, %v7588_v50 }
  0xa3   :  { %v1873_v56 = vmul.f32 %v15722_v44, %v15752_v41  ;;  %v1874_v5 = vmul.f32 %v15722_v44, %v15753_v22  ;;  %v7763_v23 = vadd.f32 %v1846_v4, %v7597_v37  ;;  %v7766_v46 = vadd.f32 %v1847_v28, %v7600_v43  ;;  %v15790_v44 = vld [vmem:[#allocation117_spill] sm:$0xff] }
  0xa4   :  { %v7769_v41 = vadd.f32 %v1848_v16, %v7603_v49  ;;  %v7772_v22 = vadd.f32 %v1849_v32, %v7606_v36  ;;  %v7775_v50 = vadd.f32 %v1850_v31, %v7609_v45  ;;  %v7778_v8 = vadd.f32 %v1851_v21, %v7612_v1  ;;  %v15770_v31 = vld [vmem:[#allocation86_spill] sm:$0xff] }
  0xa5   :  { %v7781_v61 = vadd.f32 %v1852_v13, %v7615_v60  ;;  %v7784_v37 = vadd.f32 %v1853_v54, %v7618_v51  ;;  %v7787_v43 = vadd.f32 %v1854_v12, %v7621_v57  ;;  %v7790_v49 = vadd.f32 %v1855_v19, %v7624_v53  ;;  %v15772_v13 = vld [vmem:[#allocation104_spill] sm:$0xff]  ;;  %v15773_v54 = vld [vmem:[#allocation73_spill] sm:$0xff] }
  0xa6   :  { %v7793_v36 = vadd.f32 %v1856_v47, %v7627_v14  ;;  %v7796_v45 = vadd.f32 %v1857_v17, %v7630_v48  ;;  %v7799_v1 = vadd.f32 %v1858_v42, %v7633_v20  ;;  %v7802_v60 = vadd.f32 %v1859_v0, %v7636_v11  ;;  %v15774_v19 = vld [vmem:[#allocation105_spill] sm:$0xff]  ;;  %v15775_v17 = vld [vmem:[#allocation106_spill] sm:$0xff] }
  0xa7   :  { %v7805_v51 = vadd.f32 %v1860_v27, %v7639_v33  ;;  %v7808_v57 = vadd.f32 %v1861_v25, %v7642_v29  ;;  %v7811_v53 = vadd.f32 %v1862_v62, %v7645_v38  ;;  %v7814_v14 = vadd.f32 %v1863_v40, %v7648_v52  ;;  %v15756_v33 = vld [vmem:[#allocation28_spill] sm:$0xff]  ;;  %v15758_v29 = vld [vmem:[#allocation31_spill] sm:$0xff]  ;;  %v15760_v38 = vld [vmem:[#allocation58_spill] sm:$0xff] }
  0xa8   :  { %v7817_v48 = vadd.f32 %v1864_v2, %v7651_v63  ;;  %v7820_v20 = vadd.f32 %v1865_v10, %v7654_v24  ;;  %v7823_v11 = vadd.f32 %v1866_v18, %v7657_v39  ;;  %v7826_v34 = vadd.f32 %v1867_v15, %v15756_v33  ;;  %v15762_v52 = vld [vmem:[#allocation102_spill] sm:$0xff]  ;;  %v15764_v63 = vld [vmem:[#allocation83_spill] sm:$0xff]  ;;  %v15766_v24 = vld [vmem:[#allocation84_spill] sm:$0xff] }
  0xa9   :  { %v7829_v7 = vadd.f32 %v1868_v3, %v15758_v29  ;;  %v7832_v6 = vadd.f32 %v1869_v26, %v15760_v38  ;;  %v7835_v4 = vadd.f32 %v1870_v9, %v15762_v52  ;;  %v7838_v28 = vadd.f32 %v1871_v35, %v15764_v63  ;;  %v15768_v39 = vld [vmem:[#allocation85_spill] sm:$0xff]  ;;  %v15776_v0 = vld [vmem:[#allocation130_spill] sm:$0xff]  ;;  %v15777_v25 = vld [vmem:[#allocation107_spill] sm:$0xff] }
  0xaa   :  { %15754 = vst [vmem:[#allocation89_spill] sm:$0xff] %v7820_v20  ;;  %15755 = vst [vmem:[#allocation90_spill] sm:$0xff] %v7823_v11  ;;  %v7841_v16 = vadd.f32 %v1872_v59, %v15766_v24  ;;  %v7844_v32 = vadd.f32 %v1873_v56, %v15768_v39  ;;  %v7847_v21 = vadd.f32 %v1874_v5, %v15770_v31  ;;  %v15778_v40 = vld [vmem:[#allocation108_spill] sm:$0xff]  ;;  %v15779_v10 = vld [vmem:[#allocation109_spill] sm:$0xff] }
  0xab   :  { %15757 = vst [vmem:[#allocation91_spill] sm:$0xff] %v7826_v34  ;;  %15759 = vst [vmem:[#allocation92_spill] sm:$0xff] %v7829_v7  ;;  %v2081_v12 = vmul.f32 %v15773_v54, %v15772_v13  ;;  %v2082_v47 = vmul.f32 %v15773_v54, %v15774_v19  ;;  %v2083_v42 = vmul.f32 %v15773_v54, %v15775_v17  ;;  %v15780_v15 = vld [vmem:[#allocation131_spill] sm:$0xff]  ;;  %v15781_v26 = vld [vmem:[#allocation110_spill] sm:$0xff] }
  0xac   :  { %15761 = vst [vmem:[#allocation8_spill] sm:$0xff] %v7832_v6  ;;  %15763 = vst [vmem:[#allocation9_spill] sm:$0xff] %v7835_v4  ;;  %v2084_v27 = vmul.f32 %v15773_v54, %v15776_v0  ;;  %v2085_v62 = vmul.f32 %v15773_v54, %v15777_v25  ;;  %v2086_v2 = vmul.f32 %v15773_v54, %v15778_v40  ;;  %v15782_v35 = vld [vmem:[#allocation111_spill] sm:$0xff]  ;;  %v15783_v56 = vld [vmem:[#allocation112_spill] sm:$0xff] }
  0xad   :  { %15765 = vst [vmem:[#allocation10_spill] sm:$0xff] %v7838_v28  ;;  %15767 = vst [vmem:[#allocation11_spill] sm:$0xff] %v7841_v16  ;;  %v2087_v18 = vmul.f32 %v15773_v54, %v15779_v10  ;;  %v2088_v3 = vmul.f32 %v15773_v54, %v15780_v15  ;;  %v2089_v9 = vmul.f32 %v15773_v54, %v15781_v26  ;;  %v15784_v33 = vld [vmem:[#allocation132_spill] sm:$0xff]  ;;  %v15785_v38 = vld [vmem:[#allocation113_spill] sm:$0xff] }
  0xae   :  { %15769 = vst [vmem:[#allocation12_spill] sm:$0xff] %v7844_v32  ;;  %15771 = vst [vmem:[#allocation13_spill] sm:$0xff] %v7847_v21  ;;  %v2090_v59 = vmul.f32 %v15773_v54, %v15782_v35  ;;  %v2091_v5 = vmul.f32 %v15773_v54, %v15783_v56  ;;  %v2092_v29 = vmul.f32 %v15773_v54, %v15784_v33  ;;  %v15786_v63 = vld [vmem:[#allocation114_spill] sm:$0xff]  ;;  %v15787_v39 = vld [vmem:[#allocation115_spill] sm:$0xff] }
  0xaf   :  { %v2093_v52 = vmul.f32 %v15773_v54, %v15785_v38  ;;  %v2094_v24 = vmul.f32 %v15773_v54, %v15786_v63  ;;  %v2095_v31 = vmul.f32 %v15773_v54, %v15787_v39  ;;  %v15788_v13 = vld [vmem:[#allocation133_spill] sm:$0xff]  ;;  %v15789_v17 = vld [vmem:[#allocation116_spill] sm:$0xff]  ;;  %v2098_v56 = vmul.f32 %v15773_v54, %v15790_v44  ;;  %v15791_v35 = vld [vmem:[#allocation118_spill] sm:$0xff] }
  0xb0   :  { %v2096_v19 = vmul.f32 %v15773_v54, %v15788_v13  ;;  %v2097_v0 = vmul.f32 %v15773_v54, %v15789_v17  ;;  %v2099_v33 = vmul.f32 %v15773_v54, %v15791_v35  ;;  %v15792_v26 = vld [vmem:[#allocation134_spill] sm:$0xff]  ;;  %v15793_v15 = vld [vmem:[#allocation119_spill] sm:$0xff]  ;;  %v15794_v10 = vld [vmem:[#allocation120_spill] sm:$0xff] }
  0xb1   :  { %v2100_v38 = vmul.f32 %v15773_v54, %v15792_v26  ;;  %v2101_v63 = vmul.f32 %v15773_v54, %v15793_v15  ;;  %v2102_v39 = vmul.f32 %v15773_v54, %v15794_v10  ;;  %v15795_v40 = vld [vmem:[#allocation121_spill] sm:$0xff]  ;;  %v15796_v25 = vld [vmem:[#allocation135_spill] sm:$0xff]  ;;  %v15797_v21 = vld [vmem:[#allocation52_spill] sm:$0xff] }
  0xb2   :  { %v2103_v13 = vmul.f32 %v15773_v54, %v15795_v40  ;;  %v2104_v17 = vmul.f32 %v15773_v54, %v15796_v25  ;;  %v2105_v44 = vmul.f32 %v15773_v54, %v15797_v21  ;;  %v15798_v32 = vld [vmem:[#allocation122_spill] sm:$0xff]  ;;  %v15799_v16 = vld [vmem:[#allocation56_spill] sm:$0xff]  ;;  %v15801_v4 = vld [vmem:[#allocation57_spill] sm:$0xff] }
  0xb3   :  { %v2106_v35 = vmul.f32 %v15773_v54, %v15798_v32  ;;  %v2107_v26 = vmul.f32 %v15773_v54, %v15799_v16  ;;  %v15800_v28 = vld [vmem:[#allocation136_spill] sm:$0xff]  ;;  %v2109_v10 = vmul.f32 %v15773_v54, %v15801_v4  ;;  %v15802_v6 = vld [vmem:[#allocation123_spill] sm:$0xff]  ;;  %v15804_v34 = vld [vmem:[#allocation137_spill] sm:$0xff] }
  0xb4   :  { %v2108_v15 = vmul.f32 %v15773_v54, %v15800_v28  ;;  %v2110_v40 = vmul.f32 %v15773_v54, %v15802_v6  ;;  %v15803_v7 = vld [vmem:[#allocation124_spill] sm:$0xff]  ;;  %v2112_v21 = vmul.f32 %v15773_v54, %v15804_v34  ;;  %v15805_v11 = vld [vmem:[#allocation127_spill] sm:$0xff]  ;;  %v15809_v28 = vld [vmem:[#allocation138_spill] sm:$0xff]  ;;  %v7926_v6 = vadd.f32 %v2081_v12, %v7754_v30 }
  0xb5   :  { %v2111_v25 = vmul.f32 %v15773_v54, %v15803_v7  ;;  %v7915_v32 = vmul.f32 %v15773_v54, %v15805_v11  ;;  %v15807_v16 = vld [vmem:[#allocation128_spill] sm:$0xff]  ;;  %v7923_v4 = vmul.f32 %v15773_v54, %v15809_v28  ;;  %v7929_v7 = vadd.f32 %v2082_v47, %v7757_v58  ;;  %v15852_v28 = vld [vmem:[#allocation65_spill] sm:$0xff] }
  0xb6   :  { %v7919_v20 = vmul.f32 %v15773_v54, %v15807_v16  ;;  %v7932_v34 = vadd.f32 %v2083_v42, %v7760_v55  ;;  %v7935_v11 = vadd.f32 %v2084_v27, %v7763_v23  ;;  %v7947_v30 = vadd.f32 %v2088_v3, %v7775_v50  ;;  %v15823_v3 = vld [vmem:[#allocation11_spill] sm:$0xff]  ;;  %v15851_v54 = vld [vmem:[#allocation64_spill] sm:$0xff]  ;;  %v15853_v16 = vld [vmem:[#allocation66_spill] sm:$0xff] }
  0xb7   :  { %15806 = vst [vmem:[#allocation14_spill] sm:$0xff] %v7915_v32  ;;  %15810 = vst [vmem:[#allocation16_spill] sm:$0xff] %v7923_v4  ;;  %v7938_v32 = vadd.f32 %v2085_v62, %v7766_v46  ;;  %v7944_v4 = vadd.f32 %v2087_v18, %v7772_v22  ;;  %v7950_v58 = vadd.f32 %v2089_v9, %v7778_v8 }
  0xb8   :  { %15808 = vst [vmem:[#allocation15_spill] sm:$0xff] %v7919_v20  ;;  %v7941_v20 = vadd.f32 %v2086_v2, %v7769_v41  ;;  %v7953_v55 = vadd.f32 %v2090_v59, %v7781_v61  ;;  %v7956_v23 = vadd.f32 %v2091_v5, %v7784_v37  ;;  %v7959_v46 = vadd.f32 %v2092_v29, %v7787_v43  ;;  %v15825_v59 = vld [vmem:[#allocation12_spill] sm:$0xff] }
  0xb9   :  { %v7962_v41 = vadd.f32 %v2093_v52, %v7790_v49  ;;  %v7965_v22 = vadd.f32 %v2094_v24, %v7793_v36  ;;  %v7968_v50 = vadd.f32 %v2095_v31, %v7796_v45  ;;  %v7971_v8 = vadd.f32 %v2096_v19, %v7799_v1  ;;  %v15811_v1 = vld [vmem:[#allocation89_spill] sm:$0xff] }
  0xba   :  { %v7974_v61 = vadd.f32 %v2097_v0, %v7802_v60  ;;  %v7977_v37 = vadd.f32 %v2098_v56, %v7805_v51  ;;  %v7980_v43 = vadd.f32 %v2099_v33, %v7808_v57  ;;  %v7983_v49 = vadd.f32 %v2100_v38, %v7811_v53  ;;  %v15812_v60 = vld [vmem:[#allocation90_spill] sm:$0xff]  ;;  %v15813_v51 = vld [vmem:[#allocation91_spill] sm:$0xff]  ;;  %v15815_v57 = vld [vmem:[#allocation92_spill] sm:$0xff] }
  0xbb   :  { %v7986_v36 = vadd.f32 %v2101_v63, %v7814_v14  ;;  %v7989_v45 = vadd.f32 %v2102_v39, %v7817_v48  ;;  %v7992_v12 = vadd.f32 %v2103_v13, %v15811_v1  ;;  %v7995_v47 = vadd.f32 %v2104_v17, %v15812_v60  ;;  %v15817_v53 = vld [vmem:[#allocation8_spill] sm:$0xff]  ;;  %v15819_v14 = vld [vmem:[#allocation9_spill] sm:$0xff]  ;;  %v15821_v48 = vld [vmem:[#allocation10_spill] sm:$0xff] }
  0xbc   :  { %v7998_v42 = vadd.f32 %v2105_v44, %v15813_v51  ;;  %v8001_v27 = vadd.f32 %v2106_v35, %v15815_v57  ;;  %v8004_v62 = vadd.f32 %v2107_v26, %v15817_v53  ;;  %v8007_v2 = vadd.f32 %v2108_v15, %v15819_v14  ;;  %v15827_v44 = vld [vmem:[#allocation13_spill] sm:$0xff]  ;;  %v15829_v35 = vld [vmem:[#allocation74_spill] sm:$0xff]  ;;  %v15831_v26 = vld [vmem:[#allocation35_spill] sm:$0xff] }
  0xbd   :  { %v8010_v18 = vadd.f32 %v2109_v10, %v15821_v48  ;;  %v8013_v9 = vadd.f32 %v2110_v40, %v15823_v3  ;;  %v8016_v56 = vadd.f32 %v2111_v25, %v15825_v59  ;;  %v8019_v5 = vadd.f32 %v2112_v21, %v15827_v44  ;;  %v15830_v33 = vld [vmem:[#allocation141_spill] sm:$0xff]  ;;  %v15832_v15 = vld [vmem:[#allocation36_spill] sm:$0xff]  ;;  %v15833_v10 = vld [vmem:[#allocation39_spill] sm:$0xff] }
  0xbe   :  { %15814 = vst [vmem:[#allocation17_spill] sm:$0xff] %v7998_v42  ;;  %15816 = vst [vmem:[#allocation18_spill] sm:$0xff] %v8001_v27  ;;  %v2307_v29 = vmul.f32 %v15830_v33, %v15829_v35  ;;  %v2308_v38 = vmul.f32 %v15830_v33, %v15831_v26  ;;  %v2309_v52 = vmul.f32 %v15830_v33, %v15832_v15  ;;  %v15834_v40 = vld [vmem:[#allocation76_spill] sm:$0xff]  ;;  %v15836_v21 = vld [vmem:[#allocation41_spill] sm:$0xff] }
  0xbf   :  { %15818 = vst [vmem:[#allocation19_spill] sm:$0xff] %v8004_v62  ;;  %15820 = vst [vmem:[#allocation21_spill] sm:$0xff] %v8007_v2  ;;  %v2310_v63 = vmul.f32 %v15830_v33, %v15833_v10  ;;  %v2311_v24 = vmul.f32 %v15830_v33, %v15834_v40  ;;  %v15835_v25 = vld [vmem:[#allocation40_spill] sm:$0xff]  ;;  %v2313_v31 = vmul.f32 %v15830_v33, %v15836_v21  ;;  %v15837_v13 = vld [vmem:[#allocation45_spill] sm:$0xff] }
  0xc0   :  { %15822 = vst [vmem:[#allocation22_spill] sm:$0xff] %v8010_v18  ;;  %15824 = vst [vmem:[#allocation23_spill] sm:$0xff] %v8013_v9  ;;  %v2312_v39 = vmul.f32 %v15830_v33, %v15835_v25  ;;  %v2314_v19 = vmul.f32 %v15830_v33, %v15837_v13  ;;  %v15838_v17 = vld [vmem:[#allocation77_spill] sm:$0xff]  ;;  %v15839_v1 = vld [vmem:[#allocation46_spill] sm:$0xff] }
  0xc1   :  { %15826 = vst [vmem:[#allocation24_spill] sm:$0xff] %v8016_v56  ;;  %15828 = vst [vmem:[#allocation25_spill] sm:$0xff] %v8019_v5  ;;  %v2315_v0 = vmul.f32 %v15830_v33, %v15838_v17  ;;  %v2316_v60 = vmul.f32 %v15830_v33, %v15839_v1  ;;  %v15840_v51 = vld [vmem:[#allocation49_spill] sm:$0xff]  ;;  %v15842_v48 = vld [vmem:[#allocation78_spill] sm:$0xff] }
  0xc2   :  { %v2317_v57 = vmul.f32 %v15830_v33, %v15840_v51  ;;  %v15841_v53 = vld [vmem:[#allocation53_spill] sm:$0xff]  ;;  %v2319_v3 = vmul.f32 %v15830_v33, %v15842_v48  ;;  %v15843_v59 = vld [vmem:[#allocation54_spill] sm:$0xff]  ;;  %v15844_v35 = vld [vmem:[#allocation59_spill] sm:$0xff] }
  0xc3   :  { %v2318_v14 = vmul.f32 %v15830_v33, %v15841_v53  ;;  %v2320_v44 = vmul.f32 %v15830_v33, %v15843_v59  ;;  %v2321_v26 = vmul.f32 %v15830_v33, %v15844_v35  ;;  %v15845_v15 = vld [vmem:[#allocation60_spill] sm:$0xff]  ;;  %v15846_v40 = vld [vmem:[#allocation79_spill] sm:$0xff]  ;;  %v15847_v21 = vld [vmem:[#allocation61_spill] sm:$0xff]  ;;  %v2328_v35 = vmul.f32 %v15830_v33, %v15851_v54 }
  0xc4   :  { %v2322_v10 = vmul.f32 %v15830_v33, %v15845_v15  ;;  %v2323_v25 = vmul.f32 %v15830_v33, %v15846_v40  ;;  %v2324_v13 = vmul.f32 %v15830_v33, %v15847_v21  ;;  %v15848_v17 = vld [vmem:[#allocation62_spill] sm:$0xff]  ;;  %v15849_v51 = vld [vmem:[#allocation63_spill] sm:$0xff]  ;;  %v15850_v48 = vld [vmem:[#allocation80_spill] sm:$0xff]  ;;  %v2329_v15 = vmul.f32 %v15830_v33, %v15852_v28 }
  0xc5   :  { %v2325_v1 = vmul.f32 %v15830_v33, %v15848_v17  ;;  %v2326_v53 = vmul.f32 %v15830_v33, %v15849_v51  ;;  %v2327_v59 = vmul.f32 %v15830_v33, %v15850_v48  ;;  %v2330_v40 = vmul.f32 %v15830_v33, %v15853_v16  ;;  %v15854_v5 = vld [vmem:[#allocation81_spill] sm:$0xff]  ;;  %v15855_v56 = vld [vmem:[#allocation67_spill] sm:$0xff]  ;;  %v15856_v9 = vld [vmem:[#allocation68_spill] sm:$0xff] }
  0xc6   :  { %v2331_v21 = vmul.f32 %v15830_v33, %v15854_v5  ;;  %v2332_v17 = vmul.f32 %v15830_v33, %v15855_v56  ;;  %v2333_v51 = vmul.f32 %v15830_v33, %v15856_v9  ;;  %v15857_v18 = vld [vmem:[#allocation69_spill] sm:$0xff]  ;;  %v15858_v2 = vld [vmem:[#allocation82_spill] sm:$0xff]  ;;  %v15859_v62 = vld [vmem:[#allocation71_spill] sm:$0xff]  ;;  %v8086_v56 = vadd.f32 %v2307_v29, %v7926_v6 }
  0xc7   :  { %v2334_v48 = vmul.f32 %v15830_v33, %v15857_v18  ;;  %v2335_v54 = vmul.f32 %v15830_v33, %v15858_v2  ;;  %v2336_v28 = vmul.f32 %v15830_v33, %v15859_v62  ;;  %v15860_v27 = vld [vmem:[#allocation72_spill] sm:$0xff]  ;;  %v15861_v42 = vld [vmem:[#allocation75_spill] sm:$0xff]  ;;  %v8091_v9 = vadd.f32 %v2308_v38, %v7929_v7  ;;  %v15864_v29 = vld [vmem:[#allocation18_spill] sm:$0xff] }
  0xc8   :  { %v2337_v16 = vmul.f32 %v15830_v33, %v15860_v27  ;;  %v2338_v5 = vmul.f32 %v15830_v33, %v15861_v42  ;;  %v8094_v18 = vadd.f32 %v2309_v52, %v7932_v34  ;;  %v8097_v2 = vadd.f32 %v2310_v63, %v7935_v11  ;;  %v15866_v38 = vld [vmem:[#allocation19_spill] sm:$0xff]  ;;  %v15868_v52 = vld [vmem:[#allocation21_spill] sm:$0xff]  ;;  %v15870_v63 = vld [vmem:[#allocation22_spill] sm:$0xff] }
  0xc9   :  { %v8100_v62 = vadd.f32 %v2311_v24, %v7938_v32  ;;  %v8107_v6 = vadd.f32 %v2312_v39, %v7941_v20  ;;  %v8110_v42 = vadd.f32 %v2313_v31, %v7944_v4  ;;  %v8113_v7 = vadd.f32 %v2314_v19, %v7947_v30  ;;  %v15876_v19 = vld [vmem:[#allocation25_spill] sm:$0xff] }
  0xca   :  { %v8116_v34 = vadd.f32 %v2315_v0, %v7950_v58  ;;  %v8119_v11 = vadd.f32 %v2316_v60, %v7953_v55  ;;  %v8122_v32 = vadd.f32 %v2317_v57, %v7956_v23  ;;  %v8125_v27 = vadd.f32 %v2318_v14, %v7959_v46  ;;  %v6303_v57 = vld [vmem:[%s14510_s0 + $0x20] sm:$0xff] }
  0xcb   :  { %v8128_v20 = vadd.f32 %v2319_v3, %v7962_v41  ;;  %v8131_v4 = vadd.f32 %v2320_v44, %v7965_v22  ;;  %v8134_v30 = vadd.f32 %v2321_v26, %v7968_v50  ;;  %v8137_v58 = vadd.f32 %v2322_v10, %v7971_v8  ;;  %v6304_v3 = vld [vmem:[%s14510_s0 + $0x28] sm:$0xff] }
  0xcc   :  { %v8140_v55 = vadd.f32 %v2323_v25, %v7974_v61  ;;  %v8143_v23 = vadd.f32 %v2324_v13, %v7977_v37  ;;  %v8146_v46 = vadd.f32 %v2325_v1, %v7980_v43  ;;  %v8149_v41 = vadd.f32 %v2326_v53, %v7983_v49  ;;  %v15862_v37 = vld [vmem:[#allocation17_spill] sm:$0xff]  ;;  %v6305_v25 = vld [vmem:[%s14510_s0 + $0x30] sm:$0xff]  ;;  %v6306_v1 = vld [vmem:[%s14510_s0 + $0x38] sm:$0xf] }
  0xcd   :  { %v8152_v22 = vadd.f32 %v2327_v59, %v7986_v36  ;;  %v8155_v50 = vadd.f32 %v2328_v35, %v7989_v45  ;;  %v8158_v8 = vadd.f32 %v2329_v15, %v7992_v12  ;;  %v8161_v61 = vadd.f32 %v2330_v40, %v7995_v47  ;;  %v15872_v12 = vld [vmem:[#allocation23_spill] sm:$0xff]  ;;  %v15874_v47 = vld [vmem:[#allocation24_spill] sm:$0xff]  ;;  %v6308_v15 = vld [vmem:[%s14510_s0 + $0x48] sm:$0xff] }
  0xce   :  { %v8164_v43 = vadd.f32 %v2331_v21, %v15862_v37  ;;  %v8167_v49 = vadd.f32 %v2332_v17, %v15864_v29  ;;  %v8170_v36 = vadd.f32 %v2333_v51, %v15866_v38  ;;  %v8173_v45 = vadd.f32 %v2334_v48, %v15868_v52  ;;  %v6307_v59 = vld [vmem:[%s14510_s0 + $0x40] sm:$0xff]  ;;  %v6309_v21 = vld [vmem:[%s14510_s0 + $0x50] sm:$0xff]  ;;  %v6310_v51 = vld [vmem:[%s14510_s0 + $0x58] sm:$0xf] }
  0xcf   :  { %v8176_v24 = vadd.f32 %v2335_v54, %v15870_v63  ;;  %v8179_v39 = vadd.f32 %v2336_v28, %v15872_v12  ;;  %v8182_v31 = vadd.f32 %v2337_v16, %v15874_v47  ;;  %v8185_v0 = vadd.f32 %v2338_v5, %v15876_v19  ;;  %v6311_v54 = vld [vmem:[%s14510_s0 + $0x60] sm:$0xff]  ;;  %v6312_v16 = vld [vmem:[%s14510_s0 + $0x68] sm:$0xff]  ;;  %v6313_v37 = vld [vmem:[%s14510_s0 + $0x70] sm:$0xff] }
  0xd0   :  { %15863 = vst [vmem:[#allocation26_spill] sm:$0xff] %v8164_v43  ;;  %15865 = vst [vmem:[#allocation29_spill] sm:$0xff] %v8167_v49  ;;  %v8188_v60 = vstv %s8088_s14  ;;  %v8203_v26 = vstv %s8102_s15  ;;  %v8206_v10 = vstv %s8104_s16  ;;  %v6314_v38 = vld [vmem:[%s14510_s0 + $0x78] sm:$0xf]  ;;  %s9154_s14 = sld [smem:[#allocation2 + $0x88]]  ;;  %s9168_s15 = sld [smem:[#allocation4 + $0x1]] }
  0xd1   :  { %15867 = vst [vmem:[#allocation30_spill] sm:$0xff] %v8170_v36  ;;  %15869 = vst [vmem:[#allocation32_spill] sm:$0xff] %v8173_v45  ;;  %v8194_v14 = vmul.f32 %v6303_v57, %v8188_v60  ;;  %v8200_v44 = vmul.f32 %v6304_v3, %v8188_v60  ;;  %v2533_v13 = vmul.f32 %v6305_v25, %v8188_v60  ;;  %v6315_v63 = vld [vmem:[%s14510_s0 + $0x80] sm:$0xff]  ;;  %v6316_v47 = vld [vmem:[%s14510_s0 + $0x88] sm:$0xff] }
  0xd2   :  { %15871 = vst [vmem:[#allocation33_spill] sm:$0xff] %v8176_v24  ;;  %15873 = vst [vmem:[#allocation34_spill] sm:$0xff] %v8179_v39  ;;  %v2534_v53 = vmul.f32 %v6306_v1, %v8188_v60  ;;  %v2535_v35 = vmul.f32 %v6307_v59, %v8188_v60  ;;  %v2536_v40 = vmul.f32 %v6308_v15, %v8188_v60  ;;  %v6317_v57 = vld [vmem:[%s14510_s0 + $0x90] sm:$0xff]  ;;  %v6318_v25 = vld [vmem:[%s14510_s0 + $0x98] sm:$0xf] }
  0xd3   :  { %15875 = vst [vmem:[#allocation37_spill] sm:$0xff] %v8182_v31  ;;  %15877 = vst [vmem:[#allocation38_spill] sm:$0xff] %v8185_v0  ;;  %v2537_v17 = vmul.f32 %v6309_v21, %v8188_v60  ;;  %v2538_v48 = vmul.f32 %v6310_v51, %v8188_v60  ;;  %v2539_v28 = vmul.f32 %v6311_v54, %v8188_v60  ;;  %v6319_v59 = vld [vmem:[%s14510_s0 + $0xa0] sm:$0xff]  ;;  %v6320_v21 = vld [vmem:[%s14510_s0 + $0xa8] sm:$0xff] }
  0xd4   :  { %15878 = vst [vmem:[#allocation42_spill] sm:$0xff] %v8188_v60  ;;  %15879 = vst [vmem:[#allocation43_spill] sm:$0xff] %v8203_v26  ;;  %v2540_v5 = vmul.f32 %v6312_v16, %v8188_v60  ;;  %v2541_v29 = vmul.f32 %v6313_v37, %v8188_v60  ;;  %v2542_v52 = vmul.f32 %v6314_v38, %v8188_v60  ;;  %v6321_v54 = vld [vmem:[%s14510_s0 + $0xb0] sm:$0xff]  ;;  %v6322_v37 = vld [vmem:[%s14510_s0 + $0xb8] sm:$0xf] }
  0xd5   :  { %15880 = vst [vmem:[#allocation44_spill] sm:$0xff] %v8206_v10  ;;  %v2543_v12 = vmul.f32 %v6315_v63, %v8188_v60  ;;  %v2544_v19 = vmul.f32 %v6316_v47, %v8188_v60  ;;  %v2545_v3 = vmul.f32 %v6317_v57, %v8188_v60  ;;  %v2546_v1 = vmul.f32 %v6318_v25, %v8188_v60  ;;  %v6323_v63 = vld [vmem:[%s14510_s0 + $0xc0] sm:$0xff]  ;;  %v6324_v57 = vld [vmem:[%s14510_s0 + $0xc8] sm:$0xff] }
  0xd6   :  { %v2547_v15 = vmul.f32 %v6319_v59, %v8188_v60  ;;  %v2548_v51 = vmul.f32 %v6320_v21, %v8188_v60  ;;  %v2549_v16 = vmul.f32 %v6321_v54, %v8188_v60  ;;  %v2550_v38 = vmul.f32 %v6322_v37, %v8188_v60  ;;  %v6325_v59 = vld [vmem:[%s14510_s0 + $0xd0] sm:$0xff]  ;;  %v6326_v54 = vld [vmem:[%s14510_s0 + $0xd8] sm:$0xf] }
  0xd7   :  { %v2551_v47 = vmul.f32 %v6323_v63, %v8188_v60  ;;  %v2552_v25 = vmul.f32 %v6324_v57, %v8188_v60  ;;  %v2553_v21 = vmul.f32 %v6325_v59, %v8188_v60  ;;  %v2554_v37 = vmul.f32 %v6326_v54, %v8188_v60  ;;  %v6327_v63 = vld [vmem:[%s14510_s0 + $0xe0] sm:$0xff]  ;;  %v6328_v57 = vld [vmem:[%s14510_s0 + $0xe8] sm:$0xff]  ;;  %v6329_v59 = vld [vmem:[%s14510_s0 + $0xf0] sm:$0xff] }
  0xd8   :  { %v2555_v33 = vmul.f32 %v6327_v63, %v8188_v60  ;;  %v2556_v10 = vmul.f32 %v6328_v57, %v8188_v60  ;;  %v2557_v26 = vmul.f32 %v6329_v59, %v8188_v60  ;;  %v6330_v54 = vld [vmem:[%s14510_s0 + $0xf8] sm:$0xf]  ;;  %v6331_v63 = vld [vmem:[%s14510_s0 + $0x100] sm:$0xff]  ;;  %v6332_v57 = vld [vmem:[%s14510_s0 + $0x108] sm:$0xff]  ;;  %v8334_v36 = vadd.f32 %v8200_v44, %v8091_v9 }
  0xd9   :  { %v2558_v0 = vmul.f32 %v6330_v54, %v8188_v60  ;;  %v2559_v31 = vmul.f32 %v6331_v63, %v8188_v60  ;;  %v2560_v39 = vmul.f32 %v6332_v57, %v8188_v60  ;;  %v6333_v59 = vld [vmem:[%s14510_s0 + $0x110] sm:$0xff]  ;;  %v6334_v54 = vld [vmem:[%s14510_s0 + $0x118] sm:$0xf]  ;;  %v8330_v63 = vadd.f32 %v8194_v14, %v8086_v56 }
  0xda   :  { %v2561_v24 = vmul.f32 %v6333_v59, %v8188_v60  ;;  %v2562_v45 = vmul.f32 %v6334_v54, %v8188_v60  ;;  %v8337_v57 = vadd.f32 %v2533_v13, %v8094_v18  ;;  %v8340_v49 = vadd.f32 %v2534_v53, %v8097_v2  ;;  %v15925_v60 = vld [vmem:[#allocation136_spill] sm:$0xff] }
  0xdb   :  { %v8343_v59 = vadd.f32 %v2535_v35, %v8100_v62  ;;  %v8346_v43 = vadd.f32 %v2536_v40, %v8107_v6  ;;  %v8349_v54 = vadd.f32 %v2537_v17, %v8110_v42  ;;  %v8352_v56 = vadd.f32 %v2538_v48, %v8113_v7 }
  0xdc   :  { %v8355_v9 = vadd.f32 %v2539_v28, %v8116_v34  ;;  %v8358_v18 = vadd.f32 %v2540_v5, %v8119_v11  ;;  %v8361_v2 = vadd.f32 %v2541_v29, %v8122_v32  ;;  %v8364_v62 = vadd.f32 %v2542_v52, %v8125_v27  ;;  %v15902_v28 = vld [vmem:[#allocation43_spill] sm:$0xff] }
  0xdd   :  { %v8367_v6 = vadd.f32 %v2543_v12, %v8128_v20  ;;  %v8370_v42 = vadd.f32 %v2544_v19, %v8131_v4  ;;  %v8373_v7 = vadd.f32 %v2545_v3, %v8134_v30  ;;  %v8376_v34 = vadd.f32 %v2546_v1, %v8137_v58 }
  0xde   :  { %v8379_v11 = vadd.f32 %v2547_v15, %v8140_v55  ;;  %v8382_v32 = vadd.f32 %v2548_v51, %v8143_v23  ;;  %v8385_v27 = vadd.f32 %v2549_v16, %v8146_v46  ;;  %v8388_v20 = vadd.f32 %v2550_v38, %v8149_v41  ;;  %v15885_v23 = vld [vmem:[#allocation26_spill] sm:$0xff]  ;;  %v15887_v46 = vld [vmem:[#allocation29_spill] sm:$0xff]  ;;  %v15909_v15 = vld [vmem:[#allocation132_spill] sm:$0xff] }
  0xdf   :  { %v8391_v4 = vadd.f32 %v2551_v47, %v8152_v22  ;;  %v8394_v30 = vadd.f32 %v2552_v25, %v8155_v50  ;;  %v8397_v58 = vadd.f32 %v2553_v21, %v8158_v8  ;;  %v8400_v55 = vadd.f32 %v2554_v37, %v8161_v61  ;;  %v15889_v41 = vld [vmem:[#allocation30_spill] sm:$0xff]  ;;  %v15891_v22 = vld [vmem:[#allocation32_spill] sm:$0xff]  ;;  %v15893_v50 = vld [vmem:[#allocation33_spill] sm:$0xff] }
  0xe0   :  { %v8403_v14 = vadd.f32 %v2555_v33, %v15885_v23  ;;  %v8406_v44 = vadd.f32 %v2556_v10, %v15887_v46  ;;  %v8409_v13 = vadd.f32 %v2557_v26, %v15889_v41  ;;  %v8412_v53 = vadd.f32 %v2558_v0, %v15891_v22  ;;  %v15895_v8 = vld [vmem:[#allocation34_spill] sm:$0xff]  ;;  %v15897_v61 = vld [vmem:[#allocation37_spill] sm:$0xff]  ;;  %v15901_v10 = vld [vmem:[#allocation107_spill] sm:$0xff] }
  0xe1   :  { %15881 = vst [vmem:[#allocation47_spill] sm:$0xff] %v8391_v4  ;;  %15882 = vst [vmem:[#allocation48_spill] sm:$0xff] %v8394_v30  ;;  %v8415_v35 = vadd.f32 %v2559_v31, %v15893_v50  ;;  %v8418_v40 = vadd.f32 %v2560_v39, %v15895_v8  ;;  %v8421_v17 = vadd.f32 %v2561_v24, %v15897_v61  ;;  %v15899_v33 = vld [vmem:[#allocation38_spill] sm:$0xff]  ;;  %v15903_v26 = vld [vmem:[#allocation108_spill] sm:$0xff] }
  0xe2   :  { %15883 = vst [vmem:[#allocation50_spill] sm:$0xff] %v8397_v58  ;;  %15884 = vst [vmem:[#allocation51_spill] sm:$0xff] %v8400_v55  ;;  %v8424_v48 = vadd.f32 %v2562_v45, %v15899_v33  ;;  %v2754_v5 = vmul.f32 %v15902_v28, %v15901_v10  ;;  %v2755_v29 = vmul.f32 %v15902_v28, %v15903_v26  ;;  %v15904_v0 = vld [vmem:[#allocation109_spill] sm:$0xff]  ;;  %v15905_v31 = vld [vmem:[#allocation131_spill] sm:$0xff] }
  0xe3   :  { %15886 = vst [vmem:[#allocation28_spill] sm:$0xff] %v8403_v14  ;;  %15888 = vst [vmem:[#allocation31_spill] sm:$0xff] %v8406_v44  ;;  %v2756_v52 = vmul.f32 %v15902_v28, %v15904_v0  ;;  %v2757_v12 = vmul.f32 %v15902_v28, %v15905_v31  ;;  %v15906_v39 = vld [vmem:[#allocation110_spill] sm:$0xff]  ;;  %v15907_v24 = vld [vmem:[#allocation111_spill] sm:$0xff]  ;;  %v2761_v51 = vmul.f32 %v15902_v28, %v15909_v15 }
  0xe4   :  { %15890 = vst [vmem:[#allocation58_spill] sm:$0xff] %v8409_v13  ;;  %15892 = vst [vmem:[#allocation102_spill] sm:$0xff] %v8412_v53  ;;  %v2758_v19 = vmul.f32 %v15902_v28, %v15906_v39  ;;  %v2759_v3 = vmul.f32 %v15902_v28, %v15907_v24  ;;  %v15908_v45 = vld [vmem:[#allocation112_spill] sm:$0xff]  ;;  %v15910_v16 = vld [vmem:[#allocation113_spill] sm:$0xff] }
  0xe5   :  { %15894 = vst [vmem:[#allocation83_spill] sm:$0xff] %v8415_v35  ;;  %15896 = vst [vmem:[#allocation84_spill] sm:$0xff] %v8418_v40  ;;  %v2760_v1 = vmul.f32 %v15902_v28, %v15908_v45  ;;  %v2762_v38 = vmul.f32 %v15902_v28, %v15910_v16  ;;  %v15911_v47 = vld [vmem:[#allocation114_spill] sm:$0xff]  ;;  %v15912_v21 = vld [vmem:[#allocation115_spill] sm:$0xff]  ;;  %v2866_v58 = vadd.f32 %v2756_v52, %v8337_v57 }
  0xe6   :  { %15898 = vst [vmem:[#allocation85_spill] sm:$0xff] %v8421_v17  ;;  %15900 = vst [vmem:[#allocation86_spill] sm:$0xff] %v8424_v48  ;;  %v2763_v25 = vmul.f32 %v15902_v28, %v15911_v47  ;;  %v2764_v37 = vmul.f32 %v15902_v28, %v15912_v21  ;;  %v15913_v23 = vld [vmem:[#allocation133_spill] sm:$0xff]  ;;  %v15914_v41 = vld [vmem:[#allocation116_spill] sm:$0xff]  ;;  %v2869_v30 = vadd.f32 %v2759_v3, %v8346_v43 }
  0xe7   :  { %v2765_v46 = vmul.f32 %v15902_v28, %v15913_v23  ;;  %v2766_v22 = vmul.f32 %v15902_v28, %v15914_v41  ;;  %v15915_v50 = vld [vmem:[#allocation117_spill] sm:$0xff]  ;;  %v15916_v61 = vld [vmem:[#allocation118_spill] sm:$0xff]  ;;  %v15918_v0 = vld [vmem:[#allocation119_spill] sm:$0xff]  ;;  %v2872_v4 = vadd.f32 %v2762_v38, %v8355_v9 }
  0xe8   :  { %v2767_v8 = vmul.f32 %v15902_v28, %v15915_v50  ;;  %v2768_v33 = vmul.f32 %v15902_v28, %v15916_v61  ;;  %v15917_v10 = vld [vmem:[#allocation134_spill] sm:$0xff]  ;;  %v2770_v31 = vmul.f32 %v15902_v28, %v15918_v0  ;;  %v15919_v39 = vld [vmem:[#allocation120_spill] sm:$0xff]  ;;  %v15920_v45 = vld [vmem:[#allocation121_spill] sm:$0xff]  ;;  %v2777_v0 = vmul.f32 %v15902_v28, %v15925_v60 }
  0xe9   :  { %v2769_v26 = vmul.f32 %v15902_v28, %v15917_v10  ;;  %v2771_v24 = vmul.f32 %v15902_v28, %v15919_v39  ;;  %v2772_v15 = vmul.f32 %v15902_v28, %v15920_v45  ;;  %v15921_v16 = vld [vmem:[#allocation135_spill] sm:$0xff]  ;;  %v15922_v21 = vld [vmem:[#allocation52_spill] sm:$0xff]  ;;  %v15923_v41 = vld [vmem:[#allocation122_spill] sm:$0xff]  ;;  %v2876_v57 = vadd.f32 %v2766_v22, %v8367_v6 }
  0xea   :  { %v2773_v47 = vmul.f32 %v15902_v28, %v15921_v16  ;;  %v2774_v23 = vmul.f32 %v15902_v28, %v15922_v21  ;;  %v2775_v50 = vmul.f32 %v15902_v28, %v15923_v41  ;;  %v15924_v61 = vld [vmem:[#allocation56_spill] sm:$0xff]  ;;  %v15926_v48 = vld [vmem:[#allocation57_spill] sm:$0xff]  ;;  %v15927_v17 = vld [vmem:[#allocation123_spill] sm:$0xff] }
  0xeb   :  { %v2776_v10 = vmul.f32 %v15902_v28, %v15924_v61  ;;  %v2778_v39 = vmul.f32 %v15902_v28, %v15926_v48  ;;  %v2779_v45 = vmul.f32 %v15902_v28, %v15927_v17  ;;  %v15928_v40 = vld [vmem:[#allocation124_spill] sm:$0xff]  ;;  %v15929_v35 = vld [vmem:[#allocation137_spill] sm:$0xff]  ;;  %v15931_v13 = vld [vmem:[#allocation127_spill] sm:$0xff]  ;;  %v2879_v43 = vadd.f32 %v2769_v26, %v8376_v34 }
  0xec   :  { %v2780_v16 = vmul.f32 %v15902_v28, %v15928_v40  ;;  %v2781_v21 = vmul.f32 %v15902_v28, %v15929_v35  ;;  %v15930_v53 = vld [vmem:[#allocation125_spill] sm:$0xff]  ;;  %v2783_v61 = vmul.f32 %v15902_v28, %v15931_v13  ;;  %v15932_v44 = vld [vmem:[#allocation128_spill] sm:$0xff]  ;;  %v15933_v14 = vld [vmem:[#allocation138_spill] sm:$0xff]  ;;  %v2864_v40 = vadd.f32 %v2754_v5, %v8330_v63 }
  0xed   :  { %v2782_v41 = vmul.f32 %v15902_v28, %v15930_v53  ;;  %v2784_v60 = vmul.f32 %v15902_v28, %v15932_v44  ;;  %v2785_v48 = vmul.f32 %v15902_v28, %v15933_v14  ;;  %v15934_v55 = vld [vmem:[#allocation129_spill] sm:$0xff]  ;;  %v2865_v35 = vadd.f32 %v2755_v29, %v8334_v36  ;;  %v15936_v5 = vld [vmem:[#allocation47_spill] sm:$0xff]  ;;  %v15937_v29 = vld [vmem:[#allocation48_spill] sm:$0xff] }
  0xee   :  { %v8492_v17 = vmul.f32 %v15902_v28, %v15934_v55  ;;  %v2867_v53 = vadd.f32 %v2757_v12, %v8340_v49  ;;  %v2868_v13 = vadd.f32 %v2758_v19, %v8343_v59  ;;  %v2870_v44 = vadd.f32 %v2760_v1, %v8349_v54  ;;  %v15938_v52 = vld [vmem:[#allocation50_spill] sm:$0xff]  ;;  %v15939_v12 = vld [vmem:[#allocation51_spill] sm:$0xff]  ;;  %v15940_v19 = vld [vmem:[#allocation28_spill] sm:$0xff] }
  0xef   :  { %v2871_v14 = vadd.f32 %v2761_v51, %v8352_v56  ;;  %v2873_v55 = vadd.f32 %v2763_v25, %v8358_v18  ;;  %v2874_v63 = vadd.f32 %v2764_v37, %v8361_v2  ;;  %v2875_v36 = vadd.f32 %v2765_v46, %v8364_v62  ;;  %v15941_v3 = vld [vmem:[#allocation31_spill] sm:$0xff]  ;;  %v15942_v1 = vld [vmem:[#allocation58_spill] sm:$0xff]  ;;  %v15945_v25 = vld [vmem:[#allocation84_spill] sm:$0xff] }
  0xf0   :  { %15935 = vst [vmem:[#allocation104_spill] sm:$0xff] %v8492_v17  ;;  %v2877_v49 = vadd.f32 %v2767_v8, %v8370_v42  ;;  %v2878_v59 = vadd.f32 %v2768_v33, %v8373_v7  ;;  %v2880_v54 = vadd.f32 %v2770_v31, %v8379_v11  ;;  %v2881_v56 = vadd.f32 %v2771_v24, %v8382_v32  ;;  %v15943_v51 = vld [vmem:[#allocation102_spill] sm:$0xff]  ;;  %v15944_v38 = vld [vmem:[#allocation83_spill] sm:$0xff]  ;;  %v15946_v37 = vld [vmem:[#allocation85_spill] sm:$0xff] }
  0xf1   :  { %v2882_v9 = vadd.f32 %v2772_v15, %v8385_v27  ;;  %v2883_v18 = vadd.f32 %v2773_v47, %v8388_v20  ;;  %v2884_v2 = vadd.f32 %v2774_v23, %v15936_v5  ;;  %v2885_v62 = vadd.f32 %v2775_v50, %v15937_v29  ;;  %v15947_v22 = vld [vmem:[#allocation86_spill] sm:$0xff]  ;;  %v15948_v33 = vld [vmem:[#allocation44_spill] sm:$0xff] }
  0xf2   :  { %v2886_v6 = vadd.f32 %v2776_v10, %v15938_v52  ;;  %v2887_v42 = vadd.f32 %v2777_v0, %v15939_v12  ;;  %v2888_v7 = vadd.f32 %v2778_v39, %v15940_v19  ;;  %v2889_v34 = vadd.f32 %v2779_v45, %v15941_v3 }
  0xf3   :  { %v2890_v11 = vadd.f32 %v2780_v16, %v15942_v1  ;;  %v2891_v32 = vadd.f32 %v2781_v21, %v15943_v51  ;;  %v2892_v27 = vadd.f32 %v2782_v41, %v15944_v38  ;;  %v2893_v20 = vadd.f32 %v2783_v61, %v15945_v25 }
  0xf4   :  { %v2894_v46 = vadd.f32 %v2784_v60, %v15946_v37  ;;  %v2895_v8 = vadd.f32 %v2785_v48, %v15947_v22  ;;  %v8527_v26 = vadd.f32 %v15948_v33, %v2864_v40  ;;  %v8530_v31 = vadd.f32 %v15948_v33, %v2865_v35 }
  0xf5   :  { %v8533_v24 = vadd.f32 %v15948_v33, %v2866_v58  ;;  %v8536_v15 = vadd.f32 %v15948_v33, %v2867_v53  ;;  %v8539_v47 = vadd.f32 %v15948_v33, %v2868_v13  ;;  %v8542_v23 = vadd.f32 %v15948_v33, %v2869_v30 }
  0xf6   :  { %v8545_v50 = vadd.f32 %v15948_v33, %v2870_v44  ;;  %v8548_v10 = vadd.f32 %v15948_v33, %v2871_v14  ;;  %v8551_v0 = vadd.f32 %v15948_v33, %v2872_v4  ;;  %v8554_v58 = vadd.f32 %v15948_v33, %v2873_v55 }
  0xf7   :  { %v8557_v53 = vadd.f32 %v15948_v33, %v2874_v63  ;;  %v8560_v39 = vadd.f32 %v15948_v33, %v2875_v36  ;;  %v8563_v30 = vadd.f32 %v15948_v33, %v2876_v57  ;;  %v8566_v45 = vadd.f32 %v15948_v33, %v2877_v49 }
  0xf8   :  { %v8569_v16 = vadd.f32 %v15948_v33, %v2878_v59  ;;  %v8572_v4 = vadd.f32 %v15948_v33, %v2879_v43  ;;  %v8575_v21 = vadd.f32 %v15948_v33, %v2880_v54  ;;  %v8578_v41 = vadd.f32 %v15948_v33, %v2881_v56 }
  0xf9   :  { %v8581_v61 = vadd.f32 %v15948_v33, %v2882_v9  ;;  %v8584_v60 = vadd.f32 %v15948_v33, %v2883_v18  ;;  %v8587_v48 = vadd.f32 %v15948_v33, %v2884_v2  ;;  %v8590_v40 = vadd.f32 %v15948_v33, %v2885_v62 }
  0xfa   :  { %v8593_v35 = vadd.f32 %v15948_v33, %v2886_v6  ;;  %v8596_v13 = vadd.f32 %v15948_v33, %v2887_v42  ;;  %v8599_v44 = vadd.f32 %v15948_v33, %v2888_v7  ;;  %v8602_v14 = vadd.f32 %v15948_v33, %v2889_v34 }
  0xfb   :  { %15949 = vst [vmem:[#allocation105_spill] sm:$0xff] %v8584_v60  ;;  %15950 = vst [vmem:[#allocation106_spill] sm:$0xff] %v8587_v48  ;;  %v8605_v55 = vadd.f32 %v15948_v33, %v2890_v11  ;;  %v8608_v63 = vadd.f32 %v15948_v33, %v2891_v32  ;;  %v8611_v36 = vadd.f32 %v15948_v33, %v2892_v27  ;;  %v14756_v43 = vmax.f32 %v8527_v26, 0.0 }
  0xfc   :  { %15951 = vst [vmem:[#allocation130_spill] sm:$0xff] %v8590_v40  ;;  %15952 = vst [vmem:[#allocation89_spill] sm:$0xff] %v8596_v13  ;;  %v8614_v57 = vadd.f32 %v15948_v33, %v2893_v20  ;;  %v8617_v49 = vadd.f32 %v15948_v33, %v2894_v46  ;;  %v8620_v59 = vadd.f32 %v15948_v33, %v2895_v8  ;;  %v14757_v54 = vmax.f32 %v8530_v31, 0.0 }
  0xfd   :  { %15953 = vst [vmem:[#allocation90_spill] sm:$0xff] %v8599_v44  ;;  %15954 = vst [vmem:[#allocation91_spill] sm:$0xff] %v8602_v14  ;;  %v14758_v56 = vmax.f32 %v8533_v24, 0.0  ;;  %v14759_v9 = vmax.f32 %v8536_v15, 0.0  ;;  %v14760_v18 = vmax.f32 %v8539_v47, 0.0  ;;  %v14761_v5 = vmax.f32 %v8542_v23, 0.0 }
  0xfe   :  { %15955 = vst [vmem:[#allocation92_spill] sm:$0xff] %v8605_v55  ;;  %15956 = vst [vmem:[#allocation8_spill] sm:$0xff] %v8608_v63  ;;  %v14762_v2 = vmax.f32 %v8545_v50, 0.0  ;;  %v14763_v29 = vmax.f32 %v8548_v10, 0.0  ;;  %v14764_v62 = vmax.f32 %v8551_v0, 0.0  ;;  %v14765_v52 = vmax.f32 %v8554_v58, 0.0 }
  0xff   :  { %15957 = vst [vmem:[#allocation9_spill] sm:$0xff] %v8611_v36  ;;  %15958 = vst [vmem:[#allocation10_spill] sm:$0xff] %v8614_v57  ;;  %v14766_v6 = vmax.f32 %v8557_v53, 0.0  ;;  %v14767_v12 = vmax.f32 %v8560_v39, 0.0  ;;  %v14768_v42 = vmax.f32 %v8563_v30, 0.0  ;;  %v14769_v19 = vmax.f32 %v8566_v45, 0.0 }
 0x100   :  { %15959 = vst [vmem:[#allocation11_spill] sm:$0xff] %v8617_v49  ;;  %15960 = vst [vmem:[#allocation12_spill] sm:$0xff] %v8620_v59  ;;  %v14770_v7 = vmax.f32 %v8569_v16, 0.0  ;;  %v14771_v3 = vmax.f32 %v8572_v4, 0.0  ;;  %v14772_v34 = vmax.f32 %v8575_v21, 0.0  ;;  %v14773_v1 = vmax.f32 %v8578_v41, 0.0 }
 0x101   :  { %v14776_v11 = vmax.f32 %v8581_v61, 0.0  ;;  %v3314_v32 = vrot.slane %v14756_v43, 1  ;;  %v3315_v27 = vrot.slane %v14757_v54, 1  ;;  %v3317_v25 = vrot.slane %v14758_v56, 1 }
 0x102   :  { %v3319_v37 = vrot.slane %v14759_v9, 1  ;;  %v3321_v46 = vrot.slane %v14760_v18, 1  ;;  %v3322_v8 = vrot.slane %v14761_v5, 1  ;;  %v3324_v51 = vrot.slane %v14762_v2, 1 }
 0x103   :  { %v3326_v54 = vrot.slane %v14763_v29, 1  ;;  %v3328_v56 = vrot.slane %v14764_v62, 1  ;;  %v3316_v9 = vsel %vm1046_vm1, %v3314_v32, %v3315_v27  ;;  %v3318_v18 = vsel %vm1046_vm1, %v3315_v27, %v3317_v25 }
 0x104   :  { %v3320_v20 = vsel %vm1046_vm1, %v3317_v25, %v3319_v37  ;;  %v3329_v5 = vrot.slane %v14765_v52, 1  ;;  %v3323_v2 = vsel %vm1046_vm1, %v3321_v46, %v3322_v8  ;;  %v3331_v22 = vrot.slane %v14766_v6, 1 }
 0x105   :  { %v3333_v29 = vrot.slane %v14767_v12, 1  ;;  %v3335_v62 = vrot.slane %v14768_v42, 1  ;;  %v3325_v32 = vsel %vm1046_vm1, %v3322_v8, %v3324_v51  ;;  %v3336_v27 = vrot.slane %v14769_v19, 1 }
 0x106   :  { %v3338_v25 = vrot.slane %v14770_v7, 1  ;;  %v3340_v46 = vrot.slane %v14771_v3, 1  ;;  %v3327_v52 = vsel %vm1046_vm1, %v3324_v51, %v3326_v54  ;;  %v3330_v6 = vsel %vm1046_vm1, %v3328_v56, %v3329_v5 }
 0x107   :  { %v3342_v12 = vrot.slane %v14772_v34, 1  ;;  %v3343_v42 = vrot.slane %v14773_v1, 1  ;;  %v3332_v8 = vsel %vm1046_vm1, %v3329_v5, %v3331_v22  ;;  %v3334_v19 = vsel %vm1046_vm1, %v3331_v22, %v3333_v29 }
 0x108   :  { %v3337_v43 = vsel %vm1046_vm1, %v3335_v62, %v3336_v27  ;;  %v3345_v7 = vrot.slane %v14776_v11, 1  ;;  %v3339_v3 = vsel %vm1046_vm1, %v3336_v27, %v3338_v25  ;;  %v15961_v51 = vmax.f32 %v8584_v60, 0.0 }
 0x109   :  { %v15962_v38 = vmax.f32 %v8587_v48, 0.0  ;;  %v15963_v17 = vmax.f32 %v8590_v40, 0.0  ;;  %v3341_v5 = vsel %vm1046_vm1, %v3338_v25, %v3340_v46  ;;  %v15964_v22 = vmax.f32 %v8593_v35, 0.0 }
 0x10a   :  { %v3347_v56 = vrot.slane %v15961_v51, 1  ;;  %v15965_v62 = vmax.f32 %v8596_v13, 0.0  ;;  %v15966_v11 = vmax.f32 %v8599_v44, 0.0  ;;  %v3344_v60 = vsel %vm1046_vm1, %v3342_v12, %v3343_v42 }
 0x10b   :  { %v3349_v34 = vrot.slane %v15962_v38, 1  ;;  %v3350_v1 = vrot.slane %v15963_v17, 1  ;;  %v3352_v33 = vrot.slane %v15964_v22, 1  ;;  %v3346_v51 = vsel %vm1046_vm1, %v3343_v42, %v3345_v7 }
 0x10c   :  { %v3354_v28 = vrot.slane %v15965_v62, 1  ;;  %v3356_v27 = vrot.slane %v15966_v11, 1  ;;  %v15967_v38 = vmax.f32 %v8602_v14, 0.0  ;;  %v15968_v17 = vmax.f32 %v8605_v55, 0.0 }
 0x10d   :  { %v3348_v25 = vsel %vm1046_vm1, %v3345_v7, %v3347_v56  ;;  %v3351_v22 = vsel %vm1046_vm1, %v3349_v34, %v3350_v1  ;;  %v15969_v13 = vmax.f32 %v8608_v63, 0.0  ;;  %v15971_v11 = vmax.f32 %v8611_v36, 0.0 }
 0x10e   :  { %v3357_v48 = vrot.slane %v15967_v38, 1  ;;  %v3359_v40 = vrot.slane %v15968_v17, 1  ;;  %v3353_v12 = vsel %vm1046_vm1, %v3350_v1, %v3352_v33  ;;  %v3355_v42 = vsel %vm1046_vm1, %v3352_v33, %v3354_v28 }
 0x10f   :  { %v8726_v62 = vrot.slane %v15969_v13, 1  ;;  %v3363_v44 = vrot.slane %v15971_v11, 1  ;;  %v15972_v38 = vmax.f32 %v8614_v57, 0.0  ;;  %v15973_v17 = vmax.f32 %v8617_v49, 0.0 }
 0x110   :  { %v3358_v7 = vsel %vm1046_vm1, %v3356_v27, %v3357_v48  ;;  %v3360_v34 = vsel %vm1046_vm1, %v3357_v48, %v3359_v40  ;;  %v15974_v63 = vmax.f32 %v8620_v59, 0.0  ;;  %v3623_v49 = vsel %vm1348_vm2, %v3326_v54, 0.0 }
 0x111   :  { %15970 = vst [vmem:[#allocation13_spill] sm:$0xff] %v8726_v62  ;;  %v3364_v14 = vrot.slane %v15972_v38, 1  ;;  %v3366_v55 = vrot.slane %v15973_v17, 1  ;;  %v3362_v13 = vsel %vm1046_vm1, %v3359_v40, %v8726_v62  ;;  %v3622_v38 = vsel %vm1348_vm2, %v3319_v37, 0.0 }
 0x112   :  { %v8742_v11 = vrot.slane %v15974_v63, 1  ;;  %v3624_v48 = vsel %vm1348_vm2, %v3333_v29, 0.0  ;;  %v3625_v17 = vsel %vm1348_vm2, %v3340_v46, 0.0  ;;  %v3626_v40 = vsel %vm1348_vm2, %v3347_v56, 0.0 }
 0x113   :  { %v3365_v1 = vsel %vm1046_vm1, %v3363_v44, %v3364_v14  ;;  %v3367_v33 = vsel %vm1046_vm1, %v3364_v14, %v3366_v55  ;;  %v3627_v63 = vsel %vm1348_vm2, %v3354_v28, 0.0  ;;  %v15976_v59 = vmax.f32 %v8527_v26, 0.0 }
 0x114   :  { %15975 = vst [vmem:[#allocation74_spill] sm:$0xff] %v8742_v11  ;;  %v3369_v27 = vsel %vm1046_vm1, %v3366_v55, %v8742_v11  ;;  %v15977_v14 = vmax.f32 %v8530_v31, 0.0  ;;  %v15978_v37 = vmax.f32 %v8533_v24, 0.0  ;;  %v15979_v57 = vmax.f32 %v8536_v15, 0.0 }
 0x115   :  { %v3650_v44 = vmax.f32 %v15976_v59, %v3316_v9  ;;  %v15980_v29 = vmax.f32 %v8539_v47, 0.0  ;;  %v15981_v46 = vmax.f32 %v8542_v23, 0.0  ;;  %v15982_v28 = vmax.f32 %v8545_v50, 0.0 }
 0x116   :  { %v3651_v62 = vmax.f32 %v15977_v14, %v3318_v18  ;;  %v3652_v54 = vmax.f32 %v15978_v37, %v3320_v20  ;;  %v3653_v55 = vmax.f32 %v15979_v57, %v3622_v38  ;;  %v15983_v26 = vmax.f32 %v8548_v10, 0.0 }
 0x117   :  { %v3654_v11 = vmax.f32 %v15980_v29, %v3323_v2  ;;  %v3655_v56 = vmax.f32 %v15981_v46, %v3325_v32  ;;  %v3656_v36 = vmax.f32 %v15982_v28, %v3327_v52  ;;  %v15984_v31 = vmax.f32 %v8551_v0, 0.0  ;;  %v16008_v28 = vld [vmem:[#allocation10_spill] sm:$0xff] }
 0x118   :  { %v3657_v59 = vmax.f32 %v15983_v26, %v3623_v49  ;;  %v15985_v24 = vmax.f32 %v8554_v58, 0.0  ;;  %v15986_v15 = vmax.f32 %v8557_v53, 0.0  ;;  %v15987_v47 = vmax.f32 %v8560_v39, 0.0 }
 0x119   :  { %v3658_v9 = vmax.f32 %v15984_v31, %v3330_v6  ;;  %v15988_v23 = vmax.f32 %v8563_v30, 0.0  ;;  %v15989_v50 = vmax.f32 %v8566_v45, 0.0  ;;  %v15990_v10 = vmax.f32 %v8569_v16, 0.0  ;;  %v16010_v31 = vld [vmem:[#allocation89_spill] sm:$0xff] }
 0x11a   :  { %v3659_v18 = vmax.f32 %v15985_v24, %v3332_v8  ;;  %v3660_v57 = vmax.f32 %v15986_v15, %v3334_v19  ;;  %v3661_v2 = vmax.f32 %v15987_v47, %v3624_v48  ;;  %v15991_v0 = vmax.f32 %v8572_v4, 0.0 }
 0x11b   :  { %v3662_v20 = vmax.f32 %v15988_v23, %v3337_v43  ;;  %v3663_v52 = vmax.f32 %v15989_v50, %v3339_v3  ;;  %v3664_v49 = vmax.f32 %v15990_v10, %v3341_v5  ;;  %v15992_v6 = vmax.f32 %v8575_v21, 0.0  ;;  %v15995_v43 = vld [vmem:[#allocation105_spill] sm:$0xff]  ;;  %v15997_v3 = vld [vmem:[#allocation106_spill] sm:$0xff]  ;;  %v16014_v50 = vld [vmem:[#allocation11_spill] sm:$0xff] }
 0x11c   :  { %v3665_v58 = vmax.f32 %v15991_v0, %v3625_v17  ;;  %v15993_v19 = vmax.f32 %v8578_v41, 0.0  ;;  %v15994_v32 = vmax.f32 %v8581_v61, 0.0  ;;  %v15996_v8 = vmax.f32 %v15995_v43, 0.0  ;;  %v15999_v5 = vld [vmem:[#allocation130_spill] sm:$0xff]  ;;  %v16004_v41 = vld [vmem:[#allocation91_spill] sm:$0xff]  ;;  %v16006_v61 = vld [vmem:[#allocation9_spill] sm:$0xff] }
 0x11d   :  { %v3666_v53 = vmax.f32 %v15992_v6, %v3344_v60  ;;  %v15998_v38 = vmax.f32 %v15997_v3, 0.0  ;;  %v16000_v48 = vmax.f32 %v15999_v5, 0.0  ;;  %v16001_v4 = vmax.f32 %v8593_v35, 0.0  ;;  %v16002_v21 = vld [vmem:[#allocation90_spill] sm:$0xff] }
 0x11e   :  { %v3667_v39 = vmax.f32 %v15993_v19, %v3346_v51  ;;  %v3668_v30 = vmax.f32 %v15994_v32, %v3348_v25  ;;  %v3669_v45 = vmax.f32 %v15996_v8, %v3626_v40  ;;  %v16003_v60 = vmax.f32 %v16002_v21, 0.0 }
 0x11f   :  { %v3670_v16 = vmax.f32 %v15998_v38, %v3351_v22  ;;  %v3671_v14 = vmax.f32 %v16000_v48, %v3353_v12  ;;  %v3672_v17 = vmax.f32 %v16001_v4, %v3355_v42  ;;  %v16005_v51 = vmax.f32 %v16004_v41, 0.0  ;;  %v16012_v42 = vld [vmem:[#allocation92_spill] sm:$0xff] }
 0x120   :  { %v3674_v37 = vmax.f32 %v16003_v60, %v3358_v7  ;;  %v16007_v25 = vmax.f32 %v16006_v61, 0.0  ;;  %v16009_v40 = vmax.f32 %v16008_v28, 0.0  ;;  %v16011_v22 = vmax.f32 %v16010_v31, 0.0 }
 0x121   :  { %v3675_v29 = vmax.f32 %v16005_v51, %v3360_v34  ;;  %v8810_v15 = vmax.f32 %v3650_v44, %v3654_v11  ;;  %v8812_v12 = vmax.f32 %v3651_v62, %v3655_v56  ;;  %v8814_v35 = vmax.f32 %v3652_v54, %v3656_v36 }
 0x122   :  { %v3678_v46 = vmax.f32 %v16007_v25, %v3365_v1  ;;  %v3679_v26 = vmax.f32 %v16009_v40, %v3367_v33  ;;  %v3673_v24 = vmax.f32 %v16011_v22, %v3627_v63  ;;  %v16013_v7 = vmax.f32 %v16012_v42, 0.0 }
 0x123   :  { %v8818_v23 = vmax.f32 %v3658_v9, %v3662_v20  ;;  %v8820_v34 = vmax.f32 %v3659_v18, %v3663_v52  ;;  %v8822_v1 = vmax.f32 %v3660_v57, %v3664_v49  ;;  %v16015_v33 = vmax.f32 %v16014_v50, 0.0 }
 0x124   :  { %v3676_v47 = vmax.f32 %v16013_v7, %v3362_v13  ;;  %v8826_v0 = vmax.f32 %v3653_v55, %v3657_v59  ;;  %v8828_v11 = vmax.f32 %v3666_v53, %v3670_v16  ;;  %v8830_v62 = vmax.f32 %v3667_v39, %v3671_v14 }
 0x125   :  { %v3680_v10 = vmax.f32 %v16015_v33, %v3369_v27  ;;  %v8836_v36 = vmax.f32 %v3661_v2, %v3665_v58  ;;  %v8838_v13 = vmax.f32 %v3668_v30, %v3672_v17  ;;  %v8840_v63 = vmax.f32 %v3674_v37, %v3678_v46 }
 0x126   :  { %16016 = vst [vmem:[#allocation35_spill] sm:$0xff] %v8826_v0  ;;  %v8842_v44 = vmax.f32 %v3675_v29, %v3679_v26  ;;  %v16020_v54 = vmov 0.0   ;;  %v3874_v55 = vrot.slane %v8810_v15, 6  ;;  %v3875_v56 = vrot.slane %v8812_v12, 6 }
 0x127   :  { %16017 = vst [vmem:[#allocation36_spill] sm:$0xff] %v8836_v36  ;;  %16018 = vst [vmem:[#allocation39_spill] sm:$0xff] %v8838_v13  ;;  %v8845_v27 = vrot.slane %v16020_v54, 6  ;;  %v14794_v59 = vrot.slane %v8814_v35, 6  ;;  %v3881_v9 = vrot.slane %v8818_v23, 6  ;;  %v3882_v18 = vrot.slane %v8820_v34, 6 }
 0x128   :  { %16019 = vst [vmem:[#allocation76_spill] sm:$0xff] %v8840_v63  ;;  %v14793_v57 = vrot.slane %v8822_v1, 6  ;;  %v3888_v2 = vrot.slane %v8828_v11, 6  ;;  %v8854_v20 = vmax.f32 %v3669_v45, %v3673_v24  ;;  %v8856_v52 = vmax.f32 %v3676_v47, %v3680_v10 }
 0x129   :  { %16021 = vst [vmem:[#allocation40_spill] sm:$0xff] %v8845_v27  ;;  %v3889_v49 = vrot.slane %v8830_v62, 6  ;;  %v14792_v58 = vrot.slane %v8838_v13, 6  ;;  %v8861_v6 = vsel %vm3871_vm3, %v3874_v55, %v3875_v56  ;;  %v8866_v53 = vsel %vm3871_vm3, %v3875_v56, %v14794_v59 }
 0x12a   :  { %16022 = vst [vmem:[#allocation41_spill] sm:$0xff] %v8854_v20  ;;  %16023 = vst [vmem:[#allocation45_spill] sm:$0xff] %v8856_v52  ;;  %v3895_v19 = vrot.slane %v8840_v63, 6  ;;  %v14791_v39 = vrot.slane %v8842_v44, 6  ;;  %v8871_v32 = vsel %vm3871_vm3, %v3881_v9, %v3882_v18  ;;  %v8876_v30 = vsel %vm3871_vm3, %v3882_v18, %v14793_v57 }
 0x12b   :  { %v8880_v43 = vsel %vm3871_vm3, 0.0, %v8845_v27  ;;  %v8883_v8 = vsel %vm3871_vm3, 0.0, %v3874_v55  ;;  %v8886_v45 = vsel %vm3871_vm3, %v3888_v2, %v3889_v49  ;;  %v8891_v3 = vsel %vm3871_vm3, %v3889_v49, %v14792_v58 }
 0x12c   :  { %16024 = vst [vmem:[#allocation77_spill] sm:$0xff] %v8880_v43  ;;  %v8896_v38 = vsel %vm3871_vm3, %v3895_v19, %v14791_v39  ;;  %v8899_v16 = vsel %vm3871_vm3, 0.0, %v3881_v9  ;;  %v8902_v5 = vsel %vm3871_vm3, 0.0, %v3888_v2  ;;  %v8905_v48 = vsel %vm3871_vm3, 0.0, %v3895_v19 }
 0x12d   :  { %16025 = vst [vmem:[#allocation46_spill] sm:$0xff] %v8905_v48  ;;  %v8908_v14 = vstv %s8832_s25  ;;  %v8911_v4 = vstv %s8834_s9  ;;  %v8920_v37 = vrot.slane %v16020_v54, 2 }
 0x12e   :  { %16026 = vst [vmem:[#allocation49_spill] sm:$0xff] %v8908_v14  ;;  %16027 = vst [vmem:[#allocation53_spill] sm:$0xff] %v8911_v4  ;;  %v4034_v17 = vmul.f32 %v8908_v14, %v8880_v43  ;;  %v4035_v21 = vmul.f32 %v8908_v14, %v8845_v27  ;;  %v4036_v60 = vmul.f32 %v8908_v14, %v8883_v8  ;;  %v4144_v31 = vmul.f32 0.0, %v8911_v4 }
 0x12f   :  { %16028 = vst [vmem:[#allocation78_spill] sm:$0xff] %v8920_v37  ;;  %v4037_v41 = vmul.f32 %v8908_v14, %v8861_v6  ;;  %v4038_v51 = vmul.f32 %v8908_v14, %v8866_v53  ;;  %v4040_v29 = vmul.f32 %v8908_v14, %v8899_v16  ;;  %v4041_v61 = vmul.f32 %v8908_v14, %v8871_v32 }
 0x130   :  { %v4042_v25 = vmul.f32 %v8908_v14, %v8876_v30  ;;  %v4044_v46 = vmul.f32 %v8908_v14, %v8902_v5  ;;  %v4045_v28 = vmul.f32 %v8908_v14, %v8886_v45  ;;  %v4046_v40 = vmul.f32 %v8908_v14, %v8891_v3 }
 0x131   :  { %v4049_v26 = vmul.f32 %v8908_v14, %v8896_v38  ;;  %v4145_v22 = vmul.f32 %v8911_v4, %v8810_v15  ;;  %v4146_v24 = vmul.f32 %v8911_v4, %v8812_v12  ;;  %v4147_v42 = vmul.f32 %v8911_v4, %v8814_v35 }
 0x132   :  { %v4149_v7 = vmul.f32 %v8911_v4, %v8818_v23  ;;  %v4150_v47 = vmul.f32 %v8911_v4, %v8820_v34  ;;  %v4151_v50 = vmul.f32 %v8911_v4, %v8822_v1  ;;  %v8955_v33 = vmul.f32 %v8908_v14, %v8905_v48 }
 0x133   :  { %v4153_v10 = vmul.f32 %v8911_v4, %v8828_v11  ;;  %v4154_v55 = vmul.f32 %v8911_v4, %v8830_v62  ;;  %v4158_v56 = vmul.f32 %v8911_v4, %v8842_v44  ;;  %v4155_v9 = vmul.f32 %v8911_v4, %v8838_v13 }
 0x134   :  { %16029 = vst [vmem:[#allocation54_spill] sm:$0xff] %v8955_v33  ;;  %v4197_v18 = vadd.f32 %v4144_v31, %v4034_v17  ;;  %v8965_v2 = vadd.f32 %v4144_v31, %v4035_v21  ;;  %v4199_v49 = vadd.f32 %v4145_v22, %v4036_v60  ;;  %v4200_v19 = vadd.f32 %v4146_v24, %v4037_v41 }
 0x135   :  { %v4203_v39 = vadd.f32 %v4149_v7, %v4040_v29  ;;  %v4204_v58 = vadd.f32 %v4150_v47, %v4041_v61  ;;  %v4205_v57 = vadd.f32 %v4151_v50, %v4042_v25  ;;  %v4201_v59 = vadd.f32 %v4147_v42, %v4038_v51 }
 0x136   :  { %v4207_v54 = vadd.f32 %v4153_v10, %v4044_v46  ;;  %v4208_v27 = vadd.f32 %v4154_v55, %v4045_v28  ;;  %v8971_v43 = vadd.f32 %v4158_v56, %v4049_v26  ;;  %v4255_v33 = vrot.slane %v8810_v15, 2 }
 0x137   :  { %v4256_v17 = vrot.slane %v8812_v12, 2  ;;  %v4258_v21 = vrot.slane %v8814_v35, 2  ;;  %v14801_v60 = vrot.slane %v8826_v0, 2  ;;  %v4262_v41 = vrot.slane %v8818_v23, 2 }
 0x138   :  { %16030 = vst [vmem:[#allocation59_spill] sm:$0xff] %v8971_v43  ;;  %v4263_v29 = vrot.slane %v8820_v34, 2  ;;  %v4265_v61 = vrot.slane %v8822_v1, 2  ;;  %v14799_v51 = vrot.slane %v8836_v36, 2  ;;  %v4209_v25 = vadd.f32 %v4155_v9, %v4046_v40 }
 0x139   :  { %v8982_v46 = vsel %vm4252_vm4, %v4255_v33, %v4256_v17  ;;  %v8985_v28 = vsel %vm4252_vm4, %v4256_v17, %v4258_v21  ;;  %v4269_v26 = vrot.slane %v8828_v11, 2  ;;  %v8991_v31 = vsel %vm4252_vm4, %v4258_v21, %v14801_v60 }
 0x13a   :  { %v8994_v22 = vsel %vm4252_vm4, %v4262_v41, %v4263_v29  ;;  %v8997_v24 = vsel %vm4252_vm4, %v4263_v29, %v4265_v61  ;;  %v4270_v40 = vrot.slane %v8830_v62, 2  ;;  %v4272_v42 = vrot.slane %v8838_v13, 2 }
 0x13b   :  { %v14798_v7 = vrot.slane %v8854_v20, 2  ;;  %v14802_v47 = vrot.slane %v8842_v44, 2  ;;  %v14800_v50 = vrot.slane %v8856_v52, 2  ;;  %v9007_v33 = vsel %vm4252_vm4, %v4265_v61, %v14799_v51 }
 0x13c   :  { %v9010_v10 = vsel %vm4252_vm4, %v4269_v26, %v4270_v40  ;;  %v9014_v55 = vsel %vm3871_vm3, %v8920_v37, 0.0  ;;  %v9017_v56 = vstv %s8967_s1  ;;  %v9020_v9 = vsel %vm4252_vm4, %v4270_v40, %v4272_v42 }
 0x13d   :  { %16031 = vst [vmem:[#allocation60_spill] sm:$0xff] %v9010_v10  ;;  %16032 = vst [vmem:[#allocation79_spill] sm:$0xff] %v9014_v55  ;;  %v9025_v17 = vsel %vm4252_vm4, %v4272_v42, %v14798_v7  ;;  %v4415_v21 = vmul.f32 %v9017_v56, %v8920_v37  ;;  %v9030_v41 = vstv %s8969_s2  ;;  %v9037_v29 = vsel %vm4252_vm4, %v14802_v47, %v14800_v50 }
 0x13e   :  { %16033 = vst [vmem:[#allocation61_spill] sm:$0xff] %v9017_v56  ;;  %16034 = vst [vmem:[#allocation62_spill] sm:$0xff] %v9020_v9  ;;  %v4417_v61 = vmul.f32 %v9017_v56, %v8982_v46  ;;  %v4418_v26 = vmul.f32 %v9017_v56, %v8985_v28  ;;  %v4419_v40 = vmul.f32 %v9017_v56, %v8991_v31 }
 0x13f   :  { %16035 = vst [vmem:[#allocation63_spill] sm:$0xff] %v9025_v17  ;;  %16036 = vst [vmem:[#allocation80_spill] sm:$0xff] %v9030_v41  ;;  %v4421_v42 = vmul.f32 %v9017_v56, %v8994_v22  ;;  %v4422_v7 = vmul.f32 %v9017_v56, %v8997_v24  ;;  %v4423_v51 = vmul.f32 %v9017_v56, %v9007_v33 }
 0x140   :  { %16037 = vst [vmem:[#allocation64_spill] sm:$0xff] %v9037_v29  ;;  %v4425_v50 = vmul.f32 %v9017_v56, %v9010_v10  ;;  %v4416_v60 = vmul.f32 %v9017_v56, %v9014_v55  ;;  %v4426_v47 = vmul.f32 %v9017_v56, %v9020_v9  ;;  %v4427_v37 = vmul.f32 %v9017_v56, %v9025_v17 }
 0x141   :  { %v9061_v43 = vmul.f32 %v9017_v56, %v9037_v29  ;;  %v4469_v4 = vadd.f32 %v4415_v21, %v4197_v18  ;;  %v4470_v14 = vadd.f32 %v4415_v21, %v8965_v2  ;;  %v4472_v52 = vadd.f32 %v4417_v61, %v4199_v49 }
 0x142   :  { %v4473_v20 = vadd.f32 %v4418_v26, %v4200_v19  ;;  %v4474_v55 = vadd.f32 %v4419_v40, %v4201_v59  ;;  %v4476_v36 = vadd.f32 %v4421_v42, %v4203_v39  ;;  %v4477_v0 = vadd.f32 %v4422_v7, %v4204_v58 }
 0x143   :  { %16038 = vst [vmem:[#allocation65_spill] sm:$0xff] %v9061_v43  ;;  %v4478_v13 = vadd.f32 %v4423_v51, %v4205_v57  ;;  %v4480_v9 = vadd.f32 %v4425_v50, %v4207_v54  ;;  %v4481_v10 = vadd.f32 %v4426_v47, %v4208_v27  ;;  %v9068_v17 = vadd.f32 %v4427_v37, %v4209_v25 }
 0x144   :  { %v4542_v43 = vmul.f32 %v9030_v41, %v8883_v8  ;;  %v4543_v18 = vmul.f32 %v9030_v41, %v8861_v6  ;;  %v4544_v49 = vmul.f32 %v9030_v41, %v8866_v53  ;;  %v4546_v19 = vmul.f32 %v9030_v41, %v8899_v16 }
 0x145   :  { %16039 = vst [vmem:[#allocation66_spill] sm:$0xff] %v9068_v17  ;;  %v4547_v59 = vmul.f32 %v9030_v41, %v8871_v32  ;;  %v4548_v54 = vmul.f32 %v9030_v41, %v8876_v30  ;;  %v4550_v27 = vmul.f32 %v9030_v41, %v8902_v5  ;;  %v4551_v57 = vmul.f32 %v9030_v41, %v8886_v45 }
 0x146   :  { %v4552_v58 = vmul.f32 %v9030_v41, %v8891_v3  ;;  %v9091_v6 = vadd.f32 %v4416_v60, %v8965_v2  ;;  %v4554_v53 = vmul.f32 %v9030_v41, %v8905_v48  ;;  %v4555_v39 = vmul.f32 %v9030_v41, %v8896_v38  ;;  %v16102_v48 = vld [vmem:[#allocation73_spill] sm:$0xff] }
 0x147   :  { %v4598_v8 = vadd.f32 %v4542_v43, %v4469_v4  ;;  %v4599_v37 = vadd.f32 %v4543_v18, %v4470_v14  ;;  %v4600_v51 = vadd.f32 %v4544_v49, %v4470_v14  ;;  %v4602_v25 = vadd.f32 %v4546_v19, %v4472_v52 }
 0x148   :  { %v4603_v7 = vadd.f32 %v4547_v59, %v4473_v20  ;;  %v4604_v47 = vadd.f32 %v4548_v54, %v4474_v55  ;;  %v4606_v50 = vadd.f32 %v4550_v27, %v4476_v36  ;;  %v4607_v21 = vadd.f32 %v4551_v57, %v4477_v0 }
 0x149   :  { %v9097_v61 = vadd.f32 %v4552_v58, %v4478_v13  ;;  %v4610_v26 = vadd.f32 %v4554_v53, %v4480_v9  ;;  %v4611_v2 = vadd.f32 %v4555_v39, %v4481_v10  ;;  %v9100_v60 = vstv %s9064_s10 }
 0x14a   :  { %16041 = vst [vmem:[#allocation67_spill] sm:$0xff] %v9100_v60  ;;  %v9103_v40 = vstv %s9066_s11  ;;  %v4656_v42 = vmul.f32 %v9100_v60, %v8810_v15  ;;  %v4657_v43 = vmul.f32 %v9100_v60, %v8812_v12  ;;  %v4658_v20 = vmul.f32 %v9100_v60, %v8814_v35 }
 0x14b   :  { %16040 = vst [vmem:[#allocation81_spill] sm:$0xff] %v9097_v61  ;;  %16042 = vst [vmem:[#allocation68_spill] sm:$0xff] %v9103_v40  ;;  %v4660_v0 = vmul.f32 %v9100_v60, %v8818_v23  ;;  %v4661_v36 = vmul.f32 %v9100_v60, %v8820_v34  ;;  %v4662_v13 = vmul.f32 %v9100_v60, %v8822_v1  ;;  %v9126_v10 = vstv %s9080_s12 }
 0x14c   :  { %v4664_v52 = vmul.f32 %v9100_v60, %v8828_v11  ;;  %v4665_v15 = vmul.f32 %v9100_v60, %v8830_v62  ;;  %v4668_v12 = vmul.f32 %v9100_v60, %v8840_v63  ;;  %v4669_v14 = vmul.f32 %v9100_v60, %v8842_v44  ;;  %16043 = vst [vmem:[#allocation69_spill] sm:$0xff] %v9126_v10 }
 0x14d   :  { %v4712_v4 = vadd.f32 %v4656_v42, %v4598_v8  ;;  %v4713_v55 = vadd.f32 %v4657_v43, %v4599_v37  ;;  %v4714_v9 = vadd.f32 %v4658_v20, %v4600_v51  ;;  %v4716_v18 = vadd.f32 %v4660_v0, %v4602_v25  ;;  %v16045_v51 = vld [vmem:[#allocation60_spill] sm:$0xff] }
 0x14e   :  { %v4717_v49 = vadd.f32 %v4661_v36, %v4603_v7  ;;  %v4718_v19 = vadd.f32 %v4662_v13, %v4604_v47  ;;  %v4720_v59 = vadd.f32 %v4664_v52, %v4606_v50  ;;  %v4721_v54 = vadd.f32 %v4665_v15, %v4607_v21  ;;  %v16046_v7 = vld [vmem:[#allocation62_spill] sm:$0xff] }
 0x14f   :  { %v9130_v27 = vadd.f32 %v4668_v12, %v4610_v26  ;;  %v4782_v57 = vmul.f32 %v9103_v40, %v8982_v46  ;;  %v4783_v58 = vmul.f32 %v9103_v40, %v8985_v28  ;;  %v4784_v53 = vmul.f32 %v9103_v40, %v8991_v31  ;;  %v16047_v28 = vld [vmem:[#allocation63_spill] sm:$0xff] }
 0x150   :  { %v4786_v39 = vmul.f32 %v9103_v40, %v8994_v22  ;;  %v4787_v8 = vmul.f32 %v9103_v40, %v8997_v24  ;;  %v4788_v37 = vmul.f32 %v9103_v40, %v9007_v33  ;;  %v4790_v25 = vmul.f32 %v9103_v40, %v16045_v51 }
 0x151   :  { %16044 = vst [vmem:[#allocation71_spill] sm:$0xff] %v9130_v27  ;;  %v4791_v46 = vmul.f32 %v9103_v40, %v16046_v7  ;;  %v4725_v47 = vadd.f32 %v4669_v14, %v4611_v2  ;;  %v9150_v50 = vmul.f32 %v9103_v40, %v16047_v28  ;;  %v4795_v31 = vmul.f32 %v9103_v40, %v9037_v29 }
 0x152   :  { %v4838_v21 = vadd.f32 %v4782_v57, %v4712_v4  ;;  %v4839_v26 = vadd.f32 %v4783_v58, %v4713_v55  ;;  %v4840_v42 = vadd.f32 %v4784_v53, %v4714_v9  ;;  %v4842_v43 = vadd.f32 %v4786_v39, %v4716_v18  ;;  %v16052_v57 = vld [vmem:[#allocation39_spill] sm:$0xff] }
 0x153   :  { %16048 = vst [vmem:[#allocation72_spill] sm:$0xff] %v9150_v50  ;;  %v4843_v20 = vadd.f32 %v4787_v8, %v4717_v49  ;;  %v4844_v0 = vadd.f32 %v4788_v37, %v4718_v19  ;;  %v9156_v36 = vadd.f32 %v4790_v25, %v4720_v59  ;;  %v4847_v13 = vadd.f32 %v4791_v46, %v4721_v54  ;;  %v16092_v50 = vld [vmem:[#allocation100_spill] sm:$0xff] }
 0x154   :  { %v4896_v2 = vmul.f32 %v9126_v10, %v8899_v16  ;;  %v4897_v52 = vmul.f32 %v9126_v10, %v8871_v32  ;;  %v4898_v15 = vmul.f32 %v9126_v10, %v8876_v30  ;;  %v4900_v12 = vmul.f32 %v9126_v10, %v8902_v5 }
 0x155   :  { %16049 = vst [vmem:[#allocation75_spill] sm:$0xff] %v9156_v36  ;;  %v4901_v14 = vmul.f32 %v9126_v10, %v8886_v45  ;;  %v4902_v4 = vmul.f32 %v9126_v10, %v8891_v3  ;;  %v4905_v16 = vmul.f32 %v9126_v10, %v8896_v38  ;;  %v9175_v9 = vstv %s9128_s13  ;;  %v16101_v36 = vld [vmem:[#allocation125_spill] sm:$0xff] }
 0x156   :  { %v4950_v55 = vadd.f32 %v4896_v2, %v4838_v21  ;;  %16050 = vst [vmem:[#allocation17_spill] sm:$0xff] %v9175_v9  ;;  %v4951_v32 = vadd.f32 %v4897_v52, %v4839_v26  ;;  %v4952_v30 = vadd.f32 %v4898_v15, %v4840_v42  ;;  %v4954_v18 = vadd.f32 %v4900_v12, %v4842_v43  ;;  %v9210_v26 = vld [vmem:[%s14510_s0 + $0x128] sm:$0xff] }
 0x157   :  { %v4955_v49 = vadd.f32 %v4901_v14, %v4843_v20  ;;  %v9177_v5 = vadd.f32 %v4795_v31, %v4725_v47  ;;  %v4956_v19 = vadd.f32 %v4902_v4, %v4844_v0  ;;  %v5008_v45 = vmul.f32 %v9175_v9, %v8818_v23 }
 0x158   :  { %v5009_v3 = vmul.f32 %v9175_v9, %v8820_v34  ;;  %v5010_v38 = vmul.f32 %v9175_v9, %v8822_v1  ;;  %v5012_v59 = vmul.f32 %v9175_v9, %v8828_v11  ;;  %v5013_v54 = vmul.f32 %v9175_v9, %v8830_v62  ;;  %v9197_v11 = vld [vmem:[%s14510_s0 + $0x120] sm:$0xff] }
 0x159   :  { %16051 = vst [vmem:[#allocation18_spill] sm:$0xff] %v9177_v5  ;;  %v5014_v58 = vmul.f32 %v9175_v9, %v16052_v57  ;;  %v4959_v53 = vadd.f32 %v4905_v16, %v4847_v13  ;;  %v5061_v39 = vadd.f32 %v5008_v45, %v4950_v55  ;;  %v9192_v23 = vstv %s9154_s14  ;;  %v9238_v16 = vld [vmem:[%s14510_s0 + $0x138] sm:$0xf] }
 0x15a   :  { %v5062_v8 = vadd.f32 %v5009_v3, %v4951_v32  ;;  %16053 = vst [vmem:[#allocation19_spill] sm:$0xff] %v9192_v23  ;;  %v5063_v37 = vadd.f32 %v5010_v38, %v4952_v30  ;;  %v5065_v34 = vadd.f32 %v5012_v59, %v4954_v18  ;;  %v5066_v25 = vadd.f32 %v5013_v54, %v4955_v49  ;;  %v9248_v18 = vld [vmem:[%s14510_s0 + $0x140] sm:$0xff] }
 0x15b   :  { %v5067_v46 = vadd.f32 %v5014_v58, %v4956_v19  ;;  %v5017_v62 = vmul.f32 %v9175_v9, %v8842_v44  ;;  %v5119_v47 = vmul.f32 %v9192_v23, %v8994_v22  ;;  %v5120_v31 = vmul.f32 %v9192_v23, %v8997_v24 }
 0x15c   :  { %v5121_v21 = vmul.f32 %v9192_v23, %v9007_v33  ;;  %v5123_v42 = vmul.f32 %v9192_v23, %v16045_v51  ;;  %v5124_v43 = vmul.f32 %v9192_v23, %v16046_v7  ;;  %v5125_v22 = vmul.f32 %v9192_v23, %v16047_v28  ;;  %v9224_v33 = vld [vmem:[%s14510_s0 + $0x130] sm:$0xff]  ;;  %v16098_v23 = vld [vmem:[#allocation99_spill] sm:$0xff] }
 0x15d   :  { %v9219_v20 = vstv %s9168_s15  ;;  %v5173_v24 = vadd.f32 %v5119_v47, %v5061_v39  ;;  %v5174_v0 = vadd.f32 %v5120_v31, %v5062_v8  ;;  %v339_v2 = vrot.slane %v9197_v11, 7  ;;  %v9264_v39 = vld [vmem:[%s14510_s0 + $0x150] sm:$0xff] }
 0x15e   :  { %16054 = vst [vmem:[#allocation21_spill] sm:$0xff] %v9219_v20  ;;  %v5175_v13 = vadd.f32 %v5121_v21, %v5063_v37  ;;  %v5177_v52 = vadd.f32 %v5123_v42, %v5065_v34  ;;  %v5178_v51 = vadd.f32 %v5124_v43, %v5066_v25  ;;  %v5179_v15 = vadd.f32 %v5125_v22, %v5067_v46  ;;  %v9285_v22 = vld [vmem:[%s14510_s0 + $0x158] sm:$0xf] }
 0x15f   :  { %v340_v7 = vrot.slane %v9210_v26, 7  ;;  %v9228_v12 = vadd.f32 %v5017_v62, %v4959_v53  ;;  %v5231_v28 = vadd.f32 %v9219_v20, %v5173_v24  ;;  %v5232_v14 = vadd.f32 %v9219_v20, %v5174_v0  ;;  %v9259_v53 = vld [vmem:[%s14510_s0 + $0x148] sm:$0xff] }
 0x160   :  { %v9233_v4 = vadd.f32 %v9219_v20, %v5175_v13  ;;  %v5235_v55 = vadd.f32 %v9219_v20, %v5177_v52  ;;  %v5236_v32 = vadd.f32 %v9219_v20, %v5178_v51  ;;  %v9243_v30 = vadd.f32 %v9219_v20, %v5179_v15 }
 0x161   :  { %16055 = vst [vmem:[#allocation22_spill] sm:$0xff] %v9228_v12  ;;  %v342_v49 = vrot.slane %v9224_v33, 7  ;;  %v5287_v19 = vmax.f32 %v5231_v28, 0.0  ;;  %v5288_v45 = vmax.f32 %v5232_v14, 0.0  ;;  %v9253_v38 = vsel %vm273_vm0, %v339_v2, %v340_v7  ;;  %v16097_v12 = vld [vmem:[#allocation96_spill] sm:$0xff] }
 0x162   :  { %16056 = vst [vmem:[#allocation23_spill] sm:$0xff] %v9233_v4  ;;  %16057 = vst [vmem:[#allocation24_spill] sm:$0xff] %v9243_v30  ;;  %v14826_v3 = vmax.f32 %v9233_v4, 0.0  ;;  %v5291_v59 = vmax.f32 %v5235_v55, 0.0  ;;  %v5292_v54 = vmax.f32 %v5236_v32, 0.0  ;;  %v14825_v58 = vmax.f32 %v9243_v30, 0.0 }
 0x163   :  { %v344_v8 = vrot.slane %v9238_v16, 7  ;;  %v5399_v37 = vrot.slane %v5287_v19, 2  ;;  %v5400_v34 = vrot.slane %v5288_v45, 2  ;;  %v346_v46 = vrot.slane %v9248_v18, 7  ;;  %v16093_v30 = vld [vmem:[#allocation94_spill] sm:$0xff] }
 0x164   :  { %v9269_v25 = vrot.slane %v14826_v3, 2  ;;  %v5406_v62 = vrot.slane %v5291_v59, 2  ;;  %v5407_v47 = vrot.slane %v5292_v54, 2  ;;  %v9274_v31 = vrot.slane %v14825_v58, 2 }
 0x165   :  { %v9277_v21 = vsel %vm273_vm0, %v340_v7, %v342_v49  ;;  %v5401_v42 = vsel %vm4252_vm4, %v5399_v37, %v5400_v34  ;;  %v347_v24 = vrot.slane %v9259_v53, 7  ;;  %v349_v0 = vrot.slane %v9264_v39, 7 }
 0x166   :  { %16058 = vst [vmem:[#allocation25_spill] sm:$0xff] %v9269_v25  ;;  %16059 = vst [vmem:[#allocation26_spill] sm:$0xff] %v9274_v31  ;;  %v5403_v43 = vsel %vm4252_vm4, %v5400_v34, %v9269_v25  ;;  %v5408_v13 = vsel %vm4252_vm4, %v5406_v62, %v5407_v47  ;;  %v5410_v52 = vsel %vm4252_vm4, %v5407_v47, %v9274_v31  ;;  %v351_v37 = vrot.slane %v9285_v22, 7  ;;  %v16096_v25 = vld [vmem:[#allocation95_spill] sm:$0xff] }
 0x167   :  { %v5567_v51 = vmax.f32 %v5287_v19, %v5401_v42  ;;  %v5568_v15 = vmax.f32 %v5288_v45, %v5403_v43  ;;  %v5571_v7 = vmax.f32 %v5291_v59, %v5408_v13  ;;  %v5572_v28 = vmax.f32 %v5292_v54, %v5410_v52  ;;  %v16063_v59 = vld [vmem:[#allocation55_spill] sm:$0xff]  ;;  %v16072_v13 = vld [vmem:[#allocation98_spill] sm:$0xff] }
 0x168   :  { %v9293_v14 = vsel %vm273_vm0, %v342_v49, %v344_v8  ;;  %v9296_v55 = vsel %vm273_vm0, %v346_v46, %v347_v24  ;;  %v9299_v32 = vsel %vm273_vm0, %v347_v24, %v349_v0  ;;  %v9303_v34 = vsel %vm273_vm0, 0.0, %v339_v2 }
 0x169   :  { %16060 = vst [vmem:[#allocation29_spill] sm:$0xff] %v9296_v55  ;;  %16061 = vst [vmem:[#allocation30_spill] sm:$0xff] %v9299_v32  ;;  %v9306_v62 = vsel %vm273_vm0, 0.0, %v346_v46  ;;  %v5623_v19 = vmax.f32 %v5567_v51, %v5571_v7  ;;  %v5624_v45 = vmax.f32 %v5568_v15, %v5572_v28  ;;  %v9310_v49 = vmul.f32 %v16063_v59, %v9303_v34 }
 0x16a   :  { %16062 = vst [vmem:[#allocation32_spill] sm:$0xff] %v9306_v62  ;;  %v9314_v54 = vmul.f32 %v16063_v59, %v9253_v38  ;;  %v9317_v8 = vsel %vm273_vm0, %v349_v0, %v351_v37  ;;  %v9321_v2 = vmul.f32 %v16063_v59, %v9277_v21  ;;  %v9325_v46 = vmul.f32 %v16063_v59, %v9293_v14  ;;  %v6335_v0 = vld [vmem:[%s14510_s0 + $0x100] sm:$0xff]  ;;  %v16073_v37 = vld [vmem:[#allocation97_spill] sm:$0xff] }
 0x16b   :  { %16064 = vst [vmem:[#allocation33_spill] sm:$0xff] %v9310_v49  ;;  %16066 = vst [vmem:[#allocation37_spill] sm:$0xff] %v9317_v8  ;;  %v9329_v47 = vmul.f32 %v16063_v59, %v9306_v62  ;;  %v6229_v42 = vpack.c.bf16 %v5624_v45, %v5623_v19  ;;  %v9333_v43 = vmul.f32 %v16063_v59, %v9296_v55  ;;  %v1112_v51 = vrot.slane %v9197_v11, 1 }
 0x16c   :  { %16065 = vst [vmem:[#allocation34_spill] sm:$0xff] %v9314_v54  ;;  %16067 = vst [vmem:[#allocation38_spill] sm:$0xff] %v9321_v2  ;;  %v9337_v24 = vmul.f32 %v16063_v59, %v9299_v32  ;;  %v859_v52 = vmul.f32 %v6335_v0, %v16072_v13  ;;  %v1113_v15 = vrot.slane %v9210_v26, 1  ;;  %v1115_v7 = vrot.slane %v9224_v33, 1  ;;  %v16080_v54 = vld [vmem:[#allocation126_spill] sm:$0xff] }
 0x16d   :  { %16068 = vst [vmem:[#allocation107_spill] sm:$0xff] %v9325_v46  ;;  %16069 = vst [vmem:[#allocation108_spill] sm:$0xff] %v9329_v47  ;;  %v1117_v28 = vrot.slane %v9238_v16, 1  ;;  %6230 = vmatpush1.bf16.msra.mxu0 %v6229_v42  ;;  %v1119_v45 = vrot.slane %v9248_v18, 1  ;;  %v1120_v58 = vrot.slane %v9259_v53, 1  ;;  %v1122_v3 = vrot.slane %v9264_v39, 1 }
 0x16e   :  { %16070 = vst [vmem:[#allocation109_spill] sm:$0xff] %v9333_v43  ;;  %16071 = vst [vmem:[#allocation131_spill] sm:$0xff] %v9337_v24  ;;  %v969_v19 = vadd.f32 %v859_v52, %v16073_v37  ;;  %v16074_v24 = vmov 0.0|0.0   ;;  %v9353_v43 = vsel %vm1046_vm1, %v1112_v51, %v1113_v15  ;;  %v9356_v47 = vsel %vm1046_vm1, %v1113_v15, %v1115_v7 }
 0x16f   :  { %6231 = vmatprep.subr.bf16.mxu0 %v16074_v24  ;;  %v9359_v46 = vsel %vm1046_vm1, %v1115_v7, %v1117_v28  ;;  %v1124_v42 = vrot.slane %v9285_v22, 1  ;;  %v9364_v52 = vmul.f32 %v16063_v59, %v9317_v8  ;;  %v9367_v37 = vsel %vm1046_vm1, %v1119_v45, %v1120_v58  ;;  %v16091_v24 = vld [vmem:[#allocation82_spill] sm:$0xff] }
 0x170   :  { %16076 = vst [vmem:[#allocation111_spill] sm:$0xff] %v9367_v37  ;;  %v9370_v2 = vsel %vm1046_vm1, %v1120_v58, %v1122_v3  ;;  %v9373_v51 = vsel %vm1348_vm2, %v1117_v28, 0.0  ;;  %v9383_v49 = vmul.f32 %v16080_v54, %v9353_v43  ;;  %v9387_v45 = vmul.f32 %v16080_v54, %v9356_v47 }
 0x171   :  { %16075 = vst [vmem:[#allocation110_spill] sm:$0xff] %v9364_v52  ;;  %16077 = vst [vmem:[#allocation112_spill] sm:$0xff] %v9370_v2  ;;  %v9376_v15 = vsel %vm1046_vm1, %v1122_v3, %v1124_v42  ;;  %v9379_v7 = vsel %vm1348_vm2, %v1124_v42, 0.0  ;;  %v9391_v58 = vmul.f32 %v16080_v54, %v9359_v46  ;;  %v9395_v28 = vmul.f32 %v16080_v54, %v9373_v51  ;;  %v16089_v52 = vld [vmem:[#allocation139_spill] sm:$0xff] }
 0x172   :  { %16078 = vst [vmem:[#allocation132_spill] sm:$0xff] %v9376_v15  ;;  %16079 = vst [vmem:[#allocation113_spill] sm:$0xff] %v9379_v7  ;;  %v9399_v3 = vmul.f32 %v16080_v54, %v9367_v37  ;;  %v9403_v42 = vmul.f32 %v16080_v54, %v9370_v2  ;;  %v1653_v61 = vmul.f32 %v16092_v50, %v9303_v34 }
 0x173   :  { %16081 = vst [vmem:[#allocation114_spill] sm:$0xff] %v9383_v49  ;;  %16082 = vst [vmem:[#allocation115_spill] sm:$0xff] %v9387_v45  ;;  %v9407_v49 = vmul.f32 %v16080_v54, %v9376_v15  ;;  %v16088_v45 = vld [vmem:[#allocation93_spill] sm:$0xff]  ;;  %v2113_v27 = vmul.f32 %v16102_v48, %v16101_v36  ;;  %v2117_v10 = vmul.f32 %v16102_v48, %v9353_v43 }
 0x174   :  { %16083 = vst [vmem:[#allocation133_spill] sm:$0xff] %v9391_v58  ;;  %16084 = vst [vmem:[#allocation116_spill] sm:$0xff] %v9395_v28  ;;  %v1519_v13 = vadd.f32 %v16089_v52, %v16088_v45  ;;  %v16090_v58 = vld [vmem:[#allocation140_spill] sm:$0xff]  ;;  %v1649_v28 = vmul.f32 %v16092_v50, %v16091_v24  ;;  %v16094_v52 = vld [vmem:[#allocation27_spill] sm:$0xff]  ;;  %v2118_v40 = vmul.f32 %v16102_v48, %v9356_v47 }
 0x175   :  { %16085 = vst [vmem:[#allocation117_spill] sm:$0xff] %v9399_v3  ;;  %16086 = vst [vmem:[#allocation118_spill] sm:$0xff] %v9403_v42  ;;  %v1523_v59 = vadd.f32 %v16090_v58, %v969_v19  ;;  %v1654_v3 = vmul.f32 %v16092_v50, %v9253_v38  ;;  %v1655_v42 = vmul.f32 %v16092_v50, %v9277_v21  ;;  %v16095_v19 = vld [vmem:[#allocation101_spill] sm:$0xff] }
 0x176   :  { %16087 = vst [vmem:[#allocation134_spill] sm:$0xff] %v9407_v49  ;;  %v1656_v49 = vmul.f32 %v16092_v50, %v9293_v14  ;;  %v1761_v17 = vadd.f32 %v1649_v28, %v1519_v13  ;;  %v1764_v45 = vadd.f32 %v16094_v52, %v16093_v30  ;;  %v1875_v58 = vmul.f32 %v6335_v0, %v16095_v19  ;;  %v6336_v24 = vld [vmem:[%s14510_s0 + $0x108] sm:$0xff]  ;;  %v6337_v13 = vld [vmem:[%s14510_s0 + $0x110] sm:$0xff]  ;;  %v6338_v0 = vld [vmem:[%s14510_s0 + $0x118] sm:$0xf] }
 0x177   :  { %v1876_v4 = vmul.f32 %v6336_v24, %v16095_v19  ;;  %v1765_v31 = vadd.f32 %v1653_v61, %v1523_v59  ;;  %v1766_v20 = vadd.f32 %v1654_v3, %v16096_v25  ;;  %v1767_v29 = vadd.f32 %v1655_v42, %v16097_v12  ;;  %v16100_v42 = vld [vmem:[#allocation88_spill] sm:$0xff] }
 0x178   :  { %v1768_v5 = vadd.f32 %v1656_v49, %v16098_v23  ;;  %v1877_v30 = vmul.f32 %v6337_v13, %v16095_v19  ;;  %v1878_v28 = vmul.f32 %v6338_v0, %v16095_v19  ;;  %v1879_v61 = vmul.f32 %v16095_v19, %v9197_v11  ;;  %v16099_v49 = vld [vmem:[#allocation87_spill] sm:$0xff] }
 0x179   :  { %v1880_v12 = vmul.f32 %v16095_v19, %v9210_v26  ;;  %v1881_v23 = vmul.f32 %v16095_v19, %v9224_v33  ;;  %v1882_v25 = vmul.f32 %v16095_v19, %v9238_v16  ;;  %v1987_v59 = vadd.f32 %v1875_v58, %v1761_v17  ;;  %v16105_v58 = vld [vmem:[#allocation16_spill] sm:$0xff] }
 0x17a   :  { %v1988_v3 = vadd.f32 %v1876_v4, %v16099_v49  ;;  %v1989_v52 = vadd.f32 %v1877_v30, %v16100_v42  ;;  %v1990_v24 = vadd.f32 %v1878_v28, %v1764_v45  ;;  %v1991_v13 = vadd.f32 %v1879_v61, %v1765_v31  ;;  %v16103_v45 = vld [vmem:[#allocation14_spill] sm:$0xff] }
 0x17b   :  { %v1992_v0 = vadd.f32 %v1880_v12, %v1766_v20  ;;  %v1993_v50 = vadd.f32 %v1881_v23, %v1767_v29  ;;  %v1994_v9 = vadd.f32 %v1882_v25, %v1768_v5  ;;  %v2119_v17 = vmul.f32 %v16102_v48, %v9359_v46  ;;  %v16104_v29 = vld [vmem:[#allocation15_spill] sm:$0xff]  ;;  %v16106_v23 = vld [vmem:[#allocation141_spill] sm:$0xff] }
 0x17c   :  { %v2120_v4 = vmul.f32 %v16102_v48, %v9373_v51  ;;  %v2226_v31 = vadd.f32 %v16103_v45, %v1988_v3  ;;  %v2225_v20 = vadd.f32 %v2113_v27, %v1987_v59  ;;  %v2227_v5 = vadd.f32 %v16104_v29, %v1989_v52  ;;  %v16145_v48 = vld [vmem:[#allocation69_spill] sm:$0xff] }
 0x17d   :  { %v2228_v30 = vadd.f32 %v16105_v58, %v1990_v24  ;;  %v2229_v36 = vadd.f32 %v2117_v10, %v1991_v13  ;;  %v2230_v28 = vadd.f32 %v2118_v40, %v1992_v0  ;;  %v2231_v61 = vadd.f32 %v2119_v17, %v1993_v50  ;;  %v16107_v13 = vld [vmem:[#allocation42_spill] sm:$0xff] }
 0x17e   :  { %v2232_v12 = vadd.f32 %v2120_v4, %v1994_v9  ;;  %v2339_v25 = vmul.f32 %v16106_v23, %v9303_v34  ;;  %v2340_v49 = vmul.f32 %v16106_v23, %v9253_v38  ;;  %v2341_v42 = vmul.f32 %v16106_v23, %v9277_v21 }
 0x17f   :  { %v2342_v27 = vmul.f32 %v16106_v23, %v9293_v14  ;;  %v2343_v59 = vmul.f32 %v16106_v23, %v9306_v62  ;;  %v2344_v40 = vmul.f32 %v16106_v23, %v9296_v55  ;;  %v2345_v10 = vmul.f32 %v16106_v23, %v9299_v32  ;;  %v16235_v62 = vld [vmem:[#allocation33_spill] sm:$0xff] }
 0x180   :  { %v2346_v50 = vmul.f32 %v16106_v23, %v9317_v8  ;;  %v2449_v9 = vadd.f32 %v2339_v25, %v2225_v20  ;;  %v2450_v38 = vadd.f32 %v2340_v49, %v2226_v31  ;;  %v2451_v34 = vadd.f32 %v2341_v42, %v2227_v5 }
 0x181   :  { %v2452_v3 = vadd.f32 %v2342_v27, %v2228_v30  ;;  %v2453_v21 = vadd.f32 %v2343_v59, %v2229_v36  ;;  %v2454_v52 = vadd.f32 %v2344_v40, %v2230_v28  ;;  %v2455_v24 = vadd.f32 %v2345_v10, %v2231_v61  ;;  %v16108_v61 = vld [vmem:[#allocation43_spill] sm:$0xff] }
 0x182   :  { %v2456_v14 = vadd.f32 %v2346_v50, %v2232_v12  ;;  %v2563_v0 = vmul.f32 %v16107_v13, %v9197_v11  ;;  %v2564_v17 = vmul.f32 %v16107_v13, %v9210_v26  ;;  %v2565_v4 = vmul.f32 %v16107_v13, %v9224_v33 }
 0x183   :  { %v2566_v45 = vmul.f32 %v16107_v13, %v9238_v16  ;;  %v2567_v31 = vmul.f32 %v16107_v13, %v9248_v18  ;;  %v2568_v20 = vmul.f32 %v16107_v13, %v9259_v53  ;;  %v2569_v29 = vmul.f32 %v16107_v13, %v9264_v39 }
 0x184   :  { %v2570_v11 = vmul.f32 %v16107_v13, %v9285_v22  ;;  %v2672_v5 = vadd.f32 %v2563_v0, %v2449_v9  ;;  %v2673_v26 = vadd.f32 %v2564_v17, %v2450_v38  ;;  %v2674_v58 = vadd.f32 %v2565_v4, %v2451_v34  ;;  %v16109_v34 = vld [vmem:[#allocation44_spill] sm:$0xff] }
 0x185   :  { %v2675_v30 = vadd.f32 %v2566_v45, %v2452_v3  ;;  %v2676_v33 = vadd.f32 %v2567_v31, %v2453_v21  ;;  %v2677_v36 = vadd.f32 %v2568_v20, %v2454_v52  ;;  %v2678_v28 = vadd.f32 %v2569_v29, %v2455_v24 }
 0x186   :  { %v2679_v16 = vadd.f32 %v2570_v11, %v2456_v14  ;;  %v2786_v18 = vmul.f32 %v16108_v61, %v9353_v43  ;;  %v2787_v12 = vmul.f32 %v16108_v61, %v9356_v47  ;;  %v2788_v25 = vmul.f32 %v16108_v61, %v9359_v46 }
 0x187   :  { %v2789_v49 = vmul.f32 %v16108_v61, %v9373_v51  ;;  %v2790_v42 = vmul.f32 %v16108_v61, %v9367_v37  ;;  %v2791_v27 = vmul.f32 %v16108_v61, %v9370_v2  ;;  %v2792_v59 = vmul.f32 %v16108_v61, %v9376_v15 }
 0x188   :  { %v2793_v43 = vmul.f32 %v16108_v61, %v9379_v7  ;;  %v2896_v40 = vadd.f32 %v2786_v18, %v2672_v5  ;;  %v2897_v47 = vadd.f32 %v2787_v12, %v2673_v26  ;;  %v2898_v10 = vadd.f32 %v2788_v25, %v2674_v58 }
 0x189   :  { %v2899_v50 = vadd.f32 %v2789_v49, %v2675_v30  ;;  %v2900_v46 = vadd.f32 %v2790_v42, %v2676_v33  ;;  %v2901_v9 = vadd.f32 %v2791_v27, %v2677_v36  ;;  %v2902_v38 = vadd.f32 %v2792_v59, %v2678_v28  ;;  %v16110_v49 = vld [vmem:[#allocation13_spill] sm:$0xff] }
 0x18a   :  { %v2903_v51 = vadd.f32 %v2793_v43, %v2679_v16  ;;  %v3010_v3 = vadd.f32 %v16109_v34, %v2896_v40  ;;  %v3011_v21 = vadd.f32 %v16109_v34, %v2897_v47  ;;  %v3012_v52 = vadd.f32 %v16109_v34, %v2898_v10  ;;  %v16111_v40 = vld [vmem:[#allocation74_spill] sm:$0xff] }
 0x18b   :  { %v9515_v24 = vadd.f32 %v16109_v34, %v2899_v50  ;;  %v3014_v14 = vadd.f32 %v16109_v34, %v2900_v46  ;;  %v3015_v0 = vadd.f32 %v16109_v34, %v2901_v9  ;;  %v3016_v17 = vadd.f32 %v16109_v34, %v2902_v38  ;;  %v16112_v9 = vld [vmem:[#allocation8_spill] sm:$0xff] }
 0x18c   :  { %v9521_v4 = vadd.f32 %v16109_v34, %v2903_v51  ;;  %v3122_v45 = vmax.f32 %v3010_v3, 0.0  ;;  %v3123_v31 = vmax.f32 %v3011_v21, 0.0  ;;  %v3124_v20 = vmax.f32 %v3012_v52, 0.0  ;;  %v16115_v21 = vld [vmem:[#allocation12_spill] sm:$0xff] }
 0x18d   :  { %v14846_v29 = vmax.f32 %v9515_v24, 0.0  ;;  %v3126_v11 = vmax.f32 %v3014_v14, 0.0  ;;  %v3127_v5 = vmax.f32 %v3015_v0, 0.0  ;;  %v3128_v26 = vmax.f32 %v3016_v17, 0.0 }
 0x18e   :  { %v14845_v58 = vmax.f32 %v9521_v4, 0.0  ;;  %v3370_v30 = vrot.slane %v3122_v45, 1  ;;  %v3371_v33 = vrot.slane %v3123_v31, 1  ;;  %v3373_v36 = vrot.slane %v3124_v20, 1 }
 0x18f   :  { %v9527_v28 = vrot.slane %v14846_v29, 1  ;;  %v3377_v16 = vrot.slane %v3126_v11, 1  ;;  %v3378_v18 = vrot.slane %v3127_v5, 1  ;;  %v3380_v12 = vrot.slane %v3128_v26, 1 }
 0x190   :  { %v9531_v25 = vrot.slane %v14845_v58, 1  ;;  %v3628_v42 = vsel %vm1348_vm2, %v16110_v49, 0.0  ;;  %v3372_v27 = vsel %vm1046_vm1, %v3370_v30, %v3371_v33  ;;  %v3374_v59 = vsel %vm1046_vm1, %v3371_v33, %v3373_v36 }
 0x191   :  { %v3376_v43 = vsel %vm1046_vm1, %v3373_v36, %v9527_v28  ;;  %v3629_v47 = vsel %vm1348_vm2, %v16111_v40, 0.0  ;;  %v3379_v10 = vsel %vm1046_vm1, %v3377_v16, %v3378_v18  ;;  %v3381_v50 = vsel %vm1046_vm1, %v3378_v18, %v3380_v12  ;;  %v16117_v16 = vld [vmem:[#allocation35_spill] sm:$0xff] }
 0x192   :  { %v3383_v46 = vsel %vm1046_vm1, %v3380_v12, %v9531_v25  ;;  %v16113_v38 = vmax.f32 %v16112_v9, 0.0  ;;  %v9549_v3 = vmul.f32 %v16080_v54, %v9379_v7  ;;  %v16116_v52 = vmax.f32 %v16115_v21, 0.0  ;;  %v16119_v12 = vld [vmem:[#allocation36_spill] sm:$0xff]  ;;  %v16236_v54 = vld [vmem:[#allocation34_spill] sm:$0xff] }
 0x193   :  { %v3682_v0 = vmax.f32 %v3122_v45, %v3372_v27  ;;  %v3683_v17 = vmax.f32 %v3123_v31, %v3374_v59  ;;  %v3684_v30 = vmax.f32 %v3124_v20, %v3376_v43  ;;  %v3686_v33 = vmax.f32 %v3126_v11, %v3379_v10  ;;  %v16124_v31 = vld [vmem:[#allocation45_spill] sm:$0xff] }
 0x194   :  { %v3677_v51 = vmax.f32 %v16113_v38, %v3628_v42  ;;  %16114 = vst [vmem:[#allocation119_spill] sm:$0xff] %v9549_v3  ;;  %v3681_v14 = vmax.f32 %v16116_v52, %v3629_v47  ;;  %v3687_v36 = vmax.f32 %v3127_v5, %v3381_v50  ;;  %v3879_v18 = vrot.slane %v16117_v16, 6  ;;  %v16120_v42 = vld [vmem:[#allocation41_spill] sm:$0xff] }
 0x195   :  { %v3688_v49 = vmax.f32 %v3128_v26, %v3383_v46  ;;  %v3886_v9 = vrot.slane %v16119_v12, 6  ;;  %v3893_v38 = vrot.slane %v16120_v42, 6  ;;  %v9558_v58 = vmax.f32 %v3682_v0, %v3686_v33  ;;  %v16127_v43 = vld [vmem:[#allocation49_spill] sm:$0xff] }
 0x196   :  { %v9554_v40 = vmax.f32 %v3677_v51, %v3681_v14  ;;  %v9560_v29 = vmax.f32 %v3683_v17, %v3687_v36  ;;  %v16123_v47 = vrot.slane %v8814_v35, 6  ;;  %v14848_v20 = vrot.slane %v16124_v31, 6 }
 0x197   :  { %16121 = vst [vmem:[#allocation121_spill] sm:$0xff] %v9558_v58  ;;  %v16125_v11 = vrot.slane %v8822_v1, 6  ;;  %v16126_v26 = vrot.slane %v16052_v57, 6  ;;  %v3902_v50 = vrot.slane %v9558_v58, 6  ;;  %v9578_v21 = vmax.f32 %v3684_v30, %v3688_v49  ;;  %v16129_v1 = vld [vmem:[#allocation53_spill] sm:$0xff] }
 0x198   :  { %16118 = vst [vmem:[#allocation120_spill] sm:$0xff] %v9554_v40  ;;  %16122 = vst [vmem:[#allocation135_spill] sm:$0xff] %v9560_v29  ;;  %v3880_v45 = vsel %vm3871_vm3, %v16123_v47, %v3879_v18  ;;  %v3900_v59 = vrot.slane %v9554_v40, 6  ;;  %v14847_v35 = vrot.slane %v9560_v29, 6  ;;  %v4148_v52 = vmul.f32 %v16129_v1, %v16117_v16 }
 0x199   :  { %v3887_v5 = vsel %vm3871_vm3, %v16125_v11, %v3886_v9  ;;  %v3894_v27 = vsel %vm3871_vm3, %v16126_v26, %v3893_v38  ;;  %v4039_v10 = vmul.f32 %v16127_v43, %v3880_v45  ;;  %16128 = vst [vmem:[#allocation52_spill] sm:$0xff] %v9578_v21  ;;  %v4152_v14 = vmul.f32 %v16129_v1, %v16119_v12 }
 0x19a   :  { %v4043_v46 = vmul.f32 %v16127_v43, %v3887_v5  ;;  %v4047_v51 = vmul.f32 %v16127_v43, %v3894_v27  ;;  %v4156_v0 = vmul.f32 %v16129_v1, %v16120_v42  ;;  %v9589_v17 = vsel %vm3871_vm3, %v14848_v20, %v3900_v59 }
 0x19b   :  { %v9594_v33 = vsel %vm3871_vm3, %v3902_v50, %v14847_v35  ;;  %v9597_v30 = vsel %vm3871_vm3, 0.0, %v3902_v50  ;;  %v4276_v36 = vrot.slane %v8840_v63, 2  ;;  %v9602_v18 = vmul.f32 %v16127_v43, %v9589_v17 }
 0x19c   :  { %16130 = vst [vmem:[#allocation122_spill] sm:$0xff] %v9594_v33  ;;  %16131 = vst [vmem:[#allocation56_spill] sm:$0xff] %v9597_v30  ;;  %v9606_v49 = vmul.f32 %v16127_v43, %v9597_v30  ;;  %v4202_v9 = vadd.f32 %v4148_v52, %v4039_v10  ;;  %v4206_v38 = vadd.f32 %v4152_v14, %v4043_v46  ;;  %v16134_v11 = vrot.slane %v8842_v44, 2 }
 0x19d   :  { %16132 = vst [vmem:[#allocation136_spill] sm:$0xff] %v9602_v18  ;;  %v4210_v47 = vadd.f32 %v4156_v0, %v4047_v51  ;;  %v4283_v59 = vrot.slane %v9558_v58, 2  ;;  %v4284_v50 = vrot.slane %v9560_v29, 2  ;;  %v14853_v35 = vrot.slane %v9578_v21, 2 }
 0x19e   :  { %16133 = vst [vmem:[#allocation57_spill] sm:$0xff] %v9606_v49  ;;  %v4278_v26 = vsel %vm4252_vm4, %v4276_v36, %v16134_v11  ;;  %v16135_v20 = vrot.slane %v16117_v16, 2  ;;  %v16136_v1 = vrot.slane %v16119_v12, 2  ;;  %v16137_v46 = vrot.slane %v16120_v42, 2 }
 0x19f   :  { %v9624_v52 = vsel %vm4252_vm4, %v4283_v59, %v4284_v50  ;;  %v9639_v11 = vmul.f32 %v9017_v56, %v4278_v26  ;;  %v4545_v59 = vmul.f32 %v9030_v41, %v3880_v45  ;;  %v4549_v13 = vmul.f32 %v9030_v41, %v3887_v5 }
 0x1a0   :  { %v4401_v18 = vsel %vm3871_vm3, %v16135_v20, 0.0  ;;  %v4402_v10 = vsel %vm3871_vm3, %v16136_v1, 0.0  ;;  %v4403_v51 = vsel %vm3871_vm3, %v16137_v46, 0.0  ;;  %16138 = vst [vmem:[#allocation123_spill] sm:$0xff] %v9624_v52  ;;  %v9631_v20 = vmul.f32 %v16127_v43, %v9594_v33 }
 0x1a1   :  { %v4420_v14 = vmul.f32 %v9017_v56, %v4401_v18  ;;  %v4424_v0 = vmul.f32 %v9017_v56, %v4402_v10  ;;  %v4428_v36 = vmul.f32 %v9017_v56, %v4403_v51  ;;  %v9636_v1 = vsel %vm4252_vm4, %v4284_v50, %v14853_v35  ;;  %16141 = vst [vmem:[#allocation127_spill] sm:$0xff] %v9639_v11 }
 0x1a2   :  { %16139 = vst [vmem:[#allocation124_spill] sm:$0xff] %v9631_v20  ;;  %16140 = vst [vmem:[#allocation137_spill] sm:$0xff] %v9636_v1  ;;  %v9644_v46 = vmul.f32 %v9017_v56, %v9624_v52  ;;  %v4553_v20 = vmul.f32 %v9030_v41, %v3894_v27  ;;  %v4557_v50 = vmul.f32 %v9030_v41, %v9589_v17 }
 0x1a3   :  { %v4475_v49 = vadd.f32 %v4420_v14, %v4202_v9  ;;  %v4479_v34 = vadd.f32 %v4424_v0, %v4206_v38  ;;  %v4483_v61 = vadd.f32 %v4428_v36, %v4210_v47  ;;  %v4601_v35 = vadd.f32 %v4545_v59, %v9091_v6  ;;  %v16143_v36 = vld [vmem:[#allocation68_spill] sm:$0xff] }
 0x1a4   :  { %16142 = vst [vmem:[#allocation128_spill] sm:$0xff] %v9644_v46  ;;  %v4659_v11 = vmul.f32 %v9100_v60, %v16117_v16  ;;  %v4663_v45 = vmul.f32 %v9100_v60, %v16119_v12  ;;  %v4667_v9 = vmul.f32 %v9100_v60, %v16120_v42  ;;  %v4671_v38 = vmul.f32 %v9100_v60, %v9554_v40 }
 0x1a5   :  { %v4605_v47 = vadd.f32 %v4549_v13, %v4475_v49  ;;  %v4609_v14 = vadd.f32 %v4553_v20, %v4479_v34  ;;  %v4613_v0 = vadd.f32 %v4557_v50, %v4483_v61  ;;  %v4785_v46 = vmul.f32 %v16143_v36, %v4401_v18  ;;  %v16146_v34 = vld [vmem:[#allocation71_spill] sm:$0xff]  ;;  %v16147_v49 = vld [vmem:[#allocation46_spill] sm:$0xff] }
 0x1a6   :  { %v9662_v6 = vmul.f32 %v9017_v56, %v9636_v1  ;;  %v4715_v59 = vadd.f32 %v4659_v11, %v4601_v35  ;;  %v4789_v16 = vmul.f32 %v16143_v36, %v4402_v10  ;;  %v4794_v23 = vmul.f32 %v16143_v36, %v4278_v26 }
 0x1a7   :  { %v4719_v7 = vadd.f32 %v4663_v45, %v4605_v47  ;;  %v4723_v15 = vadd.f32 %v4667_v9, %v4609_v14  ;;  %v4793_v2 = vmul.f32 %v16143_v36, %v4403_v51  ;;  %v4899_v37 = vmul.f32 %v16145_v48, %v3887_v5  ;;  %v16148_v47 = vld [vmem:[#allocation75_spill] sm:$0xff] }
 0x1a8   :  { %16144 = vst [vmem:[#allocation138_spill] sm:$0xff] %v9662_v6  ;;  %v4841_v13 = vadd.f32 %v4785_v46, %v4715_v59  ;;  %v4850_v61 = vadd.f32 %v4794_v23, %v16146_v34  ;;  %v4903_v18 = vmul.f32 %v16145_v48, %v3894_v27  ;;  %v4904_v20 = vmul.f32 %v16145_v48, %v16147_v49  ;;  %v16149_v46 = vld [vmem:[#allocation17_spill] sm:$0xff]  ;;  %v16151_v34 = vld [vmem:[#allocation19_spill] sm:$0xff] }
 0x1a9   :  { %v9672_v50 = vadd.f32 %v4671_v38, %v4613_v0  ;;  %v4845_v35 = vadd.f32 %v4789_v16, %v4719_v7  ;;  %v4908_v11 = vmul.f32 %v16145_v48, %v9597_v30  ;;  %v4909_v45 = vmul.f32 %v16145_v48, %v9594_v33  ;;  %v16150_v38 = vld [vmem:[#allocation18_spill] sm:$0xff] }
 0x1aa   :  { %v4953_v9 = vadd.f32 %v4899_v37, %v4841_v13  ;;  %v4958_v5 = vadd.f32 %v4904_v20, %v16148_v47  ;;  %v5011_v23 = vmul.f32 %v16149_v46, %v16119_v12  ;;  %v5015_v27 = vmul.f32 %v16149_v46, %v16120_v42 }
 0x1ab   :  { %v4957_v14 = vadd.f32 %v4903_v18, %v4845_v35  ;;  %v4962_v59 = vadd.f32 %v4908_v11, %v4850_v61  ;;  %v4963_v0 = vadd.f32 %v4909_v45, %v16150_v38  ;;  %v5016_v7 = vmul.f32 %v16149_v46, %v8840_v63  ;;  %v16152_v11 = vld [vmem:[#allocation64_spill] sm:$0xff] }
 0x1ac   :  { %v5020_v16 = vmul.f32 %v16149_v46, %v9558_v58  ;;  %v5021_v37 = vmul.f32 %v16149_v46, %v9560_v29  ;;  %v5064_v13 = vadd.f32 %v5011_v23, %v4953_v9  ;;  %v5122_v49 = vmul.f32 %v16151_v34, %v4402_v10 }
 0x1ad   :  { %v5068_v12 = vadd.f32 %v5015_v27, %v4957_v14  ;;  %v5069_v20 = vadd.f32 %v5016_v7, %v4958_v5  ;;  %v5126_v42 = vmul.f32 %v16151_v34, %v4403_v51  ;;  %v5127_v61 = vmul.f32 %v16151_v34, %v4278_v26  ;;  %v16153_v5 = vld [vmem:[#allocation22_spill] sm:$0xff] }
 0x1ae   :  { %v5073_v18 = vadd.f32 %v5020_v16, %v4962_v59  ;;  %v5074_v35 = vadd.f32 %v5021_v37, %v4963_v0  ;;  %v5128_v45 = vmul.f32 %v16151_v34, %v16152_v11  ;;  %v5131_v47 = vmul.f32 %v16151_v34, %v9624_v52  ;;  %v16154_v0 = vld [vmem:[#allocation21_spill] sm:$0xff] }
 0x1af   :  { %v5132_v38 = vmul.f32 %v16151_v34, %v9636_v1  ;;  %v5176_v9 = vadd.f32 %v5122_v49, %v5064_v13  ;;  %v5180_v23 = vadd.f32 %v5126_v42, %v5068_v12  ;;  %v5181_v10 = vadd.f32 %v5127_v61, %v5069_v20 }
 0x1b0   :  { %v9699_v27 = vadd.f32 %v4793_v2, %v4723_v15  ;;  %v5182_v51 = vadd.f32 %v5128_v45, %v16153_v5  ;;  %v5185_v14 = vadd.f32 %v5131_v47, %v5073_v18  ;;  %v3630_v26 = vsel %vm1348_vm2, %v9527_v28, 0.0 }
 0x1b1   :  { %v5186_v59 = vadd.f32 %v5132_v38, %v5074_v35  ;;  %v5234_v7 = vadd.f32 %v16154_v0, %v5176_v9  ;;  %v5238_v16 = vadd.f32 %v16154_v0, %v5180_v23  ;;  %v5239_v37 = vadd.f32 %v16154_v0, %v5181_v10 }
 0x1b2   :  { %v9708_v11 = vadd.f32 %v16154_v0, %v5182_v51  ;;  %v5243_v13 = vadd.f32 %v16154_v0, %v5185_v14  ;;  %v3631_v2 = vsel %vm1348_vm2, %v9531_v25, 0.0  ;;  %v16155_v15 = vmax.f32 %v9515_v24, 0.0 }
 0x1b3   :  { %v9716_v28 = vadd.f32 %v16154_v0, %v5186_v59  ;;  %v5290_v12 = vmax.f32 %v5234_v7, 0.0  ;;  %v5294_v20 = vmax.f32 %v5238_v16, 0.0  ;;  %v5295_v42 = vmax.f32 %v5239_v37, 0.0  ;;  %v16161_v59 = vld [vmem:[#allocation26_spill] sm:$0xff] }
 0x1b4   :  { %v3685_v49 = vmax.f32 %v16155_v15, %v3630_v26  ;;  %v14860_v61 = vmax.f32 %v9708_v11, 0.0  ;;  %v5299_v18 = vmax.f32 %v5243_v13, 0.0  ;;  %v16156_v35 = vmax.f32 %v9521_v4, 0.0  ;;  %v16160_v26 = vld [vmem:[#allocation25_spill] sm:$0xff]  ;;  %v16162_v15 = vld [vmem:[#allocation23_spill] sm:$0xff] }
 0x1b5   :  { %v16157_v47 = vrot.slane %v16124_v31, 6  ;;  %v16158_v38 = vrot.slane %v8842_v44, 6  ;;  %v14861_v24 = vmax.f32 %v9716_v28, 0.0  ;;  %v5404_v9 = vrot.slane %v5290_v12, 2 }
 0x1b6   :  { %v3689_v45 = vmax.f32 %v16156_v35, %v3631_v2  ;;  %v5411_v23 = vrot.slane %v5294_v20, 2  ;;  %v5413_v10 = vrot.slane %v5295_v42, 2  ;;  %v9729_v5 = vrot.slane %v14860_v61, 2 }
 0x1b7   :  { %v3899_v25 = vsel %vm3871_vm3, %v16158_v38, %v16157_v47  ;;  %v5420_v51 = vrot.slane %v5299_v18, 2  ;;  %v3905_v4 = vrot.slane %v9578_v21, 6  ;;  %v5405_v44 = vsel %vm4252_vm4, %v16160_v26, %v5404_v9  ;;  %v16164_v38 = vld [vmem:[#allocation24_spill] sm:$0xff] }
 0x1b8   :  { %v9731_v14 = vmax.f32 %v3685_v49, %v3689_v45  ;;  %v5412_v7 = vsel %vm4252_vm4, %v16161_v59, %v5411_v23  ;;  %v9740_v16 = vrot.slane %v14861_v24, 2  ;;  %v5553_v37 = vsel %vm3871_vm3, %v5404_v9, 0.0 }
 0x1b9   :  { %v5415_v13 = vsel %vm4252_vm4, %v5413_v10, %v9729_v5  ;;  %v5554_v2 = vsel %vm3871_vm3, %v5411_v23, 0.0  ;;  %v16163_v49 = vmax.f32 %v16162_v15, 0.0  ;;  %v5570_v45 = vmax.f32 %v5290_v12, %v5553_v37 }
 0x1ba   :  { %16159 = vst [vmem:[#allocation129_spill] sm:$0xff] %v9731_v14  ;;  %v5422_v47 = vsel %vm4252_vm4, %v5420_v51, %v9740_v16  ;;  %v16165_v26 = vmax.f32 %v16164_v38, 0.0  ;;  %v5574_v61 = vmax.f32 %v5294_v20, %v5554_v2  ;;  %v5575_v24 = vmax.f32 %v5295_v42, %v5415_v13 }
 0x1bb   :  { %v5569_v35 = vmax.f32 %v16163_v49, %v5405_v44  ;;  %v5579_v1 = vmax.f32 %v5299_v18, %v5422_v47  ;;  %v16166_v9 = vrot.slane %v9560_v29, 6  ;;  %v3907_v23 = vrot.slane %v9731_v14, 6 }
 0x1bc   :  { %v5573_v59 = vmax.f32 %v16165_v26, %v5412_v7  ;;  %v9759_v10 = vmul.f32 %v16127_v43, %v3899_v25  ;;  %v5626_v44 = vmax.f32 %v5570_v45, %v5574_v61  ;;  %v4281_v20 = vrot.slane %v9554_v40, 2  ;;  %v16180_v26 = vld [vmem:[#allocation66_spill] sm:$0xff] }
 0x1bd   :  { %v9755_v52 = vsel %vm3871_vm3, %v16166_v9, %v3905_v4  ;;  %v5627_v42 = vmax.f32 %v5575_v24, %v5579_v1  ;;  %v9767_v18 = vsel %vm3871_vm3, %v3905_v4, %v3907_v23  ;;  %v4288_v7 = vrot.slane %v9731_v14, 2 }
 0x1be   :  { %16167 = vst [vmem:[#allocation47_spill] sm:$0xff] %v9755_v52  ;;  %16168 = vst [vmem:[#allocation48_spill] sm:$0xff] %v9759_v10  ;;  %v5625_v12 = vmax.f32 %v5569_v35, %v5573_v59  ;;  %v9763_v51 = vmul.f32 %v16127_v43, %v9755_v52  ;;  %v4556_v37 = vmul.f32 %v9030_v41, %v3899_v25  ;;  %v16172_v61 = vrot.slane %v16124_v31, 2 }
 0x1bf   :  { %16170 = vst [vmem:[#allocation51_spill] sm:$0xff] %v9767_v18  ;;  %v9773_v13 = vmul.f32 %v16127_v43, %v9767_v18  ;;  %v4404_v15 = vsel %vm3871_vm3, %v4281_v20, 0.0  ;;  %v4666_v1 = vmul.f32 %v9100_v60, %v16052_v57  ;;  %v9781_v24 = vrot.slane %v5627_v42, 4 }
 0x1c0   :  { %16169 = vst [vmem:[#allocation50_spill] sm:$0xff] %v9763_v51  ;;  %v4282_v2 = vsel %vm4252_vm4, %v16172_v61, %v4281_v20  ;;  %v16173_v4 = vrot.slane %v9578_v21, 2  ;;  %v9789_v35 = vsel %vm3871_vm3, %v4288_v7, 0.0  ;;  %v9795_v47 = vmul.f32 %v9017_v56, %v4404_v15  ;;  %v16181_v20 = vld [vmem:[#allocation81_spill] sm:$0xff] }
 0x1c1   :  { %16171 = vst [vmem:[#allocation28_spill] sm:$0xff] %v9773_v13  ;;  %16175 = vst [vmem:[#allocation58_spill] sm:$0xff] %v9789_v35  ;;  %v9792_v45 = vmul.f32 %v9017_v56, %v4282_v2  ;;  %v9803_v57 = vmul.f32 %v9017_v56, %v9789_v35  ;;  %v4612_v59 = vadd.f32 %v4556_v37, %v16180_v26  ;;  %v16182_v37 = vld [vmem:[#allocation72_spill] sm:$0xff] }
 0x1c2   :  { %v9786_v49 = vsel %vm4252_vm4, %v16173_v4, %v4288_v7  ;;  %16177 = vst [vmem:[#allocation83_spill] sm:$0xff] %v9795_v47  ;;  %v5697_v9 = vsel %vm5655_vm5, %v5626_v44, %v9781_v24  ;;  %v4670_v23 = vmul.f32 %v9100_v60, %v16124_v31  ;;  %v4722_v42 = vadd.f32 %v4666_v1, %v16181_v20 }
 0x1c3   :  { %16174 = vst [vmem:[#allocation31_spill] sm:$0xff] %v9786_v49  ;;  %16176 = vst [vmem:[#allocation102_spill] sm:$0xff] %v9792_v45  ;;  %v9799_v38 = vmul.f32 %v9017_v56, %v9786_v49  ;;  %v4796_v7 = vmul.f32 %v16143_v36, %v4282_v2  ;;  %v6232_v61 = vpack.c.bf16 %v5697_v9, %v5625_v12  ;;  %v16211_v60 = vmax.f32 %v9708_v11, 0.0 }
 0x1c4   :  { %16179 = vst [vmem:[#allocation85_spill] sm:$0xff] %v9803_v57  ;;  %v4797_v4 = vmul.f32 %v16143_v36, %v4404_v15  ;;  %v4907_v57 = vmul.f32 %v16145_v48, %v9589_v17  ;;  %v4726_v47 = vadd.f32 %v4670_v23, %v4612_v59  ;;  %v4848_v26 = vadd.f32 %v16182_v37, %v4722_v42 }
 0x1c5   :  { %16178 = vst [vmem:[#allocation84_spill] sm:$0xff] %v9799_v38  ;;  %v4906_v38 = vmul.f32 %v16145_v48, %v3899_v25  ;;  %v4910_v44 = vmul.f32 %v16145_v48, %v9755_v52  ;;  %v4911_v45 = vmul.f32 %v16145_v48, %v9767_v18  ;;  %6233 = vmatpush1.bf16.msra.mxu0 %v6232_v61  ;;  %v16183_v59 = vmov 0.0|0.0   ;;  %v9976_v48 = vld [vmem:[%s14510_s0 + $0x1e0] sm:$0xff] }
 0x1c6   :  { %v4853_v1 = vadd.f32 %v4797_v4, %v9672_v50  ;;  %v4961_v12 = vadd.f32 %v4907_v57, %v9699_v27  ;;  %v5018_v25 = vmul.f32 %v16149_v46, %v16124_v31  ;;  %v5019_v17 = vmul.f32 %v16149_v46, %v9554_v40  ;;  %6234 = vmatprep.subr.bf16.mxu0 %v16183_v59  ;;  %v9835_v50 = vld [vmem:[%s14510_s0 + $0x160] sm:$0xff]  ;;  %v9840_v27 = vld [vmem:[%s14510_s0 + $0x168] sm:$0xff]  ;;  %v9852_v4 = vld [vmem:[%s14510_s0 + $0x178] sm:$0xf] }
 0x1c7   :  { %v4852_v9 = vadd.f32 %v4796_v7, %v4726_v47  ;;  %v4960_v23 = vadd.f32 %v4906_v38, %v4848_v26  ;;  %v5022_v20 = vmul.f32 %v16149_v46, %v9578_v21  ;;  %v5023_v42 = vmul.f32 %v16149_v46, %v9731_v14  ;;  %v9847_v7 = vld [vmem:[%s14510_s0 + $0x170] sm:$0xff]  ;;  %16185 = vst [vmem:[#allocation105_spill] sm:$0xff] %v9852_v4  ;;  %v9971_v46 = vld [vmem:[%s14510_s0 + $0x1d8] sm:$0xf] }
 0x1c8   :  { %v4965_v57 = vadd.f32 %v4911_v45, %v4853_v1  ;;  %v5072_v61 = vadd.f32 %v5019_v17, %v4961_v12  ;;  %v5129_v47 = vmul.f32 %v16151_v34, %v4282_v2  ;;  %v5130_v38 = vmul.f32 %v16151_v34, %v4404_v15  ;;  %16184 = vst [vmem:[#allocation86_spill] sm:$0xff] %v9847_v7  ;;  %v9861_v15 = vld [vmem:[%s14510_s0 + $0x180] sm:$0xff] }
 0x1c9   :  { %v4964_v37 = vadd.f32 %v4910_v44, %v4852_v9  ;;  %v5071_v26 = vadd.f32 %v5018_v25, %v4960_v23  ;;  %v5133_v45 = vmul.f32 %v16151_v34, %v9786_v49  ;;  %v5134_v2 = vmul.f32 %v16151_v34, %v9789_v35  ;;  %16186 = vst [vmem:[#allocation106_spill] sm:$0xff] %v9861_v15  ;;  %v9868_v25 = vld [vmem:[%s14510_s0 + $0x188] sm:$0xff]  ;;  %v9873_v9 = vld [vmem:[%s14510_s0 + $0x190] sm:$0xff] }
 0x1ca   :  { %v5076_v1 = vadd.f32 %v5023_v42, %v4965_v57  ;;  %v5184_v12 = vadd.f32 %v5130_v38, %v5072_v61  ;;  %v14868_v17 = vrot.slane %v9835_v50, 7  ;;  %v354_v18 = vrot.slane %v9840_v27, 7  ;;  %16187 = vst [vmem:[#allocation130_spill] sm:$0xff] %v9868_v25  ;;  %16188 = vst [vmem:[#allocation90_spill] sm:$0xff] %v9873_v9 }
 0x1cb   :  { %v5075_v52 = vadd.f32 %v5022_v20, %v4964_v37  ;;  %v5183_v44 = vadd.f32 %v5129_v47, %v5071_v26  ;;  %v356_v23 = vrot.slane %v9847_v7, 7  ;;  %v358_v42 = vrot.slane %v9852_v4, 7  ;;  %v9883_v20 = vld [vmem:[%s14510_s0 + $0x198] sm:$0xf]  ;;  %v9888_v47 = vld [vmem:[%s14510_s0 + $0x1a0] sm:$0xff]  ;;  %16208 = vst [vmem:[#allocation96_spill] sm:$0xff] %v9971_v46 }
 0x1cc   :  { %v5188_v57 = vadd.f32 %v5134_v2, %v5076_v1  ;;  %v9878_v61 = vadd.f32 %v16154_v0, %v5184_v12  ;;  %16190 = vst [vmem:[#allocation9_spill] sm:$0xff] %v9883_v20  ;;  %16191 = vst [vmem:[#allocation10_spill] sm:$0xff] %v9888_v47  ;;  %v9893_v38 = vsel %vm273_vm0, %v14868_v17, %v354_v18  ;;  %v360_v37 = vrot.slane %v9861_v15, 7  ;;  %v9910_v17 = vld [vmem:[%s14510_s0 + $0x1a8] sm:$0xff] }
 0x1cd   :  { %16192 = vst [vmem:[#allocation89_spill] sm:$0xff] %v9893_v38  ;;  %v5187_v26 = vadd.f32 %v5133_v45, %v5075_v52  ;;  %v5241_v2 = vadd.f32 %v16154_v0, %v5183_v44  ;;  %v9898_v1 = vsel %vm273_vm0, %v354_v18, %v356_v23  ;;  %v9901_v12 = vsel %vm273_vm0, %v356_v23, %v358_v42  ;;  %v9915_v52 = vld [vmem:[%s14510_s0 + $0x1b0] sm:$0xff]  ;;  %v9923_v42 = vld [vmem:[%s14510_s0 + $0x1b8] sm:$0xf] }
 0x1ce   :  { %16189 = vst [vmem:[#allocation91_spill] sm:$0xff] %v9878_v61  ;;  %16193 = vst [vmem:[#allocation92_spill] sm:$0xff] %v9898_v1  ;;  %v9904_v35 = vadd.f32 %v16154_v0, %v5188_v57  ;;  %v361_v18 = vrot.slane %v9868_v25, 7  ;;  %v363_v45 = vrot.slane %v9873_v9, 7  ;;  %v9928_v57 = vld [vmem:[%s14510_s0 + $0x1c0] sm:$0xff]  ;;  %v365_v49 = vrot.slane %v9883_v20, 7 }
 0x1cf   :  { %16194 = vst [vmem:[#allocation11_spill] sm:$0xff] %v9901_v12  ;;  %16196 = vst [vmem:[#allocation62_spill] sm:$0xff] %v9910_v17  ;;  %v5245_v44 = vadd.f32 %v16154_v0, %v5187_v26  ;;  %v5297_v23 = vmax.f32 %v5241_v2, 0.0  ;;  %v367_v13 = vrot.slane %v9888_v47, 7  ;;  %v16200_v10 = vmax.f32 %v9878_v61, 0.0 }
 0x1d0   :  { %16195 = vst [vmem:[#allocation60_spill] sm:$0xff] %v9904_v35  ;;  %16197 = vst [vmem:[#allocation63_spill] sm:$0xff] %v9915_v52  ;;  %v14877_v51 = vmax.f32 %v9904_v35, 0.0  ;;  %v9938_v2 = vsel %vm273_vm0, %v360_v37, %v361_v18  ;;  %v9941_v14 = vsel %vm273_vm0, %v361_v18, %v363_v45  ;;  %v9944_v31 = vsel %vm273_vm0, %v363_v45, %v365_v49  ;;  %v9959_v18 = vld [vmem:[%s14510_s0 + $0x1d0] sm:$0xff] }
 0x1d1   :  { %16198 = vst [vmem:[#allocation39_spill] sm:$0xff] %v9923_v42  ;;  %16199 = vst [vmem:[#allocation97_spill] sm:$0xff] %v9928_v57  ;;  %v9935_v26 = vrot.slane %v16200_v10, 2  ;;  %v5301_v21 = vmax.f32 %v5245_v44, 0.0  ;;  %v5416_v40 = vrot.slane %v5297_v23, 2  ;;  %v368_v0 = vrot.slane %v9910_v17, 7 }
 0x1d2   :  { %16202 = vst [vmem:[#allocation139_spill] sm:$0xff] %v9938_v2  ;;  %16203 = vst [vmem:[#allocation140_spill] sm:$0xff] %v9941_v14  ;;  %v9949_v34 = vrot.slane %v14877_v51, 2  ;;  %v9954_v10 = vld [vmem:[%s14510_s0 + $0x1c8] sm:$0xff]  ;;  %v370_v44 = vrot.slane %v9915_v52, 7  ;;  %v372_v49 = vrot.slane %v9923_v42, 7 }
 0x1d3   :  { %16201 = vst [vmem:[#allocation93_spill] sm:$0xff] %v9935_v26  ;;  %16204 = vst [vmem:[#allocation82_spill] sm:$0xff] %v9944_v31  ;;  %v374_v45 = vrot.slane %v9928_v57, 7  ;;  %v5417_v51 = vsel %vm4252_vm4, %v9729_v5, %v5416_v40  ;;  %v5419_v35 = vsel %vm4252_vm4, %v5416_v40, %v9935_v26  ;;  %v5423_v61 = vrot.slane %v5301_v21, 2  ;;  %v9986_v40 = vld [vmem:[%s14510_s0 + $0x1e8] sm:$0xff]  ;;  %v9991_v26 = vld [vmem:[%s14510_s0 + $0x200] sm:$0xff] }
 0x1d4   :  { %16205 = vst [vmem:[#allocation94_spill] sm:$0xff] %v9949_v34  ;;  %16206 = vst [vmem:[#allocation27_spill] sm:$0xff] %v9954_v10  ;;  %v9979_v36 = vsel %vm273_vm0, %v367_v13, %v368_v0  ;;  %v5576_v5 = vmax.f32 %v16211_v60, %v5417_v51  ;;  %v5577_v33 = vmax.f32 %v5297_v23, %v5419_v35  ;;  %v10006_v51 = vld [vmem:[%s14510_s0 + $0x208] sm:$0xff]  ;;  %v375_v35 = vrot.slane %v9954_v10, 7 }
 0x1d5   :  { %16207 = vst [vmem:[#allocation95_spill] sm:$0xff] %v9959_v18  ;;  %16209 = vst [vmem:[#allocation99_spill] sm:$0xff] %v9976_v48  ;;  %v9994_v41 = vsel %vm273_vm0, %v368_v0, %v370_v44  ;;  %v9997_v30 = vsel %vm273_vm0, %v370_v44, %v372_v49  ;;  %v5424_v60 = vsel %vm4252_vm4, %v9740_v16, %v5423_v61  ;;  %v377_v23 = vrot.slane %v9959_v18, 7 }
 0x1d6   :  { %16210 = vst [vmem:[#allocation87_spill] sm:$0xff] %v9979_v36  ;;  %16212 = vst [vmem:[#allocation88_spill] sm:$0xff] %v9986_v40  ;;  %v5426_v11 = vsel %vm4252_vm4, %v5423_v61, %v9949_v34  ;;  %v16217_v0 = vmax.f32 %v9716_v28, 0.0  ;;  %v379_v49 = vrot.slane %v9971_v46, 7  ;;  %v381_v16 = vrot.slane %v9976_v48, 7  ;;  %v16238_v48 = vld [vmem:[#allocation107_spill] sm:$0xff] }
 0x1d7   :  { %16213 = vst [vmem:[#allocation125_spill] sm:$0xff] %v9991_v26  ;;  %16214 = vst [vmem:[#allocation14_spill] sm:$0xff] %v9994_v41  ;;  %v5581_v44 = vmax.f32 %v5301_v21, %v5426_v11  ;;  %v10015_v6 = vsel %vm273_vm0, %v374_v45, %v375_v35  ;;  %v10018_v61 = vsel %vm273_vm0, %v375_v35, %v377_v23  ;;  %v14899_v34 = vrot.slane %v9986_v40, 7 }
 0x1d8   :  { %16215 = vst [vmem:[#allocation15_spill] sm:$0xff] %v9997_v30  ;;  %16216 = vst [vmem:[#allocation16_spill] sm:$0xff] %v10006_v51  ;;  %v5580_v56 = vmax.f32 %v16217_v0, %v5424_v60  ;;  %v388_v43 = vrot.slane %v9991_v26, 7  ;;  %v10023_v28 = vsel %vm273_vm0, %v377_v23, %v379_v49  ;;  %v14898_v21 = vrot.slane %v10006_v51, 7  ;;  %v16237_v26 = vld [vmem:[#allocation38_spill] sm:$0xff] }
 0x1d9   :  { %16218 = vst [vmem:[#allocation13_spill] sm:$0xff] %v10015_v6  ;;  %16219 = vst [vmem:[#allocation74_spill] sm:$0xff] %v10018_v61  ;;  %v5629_v58 = vmax.f32 %v5577_v33, %v5581_v44  ;;  %v10029_v60 = vsel %vm273_vm0, %v381_v16, %v14899_v34  ;;  %v16222_v11 = vrot.slane %v9835_v50, 7  ;;  %v10037_v0 = vsel %vm273_vm0, 0.0, %v360_v37 }
 0x1da   :  { %v5628_v29 = vmax.f32 %v5576_v5, %v5580_v56  ;;  %16220 = vst [vmem:[#allocation8_spill] sm:$0xff] %v10023_v28  ;;  %16221 = vst [vmem:[#allocation12_spill] sm:$0xff] %v10029_v60  ;;  %v10040_v56 = vsel %vm273_vm0, 0.0, %v367_v13  ;;  %v10047_v23 = vsel %vm273_vm0, %v388_v43, %v14898_v21  ;;  %v10050_v44 = vsel %vm273_vm0, 0.0, %v374_v45  ;;  %v16231_v13 = vld [vmem:[#allocation55_spill] sm:$0xff] }
 0x1db   :  { %v10034_v35 = vsel %vm273_vm0, 0.0, %v16222_v11  ;;  %16224 = vst [vmem:[#allocation36_spill] sm:$0xff] %v10037_v0  ;;  %16225 = vst [vmem:[#allocation41_spill] sm:$0xff] %v10040_v56  ;;  %v10042_v5 = vrot.slane %v5629_v58, 4  ;;  %v10053_v49 = vsel %vm273_vm0, 0.0, %v381_v16  ;;  %v10056_v37 = vsel %vm273_vm0, 0.0, %v388_v43 }
 0x1dc   :  { %16223 = vst [vmem:[#allocation35_spill] sm:$0xff] %v10034_v35  ;;  %v5657_v33 = vrot.slane %v5628_v29, 4  ;;  %16227 = vst [vmem:[#allocation46_spill] sm:$0xff] %v10047_v23  ;;  %v650_v11 = vmul.f32 %v16231_v13, %v10034_v35  ;;  %v651_v29 = vmul.f32 %v16231_v13, %v9893_v38  ;;  %v652_v45 = vmul.f32 %v16231_v13, %v9898_v1 }
 0x1dd   :  { %16226 = vst [vmem:[#allocation71_spill] sm:$0xff] %v10042_v5  ;;  %16228 = vst [vmem:[#allocation75_spill] sm:$0xff] %v10050_v44  ;;  %v653_v16 = vmul.f32 %v16231_v13, %v9901_v12  ;;  %v654_v34 = vmul.f32 %v16231_v13, %v10037_v0  ;;  %v655_v63 = vmul.f32 %v16231_v13, %v9938_v2 }
 0x1de   :  { %16229 = vst [vmem:[#allocation18_spill] sm:$0xff] %v10053_v49  ;;  %16230 = vst [vmem:[#allocation64_spill] sm:$0xff] %v10056_v37  ;;  %v5658_v58 = vsel %vm5655_vm5, %v9781_v24, %v5657_v33  ;;  %v5660_v21 = vsel %vm5655_vm5, %v5657_v33, %v10042_v5  ;;  %v656_v23 = vmul.f32 %v16231_v13, %v9941_v14 }
 0x1df   :  { %v6235_v43 = vpack.c.bf16 %v5660_v21, %v5658_v58  ;;  %v657_v24 = vmul.f32 %v16231_v13, %v9944_v31  ;;  %v658_v33 = vmul.f32 %v16231_v13, %v10040_v56  ;;  %v659_v5 = vmul.f32 %v16231_v13, %v9979_v36 }
 0x1e0   :  { %v660_v21 = vmul.f32 %v16231_v13, %v9994_v41  ;;  %v661_v58 = vmul.f32 %v16231_v13, %v9997_v30  ;;  %v662_v37 = vmul.f32 %v16231_v13, %v10050_v44  ;;  %v663_v19 = vmul.f32 %v16231_v13, %v10015_v6  ;;  %v6339_v30 = vld [vmem:[%s14510_s0 + $0x120] sm:$0xff]  ;;  %v16233_v44 = vld [vmem:[#allocation98_spill] sm:$0xff]  ;;  %v6340_v6 = vld [vmem:[%s14510_s0 + $0x128] sm:$0xff] }
 0x1e1   :  { %6236 = vmatpush1.bf16.msra.mxu0 %v6235_v43  ;;  %v664_v60 = vmul.f32 %v16231_v13, %v10018_v61  ;;  %v665_v36 = vmul.f32 %v16231_v13, %v10023_v28  ;;  %v10097_v43 = vmul.f32 %v16231_v13, %v10053_v49  ;;  %v863_v41 = vmul.f32 %v6339_v30, %v16233_v44  ;;  %v10118_v30 = vld [vmem:[%s14510_s0 + $0x140] sm:$0xff] }
 0x1e2   :  { %6237 = vmatprep.subr.bf16.mxu0 %v16183_v59  ;;  %v864_v61 = vmul.f32 %v6340_v6, %v16233_v44  ;;  %v6341_v59 = vld [vmem:[%s14510_s0 + $0x130] sm:$0xff]  ;;  %16234 = vst [vmem:[#allocation25_spill] sm:$0xff] %v10118_v30  ;;  %v867_v6 = vmul.f32 %v10118_v30, %v16233_v44  ;;  %v868_v49 = vmul.f32 %v16233_v44, %v9259_v53 }
 0x1e3   :  { %16232 = vst [vmem:[#allocation22_spill] sm:$0xff] %v10097_v43  ;;  %v865_v28 = vmul.f32 %v6341_v59, %v16233_v44  ;;  %v6342_v43 = vld [vmem:[%s14510_s0 + $0x138] sm:$0xf]  ;;  %v869_v59 = vmul.f32 %v16233_v44, %v9264_v39  ;;  %v870_v56 = vmul.f32 %v16233_v44, %v9285_v22  ;;  %v872_v31 = vmul.f32 %v16233_v44, %v9840_v27 }
 0x1e4   :  { %v866_v13 = vmul.f32 %v6342_v43, %v16233_v44  ;;  %v871_v43 = vmul.f32 %v16233_v44, %v9835_v50  ;;  %v873_v14 = vmul.f32 %v16233_v44, %v9847_v7  ;;  %v874_v30 = vmul.f32 %v16233_v44, %v9852_v4 }
 0x1e5   :  { %v875_v53 = vmul.f32 %v16233_v44, %v9861_v15  ;;  %v876_v39 = vmul.f32 %v16233_v44, %v9868_v25  ;;  %v877_v22 = vmul.f32 %v16233_v44, %v9873_v9  ;;  %v878_v2 = vmul.f32 %v16233_v44, %v9883_v20 }
 0x1e6   :  { %v879_v0 = vmul.f32 %v16233_v44, %v9888_v47  ;;  %v880_v12 = vmul.f32 %v16233_v44, %v9910_v17  ;;  %v881_v1 = vmul.f32 %v16233_v44, %v9915_v52  ;;  %v882_v38 = vmul.f32 %v16233_v44, %v9923_v42  ;;  %v16239_v42 = vld [vmem:[#allocation108_spill] sm:$0xff]  ;;  %v16240_v52 = vld [vmem:[#allocation109_spill] sm:$0xff]  ;;  %v16241_v17 = vld [vmem:[#allocation131_spill] sm:$0xff] }
 0x1e7   :  { %v883_v35 = vmul.f32 %v16233_v44, %v9928_v57  ;;  %v884_v8 = vmul.f32 %v16233_v44, %v9954_v10  ;;  %v885_v32 = vmul.f32 %v16233_v44, %v9959_v18  ;;  %v886_v55 = vmul.f32 %v16233_v44, %v9971_v46 }
 0x1e8   :  { %v10161_v3 = vadd.f32 %v863_v41, %v16235_v62  ;;  %v10164_v51 = vadd.f32 %v864_v61, %v16236_v54  ;;  %v10167_v40 = vadd.f32 %v865_v28, %v16237_v26  ;;  %v10170_v57 = vadd.f32 %v866_v13, %v16238_v48  ;;  %v16242_v41 = vld [vmem:[#allocation110_spill] sm:$0xff] }
 0x1e9   :  { %v10173_v10 = vadd.f32 %v867_v6, %v16239_v42  ;;  %v10176_v18 = vadd.f32 %v868_v49, %v16240_v52  ;;  %v10179_v44 = vadd.f32 %v869_v59, %v16241_v17  ;;  %v10182_v62 = vadd.f32 %v870_v56, %v16242_v41  ;;  %v16254_v59 = vld [vmem:[#allocation27_spill] sm:$0xff] }
 0x1ea   :  { %v10184_v54 = vadd.f32 %v871_v43, %v650_v11  ;;  %v10186_v61 = vadd.f32 %v872_v31, %v651_v29  ;;  %v10188_v26 = vadd.f32 %v873_v14, %v652_v45  ;;  %v10190_v48 = vadd.f32 %v874_v30, %v653_v16  ;;  %v16250_v16 = vld [vmem:[#allocation63_spill] sm:$0xff]  ;;  %v16253_v30 = vld [vmem:[#allocation97_spill] sm:$0xff] }
 0x1eb   :  { %v10192_v28 = vadd.f32 %v875_v53, %v654_v34  ;;  %v10194_v42 = vadd.f32 %v876_v39, %v655_v63  ;;  %v10196_v52 = vadd.f32 %v877_v22, %v656_v23  ;;  %v10198_v49 = vadd.f32 %v878_v2, %v657_v24  ;;  %v16255_v53 = vld [vmem:[#allocation95_spill] sm:$0xff]  ;;  %v10255_v22 = vld [vmem:[%s14510_s0 + $0x1f0] sm:$0xff] }
 0x1ec   :  { %v10200_v17 = vadd.f32 %v879_v0, %v658_v33  ;;  %v10202_v56 = vadd.f32 %v880_v12, %v659_v5  ;;  %v10204_v13 = vadd.f32 %v881_v1, %v660_v21  ;;  %v10206_v31 = vadd.f32 %v882_v38, %v661_v58  ;;  %v16247_v5 = vld [vmem:[#allocation62_spill] sm:$0xff]  ;;  %v16251_v33 = vld [vmem:[#allocation39_spill] sm:$0xff]  ;;  %16256 = vst [vmem:[#allocation34_spill] sm:$0xff] %v10255_v22 }
 0x1ed   :  { %v10208_v14 = vadd.f32 %v883_v35, %v662_v37  ;;  %v10210_v11 = vadd.f32 %v884_v8, %v663_v19  ;;  %v10212_v34 = vadd.f32 %v885_v32, %v664_v60  ;;  %v10214_v63 = vadd.f32 %v886_v55, %v665_v36 }
 0x1ee   :  { %v1126_v23 = vrot.slane %v9835_v50, 1  ;;  %v1127_v2 = vrot.slane %v9840_v27, 1  ;;  %v1129_v0 = vrot.slane %v9847_v7, 1  ;;  %v1131_v12 = vrot.slane %v9852_v4, 1 }
 0x1ef   :  { %v1133_v1 = vrot.slane %v9861_v15, 1  ;;  %v1134_v38 = vrot.slane %v9868_v25, 1  ;;  %v1136_v32 = vrot.slane %v9873_v9, 1  ;;  %v1138_v55 = vrot.slane %v9883_v20, 1 }
 0x1f0   :  { %v10223_v35 = vsel %vm1046_vm1, %v1126_v23, %v1127_v2  ;;  %v1140_v8 = vrot.slane %v9888_v47, 1  ;;  %v10229_v19 = vsel %vm1046_vm1, %v1127_v2, %v1129_v0  ;;  %v10232_v36 = vsel %vm1046_vm1, %v1129_v0, %v1131_v12  ;;  %v16259_v0 = vld [vmem:[#allocation99_spill] sm:$0xff] }
 0x1f1   :  { %16243 = vst [vmem:[#allocation26_spill] sm:$0xff] %v10223_v35  ;;  %16244 = vst [vmem:[#allocation23_spill] sm:$0xff] %v10229_v19  ;;  %v10235_v60 = vsel %vm1046_vm1, %v1133_v1, %v1134_v38  ;;  %v1141_v37 = vrot.slane %v16247_v5, 1  ;;  %v10239_v29 = vsel %vm1046_vm1, %v1134_v38, %v1136_v32  ;;  %v10242_v45 = vsel %vm1046_vm1, %v1136_v32, %v1138_v55  ;;  %v10268_v38 = vld [vmem:[%s14510_s0 + $0x210] sm:$0xff] }
 0x1f2   :  { %16245 = vst [vmem:[#allocation24_spill] sm:$0xff] %v10232_v36  ;;  %16246 = vst [vmem:[#allocation66_spill] sm:$0xff] %v10235_v60  ;;  %v1143_v24 = vrot.slane %v16250_v16, 1  ;;  %v1145_v21 = vrot.slane %v16251_v33, 1  ;;  %v1147_v6 = vrot.slane %v16253_v30, 1  ;;  %v1148_v43 = vrot.slane %v16254_v59, 1 }
 0x1f3   :  { %16248 = vst [vmem:[#allocation81_spill] sm:$0xff] %v10239_v29  ;;  %16249 = vst [vmem:[#allocation72_spill] sm:$0xff] %v10242_v45  ;;  %v10247_v58 = vsel %vm1046_vm1, %v1140_v8, %v1141_v37  ;;  %v1150_v39 = vrot.slane %v16255_v53, 1  ;;  %v1152_v2 = vrot.slane %v9971_v46, 1  ;;  %v1154_v1 = vrot.slane %v16259_v0, 1  ;;  %v16265_v46 = vld [vmem:[#allocation125_spill] sm:$0xff] }
 0x1f4   :  { %16252 = vst [vmem:[#allocation33_spill] sm:$0xff] %v10247_v58  ;;  %v10258_v41 = vsel %vm1046_vm1, %v1141_v37, %v1143_v24  ;;  %v10261_v23 = vsel %vm1046_vm1, %v1143_v24, %v1145_v21  ;;  %16260 = vst [vmem:[#allocation108_spill] sm:$0xff] %v10268_v38  ;;  %v10271_v32 = vsel %vm1046_vm1, %v1147_v6, %v1148_v43  ;;  %v16263_v37 = vld [vmem:[#allocation88_spill] sm:$0xff]  ;;  %v14970_v24 = vrot.slane %v10255_v22, 1 }
 0x1f5   :  { %16257 = vst [vmem:[#allocation38_spill] sm:$0xff] %v10258_v41  ;;  %16258 = vst [vmem:[#allocation107_spill] sm:$0xff] %v10261_v23  ;;  %v10274_v8 = vsel %vm1046_vm1, %v1148_v43, %v1150_v39  ;;  %v1155_v53 = vrot.slane %v16263_v37, 1  ;;  %v10279_v59 = vsel %vm1046_vm1, %v1150_v39, %v1152_v2  ;;  %v1161_v0 = vrot.slane %v16265_v46, 1  ;;  %v16266_v30 = vld [vmem:[#allocation16_spill] sm:$0xff] }
 0x1f6   :  { %16261 = vst [vmem:[#allocation109_spill] sm:$0xff] %v10271_v32  ;;  %16262 = vst [vmem:[#allocation131_spill] sm:$0xff] %v10274_v8  ;;  %v1162_v33 = vrot.slane %v16266_v30, 1  ;;  %v14972_v16 = vrot.slane %v10268_v38, 1  ;;  %v10293_v43 = vsel %vm1348_vm2, %v1131_v12, 0.0  ;;  %v10296_v39 = vsel %vm1348_vm2, %v1138_v55, 0.0 }
 0x1f7   :  { %16264 = vst [vmem:[#allocation110_spill] sm:$0xff] %v10279_v59  ;;  %v10285_v5 = vsel %vm1046_vm1, %v1154_v1, %v1155_v53  ;;  %v10290_v6 = vsel %vm1046_vm1, %v1155_v53, %v14970_v24  ;;  %16269 = vst [vmem:[#allocation144_spill] sm:$0xff] %v10293_v43  ;;  %v10307_v1 = vsel %vm1348_vm2, %v1145_v21, 0.0  ;;  %v10310_v53 = vsel %vm1348_vm2, %v1152_v2, 0.0  ;;  %v16275_v12 = vld [vmem:[#allocation126_spill] sm:$0xff] }
 0x1f8   :  { %16267 = vst [vmem:[#allocation142_spill] sm:$0xff] %v10285_v5  ;;  %16268 = vst [vmem:[#allocation143_spill] sm:$0xff] %v10290_v6  ;;  %v10299_v46 = vsel %vm1046_vm1, %v1161_v0, %v1162_v33  ;;  %v10304_v30 = vsel %vm1046_vm1, %v1162_v33, %v14972_v16  ;;  %v1424_v24 = vmul.f32 %v16275_v12, %v10223_v35 }
 0x1f9   :  { %16270 = vst [vmem:[#allocation145_spill] sm:$0xff] %v10296_v39  ;;  %16271 = vst [vmem:[#allocation146_spill] sm:$0xff] %v10299_v46  ;;  %v1425_v55 = vmul.f32 %v16275_v12, %v10229_v19  ;;  %v1426_v0 = vmul.f32 %v16275_v12, %v10232_v36  ;;  %v1427_v38 = vmul.f32 %v16275_v12, %v10293_v43 }
 0x1fa   :  { %16272 = vst [vmem:[#allocation147_spill] sm:$0xff] %v10304_v30  ;;  %16273 = vst [vmem:[#allocation148_spill] sm:$0xff] %v10307_v1  ;;  %v1428_v33 = vmul.f32 %v16275_v12, %v10235_v60  ;;  %v1429_v21 = vmul.f32 %v16275_v12, %v10239_v29  ;;  %v1430_v2 = vmul.f32 %v16275_v12, %v10242_v45 }
 0x1fb   :  { %16274 = vst [vmem:[#allocation149_spill] sm:$0xff] %v10310_v53  ;;  %v1431_v16 = vmul.f32 %v16275_v12, %v10296_v39  ;;  %v1432_v22 = vmul.f32 %v16275_v12, %v10247_v58  ;;  %v1433_v30 = vmul.f32 %v16275_v12, %v10258_v41  ;;  %v1434_v46 = vmul.f32 %v16275_v12, %v10261_v23  ;;  %v16276_v41 = vld [vmem:[#allocation114_spill] sm:$0xff]  ;;  %v16277_v23 = vld [vmem:[#allocation115_spill] sm:$0xff] }
 0x1fc   :  { %v1435_v6 = vmul.f32 %v16275_v12, %v10307_v1  ;;  %v1436_v5 = vmul.f32 %v16275_v12, %v10271_v32  ;;  %v1437_v45 = vmul.f32 %v16275_v12, %v10274_v8  ;;  %v1438_v39 = vmul.f32 %v16275_v12, %v10279_v59  ;;  %v16278_v1 = vld [vmem:[#allocation133_spill] sm:$0xff]  ;;  %v16279_v32 = vld [vmem:[#allocation116_spill] sm:$0xff]  ;;  %v16281_v59 = vld [vmem:[#allocation118_spill] sm:$0xff] }
 0x1fd   :  { %v1439_v58 = vmul.f32 %v16275_v12, %v10310_v53  ;;  %v1527_v29 = vadd.f32 %v16276_v41, %v10161_v3  ;;  %v1528_v60 = vadd.f32 %v16277_v23, %v10164_v51  ;;  %v1529_v43 = vadd.f32 %v16278_v1, %v10167_v40  ;;  %v16280_v8 = vld [vmem:[#allocation117_spill] sm:$0xff]  ;;  %v16282_v12 = vld [vmem:[#allocation134_spill] sm:$0xff]  ;;  %v16283_v3 = vld [vmem:[#allocation119_spill] sm:$0xff] }
 0x1fe   :  { %v1530_v36 = vadd.f32 %v16279_v32, %v10170_v57  ;;  %v1531_v19 = vadd.f32 %v16280_v8, %v10173_v10  ;;  %v1532_v35 = vadd.f32 %v16281_v59, %v10176_v18  ;;  %v1533_v53 = vadd.f32 %v16282_v12, %v10179_v44  ;;  %v16300_v12 = vld [vmem:[#allocation82_spill] sm:$0xff] }
 0x1ff   :  { %v1534_v41 = vadd.f32 %v16283_v3, %v10182_v62  ;;  %v1535_v51 = vadd.f32 %v1424_v24, %v10184_v54  ;;  %v1536_v23 = vadd.f32 %v1425_v55, %v10186_v61  ;;  %v1537_v40 = vadd.f32 %v1426_v0, %v10188_v26  ;;  %v16298_v24 = vld [vmem:[#allocation139_spill] sm:$0xff]  ;;  %v16301_v0 = vld [vmem:[#allocation41_spill] sm:$0xff]  ;;  %v16303_v3 = vld [vmem:[#allocation14_spill] sm:$0xff] }
 0x200   :  { %v1538_v57 = vadd.f32 %v1427_v38, %v10190_v48  ;;  %v1539_v32 = vadd.f32 %v1428_v33, %v10192_v28  ;;  %v1540_v10 = vadd.f32 %v1429_v21, %v10194_v42  ;;  %v1541_v18 = vadd.f32 %v1430_v2, %v10196_v52  ;;  %v16288_v52 = vld [vmem:[#allocation32_spill] sm:$0xff]  ;;  %v16302_v21 = vld [vmem:[#allocation87_spill] sm:$0xff] }
 0x201   :  { %v1542_v59 = vadd.f32 %v1431_v16, %v10198_v49  ;;  %v1543_v44 = vadd.f32 %v1432_v22, %v10200_v17  ;;  %v1544_v62 = vadd.f32 %v1433_v30, %v10202_v56  ;;  %v10371_v54 = vadd.f32 %v1434_v46, %v10204_v13  ;;  %v16289_v49 = vld [vmem:[#allocation100_spill] sm:$0xff]  ;;  %v16290_v56 = vld [vmem:[#allocation29_spill] sm:$0xff]  ;;  %v16291_v13 = vld [vmem:[#allocation30_spill] sm:$0xff] }
 0x202   :  { %v10374_v61 = vadd.f32 %v1435_v6, %v10206_v31  ;;  %v1547_v26 = vadd.f32 %v1436_v5, %v10208_v14  ;;  %v1548_v48 = vadd.f32 %v1437_v45, %v10210_v11  ;;  %v10379_v28 = vadd.f32 %v1438_v39, %v10212_v34  ;;  %v16292_v16 = vld [vmem:[#allocation37_spill] sm:$0xff]  ;;  %v16293_v5 = vld [vmem:[#allocation35_spill] sm:$0xff]  ;;  %v16297_v38 = vld [vmem:[#allocation36_spill] sm:$0xff] }
 0x203   :  { %16284 = vst [vmem:[#allocation114_spill] sm:$0xff] %v10371_v54  ;;  %v10382_v42 = vadd.f32 %v1439_v58, %v10214_v63  ;;  %v1657_v17 = vmul.f32 %v16289_v49, %v16288_v52  ;;  %v1658_v46 = vmul.f32 %v16289_v49, %v16290_v56  ;;  %v1659_v31 = vmul.f32 %v16289_v49, %v16291_v13  ;;  %v16294_v34 = vld [vmem:[#allocation89_spill] sm:$0xff]  ;;  %v16295_v63 = vld [vmem:[#allocation92_spill] sm:$0xff]  ;;  %v16296_v30 = vld [vmem:[#allocation11_spill] sm:$0xff] }
 0x204   :  { %16285 = vst [vmem:[#allocation115_spill] sm:$0xff] %v10374_v61  ;;  %16286 = vst [vmem:[#allocation133_spill] sm:$0xff] %v10379_v28  ;;  %v1660_v14 = vmul.f32 %v16289_v49, %v16292_v16  ;;  %v1661_v11 = vmul.f32 %v16289_v49, %v16293_v5  ;;  %v1662_v45 = vmul.f32 %v16289_v49, %v16294_v34  ;;  %v16299_v39 = vld [vmem:[#allocation140_spill] sm:$0xff]  ;;  %v16304_v56 = vld [vmem:[#allocation15_spill] sm:$0xff] }
 0x205   :  { %16287 = vst [vmem:[#allocation116_spill] sm:$0xff] %v10382_v42  ;;  %v1663_v58 = vmul.f32 %v16289_v49, %v16295_v63  ;;  %v1664_v22 = vmul.f32 %v16289_v49, %v16296_v30  ;;  %v1665_v8 = vmul.f32 %v16289_v49, %v16297_v38  ;;  %v1666_v6 = vmul.f32 %v16289_v49, %v16298_v24  ;;  %v16305_v16 = vld [vmem:[#allocation75_spill] sm:$0xff]  ;;  %v16306_v28 = vld [vmem:[#allocation13_spill] sm:$0xff]  ;;  %v16307_v54 = vld [vmem:[#allocation74_spill] sm:$0xff] }
 0x206   :  { %v1667_v1 = vmul.f32 %v16289_v49, %v16299_v39  ;;  %v1668_v55 = vmul.f32 %v16289_v49, %v16300_v12  ;;  %v1669_v33 = vmul.f32 %v16289_v49, %v16301_v0  ;;  %v1670_v2 = vmul.f32 %v16289_v49, %v16302_v21  ;;  %v16309_v0 = vld [vmem:[#allocation8_spill] sm:$0xff]  ;;  %v16311_v21 = vld [vmem:[#allocation18_spill] sm:$0xff] }
 0x207   :  { %v1671_v52 = vmul.f32 %v16289_v49, %v16303_v3  ;;  %v1672_v13 = vmul.f32 %v16289_v49, %v16304_v56  ;;  %v1673_v42 = vmul.f32 %v16289_v49, %v16305_v16  ;;  %v1674_v61 = vmul.f32 %v16289_v49, %v16306_v28  ;;  %v16312_v24 = vld [vmem:[#allocation12_spill] sm:$0xff] }
 0x208   :  { %v10422_v12 = vmul.f32 %v16289_v49, %v16307_v54  ;;  %v10426_v39 = vmul.f32 %v16289_v49, %v16309_v0  ;;  %v1677_v3 = vmul.f32 %v16289_v49, %v16311_v21  ;;  %v1678_v56 = vmul.f32 %v16289_v49, %v16312_v24 }
 0x209   :  { %v1769_v38 = vadd.f32 %v1657_v17, %v1527_v29  ;;  %v1770_v30 = vadd.f32 %v1658_v46, %v1528_v60  ;;  %v1771_v16 = vadd.f32 %v1659_v31, %v1529_v43  ;;  %v1772_v63 = vadd.f32 %v1660_v14, %v1530_v36  ;;  %v16313_v29 = vld [vmem:[#allocation101_spill] sm:$0xff]  ;;  %v6345_v36 = vld [vmem:[%s14510_s0 + $0x150] sm:$0xff] }
 0x20a   :  { %16308 = vst [vmem:[#allocation117_spill] sm:$0xff] %v10422_v12  ;;  %16310 = vst [vmem:[#allocation118_spill] sm:$0xff] %v10426_v39  ;;  %v1773_v34 = vadd.f32 %v1661_v11, %v1531_v19  ;;  %v1774_v28 = vadd.f32 %v1662_v45, %v1532_v35  ;;  %v1775_v5 = vadd.f32 %v1663_v58, %v1533_v53  ;;  %v16314_v60 = vld [vmem:[#allocation25_spill] sm:$0xff]  ;;  %v16320_v17 = vld [vmem:[#allocation10_spill] sm:$0xff] }
 0x20b   :  { %v1776_v37 = vadd.f32 %v1664_v22, %v1534_v41  ;;  %v1777_v54 = vadd.f32 %v1665_v8, %v1535_v51  ;;  %v1778_v12 = vadd.f32 %v1666_v6, %v1536_v23  ;;  %v1779_v47 = vadd.f32 %v1667_v1, %v1537_v40  ;;  %v6344_v35 = vld [vmem:[%s14510_s0 + $0x148] sm:$0xff]  ;;  %v6346_v41 = vld [vmem:[%s14510_s0 + $0x158] sm:$0xf]  ;;  %v16321_v31 = vld [vmem:[#allocation62_spill] sm:$0xff] }
 0x20c   :  { %v1780_v20 = vadd.f32 %v1668_v55, %v1538_v57  ;;  %v1781_v0 = vadd.f32 %v1669_v33, %v1539_v32  ;;  %v1782_v39 = vadd.f32 %v1670_v2, %v1540_v10  ;;  %v1783_v9 = vadd.f32 %v1671_v52, %v1541_v18  ;;  %v16315_v32 = vld [vmem:[#allocation105_spill] sm:$0xff]  ;;  %v16316_v18 = vld [vmem:[#allocation106_spill] sm:$0xff]  ;;  %v16322_v11 = vld [vmem:[#allocation63_spill] sm:$0xff] }
 0x20d   :  { %v1784_v25 = vadd.f32 %v1672_v13, %v1542_v59  ;;  %v1785_v21 = vadd.f32 %v1673_v42, %v1543_v44  ;;  %v1786_v15 = vadd.f32 %v1674_v61, %v1544_v62  ;;  %v1789_v4 = vadd.f32 %v1677_v3, %v1547_v26  ;;  %v16317_v44 = vld [vmem:[#allocation130_spill] sm:$0xff]  ;;  %v16323_v58 = vld [vmem:[#allocation39_spill] sm:$0xff]  ;;  %v16324_v8 = vld [vmem:[#allocation97_spill] sm:$0xff] }
 0x20e   :  { %v1790_v49 = vadd.f32 %v1678_v56, %v1548_v48  ;;  %v1883_v43 = vmul.f32 %v16314_v60, %v16313_v29  ;;  %v1884_v19 = vmul.f32 %v6344_v35, %v16313_v29  ;;  %v1885_v53 = vmul.f32 %v6345_v36, %v16313_v29  ;;  %v16318_v61 = vld [vmem:[#allocation90_spill] sm:$0xff]  ;;  %v16319_v48 = vld [vmem:[#allocation9_spill] sm:$0xff]  ;;  %v16325_v1 = vld [vmem:[#allocation27_spill] sm:$0xff] }
 0x20f   :  { %v1886_v51 = vmul.f32 %v6346_v41, %v16313_v29  ;;  %v1887_v23 = vmul.f32 %v16313_v29, %v9835_v50  ;;  %v1888_v40 = vmul.f32 %v16313_v29, %v9840_v27  ;;  %v1889_v57 = vmul.f32 %v16313_v29, %v9847_v7  ;;  %v16326_v33 = vld [vmem:[#allocation99_spill] sm:$0xff]  ;;  %v16327_v3 = vld [vmem:[#allocation88_spill] sm:$0xff] }
 0x210   :  { %v1890_v10 = vmul.f32 %v16313_v29, %v16315_v32  ;;  %v1891_v59 = vmul.f32 %v16313_v29, %v16316_v18  ;;  %v1892_v62 = vmul.f32 %v16313_v29, %v16317_v44  ;;  %v1893_v26 = vmul.f32 %v16313_v29, %v16318_v61 }
 0x211   :  { %v1894_v42 = vmul.f32 %v16313_v29, %v16319_v48  ;;  %v1895_v46 = vmul.f32 %v16313_v29, %v16320_v17  ;;  %v1896_v14 = vmul.f32 %v16313_v29, %v16321_v31  ;;  %v1897_v45 = vmul.f32 %v16313_v29, %v16322_v11 }
 0x212   :  { %v1898_v22 = vmul.f32 %v16313_v29, %v16323_v58  ;;  %v1899_v6 = vmul.f32 %v16313_v29, %v16324_v8  ;;  %v1900_v55 = vmul.f32 %v16313_v29, %v16325_v1  ;;  %v1903_v2 = vmul.f32 %v16313_v29, %v16326_v33 }
 0x213   :  { %v1904_v52 = vmul.f32 %v16313_v29, %v16327_v3  ;;  %v1995_v56 = vadd.f32 %v1883_v43, %v1769_v38  ;;  %v1996_v13 = vadd.f32 %v1884_v19, %v1770_v30  ;;  %v1997_v60 = vadd.f32 %v1885_v53, %v1771_v16  ;;  %v16328_v38 = vld [vmem:[#allocation111_spill] sm:$0xff]  ;;  %v16329_v30 = vld [vmem:[#allocation73_spill] sm:$0xff]  ;;  %v16339_v19 = vld [vmem:[#allocation72_spill] sm:$0xff] }
 0x214   :  { %v1998_v35 = vadd.f32 %v1886_v51, %v1772_v63  ;;  %v1999_v36 = vadd.f32 %v1887_v23, %v1773_v34  ;;  %v2000_v41 = vadd.f32 %v1888_v40, %v1774_v28  ;;  %v2001_v11 = vadd.f32 %v1889_v57, %v1775_v5  ;;  %v16330_v63 = vld [vmem:[#allocation112_spill] sm:$0xff]  ;;  %v16340_v51 = vld [vmem:[#allocation145_spill] sm:$0xff] }
 0x215   :  { %v2002_v58 = vadd.f32 %v1890_v10, %v1776_v37  ;;  %v2003_v31 = vadd.f32 %v1891_v59, %v1777_v54  ;;  %v2004_v17 = vadd.f32 %v1892_v62, %v1778_v12  ;;  %v2005_v8 = vadd.f32 %v1893_v26, %v1779_v47  ;;  %v16331_v5 = vld [vmem:[#allocation132_spill] sm:$0xff]  ;;  %v16332_v54 = vld [vmem:[#allocation113_spill] sm:$0xff]  ;;  %v16333_v47 = vld [vmem:[#allocation26_spill] sm:$0xff] }
 0x216   :  { %v2006_v48 = vadd.f32 %v1894_v42, %v1780_v20  ;;  %v2007_v61 = vadd.f32 %v1895_v46, %v1781_v0  ;;  %v2008_v1 = vadd.f32 %v1896_v14, %v1782_v39  ;;  %v2009_v44 = vadd.f32 %v1897_v45, %v1783_v9  ;;  %v16336_v34 = vld [vmem:[#allocation144_spill] sm:$0xff]  ;;  %v16337_v12 = vld [vmem:[#allocation66_spill] sm:$0xff]  ;;  %v16341_v40 = vld [vmem:[#allocation33_spill] sm:$0xff] }
 0x217   :  { %v2010_v18 = vadd.f32 %v1898_v22, %v1784_v25  ;;  %v2011_v33 = vadd.f32 %v1899_v6, %v1785_v21  ;;  %v2012_v32 = vadd.f32 %v1900_v55, %v1786_v15  ;;  %v2015_v7 = vadd.f32 %v1903_v2, %v1789_v4  ;;  %v16334_v25 = vld [vmem:[#allocation23_spill] sm:$0xff]  ;;  %v16335_v4 = vld [vmem:[#allocation24_spill] sm:$0xff]  ;;  %v16338_v21 = vld [vmem:[#allocation81_spill] sm:$0xff] }
 0x218   :  { %v2016_v29 = vadd.f32 %v1904_v52, %v1790_v49  ;;  %v2121_v16 = vmul.f32 %v16329_v30, %v16328_v38  ;;  %v2122_v28 = vmul.f32 %v16329_v30, %v16330_v63  ;;  %v2123_v37 = vmul.f32 %v16329_v30, %v16331_v5  ;;  %v16342_v10 = vld [vmem:[#allocation38_spill] sm:$0xff]  ;;  %v16343_v62 = vld [vmem:[#allocation107_spill] sm:$0xff]  ;;  %v16344_v42 = vld [vmem:[#allocation148_spill] sm:$0xff] }
 0x219   :  { %v2124_v20 = vmul.f32 %v16329_v30, %v16332_v54  ;;  %v2125_v9 = vmul.f32 %v16329_v30, %v16333_v47  ;;  %v2126_v15 = vmul.f32 %v16329_v30, %v16334_v25  ;;  %v2127_v49 = vmul.f32 %v16329_v30, %v16335_v4  ;;  %v16345_v14 = vld [vmem:[#allocation109_spill] sm:$0xff]  ;;  %v16346_v22 = vld [vmem:[#allocation131_spill] sm:$0xff]  ;;  %v16347_v55 = vld [vmem:[#allocation110_spill] sm:$0xff] }
 0x21a   :  { %v2128_v39 = vmul.f32 %v16329_v30, %v16336_v34  ;;  %v2129_v0 = vmul.f32 %v16329_v30, %v16337_v12  ;;  %v2130_v43 = vmul.f32 %v16329_v30, %v16338_v21  ;;  %v2131_v53 = vmul.f32 %v16329_v30, %v16339_v19  ;;  %v16349_v52 = vld [vmem:[#allocation149_spill] sm:$0xff]  ;;  %v16351_v63 = vld [vmem:[#allocation142_spill] sm:$0xff]  ;;  %v16352_v54 = vld [vmem:[#allocation143_spill] sm:$0xff] }
 0x21b   :  { %v2132_v23 = vmul.f32 %v16329_v30, %v16340_v51  ;;  %v2133_v57 = vmul.f32 %v16329_v30, %v16341_v40  ;;  %v2134_v59 = vmul.f32 %v16329_v30, %v16342_v10  ;;  %v2135_v26 = vmul.f32 %v16329_v30, %v16343_v62 }
 0x21c   :  { %v2136_v46 = vmul.f32 %v16329_v30, %v16344_v42  ;;  %v2137_v45 = vmul.f32 %v16329_v30, %v16345_v14  ;;  %v2138_v6 = vmul.f32 %v16329_v30, %v16346_v22  ;;  %v10516_v2 = vmul.f32 %v16329_v30, %v16347_v55 }
 0x21d   :  { %v10520_v38 = vmul.f32 %v16329_v30, %v16349_v52  ;;  %v2141_v5 = vmul.f32 %v16329_v30, %v16351_v63  ;;  %v2142_v42 = vmul.f32 %v16329_v30, %v16352_v54  ;;  %v2233_v62 = vadd.f32 %v2121_v16, %v1995_v56  ;;  %v16353_v56 = vld [vmem:[#allocation35_spill] sm:$0xff] }
 0x21e   :  { %16348 = vst [vmem:[#allocation134_spill] sm:$0xff] %v10516_v2  ;;  %v2234_v10 = vadd.f32 %v2122_v28, %v1996_v13  ;;  %v2235_v14 = vadd.f32 %v2123_v37, %v1997_v60  ;;  %v2236_v40 = vadd.f32 %v2124_v20, %v1998_v35  ;;  %v2237_v51 = vadd.f32 %v2125_v9, %v1999_v36  ;;  %v16354_v13 = vld [vmem:[#allocation141_spill] sm:$0xff]  ;;  %v16364_v28 = vld [vmem:[#allocation14_spill] sm:$0xff]  ;;  %v16365_v20 = vld [vmem:[#allocation15_spill] sm:$0xff] }
 0x21f   :  { %16350 = vst [vmem:[#allocation119_spill] sm:$0xff] %v10520_v38  ;;  %v2238_v22 = vadd.f32 %v2126_v15, %v2000_v41  ;;  %v2239_v19 = vadd.f32 %v2127_v49, %v2001_v11  ;;  %v2240_v21 = vadd.f32 %v2128_v39, %v2002_v58  ;;  %v2241_v55 = vadd.f32 %v2129_v0, %v2003_v31  ;;  %v16355_v35 = vld [vmem:[#allocation89_spill] sm:$0xff]  ;;  %v16356_v11 = vld [vmem:[#allocation92_spill] sm:$0xff]  ;;  %v16361_v58 = vld [vmem:[#allocation82_spill] sm:$0xff] }
 0x220   :  { %v2242_v2 = vadd.f32 %v2130_v43, %v2004_v17  ;;  %v2243_v12 = vadd.f32 %v2131_v53, %v2005_v8  ;;  %v2244_v34 = vadd.f32 %v2132_v23, %v2006_v48  ;;  %v2245_v52 = vadd.f32 %v2133_v57, %v2007_v61  ;;  %v16357_v17 = vld [vmem:[#allocation11_spill] sm:$0xff]  ;;  %v16358_v61 = vld [vmem:[#allocation36_spill] sm:$0xff]  ;;  %v16367_v39 = vld [vmem:[#allocation13_spill] sm:$0xff] }
 0x221   :  { %v2246_v38 = vadd.f32 %v2134_v59, %v2008_v1  ;;  %v2247_v4 = vadd.f32 %v2135_v26, %v2009_v44  ;;  %v2248_v25 = vadd.f32 %v2136_v46, %v2010_v18  ;;  %v2249_v63 = vadd.f32 %v2137_v45, %v2011_v33  ;;  %v16359_v18 = vld [vmem:[#allocation139_spill] sm:$0xff]  ;;  %v16362_v1 = vld [vmem:[#allocation41_spill] sm:$0xff]  ;;  %v16368_v43 = vld [vmem:[#allocation74_spill] sm:$0xff] }
 0x222   :  { %v2250_v47 = vadd.f32 %v2138_v6, %v2012_v32  ;;  %v2253_v3 = vadd.f32 %v2141_v5, %v2015_v7  ;;  %v2254_v30 = vadd.f32 %v2142_v42, %v2016_v29  ;;  %v2347_v60 = vmul.f32 %v16354_v13, %v16353_v56  ;;  %v16360_v7 = vld [vmem:[#allocation140_spill] sm:$0xff]  ;;  %v16363_v41 = vld [vmem:[#allocation87_spill] sm:$0xff]  ;;  %v16370_v59 = vld [vmem:[#allocation18_spill] sm:$0xff] }
 0x223   :  { %v2348_v36 = vmul.f32 %v16354_v13, %v16355_v35  ;;  %v2349_v31 = vmul.f32 %v16354_v13, %v16356_v11  ;;  %v2350_v48 = vmul.f32 %v16354_v13, %v16357_v17  ;;  %v2351_v44 = vmul.f32 %v16354_v13, %v16358_v61  ;;  %v16366_v15 = vld [vmem:[#allocation75_spill] sm:$0xff]  ;;  %v16369_v23 = vld [vmem:[#allocation8_spill] sm:$0xff]  ;;  %v16372_v6 = vld [vmem:[#allocation46_spill] sm:$0xff] }
 0x224   :  { %v2352_v32 = vmul.f32 %v16354_v13, %v16359_v18  ;;  %v2353_v29 = vmul.f32 %v16354_v13, %v16360_v7  ;;  %v2354_v8 = vmul.f32 %v16354_v13, %v16361_v58  ;;  %v2355_v33 = vmul.f32 %v16354_v13, %v16362_v1  ;;  %v16371_v46 = vld [vmem:[#allocation64_spill] sm:$0xff] }
 0x225   :  { %v2356_v16 = vmul.f32 %v16354_v13, %v16363_v41  ;;  %v2357_v37 = vmul.f32 %v16354_v13, %v16364_v28  ;;  %v2358_v9 = vmul.f32 %v16354_v13, %v16365_v20  ;;  %v2359_v49 = vmul.f32 %v16354_v13, %v16366_v15 }
 0x226   :  { %v2360_v0 = vmul.f32 %v16354_v13, %v16367_v39  ;;  %v2361_v53 = vmul.f32 %v16354_v13, %v16368_v43  ;;  %v2362_v57 = vmul.f32 %v16354_v13, %v16369_v23  ;;  %v2363_v26 = vmul.f32 %v16354_v13, %v16370_v59 }
 0x227   :  { %v2364_v42 = vmul.f32 %v16354_v13, %v16312_v24  ;;  %v2367_v45 = vmul.f32 %v16354_v13, %v16371_v46  ;;  %v2368_v5 = vmul.f32 %v16354_v13, %v16372_v6  ;;  %v2457_v56 = vadd.f32 %v2347_v60, %v2233_v62 }
 0x228   :  { %v2458_v35 = vadd.f32 %v2348_v36, %v2234_v10  ;;  %v2459_v11 = vadd.f32 %v2349_v31, %v2235_v14  ;;  %v2460_v17 = vadd.f32 %v2350_v48, %v2236_v40  ;;  %v2461_v61 = vadd.f32 %v2351_v44, %v2237_v51  ;;  %v16373_v10 = vld [vmem:[#allocation42_spill] sm:$0xff]  ;;  %v16375_v40 = vld [vmem:[#allocation105_spill] sm:$0xff]  ;;  %v16385_v48 = vld [vmem:[#allocation27_spill] sm:$0xff] }
 0x229   :  { %v2462_v18 = vadd.f32 %v2352_v32, %v2238_v22  ;;  %v2463_v7 = vadd.f32 %v2353_v29, %v2239_v19  ;;  %v2464_v58 = vadd.f32 %v2354_v8, %v2240_v21  ;;  %v2465_v1 = vadd.f32 %v2355_v33, %v2241_v55  ;;  %v16374_v19 = vld [vmem:[#allocation86_spill] sm:$0xff]  ;;  %v16379_v14 = vld [vmem:[#allocation9_spill] sm:$0xff]  ;;  %v16386_v32 = vld [vmem:[#allocation95_spill] sm:$0xff] }
 0x22a   :  { %v2466_v41 = vadd.f32 %v2356_v16, %v2242_v2  ;;  %v2467_v28 = vadd.f32 %v2357_v37, %v2243_v12  ;;  %v2468_v20 = vadd.f32 %v2358_v9, %v2244_v34  ;;  %v2469_v15 = vadd.f32 %v2359_v49, %v2245_v52  ;;  %v16376_v12 = vld [vmem:[#allocation106_spill] sm:$0xff]  ;;  %v16382_v52 = vld [vmem:[#allocation63_spill] sm:$0xff]  ;;  %v16384_v36 = vld [vmem:[#allocation97_spill] sm:$0xff] }
 0x22b   :  { %v2470_v39 = vadd.f32 %v2360_v0, %v2246_v38  ;;  %v2471_v43 = vadd.f32 %v2361_v53, %v2247_v4  ;;  %v2472_v23 = vadd.f32 %v2362_v57, %v2248_v25  ;;  %v2473_v59 = vadd.f32 %v2363_v26, %v2249_v63  ;;  %v16377_v25 = vld [vmem:[#allocation130_spill] sm:$0xff]  ;;  %v16383_v63 = vld [vmem:[#allocation39_spill] sm:$0xff]  ;;  %v16387_v8 = vld [vmem:[#allocation96_spill] sm:$0xff] }
 0x22c   :  { %v2474_v46 = vadd.f32 %v2364_v42, %v2250_v47  ;;  %v2477_v24 = vadd.f32 %v2367_v45, %v2253_v3  ;;  %v2478_v6 = vadd.f32 %v2368_v5, %v2254_v30  ;;  %v2571_v62 = vmul.f32 %v16373_v10, %v9835_v50  ;;  %v16378_v3 = vld [vmem:[#allocation90_spill] sm:$0xff]  ;;  %v16388_v16 = vld [vmem:[#allocation99_spill] sm:$0xff]  ;;  %v16389_v9 = vld [vmem:[#allocation88_spill] sm:$0xff] }
 0x22d   :  { %v2572_v51 = vmul.f32 %v16373_v10, %v9840_v27  ;;  %v2573_v21 = vmul.f32 %v16373_v10, %v16374_v19  ;;  %v2574_v34 = vmul.f32 %v16373_v10, %v16375_v40  ;;  %v2575_v4 = vmul.f32 %v16373_v10, %v16376_v12  ;;  %v16380_v22 = vld [vmem:[#allocation10_spill] sm:$0xff]  ;;  %v16390_v0 = vld [vmem:[#allocation125_spill] sm:$0xff]  ;;  %v16391_v57 = vld [vmem:[#allocation16_spill] sm:$0xff] }
 0x22e   :  { %v2576_v47 = vmul.f32 %v16373_v10, %v16377_v25  ;;  %v2577_v30 = vmul.f32 %v16373_v10, %v16378_v3  ;;  %v2578_v50 = vmul.f32 %v16373_v10, %v16379_v14  ;;  %v2579_v27 = vmul.f32 %v16373_v10, %v16380_v22  ;;  %v16381_v55 = vld [vmem:[#allocation62_spill] sm:$0xff] }
 0x22f   :  { %v2580_v2 = vmul.f32 %v16373_v10, %v16381_v55  ;;  %v2581_v38 = vmul.f32 %v16373_v10, %v16382_v52  ;;  %v2582_v60 = vmul.f32 %v16373_v10, %v16383_v63  ;;  %v2583_v31 = vmul.f32 %v16373_v10, %v16384_v36 }
 0x230   :  { %v2584_v44 = vmul.f32 %v16373_v10, %v16385_v48  ;;  %v2585_v29 = vmul.f32 %v16373_v10, %v16386_v32  ;;  %v2586_v33 = vmul.f32 %v16373_v10, %v16387_v8  ;;  %v2587_v37 = vmul.f32 %v16373_v10, %v16388_v16 }
 0x231   :  { %v2588_v49 = vmul.f32 %v16373_v10, %v16389_v9  ;;  %v2591_v53 = vmul.f32 %v16373_v10, %v16390_v0  ;;  %v2592_v26 = vmul.f32 %v16373_v10, %v16391_v57  ;;  %v2680_v42 = vadd.f32 %v2571_v62, %v2457_v56  ;;  %v16392_v56 = vld [vmem:[#allocation26_spill] sm:$0xff] }
 0x232   :  { %v2681_v45 = vadd.f32 %v2572_v51, %v2458_v35  ;;  %v2682_v5 = vadd.f32 %v2573_v21, %v2459_v11  ;;  %v2683_v19 = vadd.f32 %v2574_v34, %v2460_v17  ;;  %v2684_v40 = vadd.f32 %v2575_v4, %v2461_v61  ;;  %v16393_v35 = vld [vmem:[#allocation43_spill] sm:$0xff]  ;;  %v16404_v34 = vld [vmem:[#allocation148_spill] sm:$0xff] }
 0x233   :  { %v2685_v12 = vadd.f32 %v2576_v47, %v2462_v18  ;;  %v2686_v25 = vadd.f32 %v2577_v30, %v2463_v7  ;;  %v2687_v3 = vadd.f32 %v2578_v50, %v2464_v58  ;;  %v2688_v14 = vadd.f32 %v2579_v27, %v2465_v1  ;;  %v16394_v17 = vld [vmem:[#allocation23_spill] sm:$0xff]  ;;  %v16395_v18 = vld [vmem:[#allocation24_spill] sm:$0xff]  ;;  %v16405_v47 = vld [vmem:[#allocation109_spill] sm:$0xff] }
 0x234   :  { %v2689_v22 = vadd.f32 %v2580_v2, %v2466_v41  ;;  %v2690_v55 = vadd.f32 %v2581_v38, %v2467_v28  ;;  %v2691_v52 = vadd.f32 %v2582_v60, %v2468_v20  ;;  %v2692_v63 = vadd.f32 %v2583_v31, %v2469_v15  ;;  %v16396_v58 = vld [vmem:[#allocation144_spill] sm:$0xff]  ;;  %v16397_v41 = vld [vmem:[#allocation66_spill] sm:$0xff]  ;;  %v16398_v20 = vld [vmem:[#allocation81_spill] sm:$0xff] }
 0x235   :  { %v2693_v36 = vadd.f32 %v2584_v44, %v2470_v39  ;;  %v2694_v48 = vadd.f32 %v2585_v29, %v2471_v43  ;;  %v2695_v32 = vadd.f32 %v2586_v33, %v2472_v23  ;;  %v2696_v8 = vadd.f32 %v2587_v37, %v2473_v59  ;;  %v16400_v15 = vld [vmem:[#allocation145_spill] sm:$0xff]  ;;  %v16402_v59 = vld [vmem:[#allocation38_spill] sm:$0xff]  ;;  %v16403_v51 = vld [vmem:[#allocation107_spill] sm:$0xff] }
 0x236   :  { %v2697_v16 = vadd.f32 %v2588_v49, %v2474_v46  ;;  %v2700_v0 = vadd.f32 %v2591_v53, %v2477_v24  ;;  %v2701_v10 = vadd.f32 %v2592_v26, %v2478_v6  ;;  %v2794_v11 = vmul.f32 %v16393_v35, %v16392_v56  ;;  %v16399_v24 = vld [vmem:[#allocation72_spill] sm:$0xff]  ;;  %v16401_v43 = vld [vmem:[#allocation33_spill] sm:$0xff]  ;;  %v16406_v50 = vld [vmem:[#allocation131_spill] sm:$0xff] }
 0x237   :  { %v2795_v61 = vmul.f32 %v16393_v35, %v16394_v17  ;;  %v2796_v7 = vmul.f32 %v16393_v35, %v16395_v18  ;;  %v2797_v1 = vmul.f32 %v16393_v35, %v16396_v58  ;;  %v2798_v28 = vmul.f32 %v16393_v35, %v16397_v41  ;;  %v16407_v2 = vld [vmem:[#allocation110_spill] sm:$0xff]  ;;  %v16408_v60 = vld [vmem:[#allocation149_spill] sm:$0xff]  ;;  %v16411_v53 = vld [vmem:[#allocation147_spill] sm:$0xff] }
 0x238   :  { %v2799_v46 = vmul.f32 %v16393_v35, %v16398_v20  ;;  %v2800_v6 = vmul.f32 %v16393_v35, %v16399_v24  ;;  %v2801_v39 = vmul.f32 %v16393_v35, %v16400_v15  ;;  %v2802_v23 = vmul.f32 %v16393_v35, %v16401_v43  ;;  %v16409_v44 = vld [vmem:[#allocation142_spill] sm:$0xff] }
 0x239   :  { %v2803_v62 = vmul.f32 %v16393_v35, %v16402_v59  ;;  %v2804_v21 = vmul.f32 %v16393_v35, %v16403_v51  ;;  %v2805_v4 = vmul.f32 %v16393_v35, %v16404_v34  ;;  %v2806_v30 = vmul.f32 %v16393_v35, %v16405_v47  ;;  %v16410_v37 = vld [vmem:[#allocation146_spill] sm:$0xff] }
 0x23a   :  { %v2807_v27 = vmul.f32 %v16393_v35, %v16406_v50  ;;  %v2808_v38 = vmul.f32 %v16393_v35, %v16407_v2  ;;  %v2809_v31 = vmul.f32 %v16393_v35, %v16408_v60  ;;  %v2810_v29 = vmul.f32 %v16393_v35, %v16409_v44 }
 0x23b   :  { %v2811_v33 = vmul.f32 %v16393_v35, %v16352_v54  ;;  %v2814_v49 = vmul.f32 %v16393_v35, %v16410_v37  ;;  %v2815_v26 = vmul.f32 %v16393_v35, %v16411_v53  ;;  %v2904_v56 = vadd.f32 %v2794_v11, %v2680_v42  ;;  %v16412_v42 = vld [vmem:[#allocation44_spill] sm:$0xff] }
 0x23c   :  { %v2905_v17 = vadd.f32 %v2795_v61, %v2681_v45  ;;  %v2906_v18 = vadd.f32 %v2796_v7, %v2682_v5  ;;  %v2907_v58 = vadd.f32 %v2797_v1, %v2683_v19  ;;  %v2908_v41 = vadd.f32 %v2798_v28, %v2684_v40 }
 0x23d   :  { %v2909_v20 = vadd.f32 %v2799_v46, %v2685_v12  ;;  %v2910_v24 = vadd.f32 %v2800_v6, %v2686_v25  ;;  %v2911_v15 = vadd.f32 %v2801_v39, %v2687_v3  ;;  %v2912_v43 = vadd.f32 %v2802_v23, %v2688_v14 }
 0x23e   :  { %v2913_v59 = vadd.f32 %v2803_v62, %v2689_v22  ;;  %v2914_v51 = vadd.f32 %v2804_v21, %v2690_v55  ;;  %v2915_v34 = vadd.f32 %v2805_v4, %v2691_v52  ;;  %v2916_v47 = vadd.f32 %v2806_v30, %v2692_v63 }
 0x23f   :  { %v2917_v50 = vadd.f32 %v2807_v27, %v2693_v36  ;;  %v2918_v2 = vadd.f32 %v2808_v38, %v2694_v48  ;;  %v2919_v60 = vadd.f32 %v2809_v31, %v2695_v32  ;;  %v2920_v37 = vadd.f32 %v2810_v29, %v2696_v8 }
 0x240   :  { %v2921_v54 = vadd.f32 %v2811_v33, %v2697_v16  ;;  %v2924_v44 = vadd.f32 %v2814_v49, %v2700_v0  ;;  %v2925_v53 = vadd.f32 %v2815_v26, %v2701_v10  ;;  %v10647_v45 = vadd.f32 %v16412_v42, %v2904_v56 }
 0x241   :  { %v10650_v5 = vadd.f32 %v16412_v42, %v2905_v17  ;;  %v10653_v19 = vadd.f32 %v16412_v42, %v2906_v18  ;;  %v10656_v40 = vadd.f32 %v16412_v42, %v2907_v58  ;;  %v10659_v12 = vadd.f32 %v16412_v42, %v2908_v41 }
 0x242   :  { %v10662_v25 = vadd.f32 %v16412_v42, %v2909_v20  ;;  %v10665_v10 = vadd.f32 %v16412_v42, %v2910_v24  ;;  %v10668_v3 = vadd.f32 %v16412_v42, %v2911_v15  ;;  %v10671_v14 = vadd.f32 %v16412_v42, %v2912_v43 }
 0x243   :  { %v10674_v22 = vadd.f32 %v16412_v42, %v2913_v59  ;;  %v10677_v55 = vadd.f32 %v16412_v42, %v2914_v51  ;;  %v10680_v52 = vadd.f32 %v16412_v42, %v2915_v34  ;;  %v10683_v63 = vadd.f32 %v16412_v42, %v2916_v47 }
 0x244   :  { %v10686_v36 = vadd.f32 %v16412_v42, %v2917_v50  ;;  %v10689_v48 = vadd.f32 %v16412_v42, %v2918_v2  ;;  %v10692_v32 = vadd.f32 %v16412_v42, %v2919_v60  ;;  %v10695_v8 = vadd.f32 %v16412_v42, %v2920_v37 }
 0x245   :  { %v10698_v16 = vadd.f32 %v16412_v42, %v2921_v54  ;;  %v10701_v0 = vadd.f32 %v16412_v42, %v2924_v44  ;;  %v10704_v11 = vadd.f32 %v16412_v42, %v2925_v53  ;;  %v3130_v61 = vmax.f32 %v10647_v45, 0.0 }
 0x246   :  { %v3131_v7 = vmax.f32 %v10650_v5, 0.0  ;;  %v3132_v1 = vmax.f32 %v10653_v19, 0.0  ;;  %v15040_v28 = vmax.f32 %v10656_v40, 0.0  ;;  %v3134_v46 = vmax.f32 %v10659_v12, 0.0 }
 0x247   :  { %v3135_v6 = vmax.f32 %v10662_v25, 0.0  ;;  %v3136_v54 = vmax.f32 %v10665_v10, 0.0  ;;  %v15039_v39 = vmax.f32 %v10668_v3, 0.0  ;;  %v3138_v23 = vmax.f32 %v10671_v14, 0.0 }
 0x248   :  { %v3139_v62 = vmax.f32 %v10674_v22, 0.0  ;;  %v3140_v21 = vmax.f32 %v10677_v55, 0.0  ;;  %v15033_v4 = vmax.f32 %v10680_v52, 0.0  ;;  %v3142_v30 = vmax.f32 %v10683_v63, 0.0 }
 0x249   :  { %v3143_v27 = vmax.f32 %v10686_v36, 0.0  ;;  %v3144_v38 = vmax.f32 %v10689_v48, 0.0  ;;  %v15032_v31 = vmax.f32 %v10692_v32, 0.0  ;;  %v3146_v44 = vmax.f32 %v10695_v8, 0.0 }
 0x24a   :  { %v15030_v29 = vmax.f32 %v10698_v16, 0.0  ;;  %v3150_v33 = vmax.f32 %v10701_v0, 0.0  ;;  %v15031_v37 = vmax.f32 %v10704_v11, 0.0  ;;  %v3384_v49 = vrot.slane %v3130_v61, 1 }
 0x24b   :  { %v3385_v53 = vrot.slane %v3131_v7, 1  ;;  %v3387_v26 = vrot.slane %v3132_v1, 1  ;;  %v10728_v56 = vrot.slane %v15040_v28, 1  ;;  %v3391_v17 = vrot.slane %v3134_v46, 1 }
 0x24c   :  { %v3392_v18 = vrot.slane %v3135_v6, 1  ;;  %v3394_v58 = vrot.slane %v3136_v54, 1  ;;  %v10732_v41 = vrot.slane %v15039_v39, 1  ;;  %v3398_v43 = vrot.slane %v3138_v23, 1 }
 0x24d   :  { %v3386_v20 = vsel %vm1046_vm1, %v3384_v49, %v3385_v53  ;;  %v3388_v24 = vsel %vm1046_vm1, %v3385_v53, %v3387_v26  ;;  %v3390_v15 = vsel %vm1046_vm1, %v3387_v26, %v10728_v56  ;;  %v3399_v47 = vrot.slane %v3139_v62, 1 }
 0x24e   :  { %v3393_v59 = vsel %vm1046_vm1, %v3391_v17, %v3392_v18  ;;  %v3395_v51 = vsel %vm1046_vm1, %v3392_v18, %v3394_v58  ;;  %v3397_v34 = vsel %vm1046_vm1, %v3394_v58, %v10732_v41  ;;  %v3401_v50 = vrot.slane %v3140_v21, 1 }
 0x24f   :  { %v10744_v2 = vrot.slane %v15033_v4, 1  ;;  %v3405_v60 = vrot.slane %v3142_v30, 1  ;;  %v3406_v45 = vrot.slane %v3143_v27, 1  ;;  %v3400_v5 = vsel %vm1046_vm1, %v3398_v43, %v3399_v47 }
 0x250   :  { %v3408_v19 = vrot.slane %v3144_v38, 1  ;;  %v10749_v12 = vrot.slane %v15032_v31, 1  ;;  %v3412_v25 = vrot.slane %v3146_v44, 1  ;;  %v3402_v10 = vsel %vm1046_vm1, %v3399_v47, %v3401_v50 }
 0x251   :  { %v3404_v14 = vsel %vm1046_vm1, %v3401_v50, %v10744_v2  ;;  %v3407_v22 = vsel %vm1046_vm1, %v3405_v60, %v3406_v45  ;;  %v10757_v55 = vrot.slane %v15030_v29, 1  ;;  %v3419_v48 = vrot.slane %v3150_v33, 1 }
 0x252   :  { %v3409_v63 = vsel %vm1046_vm1, %v3406_v45, %v3408_v19  ;;  %v3411_v36 = vsel %vm1046_vm1, %v3408_v19, %v10749_v12  ;;  %v10764_v8 = vrot.slane %v15031_v37, 1  ;;  %v3690_v49 = vmax.f32 %v3130_v61, %v3386_v20 }
 0x253   :  { %v3414_v0 = vsel %vm1046_vm1, %v3412_v25, %v10757_v55  ;;  %v3691_v53 = vmax.f32 %v3131_v7, %v3388_v24  ;;  %v3692_v26 = vmax.f32 %v3132_v1, %v3390_v15  ;;  %v3694_v18 = vmax.f32 %v3134_v46, %v3393_v59 }
 0x254   :  { %v3421_v17 = vsel %vm1046_vm1, %v3419_v48, %v10764_v8  ;;  %v3695_v58 = vmax.f32 %v3135_v6, %v3395_v51  ;;  %v3696_v43 = vmax.f32 %v3136_v54, %v3397_v34  ;;  %v3698_v47 = vmax.f32 %v3138_v23, %v3400_v5  ;;  %v16415_v54 = vld [vmem:[#allocation76_spill] sm:$0xff]  ;;  %v16416_v23 = vld [vmem:[#allocation53_spill] sm:$0xff] }
 0x255   :  { %v3699_v50 = vmax.f32 %v3139_v62, %v3402_v10  ;;  %v3700_v60 = vmax.f32 %v3140_v21, %v3404_v14  ;;  %v3702_v45 = vmax.f32 %v3142_v30, %v3407_v22  ;;  %v3703_v19 = vmax.f32 %v3143_v27, %v3409_v63  ;;  %v16421_v10 = vld [vmem:[#allocation49_spill] sm:$0xff] }
 0x256   :  { %v3704_v29 = vmax.f32 %v3144_v38, %v3411_v36  ;;  %v3706_v37 = vmax.f32 %v3146_v44, %v3414_v0  ;;  %v3710_v31 = vmax.f32 %v3150_v33, %v3421_v17  ;;  %v10770_v4 = vmax.f32 %v3690_v49, %v3694_v18  ;;  %v16417_v38 = vld [vmem:[#allocation121_spill] sm:$0xff]  ;;  %v16422_v49 = vld [vmem:[#allocation54_spill] sm:$0xff]  ;;  %v16424_v18 = vld [vmem:[#allocation124_spill] sm:$0xff] }
 0x257   :  { %v10772_v25 = vmax.f32 %v3691_v53, %v3695_v58  ;;  %v10774_v61 = vmax.f32 %v3692_v26, %v3696_v43  ;;  %v10776_v7 = vmax.f32 %v3698_v47, %v3702_v45  ;;  %v10778_v1 = vmax.f32 %v3699_v50, %v3703_v19  ;;  %v16423_v26 = vld [vmem:[#allocation57_spill] sm:$0xff] }
 0x258   :  { %v10780_v46 = vmax.f32 %v3700_v60, %v3704_v29  ;;  %v10782_v6 = vmax.f32 %v3706_v37, %v3710_v31  ;;  %v4157_v62 = vmul.f32 %v16416_v23, %v16415_v54  ;;  %v3909_v21 = vrot.slane %v10770_v4, 6  ;;  %v16418_v29 = vld [vmem:[#allocation135_spill] sm:$0xff] }
 0x259   :  { %16413 = vst [vmem:[#allocation32_spill] sm:$0xff] %v10778_v1  ;;  %v15038_v30 = vrot.slane %v10772_v25, 6  ;;  %v3916_v27 = vrot.slane %v10776_v7, 6  ;;  %v4161_v44 = vmul.f32 %v16416_v23, %v16417_v38  ;;  %v15037_v33 = vrot.slane %v10778_v1, 6 }
 0x25a   :  { %16414 = vst [vmem:[#allocation29_spill] sm:$0xff] %v10782_v6  ;;  %v15034_v20 = vrot.slane %v10782_v6, 6  ;;  %v4162_v31 = vmul.f32 %v16416_v23, %v16418_v29  ;;  %v4165_v37 = vmul.f32 %v16416_v23, %v10770_v4  ;;  %v10803_v15 = vsel %vm3871_vm3, 0.0, %v3909_v21 }
 0x25b   :  { %v10800_v24 = vsel %vm3871_vm3, %v3909_v21, %v15038_v30  ;;  %v10806_v59 = vsel %vm3871_vm3, 0.0, %v3916_v27  ;;  %v4166_v51 = vmul.f32 %v16416_v23, %v10772_v25  ;;  %v10813_v34 = vsel %vm3871_vm3, %v3916_v27, %v15037_v33 }
 0x25c   :  { %16419 = vst [vmem:[#allocation30_spill] sm:$0xff] %v10813_v34  ;;  %v10818_v5 = vsel %vm3871_vm3, 0.0, %v15034_v20  ;;  %v4056_v14 = vmul.f32 %v16421_v10, %v10803_v15  ;;  %v4057_v22 = vmul.f32 %v16421_v10, %v10800_v24  ;;  %v4060_v63 = vmul.f32 %v16421_v10, %v10806_v59 }
 0x25d   :  { %16420 = vst [vmem:[#allocation37_spill] sm:$0xff] %v10818_v5  ;;  %v4061_v36 = vmul.f32 %v16421_v10, %v10813_v34  ;;  %v4169_v48 = vmul.f32 %v16416_v23, %v10776_v7  ;;  %v4170_v0 = vmul.f32 %v16416_v23, %v10778_v1  ;;  %v4211_v53 = vadd.f32 %v4157_v62, %v16422_v49  ;;  %v16425_v49 = vld [vmem:[#allocation127_spill] sm:$0xff] }
 0x25e   :  { %v4215_v17 = vadd.f32 %v4161_v44, %v16423_v26  ;;  %v4216_v58 = vadd.f32 %v4162_v31, %v16424_v18  ;;  %v4219_v43 = vadd.f32 %v4165_v37, %v4056_v14  ;;  %v4220_v47 = vadd.f32 %v4166_v51, %v4057_v22  ;;  %v16426_v26 = vld [vmem:[#allocation59_spill] sm:$0xff]  ;;  %v16427_v31 = vld [vmem:[#allocation65_spill] sm:$0xff]  ;;  %v16428_v51 = vld [vmem:[#allocation128_spill] sm:$0xff] }
 0x25f   :  { %v4223_v50 = vadd.f32 %v4169_v48, %v4060_v63  ;;  %v4224_v60 = vadd.f32 %v4170_v0, %v4061_v36  ;;  %v4290_v45 = vrot.slane %v10770_v4, 2  ;;  %v4291_v19 = vrot.slane %v10772_v25, 2  ;;  %v16429_v48 = vld [vmem:[#allocation138_spill] sm:$0xff] }
 0x260   :  { %v15036_v54 = vrot.slane %v10774_v61, 2  ;;  %v4297_v21 = vrot.slane %v10776_v7, 2  ;;  %v4298_v27 = vrot.slane %v10778_v1, 2  ;;  %v15035_v62 = vrot.slane %v10780_v46, 2 }
 0x261   :  { %v4484_v44 = vadd.f32 %v16425_v49, %v4211_v53  ;;  %v4485_v37 = vadd.f32 %v16427_v31, %v16426_v26  ;;  %v4488_v14 = vadd.f32 %v16428_v51, %v4215_v17  ;;  %v4292_v22 = vsel %vm4252_vm4, %v4290_v45, %v4291_v19  ;;  %v16431_v53 = vld [vmem:[#allocation61_spill] sm:$0xff]  ;;  %v16432_v31 = vld [vmem:[#allocation56_spill] sm:$0xff] }
 0x262   :  { %v4294_v63 = vsel %vm4252_vm4, %v4291_v19, %v15036_v54  ;;  %v4299_v36 = vsel %vm4252_vm4, %v4297_v21, %v4298_v27  ;;  %v4489_v0 = vadd.f32 %v16429_v48, %v4216_v58  ;;  %v10854_v18 = vsel %vm4252_vm4, %v4298_v27, %v15035_v62  ;;  %v16433_v19 = vld [vmem:[#allocation80_spill] sm:$0xff]  ;;  %v16434_v21 = vld [vmem:[#allocation122_spill] sm:$0xff] }
 0x263   :  { %16430 = vst [vmem:[#allocation25_spill] sm:$0xff] %v10854_v18  ;;  %v4437_v49 = vmul.f32 %v16431_v53, %v4292_v22  ;;  %v4438_v26 = vmul.f32 %v16431_v53, %v4294_v63  ;;  %v4441_v17 = vmul.f32 %v16431_v53, %v4299_v36  ;;  %v4442_v45 = vmul.f32 %v16431_v53, %v10854_v18 }
 0x264   :  { %v4558_v51 = vmul.f32 %v16433_v19, %v16432_v31  ;;  %v4559_v58 = vmul.f32 %v16433_v19, %v16434_v21  ;;  %v4562_v48 = vmul.f32 %v16433_v19, %v10803_v15  ;;  %v4563_v54 = vmul.f32 %v16433_v19, %v10800_v24 }
 0x265   :  { %v4492_v27 = vadd.f32 %v4437_v49, %v4219_v43  ;;  %v10867_v20 = vadd.f32 %v4438_v26, %v4220_v47  ;;  %v4496_v62 = vadd.f32 %v4441_v17, %v4223_v50  ;;  %v10871_v33 = vadd.f32 %v4442_v45, %v4224_v60  ;;  %v16437_v43 = vld [vmem:[#allocation67_spill] sm:$0xff] }
 0x266   :  { %v4566_v30 = vmul.f32 %v16433_v19, %v10806_v59  ;;  %v4570_v31 = vmul.f32 %v16433_v19, %v10818_v5  ;;  %v4614_v39 = vadd.f32 %v4558_v51, %v4484_v44  ;;  %v4615_v21 = vadd.f32 %v4559_v58, %v4485_v37 }
 0x267   :  { %16435 = vst [vmem:[#allocation111_spill] sm:$0xff] %v10867_v20  ;;  %16436 = vst [vmem:[#allocation112_spill] sm:$0xff] %v10871_v33  ;;  %v4618_v28 = vadd.f32 %v4562_v48, %v4488_v14  ;;  %v4619_v6 = vadd.f32 %v4563_v54, %v4489_v0  ;;  %v4672_v47 = vmul.f32 %v16437_v43, %v16417_v38  ;;  %v16439_v54 = vld [vmem:[#allocation123_spill] sm:$0xff]  ;;  %v16440_v14 = vld [vmem:[#allocation68_spill] sm:$0xff] }
 0x268   :  { %v4622_v49 = vadd.f32 %v4566_v30, %v4492_v27  ;;  %v10879_v50 = vadd.f32 %v4570_v31, %v4496_v62  ;;  %v4673_v60 = vmul.f32 %v16437_v43, %v16418_v29  ;;  %v4676_v26 = vmul.f32 %v16437_v43, %v10770_v4  ;;  %v16441_v62 = vld [vmem:[#allocation137_spill] sm:$0xff] }
 0x269   :  { %v4677_v17 = vmul.f32 %v16437_v43, %v10772_v25  ;;  %v4680_v44 = vmul.f32 %v16437_v43, %v10776_v7  ;;  %v4728_v37 = vadd.f32 %v4672_v47, %v4614_v39  ;;  %v4798_v0 = vmul.f32 %v16440_v14, %v16439_v54  ;;  %v16442_v39 = vld [vmem:[#allocation69_spill] sm:$0xff] }
 0x26a   :  { %16438 = vst [vmem:[#allocation132_spill] sm:$0xff] %v10879_v50  ;;  %v4729_v38 = vadd.f32 %v4673_v60, %v4615_v21  ;;  %v4732_v30 = vadd.f32 %v4676_v26, %v4618_v28  ;;  %v4799_v45 = vmul.f32 %v16440_v14, %v16441_v62  ;;  %v4802_v29 = vmul.f32 %v16440_v14, %v4292_v22  ;;  %v16444_v26 = vld [vmem:[#allocation17_spill] sm:$0xff] }
 0x26b   :  { %v4733_v51 = vadd.f32 %v4677_v17, %v4619_v6  ;;  %v4736_v58 = vadd.f32 %v4680_v44, %v4622_v49  ;;  %v4803_v48 = vmul.f32 %v16440_v14, %v4294_v63  ;;  %v4806_v27 = vmul.f32 %v16440_v14, %v4299_v36 }
 0x26c   :  { %v4854_v31 = vadd.f32 %v4798_v0, %v4728_v37  ;;  %v4855_v5 = vadd.f32 %v4799_v45, %v4729_v38  ;;  %v4858_v50 = vadd.f32 %v4802_v29, %v4732_v30  ;;  %v4912_v47 = vmul.f32 %v16442_v39, %v10803_v15  ;;  %v16445_v30 = vld [vmem:[#allocation19_spill] sm:$0xff] }
 0x26d   :  { %v4859_v54 = vadd.f32 %v4803_v48, %v4733_v51  ;;  %v10898_v21 = vadd.f32 %v4806_v27, %v4736_v58  ;;  %v4913_v28 = vmul.f32 %v16442_v39, %v10800_v24  ;;  %v4916_v6 = vmul.f32 %v16442_v39, %v10806_v59  ;;  %v16446_v48 = vld [vmem:[#allocation93_spill] sm:$0xff] }
 0x26e   :  { %v4917_v49 = vmul.f32 %v16442_v39, %v10813_v34  ;;  %v4966_v60 = vadd.f32 %v4912_v47, %v4854_v31  ;;  %v5024_v17 = vmul.f32 %v16444_v26, %v10770_v4  ;;  %v5025_v44 = vmul.f32 %v16444_v26, %v10772_v25 }
 0x26f   :  { %16443 = vst [vmem:[#allocation113_spill] sm:$0xff] %v10898_v21  ;;  %v4967_v15 = vadd.f32 %v4913_v28, %v4855_v5  ;;  %v4970_v37 = vadd.f32 %v4916_v6, %v4858_v50  ;;  %v5028_v0 = vmul.f32 %v16444_v26, %v10776_v7  ;;  %v5029_v24 = vmul.f32 %v16444_v26, %v10778_v1  ;;  %v10922_v7 = vld [vmem:[%s14510_s0 + $0x1f8] sm:$0xf]  ;;  %v16450_v6 = vld [vmem:[#allocation60_spill] sm:$0xff] }
 0x270   :  { %v4971_v38 = vadd.f32 %v4917_v49, %v4859_v54  ;;  %v5077_v59 = vadd.f32 %v5024_v17, %v4966_v60  ;;  %v5135_v62 = vmul.f32 %v16445_v30, %v4292_v22  ;;  %v5136_v45 = vmul.f32 %v16445_v30, %v4294_v63  ;;  %v16447_v22 = vld [vmem:[#allocation94_spill] sm:$0xff]  ;;  %v16448_v54 = vld [vmem:[#allocation91_spill] sm:$0xff] }
 0x271   :  { %v5078_v29 = vadd.f32 %v5025_v44, %v4967_v15  ;;  %v5081_v51 = vadd.f32 %v5028_v0, %v4970_v37  ;;  %v5139_v4 = vmul.f32 %v16445_v30, %v4299_v36  ;;  %v5140_v5 = vmul.f32 %v16445_v30, %v10854_v18  ;;  %v16452_v44 = vld [vmem:[#allocation21_spill] sm:$0xff]  ;;  %v10936_v37 = vld [vmem:[%s14510_s0 + $0x1f0] sm:$0xff] }
 0x272   :  { %v5082_v50 = vadd.f32 %v5029_v24, %v4971_v38  ;;  %v5189_v58 = vadd.f32 %v5135_v62, %v5077_v59  ;;  %v5555_v27 = vsel %vm3871_vm3, %v16446_v48, 0.0  ;;  %v5556_v63 = vsel %vm3871_vm3, %v16447_v22, 0.0 }
 0x273   :  { %v5190_v31 = vadd.f32 %v5136_v45, %v5078_v29  ;;  %v5193_v47 = vadd.f32 %v5139_v4, %v5081_v51  ;;  %v16449_v36 = vmax.f32 %v16448_v54, 0.0  ;;  %v16451_v49 = vmax.f32 %v16450_v6, 0.0  ;;  %v10947_v45 = vld [vmem:[%s14510_s0 + $0x218] sm:$0xf]  ;;  %v10952_v29 = vld [vmem:[%s14510_s0 + $0x210] sm:$0xff] }
 0x274   :  { %v5194_v17 = vadd.f32 %v5140_v5, %v5082_v50  ;;  %v5247_v15 = vadd.f32 %v16452_v44, %v5189_v58  ;;  %v384_v0 = vrot.slane %v10936_v37, 7  ;;  %v386_v24 = vrot.slane %v10922_v7, 7 }
 0x275   :  { %v5578_v28 = vmax.f32 %v16449_v36, %v5555_v27  ;;  %v5582_v60 = vmax.f32 %v16451_v49, %v5556_v63  ;;  %v10941_v38 = vadd.f32 %v16452_v44, %v5190_v31  ;;  %v5251_v59 = vadd.f32 %v16452_v44, %v5193_v47 }
 0x276   :  { %v391_v51 = vrot.slane %v10952_v29, 7  ;;  %v10956_v4 = vadd.f32 %v16452_v44, %v5194_v17  ;;  %v5303_v5 = vmax.f32 %v5247_v15, 0.0  ;;  %v16455_v50 = vrot.slane %v16389_v9, 7  ;;  %v16459_v17 = vld [vmem:[#allocation71_spill] sm:$0xff] }
 0x277   :  { %16453 = vst [vmem:[#allocation35_spill] sm:$0xff] %v10941_v38  ;;  %v5630_v62 = vmax.f32 %v5578_v28, %v5582_v60  ;;  %v10964_v48 = vsel %vm273_vm0, %v384_v0, %v386_v24  ;;  %v15046_v27 = vmax.f32 %v10941_v38, 0.0  ;;  %v5307_v22 = vmax.f32 %v5251_v59, 0.0  ;;  %v16457_v28 = vld [vmem:[#allocation55_spill] sm:$0xff]  ;;  %v16462_v38 = vld [vmem:[#allocation100_spill] sm:$0xff] }
 0x278   :  { %16454 = vst [vmem:[#allocation89_spill] sm:$0xff] %v10956_v4  ;;  %v10961_v58 = vsel %vm273_vm0, %v16455_v50, %v384_v0  ;;  %v16456_v31 = vrot.slane %v16391_v57, 7  ;;  %v15045_v54 = vmax.f32 %v10956_v4, 0.0  ;;  %v5427_v36 = vrot.slane %v5303_v5, 2 }
 0x279   :  { %v5661_v63 = vrot.slane %v5630_v62, 4  ;;  %v393_v9 = vrot.slane %v10947_v45, 7  ;;  %v668_v6 = vmul.f32 %v16457_v28, %v10961_v58  ;;  %v10978_v49 = vrot.slane %v15046_v27, 2  ;;  %v16461_v62 = vld [vmem:[#allocation98_spill] sm:$0xff] }
 0x27a   :  { %v10970_v47 = vsel %vm273_vm0, %v16456_v31, %v391_v51  ;;  %v5434_v60 = vrot.slane %v5307_v22, 2  ;;  %v669_v57 = vmul.f32 %v16457_v28, %v10964_v48  ;;  %v10986_v0 = vrot.slane %v15045_v54, 2 }
 0x27b   :  { %16458 = vst [vmem:[#allocation92_spill] sm:$0xff] %v10978_v49  ;;  %v5662_v15 = vsel %vm5655_vm5, %v16459_v17, %v5661_v63  ;;  %v10989_v24 = vsel %vm273_vm0, %v391_v51, %v393_v9  ;;  %v672_v59 = vmul.f32 %v16457_v28, %v10970_v47  ;;  %v889_v50 = vmul.f32 %v10936_v37, %v16461_v62 }
 0x27c   :  { %16460 = vst [vmem:[#allocation11_spill] sm:$0xff] %v10986_v0  ;;  %v5429_v31 = vsel %vm4252_vm4, %v5427_v36, %v10978_v49  ;;  %v673_v63 = vmul.f32 %v16457_v28, %v10989_v24  ;;  %v890_v17 = vmul.f32 %v16461_v62, %v10922_v7  ;;  %v893_v54 = vmul.f32 %v10952_v29, %v16461_v62 }
 0x27d   :  { %v5436_v51 = vsel %vm4252_vm4, %v5434_v60, %v10986_v0  ;;  %v5583_v9 = vmax.f32 %v5303_v5, %v5429_v31  ;;  %v894_v27 = vmul.f32 %v16461_v62, %v10947_v45  ;;  %v999_v21 = vadd.f32 %v889_v50, %v668_v6  ;;  %v16463_v5 = vld [vmem:[#allocation34_spill] sm:$0xff]  ;;  %v16473_v0 = vld [vmem:[#allocation116_spill] sm:$0xff] }
 0x27e   :  { %v5587_v33 = vmax.f32 %v5307_v22, %v5436_v51  ;;  %v1000_v20 = vadd.f32 %v890_v17, %v669_v57  ;;  %v1003_v36 = vadd.f32 %v893_v54, %v672_v59  ;;  %v1159_v18 = vrot.slane %v10922_v7, 1  ;;  %v16465_v6 = vld [vmem:[#allocation114_spill] sm:$0xff]  ;;  %v16466_v54 = vld [vmem:[#allocation117_spill] sm:$0xff]  ;;  %v16467_v59 = vld [vmem:[#allocation108_spill] sm:$0xff] }
 0x27f   :  { %v1004_v34 = vadd.f32 %v894_v27, %v673_v63  ;;  %v1166_v4 = vrot.slane %v10947_v45, 1  ;;  %v1679_v28 = vmul.f32 %v16462_v38, %v10961_v58  ;;  %v1680_v49 = vmul.f32 %v16462_v38, %v10964_v48  ;;  %v16469_v17 = vld [vmem:[#allocation126_spill] sm:$0xff] }
 0x280   :  { %v5631_v60 = vmax.f32 %v5583_v9, %v5587_v33  ;;  %v16464_v31 = vrot.slane %v16463_v5, 1  ;;  %v1365_v22 = vsel %vm1348_vm2, %v1159_v18, 0.0  ;;  %v1787_v57 = vadd.f32 %v16466_v54, %v16465_v6  ;;  %v16471_v6 = vld [vmem:[#allocation118_spill] sm:$0xff] }
 0x281   :  { %v16468_v27 = vrot.slane %v16467_v59, 1  ;;  %v11025_v63 = vsel %vm1348_vm2, %v1166_v4, 0.0  ;;  %v1443_v33 = vmul.f32 %v16469_v17, %v1365_v22  ;;  %v1792_v44 = vadd.f32 %v1680_v49, %v16473_v0  ;;  %v16477_v0 = vld [vmem:[#allocation73_spill] sm:$0xff] }
 0x282   :  { %v1160_v62 = vsel %vm1046_vm1, %v16464_v31, %v1159_v18  ;;  %v6238_v9 = vpack.c.bf16 %v5631_v60, %v5662_v15  ;;  %v1447_v18 = vmul.f32 %v16469_v17, %v11025_v63  ;;  %v16470_v31 = vld [vmem:[#allocation115_spill] sm:$0xff]  ;;  %v6349_v60 = vld [vmem:[%s14510_s0 + $0x1d0] sm:$0xff] }
 0x283   :  { %v11022_v50 = vsel %vm1046_vm1, %v16468_v27, %v1166_v4  ;;  %v1442_v51 = vmul.f32 %v16469_v17, %v1160_v62  ;;  %v1788_v54 = vadd.f32 %v16471_v6, %v16470_v31  ;;  %v11037_v27 = vadd.f32 %v1443_v33, %v1000_v20  ;;  %v16472_v4 = vld [vmem:[#allocation133_spill] sm:$0xff]  ;;  %v6350_v20 = vld [vmem:[%s14510_s0 + $0x1d8] sm:$0xf] }
 0x284   :  { %v1446_v5 = vmul.f32 %v16469_v17, %v11022_v50  ;;  %v1791_v38 = vadd.f32 %v1679_v28, %v16472_v4  ;;  %6239 = vmatpush1.bf16.msra.mxu0 %v6238_v9  ;;  %v11043_v15 = vadd.f32 %v1447_v18, %v1004_v34  ;;  %v16475_v17 = vld [vmem:[#allocation101_spill] sm:$0xff]  ;;  %v16476_v28 = vmov 0.0|0.0  }
 0x285   :  { %v11035_v59 = vadd.f32 %v1442_v51, %v999_v21  ;;  %v1901_v26 = vmul.f32 %v6349_v60, %v16475_v17  ;;  %v1902_v21 = vmul.f32 %v6350_v20, %v16475_v17  ;;  %6240 = vmatprep.subr.bf16.mxu0 %v16476_v28  ;;  %v1905_v49 = vmul.f32 %v10936_v37, %v16475_v17  ;;  %v16478_v20 = vld [vmem:[#allocation134_spill] sm:$0xff] }
 0x286   :  { %v11041_v30 = vadd.f32 %v1446_v5, %v1003_v36  ;;  %16474 = vst [vmem:[#allocation36_spill] sm:$0xff] %v11043_v15  ;;  %v1906_v34 = vmul.f32 %v16475_v17, %v10922_v7  ;;  %v2143_v36 = vmul.f32 %v16477_v0, %v1160_v62  ;;  %v2144_v51 = vmul.f32 %v16477_v0, %v1365_v22  ;;  %v16479_v15 = vld [vmem:[#allocation119_spill] sm:$0xff] }
 0x287   :  { %v2013_v33 = vadd.f32 %v1901_v26, %v1787_v57  ;;  %v2014_v9 = vadd.f32 %v1902_v21, %v1788_v54  ;;  %v2365_v5 = vmul.f32 %v16354_v13, %v10961_v58  ;;  %v2366_v18 = vmul.f32 %v16354_v13, %v10964_v48  ;;  %v16480_v26 = vld [vmem:[#allocation42_spill] sm:$0xff] }
 0x288   :  { %v2017_v31 = vadd.f32 %v1905_v49, %v1791_v38  ;;  %v2018_v6 = vadd.f32 %v1906_v34, %v1792_v44  ;;  %v2369_v4 = vmul.f32 %v16354_v13, %v10970_v47  ;;  %v2370_v60 = vmul.f32 %v16354_v13, %v10989_v24 }
 0x289   :  { %v2251_v17 = vadd.f32 %v16478_v20, %v2013_v33  ;;  %v2252_v0 = vadd.f32 %v16479_v15, %v2014_v9  ;;  %v2589_v57 = vmul.f32 %v10936_v37, %v16480_v26  ;;  %v2590_v58 = vmul.f32 %v16480_v26, %v10922_v7 }
 0x28a   :  { %v2255_v54 = vadd.f32 %v2143_v36, %v2017_v31  ;;  %v2256_v48 = vadd.f32 %v2144_v51, %v2018_v6  ;;  %v2593_v44 = vmul.f32 %v10952_v29, %v16480_v26  ;;  %v2594_v38 = vmul.f32 %v16480_v26, %v10947_v45 }
 0x28b   :  { %v2475_v21 = vadd.f32 %v2365_v5, %v2251_v17  ;;  %v2476_v49 = vadd.f32 %v2366_v18, %v2252_v0  ;;  %v2812_v34 = vmul.f32 %v16393_v35, %v1160_v62  ;;  %v2813_v15 = vmul.f32 %v16393_v35, %v1365_v22 }
 0x28c   :  { %v2479_v33 = vadd.f32 %v2369_v4, %v2255_v54  ;;  %v2480_v9 = vadd.f32 %v2370_v60, %v2256_v48  ;;  %v2816_v37 = vmul.f32 %v16393_v35, %v11022_v50  ;;  %v2817_v7 = vmul.f32 %v16393_v35, %v11025_v63 }
 0x28d   :  { %v2698_v36 = vadd.f32 %v2589_v57, %v2475_v21  ;;  %v2699_v51 = vadd.f32 %v2590_v58, %v2476_v49  ;;  %v3632_v31 = vsel %vm1348_vm2, %v10728_v56, 0.0  ;;  %v3633_v17 = vsel %vm1348_vm2, %v10732_v41, 0.0 }
 0x28e   :  { %v2702_v0 = vadd.f32 %v2593_v44, %v2479_v33  ;;  %v2703_v62 = vadd.f32 %v2594_v38, %v2480_v9  ;;  %v3634_v22 = vsel %vm1348_vm2, %v10744_v2, 0.0  ;;  %v3635_v5 = vsel %vm1348_vm2, %v10749_v12, 0.0 }
 0x28f   :  { %v2922_v18 = vadd.f32 %v2812_v34, %v2698_v36  ;;  %v2923_v6 = vadd.f32 %v2813_v15, %v2699_v51  ;;  %v16481_v4 = vmax.f32 %v10656_v40, 0.0  ;;  %v16482_v20 = vmax.f32 %v10668_v3, 0.0 }
 0x290   :  { %v2926_v56 = vadd.f32 %v2816_v37, %v2702_v0  ;;  %v2927_v58 = vadd.f32 %v2817_v7, %v2703_v62  ;;  %v16483_v41 = vmax.f32 %v10680_v52, 0.0  ;;  %v16484_v48 = vmax.f32 %v10692_v32, 0.0 }
 0x291   :  { %v3693_v60 = vmax.f32 %v16481_v4, %v3632_v31  ;;  %v3697_v57 = vmax.f32 %v16482_v20, %v3633_v17  ;;  %v3036_v2 = vadd.f32 %v16412_v42, %v2922_v18  ;;  %v11102_v12 = vadd.f32 %v16412_v42, %v2923_v6 }
 0x292   :  { %v3701_v54 = vmax.f32 %v16483_v41, %v3634_v22  ;;  %v3705_v44 = vmax.f32 %v16484_v48, %v3635_v5  ;;  %v3912_v40 = vrot.slane %v10774_v61, 6  ;;  %v3040_v3 = vadd.f32 %v16412_v42, %v2926_v56 }
 0x293   :  { %16485 = vst [vmem:[#allocation139_spill] sm:$0xff] %v11102_v12  ;;  %v11104_v38 = vmax.f32 %v3693_v60, %v3697_v57  ;;  %v11109_v21 = vadd.f32 %v16412_v42, %v2927_v58  ;;  %v3919_v52 = vrot.slane %v10780_v46, 6  ;;  %v3148_v32 = vmax.f32 %v3036_v2, 0.0 }
 0x294   :  { %v11111_v49 = vmax.f32 %v3701_v54, %v3705_v44  ;;  %v15063_v34 = vmax.f32 %v11102_v12, 0.0  ;;  %v16488_v15 = vrot.slane %v10772_v25, 6  ;;  %v3152_v37 = vmax.f32 %v3040_v3, 0.0 }
 0x295   :  { %16486 = vst [vmem:[#allocation140_spill] sm:$0xff] %v11109_v21  ;;  %v3914_v9 = vrot.slane %v11104_v38, 6  ;;  %v15062_v7 = vmax.f32 %v11109_v21, 0.0  ;;  %v16489_v36 = vrot.slane %v10778_v1, 6  ;;  %v3415_v17 = vrot.slane %v3148_v32, 1 }
 0x296   :  { %16487 = vst [vmem:[#allocation82_spill] sm:$0xff] %v11111_v49  ;;  %v11118_v33 = vsel %vm3871_vm3, %v16488_v15, %v3912_v40  ;;  %v3921_v31 = vrot.slane %v11111_v49, 6  ;;  %v11130_v0 = vrot.slane %v15063_v34, 1  ;;  %v3422_v22 = vrot.slane %v3152_v37, 1 }
 0x297   :  { %v11125_v51 = vsel %vm3871_vm3, %v16489_v36, %v3919_v52  ;;  %v11133_v25 = vsel %vm3871_vm3, %v3912_v40, %v3914_v9  ;;  %v4058_v62 = vmul.f32 %v16421_v10, %v11118_v33  ;;  %v11139_v5 = vrot.slane %v15062_v7, 1  ;;  %v16495_v40 = vld [vmem:[#allocation45_spill] sm:$0xff]  ;;  %v16497_v9 = vld [vmem:[#allocation52_spill] sm:$0xff] }
 0x298   :  { %16490 = vst [vmem:[#allocation41_spill] sm:$0xff] %v11130_v0  ;;  %v11142_v18 = vsel %vm3871_vm3, %v3919_v52, %v3921_v31  ;;  %v4059_v6 = vmul.f32 %v16421_v10, %v11133_v25  ;;  %v3416_v4 = vsel %vm1046_vm1, %v10757_v55, %v3415_v17  ;;  %v3418_v60 = vsel %vm1046_vm1, %v3415_v17, %v11130_v0  ;;  %v16496_v52 = vld [vmem:[#allocation120_spill] sm:$0xff]  ;;  %v16498_v36 = vld [vmem:[#allocation129_spill] sm:$0xff] }
 0x299   :  { %16491 = vst [vmem:[#allocation87_spill] sm:$0xff] %v11139_v5  ;;  %16492 = vst [vmem:[#allocation14_spill] sm:$0xff] %v11142_v18  ;;  %v4062_v20 = vmul.f32 %v16421_v10, %v11125_v51  ;;  %v4063_v57 = vmul.f32 %v16421_v10, %v11142_v18  ;;  %v3423_v56 = vsel %vm1046_vm1, %v10764_v8, %v3422_v22  ;;  %v16493_v41 = vmax.f32 %v10698_v16, 0.0 }
 0x29a   :  { %v3425_v58 = vsel %vm1046_vm1, %v3422_v22, %v11139_v5  ;;  %v3708_v48 = vmax.f32 %v3148_v32, %v3418_v60  ;;  %v16494_v55 = vmax.f32 %v10704_v11, 0.0  ;;  %v4159_v3 = vmul.f32 %v16416_v23, %v16495_v40  ;;  %v16504_v40 = vld [vmem:[#allocation28_spill] sm:$0xff] }
 0x29b   :  { %v3707_v54 = vmax.f32 %v16493_v41, %v3416_v4  ;;  %v3712_v2 = vmax.f32 %v3152_v37, %v3425_v58  ;;  %v4160_v15 = vmul.f32 %v16416_v23, %v16496_v52  ;;  %v4163_v8 = vmul.f32 %v16416_v23, %v16497_v9  ;;  %v16501_v4 = vld [vmem:[#allocation48_spill] sm:$0xff]  ;;  %v16503_v41 = vld [vmem:[#allocation50_spill] sm:$0xff] }
 0x29c   :  { %v3711_v44 = vmax.f32 %v16494_v55, %v3423_v56  ;;  %v4164_v31 = vmul.f32 %v16416_v23, %v16498_v36  ;;  %v4167_v16 = vmul.f32 %v16416_v23, %v10774_v61  ;;  %v4168_v11 = vmul.f32 %v16416_v23, %v11104_v38  ;;  %v16502_v56 = vld [vmem:[#allocation136_spill] sm:$0xff] }
 0x29d   :  { %v11176_v37 = vmax.f32 %v3708_v48, %v3712_v2  ;;  %v4171_v17 = vmul.f32 %v16416_v23, %v10780_v46  ;;  %v4172_v22 = vmul.f32 %v16416_v23, %v11111_v49  ;;  %v4213_v60 = vadd.f32 %v4159_v3, %v16501_v4  ;;  %v16506_v4 = vld [vmem:[#allocation83_spill] sm:$0xff] }
 0x29e   :  { %v11174_v32 = vmax.f32 %v3707_v54, %v3711_v44  ;;  %v4214_v58 = vadd.f32 %v4160_v15, %v16502_v56  ;;  %v4217_v55 = vadd.f32 %v4163_v8, %v16503_v41  ;;  %v4218_v52 = vadd.f32 %v4164_v31, %v16504_v40  ;;  %v16505_v8 = vld [vmem:[#allocation102_spill] sm:$0xff] }
 0x29f   :  { %16500 = vst [vmem:[#allocation75_spill] sm:$0xff] %v11176_v37  ;;  %v15066_v54 = vrot.slane %v11176_v37, 6  ;;  %v4175_v48 = vmul.f32 %v16416_v23, %v11176_v37  ;;  %v4221_v44 = vadd.f32 %v4167_v16, %v4058_v62  ;;  %v4222_v2 = vadd.f32 %v4168_v11, %v4059_v6 }
 0x2a0   :  { %16499 = vst [vmem:[#allocation15_spill] sm:$0xff] %v11174_v32  ;;  %v15067_v7 = vrot.slane %v11174_v32, 6  ;;  %v4225_v34 = vadd.f32 %v4171_v17, %v4062_v20  ;;  %v4226_v1 = vadd.f32 %v4172_v22, %v4063_v57  ;;  %v4295_v21 = vrot.slane %v11104_v38, 2  ;;  %v16508_v57 = vld [vmem:[#allocation84_spill] sm:$0xff] }
 0x2a1   :  { %v4302_v15 = vrot.slane %v11111_v49, 2  ;;  %v4486_v31 = vadd.f32 %v16505_v8, %v4213_v60  ;;  %v4487_v56 = vadd.f32 %v16506_v4, %v4214_v58  ;;  %v16507_v62 = vrot.slane %v10774_v61, 2  ;;  %v16512_v8 = vld [vmem:[#allocation85_spill] sm:$0xff]  ;;  %v16569_v32 = vld [vmem:[#allocation100_spill] sm:$0xff] }
 0x2a2   :  { %v3927_v3 = vsel %vm3871_vm3, %v15067_v7, %v15066_v54  ;;  %v11206_v20 = vsel %vm3871_vm3, %v4295_v21, 0.0  ;;  %v4490_v16 = vadd.f32 %v16508_v57, %v4217_v55  ;;  %v16509_v11 = vrot.slane %v10780_v46, 2  ;;  %v16515_v54 = vld [vmem:[#allocation51_spill] sm:$0xff] }
 0x2a3   :  { %v4066_v41 = vmul.f32 %v16421_v10, %v3927_v3  ;;  %v11203_v6 = vsel %vm4252_vm4, %v16507_v62, %v4295_v21  ;;  %v11215_v22 = vsel %vm3871_vm3, %v4302_v15, 0.0  ;;  %v4440_v58 = vmul.f32 %v16431_v53, %v11206_v20 }
 0x2a4   :  { %v11212_v17 = vsel %vm4252_vm4, %v16509_v11, %v4302_v15  ;;  %16510 = vst [vmem:[#allocation13_spill] sm:$0xff] %v11215_v22  ;;  %v4439_v60 = vmul.f32 %v16431_v53, %v11203_v6  ;;  %v4444_v55 = vmul.f32 %v16431_v53, %v11215_v22  ;;  %v4491_v4 = vadd.f32 %v16512_v8, %v4218_v52  ;;  %v16514_v15 = vld [vmem:[#allocation47_spill] sm:$0xff] }
 0x2a5   :  { %v11221_v40 = vadd.f32 %v4175_v48, %v4066_v41  ;;  %v4443_v21 = vmul.f32 %v16431_v53, %v11212_v17  ;;  %v11228_v57 = vadd.f32 %v4440_v58, %v4222_v2  ;;  %v4560_v11 = vmul.f32 %v16433_v19, %v16514_v15 }
 0x2a6   :  { %v4494_v62 = vadd.f32 %v4439_v60, %v4221_v44  ;;  %v4561_v7 = vmul.f32 %v16433_v19, %v16515_v54  ;;  %v11234_v48 = vadd.f32 %v4444_v55, %v4226_v1  ;;  %v4564_v41 = vmul.f32 %v16433_v19, %v11118_v33 }
 0x2a7   :  { %16511 = vst [vmem:[#allocation74_spill] sm:$0xff] %v11221_v40  ;;  %16513 = vst [vmem:[#allocation8_spill] sm:$0xff] %v11228_v57  ;;  %v4498_v23 = vadd.f32 %v4443_v21, %v4225_v34  ;;  %v4565_v40 = vmul.f32 %v16433_v19, %v11133_v25  ;;  %v4568_v52 = vmul.f32 %v16433_v19, %v11125_v51 }
 0x2a8   :  { %16516 = vst [vmem:[#allocation18_spill] sm:$0xff] %v11234_v48  ;;  %v4572_v44 = vmul.f32 %v16433_v19, %v3927_v3  ;;  %v4616_v2 = vadd.f32 %v4560_v11, %v4486_v31  ;;  %v4617_v60 = vadd.f32 %v4561_v7, %v4487_v56  ;;  %v4620_v58 = vadd.f32 %v4564_v41, %v4490_v16  ;;  %v16532_v48 = vld [vmem:[#allocation92_spill] sm:$0xff]  ;;  %v16560_v19 = vld [vmem:[#allocation147_spill] sm:$0xff] }
 0x2a9   :  { %v4621_v8 = vadd.f32 %v4565_v40, %v4491_v4  ;;  %v4674_v34 = vmul.f32 %v16437_v43, %v16497_v9  ;;  %v4675_v1 = vmul.f32 %v16437_v43, %v16498_v36  ;;  %v4624_v54 = vadd.f32 %v4568_v52, %v4494_v62  ;;  %v16517_v4 = vld [vmem:[#allocation31_spill] sm:$0xff] }
 0x2aa   :  { %v4628_v21 = vadd.f32 %v4572_v44, %v4498_v23  ;;  %v4678_v55 = vmul.f32 %v16437_v43, %v10774_v61  ;;  %v4679_v15 = vmul.f32 %v16437_v43, %v11104_v38  ;;  %v4682_v31 = vmul.f32 %v16437_v43, %v10780_v46  ;;  %v16518_v23 = vld [vmem:[#allocation58_spill] sm:$0xff] }
 0x2ab   :  { %v4686_v7 = vmul.f32 %v16437_v43, %v11176_v37  ;;  %v4730_v56 = vadd.f32 %v4674_v34, %v4616_v2  ;;  %v4731_v16 = vadd.f32 %v4675_v1, %v4617_v60  ;;  %v4800_v36 = vmul.f32 %v16440_v14, %v16517_v4  ;;  %v16520_v4 = vld [vmem:[#allocation17_spill] sm:$0xff] }
 0x2ac   :  { %v4734_v9 = vadd.f32 %v4678_v55, %v4620_v58  ;;  %v4735_v40 = vadd.f32 %v4679_v15, %v4621_v8  ;;  %v4801_v62 = vmul.f32 %v16440_v14, %v16518_v23  ;;  %v4738_v11 = vadd.f32 %v4682_v31, %v4624_v54 }
 0x2ad   :  { %v11259_v41 = vadd.f32 %v4686_v7, %v4628_v21  ;;  %v4804_v52 = vmul.f32 %v16440_v14, %v11203_v6  ;;  %v4805_v44 = vmul.f32 %v16440_v14, %v11206_v20  ;;  %v4808_v2 = vmul.f32 %v16440_v14, %v11212_v17 }
 0x2ae   :  { %v4856_v60 = vadd.f32 %v4800_v36, %v4730_v56  ;;  %v4857_v58 = vadd.f32 %v4801_v62, %v4731_v16  ;;  %v4914_v8 = vmul.f32 %v16442_v39, %v11118_v33  ;;  %v4915_v54 = vmul.f32 %v16442_v39, %v11133_v25  ;;  %v16522_v62 = vld [vmem:[#allocation19_spill] sm:$0xff] }
 0x2af   :  { %16519 = vst [vmem:[#allocation86_spill] sm:$0xff] %v11259_v41  ;;  %v4860_v34 = vadd.f32 %v4804_v52, %v4734_v9  ;;  %v4861_v1 = vadd.f32 %v4805_v44, %v4735_v40  ;;  %v4918_v21 = vmul.f32 %v16442_v39, %v11125_v51  ;;  %v4864_v55 = vadd.f32 %v4808_v2, %v4738_v11  ;;  %v11303_v52 = vld [vmem:[%s14510_s0 + $0x230] sm:$0xff]  ;;  %v11308_v44 = vld [vmem:[%s14510_s0 + $0x238] sm:$0xf] }
 0x2b0   :  { %v4919_v15 = vmul.f32 %v16442_v39, %v11142_v18  ;;  %v4922_v31 = vmul.f32 %v16442_v39, %v3927_v3  ;;  %v4968_v7 = vadd.f32 %v4914_v8, %v4856_v60  ;;  %v4969_v56 = vadd.f32 %v4915_v54, %v4857_v58  ;;  %v11289_v3 = vld [vmem:[%s14510_s0 + $0x220] sm:$0xff] }
 0x2b1   :  { %v4972_v16 = vadd.f32 %v4918_v21, %v4860_v34  ;;  %v5026_v33 = vmul.f32 %v16520_v4, %v10774_v61  ;;  %v5027_v9 = vmul.f32 %v16520_v4, %v11104_v38  ;;  %v5030_v51 = vmul.f32 %v16520_v4, %v10780_v46  ;;  %v11294_v61 = vld [vmem:[%s14510_s0 + $0x228] sm:$0xff] }
 0x2b2   :  { %v4973_v40 = vadd.f32 %v4919_v15, %v4861_v1  ;;  %v11280_v25 = vadd.f32 %v4922_v31, %v4864_v55  ;;  %v5031_v36 = vmul.f32 %v16520_v4, %v11111_v49  ;;  %v5137_v11 = vmul.f32 %v16522_v62, %v11203_v6  ;;  %v11329_v15 = vld [vmem:[%s14510_s0 + $0x250] sm:$0xff]  ;;  %v16533_v49 = vld [vmem:[#allocation12_spill] sm:$0xff] }
 0x2b3   :  { %v5079_v38 = vadd.f32 %v5026_v33, %v4968_v7  ;;  %v5080_v23 = vadd.f32 %v5027_v9, %v4969_v56  ;;  %v5138_v46 = vmul.f32 %v16522_v62, %v11206_v20  ;;  %v5083_v2 = vadd.f32 %v5030_v51, %v4972_v16  ;;  %v11317_v20 = vld [vmem:[%s14510_s0 + $0x240] sm:$0xff]  ;;  %v16523_v56 = vld [vmem:[#allocation21_spill] sm:$0xff]  ;;  %v11340_v9 = vld [vmem:[%s14510_s0 + $0x258] sm:$0xf] }
 0x2b4   :  { %16521 = vst [vmem:[#allocation105_spill] sm:$0xff] %v11280_v25  ;;  %v5084_v60 = vadd.f32 %v5031_v36, %v4973_v40  ;;  %v5141_v58 = vmul.f32 %v16522_v62, %v11212_v17  ;;  %v5142_v6 = vmul.f32 %v16522_v62, %v11215_v22  ;;  %v395_v1 = vrot.slane %v11289_v3, 7  ;;  %v11324_v17 = vld [vmem:[%s14510_s0 + $0x248] sm:$0xff] }
 0x2b5   :  { %v5191_v8 = vadd.f32 %v5137_v11, %v5079_v38  ;;  %v5192_v34 = vadd.f32 %v5138_v46, %v5080_v23  ;;  %v396_v54 = vrot.slane %v11294_v61, 7  ;;  %v398_v31 = vrot.slane %v11303_v52, 7 }
 0x2b6   :  { %v5195_v21 = vadd.f32 %v5141_v58, %v5083_v2  ;;  %v5196_v55 = vadd.f32 %v5142_v6, %v5084_v60  ;;  %v400_v7 = vrot.slane %v11308_v44, 7  ;;  %v402_v51 = vrot.slane %v11317_v20, 7 }
 0x2b7   :  { %v5249_v16 = vadd.f32 %v16523_v56, %v5191_v8  ;;  %v11335_v33 = vadd.f32 %v16523_v56, %v5192_v34  ;;  %v11343_v40 = vsel %vm273_vm0, %v395_v1, %v396_v54  ;;  %v11351_v23 = vsel %vm273_vm0, %v396_v54, %v398_v31 }
 0x2b8   :  { %v5253_v36 = vadd.f32 %v16523_v56, %v5195_v21  ;;  %v11348_v38 = vadd.f32 %v16523_v56, %v5196_v55  ;;  %v11354_v11 = vsel %vm273_vm0, %v398_v31, %v400_v7  ;;  %v403_v60 = vrot.slane %v11324_v17, 7 }
 0x2b9   :  { %16524 = vst [vmem:[#allocation106_spill] sm:$0xff] %v11335_v33  ;;  %v5305_v46 = vmax.f32 %v5249_v16, 0.0  ;;  %v15070_v2 = vmax.f32 %v11335_v33, 0.0  ;;  %v405_v58 = vrot.slane %v11329_v15, 7  ;;  %v407_v34 = vrot.slane %v11340_v9, 7  ;;  %v16535_v33 = vld [vmem:[#allocation64_spill] sm:$0xff] }
 0x2ba   :  { %16525 = vst [vmem:[#allocation130_spill] sm:$0xff] %v11348_v38  ;;  %v5309_v6 = vmax.f32 %v5253_v36, 0.0  ;;  %v15075_v8 = vmax.f32 %v11348_v38, 0.0  ;;  %v11362_v21 = vsel %vm273_vm0, 0.0, %v395_v1  ;;  %v11369_v31 = vsel %vm273_vm0, %v402_v51, %v403_v60 }
 0x2bb   :  { %v5430_v54 = vrot.slane %v5305_v46, 2  ;;  %v11366_v55 = vrot.slane %v15070_v2, 2  ;;  %16527 = vst [vmem:[#allocation9_spill] sm:$0xff] %v11369_v31  ;;  %v11372_v7 = vsel %vm273_vm0, %v403_v60, %v405_v58  ;;  %v11379_v22 = vsel %vm273_vm0, %v405_v58, %v407_v34  ;;  %v16534_v60 = vld [vmem:[#allocation55_spill] sm:$0xff] }
 0x2bc   :  { %16528 = vst [vmem:[#allocation10_spill] sm:$0xff] %v11372_v7  ;;  %v5437_v16 = vrot.slane %v5309_v6, 2  ;;  %v11376_v36 = vrot.slane %v15075_v8, 2  ;;  %16530 = vst [vmem:[#allocation63_spill] sm:$0xff] %v11379_v22  ;;  %v11382_v1 = vsel %vm273_vm0, 0.0, %v402_v51  ;;  %v667_v18 = vmul.f32 %v16534_v60, %v16533_v49  ;;  %v16536_v8 = vld [vmem:[#allocation11_spill] sm:$0xff] }
 0x2bd   :  { %16526 = vst [vmem:[#allocation90_spill] sm:$0xff] %v11366_v55  ;;  %16531 = vst [vmem:[#allocation39_spill] sm:$0xff] %v11382_v1  ;;  %v5431_v2 = vsel %vm4252_vm4, %v16532_v48, %v5430_v54  ;;  %v5433_v57 = vsel %vm4252_vm4, %v5430_v54, %v11366_v55  ;;  %v670_v38 = vmul.f32 %v16534_v60, %v16535_v33  ;;  %v16537_v51 = vld [vmem:[#allocation35_spill] sm:$0xff]  ;;  %v16539_v48 = vld [vmem:[#allocation89_spill] sm:$0xff] }
 0x2be   :  { %16529 = vst [vmem:[#allocation62_spill] sm:$0xff] %v11376_v36  ;;  %v5438_v56 = vsel %vm4252_vm4, %v16536_v8, %v5437_v16  ;;  %v5440_v58 = vsel %vm4252_vm4, %v5437_v16, %v11376_v36  ;;  %v16538_v34 = vmax.f32 %v16537_v51, 0.0  ;;  %v5585_v25 = vmax.f32 %v5305_v46, %v5433_v57  ;;  %v16541_v55 = vld [vmem:[#allocation46_spill] sm:$0xff]  ;;  %v6351_v51 = vld [vmem:[%s14510_s0 + $0x1e0] sm:$0xff] }
 0x2bf   :  { %v16540_v4 = vmax.f32 %v16539_v48, 0.0  ;;  %v5589_v54 = vmax.f32 %v5309_v6, %v5440_v58  ;;  %v671_v49 = vmul.f32 %v16534_v60, %v16541_v55  ;;  %v11404_v39 = vmul.f32 %v16534_v60, %v11362_v21 }
 0x2c0   :  { %v5584_v62 = vmax.f32 %v16538_v34, %v5431_v2  ;;  %v11408_v8 = vmul.f32 %v16534_v60, %v11343_v40  ;;  %v11412_v16 = vmul.f32 %v16534_v60, %v11351_v23  ;;  %v11416_v57 = vmul.f32 %v16534_v60, %v11354_v11  ;;  %v16550_v34 = vld [vmem:[#allocation98_spill] sm:$0xff] }
 0x2c1   :  { %v5588_v41 = vmax.f32 %v16540_v4, %v5438_v56  ;;  %16542 = vst [vmem:[#allocation97_spill] sm:$0xff] %v11404_v39  ;;  %v11420_v4 = vmul.f32 %v16534_v60, %v11382_v1  ;;  %v5633_v46 = vmax.f32 %v5585_v25, %v5589_v54  ;;  %v11424_v2 = vmul.f32 %v16534_v60, %v11369_v31 }
 0x2c2   :  { %16543 = vst [vmem:[#allocation27_spill] sm:$0xff] %v11408_v8  ;;  %16544 = vst [vmem:[#allocation95_spill] sm:$0xff] %v11412_v16  ;;  %v11428_v6 = vmul.f32 %v16534_v60, %v11372_v7  ;;  %v11432_v58 = vmul.f32 %v16534_v60, %v11379_v22  ;;  %v887_v48 = vmul.f32 %v6351_v51, %v16550_v34  ;;  %v1168_v51 = vrot.slane %v11289_v3, 1 }
 0x2c3   :  { %16545 = vst [vmem:[#allocation96_spill] sm:$0xff] %v11416_v57  ;;  %16546 = vst [vmem:[#allocation99_spill] sm:$0xff] %v11420_v4  ;;  %v5632_v56 = vmax.f32 %v5584_v62, %v5588_v41  ;;  %v6352_v41 = vld [vmem:[%s14510_s0 + $0x1e8] sm:$0xff]  ;;  %v6353_v62 = vld [vmem:[%s14510_s0 + $0x200] sm:$0xff]  ;;  %v1169_v4 = vrot.slane %v11294_v61, 1  ;;  %v1171_v39 = vrot.slane %v11303_v52, 1  ;;  %v1681_v12 = vmul.f32 %v16569_v32, %v16535_v33 }
 0x2c4   :  { %16547 = vst [vmem:[#allocation88_spill] sm:$0xff] %v11424_v2  ;;  %16548 = vst [vmem:[#allocation125_spill] sm:$0xff] %v11428_v6  ;;  %v888_v25 = vmul.f32 %v6352_v41, %v16550_v34  ;;  %v891_v54 = vmul.f32 %v6353_v62, %v16550_v34  ;;  %v16551_v57 = vld [vmem:[#allocation22_spill] sm:$0xff]  ;;  %v1175_v36 = vrot.slane %v11317_v20, 1  ;;  %v1688_v33 = vmul.f32 %v16569_v32, %v11354_v11 }
 0x2c5   :  { %16549 = vst [vmem:[#allocation16_spill] sm:$0xff] %v11432_v58  ;;  %v6241_v6 = vpack.c.bf16 %v5633_v46, %v5632_v56  ;;  %v6354_v58 = vld [vmem:[%s14510_s0 + $0x208] sm:$0xff]  ;;  %v997_v16 = vadd.f32 %v887_v48, %v16551_v57  ;;  %v11455_v56 = vsel %vm1046_vm1, %v1168_v51, %v1169_v4  ;;  %v1173_v46 = vrot.slane %v11308_v44, 1  ;;  %v16553_v48 = vld [vmem:[#allocation126_spill] sm:$0xff] }
 0x2c6   :  { %v892_v2 = vmul.f32 %v6354_v58, %v16550_v34  ;;  %v998_v41 = vadd.f32 %v888_v25, %v667_v18  ;;  %v1001_v8 = vadd.f32 %v891_v54, %v670_v38  ;;  %v11461_v34 = vsel %vm1046_vm1, %v1169_v4, %v1171_v39  ;;  %v16554_v54 = vld [vmem:[#allocation143_spill] sm:$0xff] }
 0x2c7   :  { %6242 = vmatpush1.bf16.msra.mxu0 %v6241_v6  ;;  %v1176_v57 = vrot.slane %v11324_v17, 1  ;;  %v1178_v18 = vrot.slane %v11329_v15, 1  ;;  %v1180_v38 = vrot.slane %v11340_v9, 1  ;;  %v16552_v6 = vld [vmem:[#allocation142_spill] sm:$0xff]  ;;  %v1441_v51 = vmul.f32 %v16553_v48, %v16554_v54 }
 0x2c8   :  { %v1002_v60 = vadd.f32 %v892_v2, %v671_v49  ;;  %6243 = vmatprep.subr.bf16.mxu0 %v16476_v28  ;;  %v11467_v49 = vsel %vm1046_vm1, %v1171_v39, %v1173_v46  ;;  %v11470_v2 = vsel %vm1348_vm2, %v1173_v46, 0.0  ;;  %v1440_v25 = vmul.f32 %v16553_v48, %v16552_v6  ;;  %v16559_v46 = vld [vmem:[#allocation146_spill] sm:$0xff] }
 0x2c9   :  { %v11477_v4 = vsel %vm1046_vm1, %v1175_v36, %v1176_v57  ;;  %v11480_v28 = vsel %vm1046_vm1, %v1176_v57, %v1178_v18  ;;  %v11483_v14 = vsel %vm1046_vm1, %v1178_v18, %v1180_v38  ;;  %v11486_v39 = vsel %vm1348_vm2, %v1180_v38, 0.0 }
 0x2ca   :  { %16555 = vst [vmem:[#allocation26_spill] sm:$0xff] %v11477_v4  ;;  %16556 = vst [vmem:[#allocation23_spill] sm:$0xff] %v11480_v28  ;;  %v1444_v43 = vmul.f32 %v16553_v48, %v16559_v46  ;;  %v1445_v6 = vmul.f32 %v16553_v48, %v16560_v19  ;;  %v11494_v54 = vmul.f32 %v16553_v48, %v11455_v56 }
 0x2cb   :  { %16557 = vst [vmem:[#allocation24_spill] sm:$0xff] %v11483_v14  ;;  %16558 = vst [vmem:[#allocation144_spill] sm:$0xff] %v11486_v39  ;;  %v11498_v36 = vmul.f32 %v16553_v48, %v11461_v34  ;;  %v11502_v57 = vmul.f32 %v16553_v48, %v11467_v49  ;;  %v11506_v18 = vmul.f32 %v16553_v48, %v11470_v2 }
 0x2cc   :  { %16561 = vst [vmem:[#allocation66_spill] sm:$0xff] %v11494_v54  ;;  %v11510_v38 = vmul.f32 %v16553_v48, %v11477_v4  ;;  %v11514_v53 = vmul.f32 %v16553_v48, %v11480_v28  ;;  %v11518_v54 = vmul.f32 %v16553_v48, %v11483_v14  ;;  %v1552_v37 = vadd.f32 %v1441_v51, %v998_v41  ;;  %v16570_v51 = vld [vmem:[#allocation36_spill] sm:$0xff] }
 0x2cd   :  { %16562 = vst [vmem:[#allocation81_spill] sm:$0xff] %v11498_v36  ;;  %16563 = vst [vmem:[#allocation72_spill] sm:$0xff] %v11502_v57  ;;  %v11522_v36 = vmul.f32 %v16553_v48, %v11486_v39  ;;  %v1551_v57 = vadd.f32 %v1440_v25, %v997_v16  ;;  %v1555_v10 = vadd.f32 %v1444_v43, %v1001_v8 }
 0x2ce   :  { %16564 = vst [vmem:[#allocation145_spill] sm:$0xff] %v11506_v18  ;;  %16565 = vst [vmem:[#allocation33_spill] sm:$0xff] %v11510_v38  ;;  %v1556_v18 = vadd.f32 %v1445_v6, %v1002_v60  ;;  %v1682_v38 = vmul.f32 %v16569_v32, %v16541_v55  ;;  %v1685_v48 = vmul.f32 %v16569_v32, %v11362_v21 }
 0x2cf   :  { %16566 = vst [vmem:[#allocation38_spill] sm:$0xff] %v11514_v53  ;;  %16567 = vst [vmem:[#allocation107_spill] sm:$0xff] %v11518_v54  ;;  %v1683_v53 = vmul.f32 %v16569_v32, %v10970_v47  ;;  %v1684_v54 = vmul.f32 %v16569_v32, %v10989_v24  ;;  %v1686_v16 = vmul.f32 %v16569_v32, %v11343_v40 }
 0x2d0   :  { %16568 = vst [vmem:[#allocation148_spill] sm:$0xff] %v11522_v36  ;;  %v1687_v43 = vmul.f32 %v16569_v32, %v11351_v23  ;;  %v1793_v60 = vadd.f32 %v1681_v12, %v1551_v57  ;;  %v1794_v55 = vadd.f32 %v1682_v38, %v1552_v37  ;;  %v1797_v41 = vadd.f32 %v1685_v48, %v1555_v10  ;;  %v16571_v36 = vld [vmem:[#allocation101_spill] sm:$0xff] }
 0x2d1   :  { %v1795_v8 = vadd.f32 %v1683_v53, %v11035_v59  ;;  %v1796_v47 = vadd.f32 %v1684_v54, %v11037_v27  ;;  %v1798_v24 = vadd.f32 %v1686_v16, %v1556_v18  ;;  %v1800_v6 = vadd.f32 %v1688_v33, %v16570_v51  ;;  %v16572_v57 = vld [vmem:[#allocation73_spill] sm:$0xff] }
 0x2d2   :  { %v1799_v25 = vadd.f32 %v1687_v43, %v11041_v30  ;;  %v1907_v5 = vmul.f32 %v6353_v62, %v16571_v36  ;;  %v1908_v0 = vmul.f32 %v6354_v58, %v16571_v36  ;;  %v1909_v42 = vmul.f32 %v10952_v29, %v16571_v36 }
 0x2d3   :  { %v1910_v12 = vmul.f32 %v16571_v36, %v10947_v45  ;;  %v1911_v53 = vmul.f32 %v16571_v36, %v11289_v3  ;;  %v1912_v10 = vmul.f32 %v16571_v36, %v11294_v61  ;;  %v1913_v30 = vmul.f32 %v16571_v36, %v11303_v52 }
 0x2d4   :  { %v1914_v59 = vmul.f32 %v16571_v36, %v11308_v44  ;;  %v2019_v27 = vadd.f32 %v1907_v5, %v1793_v60  ;;  %v2020_v37 = vadd.f32 %v1908_v0, %v1794_v55  ;;  %v2021_v58 = vadd.f32 %v1909_v42, %v1795_v8 }
 0x2d5   :  { %v2022_v62 = vadd.f32 %v1910_v12, %v1796_v47  ;;  %v2023_v29 = vadd.f32 %v1911_v53, %v1797_v41  ;;  %v2024_v48 = vadd.f32 %v1912_v10, %v1798_v24  ;;  %v2025_v54 = vadd.f32 %v1913_v30, %v1799_v25 }
 0x2d6   :  { %v2026_v45 = vadd.f32 %v1914_v59, %v1800_v6  ;;  %v2145_v18 = vmul.f32 %v16572_v57, %v16559_v46  ;;  %v2146_v38 = vmul.f32 %v16572_v57, %v16560_v19  ;;  %v2147_v16 = vmul.f32 %v16572_v57, %v11022_v50 }
 0x2d7   :  { %v2148_v43 = vmul.f32 %v16572_v57, %v11025_v63  ;;  %v2149_v42 = vmul.f32 %v16572_v57, %v11455_v56  ;;  %v2150_v0 = vmul.f32 %v16572_v57, %v11461_v34  ;;  %v2151_v5 = vmul.f32 %v16572_v57, %v11467_v49 }
 0x2d8   :  { %v2152_v46 = vmul.f32 %v16572_v57, %v11470_v2  ;;  %v2257_v33 = vadd.f32 %v2145_v18, %v2019_v27  ;;  %v2258_v19 = vadd.f32 %v2146_v38, %v2020_v37  ;;  %v2259_v60 = vadd.f32 %v2147_v16, %v2021_v58 }
 0x2d9   :  { %v2260_v55 = vadd.f32 %v2148_v43, %v2022_v62  ;;  %v2261_v50 = vadd.f32 %v2149_v42, %v2023_v29  ;;  %v2262_v8 = vadd.f32 %v2150_v0, %v2024_v48  ;;  %v2263_v47 = vadd.f32 %v2151_v5, %v2025_v54 }
 0x2da   :  { %v2264_v63 = vadd.f32 %v2152_v46, %v2026_v45  ;;  %v2371_v41 = vmul.f32 %v16354_v13, %v11362_v21  ;;  %v2372_v24 = vmul.f32 %v16354_v13, %v11343_v40  ;;  %v2373_v25 = vmul.f32 %v16354_v13, %v11351_v23 }
 0x2db   :  { %v2374_v51 = vmul.f32 %v16354_v13, %v11354_v11  ;;  %v2375_v6 = vmul.f32 %v16354_v13, %v11382_v1  ;;  %v2376_v12 = vmul.f32 %v16354_v13, %v11369_v31  ;;  %v2377_v53 = vmul.f32 %v16354_v13, %v11372_v7 }
 0x2dc   :  { %v2378_v21 = vmul.f32 %v16354_v13, %v11379_v22  ;;  %v2481_v10 = vadd.f32 %v2371_v41, %v2257_v33  ;;  %v2482_v40 = vadd.f32 %v2372_v24, %v2258_v19  ;;  %v2483_v30 = vadd.f32 %v2373_v25, %v2259_v60 }
 0x2dd   :  { %v2484_v59 = vadd.f32 %v2374_v51, %v2260_v55  ;;  %v2485_v23 = vadd.f32 %v2375_v6, %v2261_v50  ;;  %v2486_v27 = vadd.f32 %v2376_v12, %v2262_v8  ;;  %v2487_v37 = vadd.f32 %v2377_v53, %v2263_v47  ;;  %v16573_v47 = vld [vmem:[#allocation44_spill] sm:$0xff] }
 0x2de   :  { %v2488_v11 = vadd.f32 %v2378_v21, %v2264_v63  ;;  %v2595_v58 = vmul.f32 %v16480_v26, %v11289_v3  ;;  %v2596_v62 = vmul.f32 %v16480_v26, %v11294_v61  ;;  %v2597_v29 = vmul.f32 %v16480_v26, %v11303_v52 }
 0x2df   :  { %v2598_v48 = vmul.f32 %v16480_v26, %v11308_v44  ;;  %v2599_v54 = vmul.f32 %v16480_v26, %v11317_v20  ;;  %v2600_v45 = vmul.f32 %v16480_v26, %v11324_v17  ;;  %v2601_v18 = vmul.f32 %v16480_v26, %v11329_v15 }
 0x2e0   :  { %v2602_v3 = vmul.f32 %v16480_v26, %v11340_v9  ;;  %v2704_v38 = vadd.f32 %v2595_v58, %v2481_v10  ;;  %v2705_v61 = vadd.f32 %v2596_v62, %v2482_v40  ;;  %v2706_v16 = vadd.f32 %v2597_v29, %v2483_v30 }
 0x2e1   :  { %v2707_v43 = vadd.f32 %v2598_v48, %v2484_v59  ;;  %v2708_v52 = vadd.f32 %v2599_v54, %v2485_v23  ;;  %v2709_v42 = vadd.f32 %v2600_v45, %v2486_v27  ;;  %v2710_v0 = vadd.f32 %v2601_v18, %v2487_v37 }
 0x2e2   :  { %v2711_v44 = vadd.f32 %v2602_v3, %v2488_v11  ;;  %v2818_v20 = vmul.f32 %v16393_v35, %v11455_v56  ;;  %v2819_v17 = vmul.f32 %v16393_v35, %v11461_v34  ;;  %v2820_v15 = vmul.f32 %v16393_v35, %v11467_v49 }
 0x2e3   :  { %v2821_v9 = vmul.f32 %v16393_v35, %v11470_v2  ;;  %v2822_v5 = vmul.f32 %v16393_v35, %v11477_v4  ;;  %v2823_v46 = vmul.f32 %v16393_v35, %v11480_v28  ;;  %v2824_v33 = vmul.f32 %v16393_v35, %v11483_v14 }
 0x2e4   :  { %v2825_v56 = vmul.f32 %v16393_v35, %v11486_v39  ;;  %v2928_v19 = vadd.f32 %v2818_v20, %v2704_v38  ;;  %v2929_v34 = vadd.f32 %v2819_v17, %v2705_v61  ;;  %v2930_v60 = vadd.f32 %v2820_v15, %v2706_v16  ;;  %v16574_v38 = vld [vmem:[#allocation41_spill] sm:$0xff] }
 0x2e5   :  { %v2931_v55 = vadd.f32 %v2821_v9, %v2707_v43  ;;  %v2932_v49 = vadd.f32 %v2822_v5, %v2708_v52  ;;  %v2933_v50 = vadd.f32 %v2823_v46, %v2709_v42  ;;  %v2934_v8 = vadd.f32 %v2824_v33, %v2710_v0  ;;  %v16575_v42 = vld [vmem:[#allocation87_spill] sm:$0xff]  ;;  %v16578_v33 = vld [vmem:[#allocation140_spill] sm:$0xff] }
 0x2e6   :  { %v2935_v2 = vadd.f32 %v2825_v56, %v2711_v44  ;;  %v3042_v63 = vadd.f32 %v16573_v47, %v2928_v19  ;;  %v3043_v41 = vadd.f32 %v16573_v47, %v2929_v34  ;;  %v3044_v24 = vadd.f32 %v16573_v47, %v2930_v60  ;;  %v16576_v9 = vld [vmem:[#allocation139_spill] sm:$0xff] }
 0x2e7   :  { %v3045_v25 = vadd.f32 %v16573_v47, %v2931_v55  ;;  %v3046_v51 = vadd.f32 %v16573_v47, %v2932_v49  ;;  %v3047_v6 = vadd.f32 %v16573_v47, %v2933_v50  ;;  %v3048_v12 = vadd.f32 %v16573_v47, %v2934_v8 }
 0x2e8   :  { %v3049_v53 = vadd.f32 %v16573_v47, %v2935_v2  ;;  %v3154_v21 = vmax.f32 %v3042_v63, 0.0  ;;  %v3155_v10 = vmax.f32 %v3043_v41, 0.0  ;;  %v3156_v40 = vmax.f32 %v3044_v24, 0.0  ;;  %v16580_v24 = vld [vmem:[#allocation15_spill] sm:$0xff] }
 0x2e9   :  { %v3157_v30 = vmax.f32 %v3045_v25, 0.0  ;;  %v3158_v59 = vmax.f32 %v3046_v51, 0.0  ;;  %v3159_v23 = vmax.f32 %v3047_v6, 0.0  ;;  %v3160_v27 = vmax.f32 %v3048_v12, 0.0  ;;  %v16582_v51 = vld [vmem:[#allocation29_spill] sm:$0xff] }
 0x2ea   :  { %v3161_v37 = vmax.f32 %v3049_v53, 0.0  ;;  %v3426_v11 = vrot.slane %v3154_v21, 1  ;;  %v3427_v58 = vrot.slane %v3155_v10, 1  ;;  %v3429_v62 = vrot.slane %v3156_v40, 1 }
 0x2eb   :  { %v3431_v29 = vrot.slane %v3157_v30, 1  ;;  %v3433_v48 = vrot.slane %v3158_v59, 1  ;;  %v3434_v54 = vrot.slane %v3159_v23, 1  ;;  %v3436_v18 = vrot.slane %v3160_v27, 1 }
 0x2ec   :  { %v3428_v45 = vsel %vm1046_vm1, %v3426_v11, %v3427_v58  ;;  %v3438_v3 = vrot.slane %v3161_v37, 1  ;;  %v3636_v61 = vsel %vm1348_vm2, %v16574_v38, 0.0  ;;  %v3430_v16 = vsel %vm1046_vm1, %v3427_v58, %v3429_v62 }
 0x2ed   :  { %v3432_v43 = vsel %vm1046_vm1, %v3429_v62, %v3431_v29  ;;  %v3435_v52 = vsel %vm1046_vm1, %v3433_v48, %v3434_v54  ;;  %v3637_v0 = vsel %vm1348_vm2, %v16575_v42, 0.0  ;;  %v3437_v44 = vsel %vm1046_vm1, %v3434_v54, %v3436_v18 }
 0x2ee   :  { %v3439_v20 = vsel %vm1046_vm1, %v3436_v18, %v3438_v3  ;;  %v3638_v17 = vsel %vm1348_vm2, %v3431_v29, 0.0  ;;  %v3639_v15 = vsel %vm1348_vm2, %v3438_v3, 0.0  ;;  %v16577_v5 = vmax.f32 %v16576_v9, 0.0  ;;  %v16599_v9 = vld [vmem:[#allocation61_spill] sm:$0xff] }
 0x2ef   :  { %v16579_v56 = vmax.f32 %v16578_v33, 0.0  ;;  %v3714_v34 = vmax.f32 %v3154_v21, %v3428_v45  ;;  %v3715_v60 = vmax.f32 %v3155_v10, %v3430_v16  ;;  %v3716_v55 = vmax.f32 %v3156_v40, %v3432_v43  ;;  %v16586_v21 = vld [vmem:[#allocation49_spill] sm:$0xff] }
 0x2f0   :  { %v3709_v46 = vmax.f32 %v16577_v5, %v3636_v61  ;;  %v3717_v49 = vmax.f32 %v3157_v30, %v3638_v17  ;;  %v3718_v50 = vmax.f32 %v3158_v59, %v3435_v52  ;;  %v3719_v8 = vmax.f32 %v3159_v23, %v3437_v44 }
 0x2f1   :  { %v3713_v19 = vmax.f32 %v16579_v56, %v3637_v0  ;;  %v3720_v2 = vmax.f32 %v3160_v27, %v3439_v20  ;;  %v3721_v63 = vmax.f32 %v3161_v37, %v3639_v15  ;;  %v16581_v25 = vrot.slane %v16580_v24, 6  ;;  %v16590_v27 = vld [vmem:[#allocation75_spill] sm:$0xff] }
 0x2f2   :  { %v16583_v6 = vrot.slane %v16582_v51, 6  ;;  %v11653_v53 = vmax.f32 %v3714_v34, %v3718_v50  ;;  %v11655_v11 = vmax.f32 %v3715_v60, %v3719_v8  ;;  %v4304_v40 = vrot.slane %v16582_v51, 2  ;;  %v16606_v60 = vld [vmem:[#allocation30_spill] sm:$0xff]  ;;  %v16608_v8 = vld [vmem:[#allocation32_spill] sm:$0xff] }
 0x2f3   :  { %v11646_v41 = vmax.f32 %v3709_v46, %v3713_v19  ;;  %v11661_v30 = vmax.f32 %v3716_v55, %v3720_v2  ;;  %v11663_v59 = vmax.f32 %v3717_v49, %v3721_v63  ;;  %v4305_v23 = vrot.slane %v16580_v24, 2  ;;  %v16607_v55 = vld [vmem:[#allocation80_spill] sm:$0xff]  ;;  %v16609_v2 = vld [vmem:[#allocation67_spill] sm:$0xff] }
 0x2f4   :  { %v3925_v12 = vsel %vm3871_vm3, %v16583_v6, %v16581_v25  ;;  %16584 = vst [vmem:[#allocation109_spill] sm:$0xff] %v11653_v53  ;;  %16585 = vst [vmem:[#allocation131_spill] sm:$0xff] %v11655_v11  ;;  %v4307_v37 = vrot.slane %v16590_v27, 2  ;;  %v3930_v58 = vrot.slane %v11653_v53, 6  ;;  %v3931_v62 = vrot.slane %v11655_v11, 6 }
 0x2f5   :  { %v11658_v10 = vmul.f32 %v16586_v21, %v3925_v12  ;;  %16588 = vst [vmem:[#allocation149_spill] sm:$0xff] %v11661_v30  ;;  %16589 = vst [vmem:[#allocation76_spill] sm:$0xff] %v11663_v59  ;;  %v15100_v29 = vrot.slane %v11646_v41, 2  ;;  %v4311_v48 = vrot.slane %v11653_v53, 2  ;;  %v15101_v54 = vrot.slane %v11661_v30, 6 }
 0x2f6   :  { %v4306_v45 = vsel %vm4252_vm4, %v4304_v40, %v4305_v23  ;;  %v4308_v18 = vsel %vm4252_vm4, %v4305_v23, %v4307_v37  ;;  %v4312_v3 = vrot.slane %v11655_v11, 2  ;;  %v11676_v38 = vsel %vm3871_vm3, %v3930_v58, %v3931_v62  ;;  %v16611_v23 = vld [vmem:[#allocation25_spill] sm:$0xff] }
 0x2f7   :  { %16587 = vst [vmem:[#allocation110_spill] sm:$0xff] %v11658_v10  ;;  %16591 = vst [vmem:[#allocation121_spill] sm:$0xff] %v11676_v38  ;;  %v11679_v61 = vsel %vm3871_vm3, 0.0, %v3930_v58  ;;  %v4310_v16 = vsel %vm4252_vm4, %v4307_v37, %v15100_v29  ;;  %v4314_v43 = vrot.slane %v11661_v30, 2  ;;  %v11688_v52 = vsel %vm3871_vm3, %v3931_v62, %v15101_v54  ;;  %v16612_v37 = vld [vmem:[#allocation68_spill] sm:$0xff]  ;;  %v16613_v62 = vld [vmem:[#allocation111_spill] sm:$0xff] }
 0x2f8   :  { %16592 = vst [vmem:[#allocation135_spill] sm:$0xff] %v11679_v61  ;;  %16593 = vst [vmem:[#allocation54_spill] sm:$0xff] %v11688_v52  ;;  %v11692_v42 = vmul.f32 %v16586_v21, %v11679_v61  ;;  %v11696_v0 = vmul.f32 %v16586_v21, %v11676_v38  ;;  %v11699_v44 = vsel %vm4252_vm4, %v4311_v48, %v4312_v3  ;;  %v15099_v15 = vrot.slane %v11663_v59, 2  ;;  %v11983_v10 = vld [vmem:[%s14510_s0 + $0x2e0] sm:$0xff] }
 0x2f9   :  { %16596 = vst [vmem:[#allocation127_spill] sm:$0xff] %v11699_v44  ;;  %v11703_v20 = vmul.f32 %v16586_v21, %v11688_v52  ;;  %v11706_v17 = vsel %vm4252_vm4, %v4312_v3, %v4314_v43  ;;  %v11710_v5 = vmul.f32 %v16599_v9, %v4306_v45  ;;  %v11713_v46 = vmul.f32 %v16599_v9, %v4308_v18  ;;  %v16614_v3 = vld [vmem:[#allocation112_spill] sm:$0xff] }
 0x2fa   :  { %16594 = vst [vmem:[#allocation57_spill] sm:$0xff] %v11692_v42  ;;  %16595 = vst [vmem:[#allocation124_spill] sm:$0xff] %v11696_v0  ;;  %v11716_v33 = vmul.f32 %v16599_v9, %v4310_v16  ;;  %v11720_v56 = vmul.f32 %v16599_v9, %v11699_v44  ;;  %v11724_v19 = vmul.f32 %v16599_v9, %v11706_v17 }
 0x2fb   :  { %16597 = vst [vmem:[#allocation59_spill] sm:$0xff] %v11703_v20  ;;  %16598 = vst [vmem:[#allocation65_spill] sm:$0xff] %v11706_v17  ;;  %v11729_v34 = vsel %vm4252_vm4, %v4314_v43, %v15099_v15  ;;  %v4567_v49 = vmul.f32 %v16607_v55, %v16606_v60  ;;  %v4571_v50 = vmul.f32 %v16607_v55, %v3925_v12  ;;  %v16615_v15 = vld [vmem:[#allocation132_spill] sm:$0xff] }
 0x2fc   :  { %16600 = vst [vmem:[#allocation128_spill] sm:$0xff] %v11710_v5  ;;  %16601 = vst [vmem:[#allocation138_spill] sm:$0xff] %v11713_v46  ;;  %v4681_v63 = vmul.f32 %v16609_v2, %v16608_v8  ;;  %v11738_v25 = vmul.f32 %v16599_v9, %v11729_v34  ;;  %v4684_v6 = vmul.f32 %v16609_v2, %v16582_v51 }
 0x2fd   :  { %16602 = vst [vmem:[#allocation56_spill] sm:$0xff] %v11716_v33  ;;  %16603 = vst [vmem:[#allocation122_spill] sm:$0xff] %v11720_v56  ;;  %v4685_v40 = vmul.f32 %v16609_v2, %v16580_v24  ;;  %v4807_v58 = vmul.f32 %v16612_v37, %v16611_v23  ;;  %v4623_v48 = vadd.f32 %v4567_v49, %v16613_v62  ;;  %v16618_v62 = vld [vmem:[#allocation86_spill] sm:$0xff] }
 0x2fe   :  { %16604 = vst [vmem:[#allocation123_spill] sm:$0xff] %v11724_v19  ;;  %16605 = vst [vmem:[#allocation137_spill] sm:$0xff] %v11729_v34  ;;  %v4627_v43 = vadd.f32 %v4571_v50, %v16614_v3  ;;  %v4810_v60 = vmul.f32 %v16612_v37, %v4306_v45  ;;  %v4811_v8 = vmul.f32 %v16612_v37, %v4308_v18  ;;  %v16617_v19 = vld [vmem:[#allocation69_spill] sm:$0xff] }
 0x2ff   :  { %16610 = vst [vmem:[#allocation93_spill] sm:$0xff] %v11738_v25  ;;  %v4740_v29 = vadd.f32 %v4684_v6, %v16615_v15  ;;  %v4812_v54 = vmul.f32 %v16612_v37, %v4310_v16  ;;  %v16616_v25 = vld [vmem:[#allocation37_spill] sm:$0xff]  ;;  %v4921_v33 = vmul.f32 %v16617_v19, %v3925_v12  ;;  %v4737_v46 = vadd.f32 %v4681_v63, %v4623_v48 }
 0x300   :  { %v4920_v56 = vmul.f32 %v16617_v19, %v16616_v25  ;;  %v4741_v5 = vadd.f32 %v4685_v40, %v4627_v43  ;;  %v4924_v49 = vmul.f32 %v16617_v19, %v11679_v61  ;;  %v4925_v50 = vmul.f32 %v16617_v19, %v11676_v38  ;;  %v16619_v6 = vld [vmem:[#allocation113_spill] sm:$0xff]  ;;  %16666 = vst [vmem:[#allocation84_spill] sm:$0xff] %v11983_v10 }
 0x301   :  { %v4866_v23 = vadd.f32 %v4810_v60, %v4740_v29  ;;  %v4868_v3 = vadd.f32 %v4812_v54, %v16618_v62  ;;  %v4926_v15 = vmul.f32 %v16617_v19, %v11688_v52  ;;  %v4863_v0 = vadd.f32 %v4807_v58, %v4737_v46  ;;  %v16620_v12 = vld [vmem:[#allocation17_spill] sm:$0xff] }
 0x302   :  { %v4974_v20 = vadd.f32 %v4920_v56, %v16619_v6  ;;  %v4867_v42 = vadd.f32 %v4811_v8, %v4741_v5  ;;  %v5032_v63 = vmul.f32 %v16620_v12, %v16582_v51  ;;  %v5033_v40 = vmul.f32 %v16620_v12, %v16580_v24  ;;  %v16621_v58 = vld [vmem:[#allocation105_spill] sm:$0xff]  ;;  %v12012_v24 = vld [vmem:[%s14510_s0 + $0x2d8] sm:$0xf] }
 0x303   :  { %v4978_v48 = vadd.f32 %v4924_v49, %v4866_v23  ;;  %v4980_v43 = vadd.f32 %v4926_v15, %v4868_v3  ;;  %v5034_v29 = vmul.f32 %v16620_v12, %v16590_v27  ;;  %v5036_v54 = vmul.f32 %v16620_v12, %v11653_v53  ;;  %v16622_v49 = vld [vmem:[#allocation19_spill] sm:$0xff]  ;;  %16672 = vst [vmem:[#allocation92_spill] sm:$0xff] %v12012_v24 }
 0x304   :  { %v4975_v60 = vadd.f32 %v4921_v33, %v4863_v0  ;;  %v4979_v62 = vadd.f32 %v4925_v50, %v4867_v42  ;;  %v5037_v46 = vmul.f32 %v16620_v12, %v11655_v11  ;;  %v5038_v5 = vmul.f32 %v16620_v12, %v11661_v30 }
 0x305   :  { %v5085_v56 = vadd.f32 %v5032_v63, %v4974_v20  ;;  %v5087_v8 = vadd.f32 %v5034_v29, %v16621_v58  ;;  %v5089_v6 = vadd.f32 %v5036_v54, %v4978_v48  ;;  %v5143_v23 = vmul.f32 %v16622_v49, %v4306_v45  ;;  %v16623_v48 = vld [vmem:[#allocation90_spill] sm:$0xff] }
 0x306   :  { %v5086_v3 = vadd.f32 %v5033_v40, %v4975_v60  ;;  %v5090_v15 = vadd.f32 %v5037_v46, %v4979_v62  ;;  %v5091_v52 = vadd.f32 %v5038_v5, %v4980_v43  ;;  %v5144_v38 = vmul.f32 %v16622_v49, %v4308_v18  ;;  %v16624_v40 = vld [vmem:[#allocation62_spill] sm:$0xff]  ;;  %v16625_v60 = vld [vmem:[#allocation21_spill] sm:$0xff] }
 0x307   :  { %v5145_v0 = vmul.f32 %v16622_v49, %v4310_v16  ;;  %v5147_v42 = vmul.f32 %v16622_v49, %v11699_v44  ;;  %v5148_v33 = vmul.f32 %v16622_v49, %v11706_v17  ;;  %v5149_v20 = vmul.f32 %v16622_v49, %v11729_v34  ;;  %v16626_v5 = vld [vmem:[#allocation106_spill] sm:$0xff] }
 0x308   :  { %v5197_v50 = vadd.f32 %v5143_v23, %v5085_v56  ;;  %v5198_v63 = vadd.f32 %v5144_v38, %v5086_v3  ;;  %v5557_v45 = vsel %vm3871_vm3, %v16623_v48, 0.0  ;;  %v5558_v43 = vsel %vm3871_vm3, %v16624_v40, 0.0  ;;  %v16628_v34 = vld [vmem:[#allocation130_spill] sm:$0xff] }
 0x309   :  { %v5199_v18 = vadd.f32 %v5145_v0, %v5087_v8  ;;  %v5201_v29 = vadd.f32 %v5147_v42, %v5089_v6  ;;  %v5202_v16 = vadd.f32 %v5148_v33, %v5090_v15  ;;  %v5203_v54 = vadd.f32 %v5149_v20, %v5091_v52 }
 0x30a   :  { %v5255_v62 = vadd.f32 %v16625_v60, %v5197_v50  ;;  %v5256_v46 = vadd.f32 %v16625_v60, %v5198_v63  ;;  %v16627_v58 = vmax.f32 %v16626_v5, 0.0  ;;  %v16629_v56 = vmax.f32 %v16628_v34, 0.0  ;;  %v16632_v5 = vld [vmem:[#allocation53_spill] sm:$0xff] }
 0x30b   :  { %v11796_v23 = vadd.f32 %v16625_v60, %v5199_v18  ;;  %v5259_v3 = vadd.f32 %v16625_v60, %v5201_v29  ;;  %v5260_v8 = vadd.f32 %v16625_v60, %v5202_v16  ;;  %v11801_v6 = vadd.f32 %v16625_v60, %v5203_v54 }
 0x30c   :  { %v5586_v17 = vmax.f32 %v16627_v58, %v5557_v45  ;;  %v5590_v38 = vmax.f32 %v16629_v56, %v5558_v43  ;;  %v5311_v52 = vmax.f32 %v5255_v62, 0.0  ;;  %v5312_v15 = vmax.f32 %v5256_v46, 0.0 }
 0x30d   :  { %v3928_v42 = vrot.slane %v11646_v41, 6  ;;  %v15107_v33 = vmax.f32 %v11796_v23, 0.0  ;;  %v5315_v20 = vmax.f32 %v5259_v3, 0.0  ;;  %v5316_v34 = vmax.f32 %v5260_v8, 0.0 }
 0x30e   :  { %v5634_v0 = vmax.f32 %v5586_v17, %v5590_v38  ;;  %v15106_v50 = vmax.f32 %v11801_v6, 0.0  ;;  %v5441_v63 = vrot.slane %v5311_v52, 2  ;;  %v5442_v48 = vrot.slane %v5312_v15, 2 }
 0x30f   :  { %v16630_v45 = vrot.slane %v16590_v27, 6  ;;  %v3935_v43 = vrot.slane %v11663_v59, 6  ;;  %v11812_v18 = vrot.slane %v15107_v33, 2  ;;  %v5448_v17 = vrot.slane %v5315_v20, 2 }
 0x310   :  { %v5449_v29 = vrot.slane %v5316_v34, 2  ;;  %v11816_v16 = vrot.slane %v15106_v50, 2  ;;  %v5443_v54 = vsel %vm4252_vm4, %v5441_v63, %v5442_v48  ;;  %v16631_v62 = vrot.slane %v11661_v30, 6  ;;  %v11988_v30 = vld [vmem:[%s14510_s0 + $0x2e8] sm:$0xff] }
 0x311   :  { %v3929_v40 = vsel %vm3871_vm3, %v16630_v45, %v3928_v42  ;;  %v4176_v58 = vmul.f32 %v16632_v5, %v11646_v41  ;;  %v5445_v56 = vsel %vm4252_vm4, %v5442_v48, %v11812_v18  ;;  %v5591_v8 = vmax.f32 %v5311_v52, %v5443_v54  ;;  %16667 = vst [vmem:[#allocation85_spill] sm:$0xff] %v11988_v30 }
 0x312   :  { %v3936_v27 = vsel %vm3871_vm3, %v16631_v62, %v3935_v43  ;;  %v4067_v46 = vmul.f32 %v16586_v21, %v3929_v40  ;;  %v5450_v38 = vsel %vm4252_vm4, %v5448_v17, %v5449_v29  ;;  %v5452_v3 = vsel %vm4252_vm4, %v5449_v29, %v11816_v16 }
 0x313   :  { %v5592_v42 = vmax.f32 %v5312_v15, %v5445_v56  ;;  %v5595_v63 = vmax.f32 %v5315_v20, %v5450_v38  ;;  %v5596_v45 = vmax.f32 %v5316_v34, %v5452_v3  ;;  %v4071_v50 = vmul.f32 %v16586_v21, %v3936_v27  ;;  %v16635_v34 = vld [vmem:[#allocation14_spill] sm:$0xff] }
 0x314   :  { %v4180_v43 = vmul.f32 %v16632_v5, %v11663_v59  ;;  %v4230_v62 = vadd.f32 %v4176_v58, %v4067_v46  ;;  %v16633_v33 = vrot.slane %v11646_v41, 2  ;;  %v16634_v48 = vrot.slane %v11663_v59, 2  ;;  %v16638_v3 = vld [vmem:[#allocation82_spill] sm:$0xff]  ;;  %v12017_v5 = vld [vmem:[%s14510_s0 + $0x2f8] sm:$0xf] }
 0x315   :  { %v5635_v61 = vmax.f32 %v5591_v8, %v5595_v63  ;;  %v5636_v29 = vmax.f32 %v5592_v42, %v5596_v45  ;;  %v4569_v54 = vmul.f32 %v16607_v55, %v16635_v34  ;;  %v4573_v46 = vmul.f32 %v16607_v55, %v3929_v40  ;;  %v16640_v63 = vld [vmem:[#allocation8_spill] sm:$0xff]  ;;  %v16641_v45 = vld [vmem:[#allocation18_spill] sm:$0xff]  ;;  %16673 = vst [vmem:[#allocation12_spill] sm:$0xff] %v12017_v5 }
 0x316   :  { %v4408_v44 = vsel %vm3871_vm3, %v16633_v33, 0.0  ;;  %v4409_v17 = vsel %vm3871_vm3, %v16634_v48, 0.0  ;;  %v4234_v20 = vadd.f32 %v4180_v43, %v4071_v50  ;;  %v11845_v58 = vmul.f32 %v16607_v55, %v3936_v27 }
 0x317   :  { %v4448_v52 = vmul.f32 %v16599_v9, %v4408_v44  ;;  %v4452_v15 = vmul.f32 %v16599_v9, %v4409_v17  ;;  %v5671_v33 = vrot.slane %v5635_v61, 4  ;;  %v11847_v56 = vrot.slane %v5636_v29, 4  ;;  %v16642_v29 = vld [vmem:[#allocation13_spill] sm:$0xff] }
 0x318   :  { %16636 = vst [vmem:[#allocation94_spill] sm:$0xff] %v11845_v58  ;;  %v4683_v8 = vmul.f32 %v16609_v2, %v16638_v3  ;;  %v4625_v50 = vadd.f32 %v4569_v54, %v16640_v63  ;;  %v4629_v43 = vadd.f32 %v4573_v46, %v16641_v45  ;;  %v4687_v48 = vmul.f32 %v16609_v2, %v11646_v41  ;;  %v11886_v63 = vld [vmem:[%s14510_s0 + $0x278] sm:$0xf]  ;;  %v11958_v2 = vld [vmem:[%s14510_s0 + $0x2c0] sm:$0xff] }
 0x319   :  { %v11849_v38 = vadd.f32 %v4448_v52, %v4230_v62  ;;  %v11853_v42 = vadd.f32 %v4452_v15, %v4234_v20  ;;  %v5673_v34 = vsel %vm5655_vm5, %v5671_v33, %v11847_v56  ;;  %v5698_v61 = vsel %vm5655_vm5, %v5634_v0, %v5671_v33  ;;  %v11868_v15 = vld [vmem:[%s14510_s0 + $0x260] sm:$0xff]  ;;  %v11876_v0 = vld [vmem:[%s14510_s0 + $0x268] sm:$0xff]  ;;  %v11881_v33 = vld [vmem:[%s14510_s0 + $0x270] sm:$0xff]  ;;  %16647 = vst [vmem:[#allocation108_spill] sm:$0xff] %v11886_v63 }
 0x31a   :  { %v4809_v62 = vmul.f32 %v16612_v37, %v16642_v29  ;;  %v4813_v52 = vmul.f32 %v16612_v37, %v4408_v44  ;;  %16643 = vst [vmem:[#allocation71_spill] sm:$0xff] %v11868_v15  ;;  %v6244_v20 = vpack.c.bf16 %v5673_v34, %v5698_v61  ;;  %v4739_v54 = vadd.f32 %v4683_v8, %v4625_v50  ;;  %v11902_v34 = vld [vmem:[%s14510_s0 + $0x288] sm:$0xff]  ;;  %v11909_v29 = vld [vmem:[%s14510_s0 + $0x290] sm:$0xff] }
 0x31b   :  { %16637 = vst [vmem:[#allocation91_spill] sm:$0xff] %v11849_v38  ;;  %16639 = vst [vmem:[#allocation60_spill] sm:$0xff] %v11853_v42  ;;  %v4743_v46 = vadd.f32 %v4687_v48, %v4629_v43  ;;  %v11871_v3 = vmul.f32 %v16612_v37, %v4409_v17  ;;  %v4923_v8 = vmul.f32 %v16617_v19, %v3929_v40  ;;  %v11897_v48 = vld [vmem:[%s14510_s0 + $0x280] sm:$0xff]  ;;  %v11929_v42 = vld [vmem:[%s14510_s0 + $0x2a8] sm:$0xff]  ;;  %v435_v21 = vrot.slane %v12012_v24, 7 }
 0x31c   :  { %16645 = vst [vmem:[#allocation114_spill] sm:$0xff] %v11876_v0  ;;  %16646 = vst [vmem:[#allocation117_spill] sm:$0xff] %v11881_v33  ;;  %v4927_v50 = vmul.f32 %v16617_v19, %v3936_v27  ;;  %v5035_v45 = vmul.f32 %v16620_v12, %v11646_v41  ;;  %v5039_v43 = vmul.f32 %v16620_v12, %v11663_v59  ;;  %6245 = vmatpush1.bf16.msra.mxu0 %v6244_v20  ;;  %v11915_v59 = vld [vmem:[%s14510_s0 + $0x298] sm:$0xf]  ;;  %v11934_v20 = vld [vmem:[%s14510_s0 + $0x2b0] sm:$0xff] }
 0x31d   :  { %16644 = vst [vmem:[#allocation34_spill] sm:$0xff] %v11871_v3  ;;  %16648 = vst [vmem:[#allocation115_spill] sm:$0xff] %v11897_v48  ;;  %v4865_v40 = vadd.f32 %v4809_v62, %v4739_v54  ;;  %v4869_v61 = vadd.f32 %v4813_v52, %v4743_v46  ;;  %v5146_v27 = vmul.f32 %v16622_v49, %v4408_v44  ;;  %v16651_v3 = vmov 0.0|0.0   ;;  %v11924_v46 = vld [vmem:[%s14510_s0 + $0x2a0] sm:$0xff] }
 0x31e   :  { %16649 = vst [vmem:[#allocation118_spill] sm:$0xff] %v11902_v34  ;;  %v5150_v41 = vmul.f32 %v16622_v49, %v4409_v17  ;;  %16650 = vst [vmem:[#allocation133_spill] sm:$0xff] %v11909_v29  ;;  %6246 = vmatprep.subr.bf16.mxu0 %v16651_v3  ;;  %v410_v62 = vrot.slane %v11876_v0, 7  ;;  %v412_v44 = vrot.slane %v11881_v33, 7  ;;  %v414_v17 = vrot.slane %v11886_v63, 7 }
 0x31f   :  { %16652 = vst [vmem:[#allocation116_spill] sm:$0xff] %v11915_v59  ;;  %v4977_v52 = vadd.f32 %v4923_v8, %v4865_v40  ;;  %v4981_v54 = vadd.f32 %v4927_v50, %v4869_v61  ;;  %16653 = vst [vmem:[#allocation134_spill] sm:$0xff] %v11924_v46  ;;  %v416_v58 = vrot.slane %v11897_v48, 7  ;;  %v417_v8 = vrot.slane %v11902_v34, 7  ;;  %v11941_v50 = vld [vmem:[%s14510_s0 + $0x2b8] sm:$0xf] }
 0x320   :  { %16654 = vst [vmem:[#allocation119_spill] sm:$0xff] %v11929_v42  ;;  %16655 = vst [vmem:[#allocation45_spill] sm:$0xff] %v11934_v20  ;;  %v16657_v40 = vrot.slane %v11868_v15, 7  ;;  %v11949_v38 = vsel %vm273_vm0, %v410_v62, %v412_v44  ;;  %v11952_v49 = vsel %vm273_vm0, %v412_v44, %v414_v17  ;;  %v419_v12 = vrot.slane %v11909_v29, 7 }
 0x321   :  { %16656 = vst [vmem:[#allocation120_spill] sm:$0xff] %v11941_v50  ;;  %16659 = vst [vmem:[#allocation129_spill] sm:$0xff] %v11949_v38  ;;  %v5088_v19 = vadd.f32 %v5035_v45, %v4977_v52  ;;  %v5092_v37 = vadd.f32 %v5039_v43, %v4981_v54  ;;  %v421_v44 = vrot.slane %v11915_v59, 7  ;;  %v11972_v45 = vld [vmem:[%s14510_s0 + $0x2d0] sm:$0xff]  ;;  %v423_v17 = vrot.slane %v11924_v46, 7 }
 0x322   :  { %v11946_v61 = vsel %vm273_vm0, %v16657_v40, %v410_v62  ;;  %16660 = vst [vmem:[#allocation48_spill] sm:$0xff] %v11952_v49  ;;  %16661 = vst [vmem:[#allocation136_spill] sm:$0xff] %v11958_v2  ;;  %v11963_v40 = vld [vmem:[%s14510_s0 + $0x2c8] sm:$0xff]  ;;  %v11966_v62 = vsel %vm273_vm0, %v416_v58, %v417_v8  ;;  %v11975_v43 = vsel %vm273_vm0, %v417_v8, %v419_v12  ;;  %v424_v52 = vrot.slane %v11929_v42, 7 }
 0x323   :  { %16658 = vst [vmem:[#allocation52_spill] sm:$0xff] %v11946_v61  ;;  %16662 = vst [vmem:[#allocation50_spill] sm:$0xff] %v11963_v40  ;;  %v426_v54 = vrot.slane %v11934_v20, 7  ;;  %v5200_v55 = vadd.f32 %v5146_v27, %v5088_v19  ;;  %v5204_v9 = vadd.f32 %v5150_v41, %v5092_v37  ;;  %v11991_v8 = vsel %vm273_vm0, %v419_v12, %v421_v44  ;;  %v11997_v19 = vld [vmem:[%s14510_s0 + $0x2f0] sm:$0xff] }
 0x324   :  { %16663 = vst [vmem:[#allocation28_spill] sm:$0xff] %v11966_v62  ;;  %16664 = vst [vmem:[#allocation102_spill] sm:$0xff] %v11972_v45  ;;  %v428_v11 = vrot.slane %v11941_v50, 7  ;;  %v12000_v37 = vsel %vm273_vm0, %v423_v17, %v424_v52  ;;  %v430_v41 = vrot.slane %v11958_v2, 7  ;;  %v431_v53 = vrot.slane %v11963_v40, 7 }
 0x325   :  { %16665 = vst [vmem:[#allocation83_spill] sm:$0xff] %v11975_v43  ;;  %16668 = vst [vmem:[#allocation47_spill] sm:$0xff] %v11991_v8  ;;  %v12003_v27 = vsel %vm273_vm0, %v424_v52, %v426_v54  ;;  %v5258_v12 = vadd.f32 %v16625_v60, %v5200_v55  ;;  %v5262_v44 = vadd.f32 %v16625_v60, %v5204_v9  ;;  %v12022_v52 = vld [vmem:[%s14510_s0 + $0x300] sm:$0xff]  ;;  %v433_v9 = vrot.slane %v11972_v45, 7  ;;  %v12031_v55 = vld [vmem:[%s14510_s0 + $0x308] sm:$0xff] }
 0x326   :  { %16669 = vst [vmem:[#allocation51_spill] sm:$0xff] %v11997_v19  ;;  %16670 = vst [vmem:[#allocation31_spill] sm:$0xff] %v12000_v37  ;;  %v12025_v51 = vsel %vm273_vm0, %v426_v54, %v428_v11  ;;  %v12034_v60 = vsel %vm273_vm0, %v430_v41, %v431_v53  ;;  %v437_v25 = vrot.slane %v11983_v10, 7  ;;  %v438_v47 = vrot.slane %v11988_v30, 7  ;;  %v12042_v11 = vld [vmem:[%s14510_s0 + $0x310] sm:$0xff] }
 0x327   :  { %16671 = vst [vmem:[#allocation58_spill] sm:$0xff] %v12003_v27  ;;  %16674 = vst [vmem:[#allocation64_spill] sm:$0xff] %v12022_v52  ;;  %v5314_v35 = vmax.f32 %v5258_v12, 0.0  ;;  %v5318_v26 = vmax.f32 %v5262_v44, 0.0  ;;  %v12045_v54 = vsel %vm273_vm0, %v431_v53, %v433_v9  ;;  %v440_v13 = vrot.slane %v11997_v19, 7 }
 0x328   :  { %16675 = vst [vmem:[#allocation11_spill] sm:$0xff] %v12025_v51  ;;  %16676 = vst [vmem:[#allocation35_spill] sm:$0xff] %v12031_v55  ;;  %v12049_v39 = vsel %vm273_vm0, %v433_v9, %v435_v21  ;;  %v12052_v14 = vsel %vm273_vm0, %v437_v25, %v438_v47  ;;  %v442_v28 = vrot.slane %v12017_v5, 7  ;;  %v444_v12 = vrot.slane %v12022_v52, 7 }
 0x329   :  { %16677 = vst [vmem:[#allocation89_spill] sm:$0xff] %v12034_v60  ;;  %16678 = vst [vmem:[#allocation46_spill] sm:$0xff] %v12042_v11  ;;  %v5446_v44 = vrot.slane %v5314_v35, 2  ;;  %v5453_v57 = vrot.slane %v5318_v26, 2  ;;  %v12057_v4 = vsel %vm273_vm0, %v438_v47, %v440_v13  ;;  %v445_v53 = vrot.slane %v12031_v55, 7 }
 0x32a   :  { %16679 = vst [vmem:[#allocation22_spill] sm:$0xff] %v12045_v54  ;;  %16680 = vst [vmem:[#allocation142_spill] sm:$0xff] %v12049_v39  ;;  %v12061_v36 = vsel %vm273_vm0, %v440_v13, %v442_v28  ;;  %v16684_v9 = vrot.slane %v11868_v15, 7  ;;  %v12070_v7 = vsel %vm273_vm0, 0.0, %v416_v58  ;;  %v16687_v28 = vmax.f32 %v11796_v23, 0.0  ;;  %v16696_v23 = vld [vmem:[#allocation55_spill] sm:$0xff] }
 0x32b   :  { %16681 = vst [vmem:[#allocation143_spill] sm:$0xff] %v12052_v14  ;;  %16682 = vst [vmem:[#allocation146_spill] sm:$0xff] %v12057_v4  ;;  %v5447_v31 = vsel %vm4252_vm4, %v11812_v18, %v5446_v44  ;;  %v5454_v47 = vsel %vm4252_vm4, %v11816_v16, %v5453_v57  ;;  %v5559_v32 = vsel %vm3871_vm3, %v5446_v44, 0.0  ;;  %v5560_v13 = vsel %vm3871_vm3, %v5453_v57, 0.0 }
 0x32c   :  { %16683 = vst [vmem:[#allocation147_spill] sm:$0xff] %v12061_v36  ;;  %v12067_v22 = vsel %vm273_vm0, 0.0, %v16684_v9  ;;  %16686 = vst [vmem:[#allocation41_spill] sm:$0xff] %v12070_v7  ;;  %v5593_v21 = vmax.f32 %v16687_v28, %v5447_v31  ;;  %v5594_v36 = vmax.f32 %v5314_v35, %v5559_v32  ;;  %v16688_v9 = vmax.f32 %v11801_v6, 0.0 }
 0x32d   :  { %16685 = vst [vmem:[#allocation36_spill] sm:$0xff] %v12067_v22  ;;  %v5598_v52 = vmax.f32 %v5318_v26, %v5560_v13  ;;  %v12083_v58 = vsel %vm273_vm0, %v444_v12, %v445_v53  ;;  %v16690_v18 = vrot.slane %v12042_v11, 7  ;;  %v12091_v16 = vsel %vm273_vm0, 0.0, %v423_v17 }
 0x32e   :  { %v5597_v1 = vmax.f32 %v16688_v9, %v5454_v47  ;;  %16689 = vst [vmem:[#allocation87_spill] sm:$0xff] %v12083_v58  ;;  %16692 = vst [vmem:[#allocation140_spill] sm:$0xff] %v12091_v16  ;;  %v12094_v57 = vsel %vm273_vm0, 0.0, %v430_v41  ;;  %v12097_v32 = vsel %vm273_vm0, 0.0, %v437_v25  ;;  %v12100_v26 = vsel %vm273_vm0, 0.0, %v444_v12 }
 0x32f   :  { %v12088_v5 = vsel %vm273_vm0, %v445_v53, %v16690_v18  ;;  %16693 = vst [vmem:[#allocation75_spill] sm:$0xff] %v12094_v57  ;;  %v5638_v35 = vmax.f32 %v5594_v36, %v5598_v52  ;;  %16694 = vst [vmem:[#allocation30_spill] sm:$0xff] %v12097_v32  ;;  %v12104_v6 = vmul.f32 %v16696_v23, %v12067_v22 }
 0x330   :  { %16691 = vst [vmem:[#allocation139_spill] sm:$0xff] %v12088_v5  ;;  %v5637_v31 = vmax.f32 %v5593_v21, %v5597_v1  ;;  %16695 = vst [vmem:[#allocation32_spill] sm:$0xff] %v12100_v26  ;;  %v12108_v44 = vmul.f32 %v16696_v23, %v11946_v61  ;;  %v12112_v17 = vmul.f32 %v16696_v23, %v11949_v38 }
 0x331   :  { %v12116_v1 = vmul.f32 %v16696_v23, %v11952_v49  ;;  %v5676_v25 = vrot.slane %v5638_v35, 4  ;;  %v12120_v41 = vmul.f32 %v16696_v23, %v12070_v7  ;;  %v12124_v52 = vmul.f32 %v16696_v23, %v11966_v62 }
 0x332   :  { %v5674_v36 = vrot.slane %v5637_v31, 4  ;;  %v12128_v12 = vmul.f32 %v16696_v23, %v11975_v43  ;;  %v12132_v53 = vmul.f32 %v16696_v23, %v11991_v8  ;;  %v12136_v21 = vmul.f32 %v16696_v23, %v12091_v16 }
 0x333   :  { %v12140_v47 = vmul.f32 %v16696_v23, %v12000_v37  ;;  %v12147_v9 = vmul.f32 %v16696_v23, %v12003_v27  ;;  %v12151_v18 = vmul.f32 %v16696_v23, %v12025_v51  ;;  %v12155_v35 = vmul.f32 %v16696_v23, %v12094_v57 }
 0x334   :  { %v5675_v13 = vsel %vm5655_vm5, %v11847_v56, %v5674_v36  ;;  %v5677_v28 = vsel %vm5655_vm5, %v5674_v36, %v5676_v25  ;;  %v12159_v26 = vmul.f32 %v16696_v23, %v12034_v60  ;;  %v12163_v56 = vmul.f32 %v16696_v23, %v12045_v54  ;;  %v12209_v60 = vld [vmem:[%s14510_s0 + $0x240] sm:$0xff] }
 0x335   :  { %v6247_v31 = vpack.c.bf16 %v5677_v28, %v5675_v13  ;;  %v12167_v36 = vmul.f32 %v16696_v23, %v12049_v39  ;;  %v12171_v25 = vmul.f32 %v16696_v23, %v12097_v32  ;;  %v12175_v13 = vmul.f32 %v16696_v23, %v12052_v14  ;;  %v16698_v32 = vld [vmem:[#allocation98_spill] sm:$0xff]  ;;  %16699 = vst [vmem:[#allocation111_spill] sm:$0xff] %v12209_v60 }
 0x336   :  { %v12179_v28 = vmul.f32 %v16696_v23, %v12057_v4  ;;  %v12183_v54 = vmul.f32 %v16696_v23, %v12083_v58  ;;  %v12187_v39 = vmul.f32 %v16696_v23, %v12088_v5  ;;  %v6356_v4 = vld [vmem:[%s14510_s0 + $0x228] sm:$0xff]  ;;  %v6357_v58 = vld [vmem:[%s14510_s0 + $0x230] sm:$0xff]  ;;  %v6358_v5 = vld [vmem:[%s14510_s0 + $0x238] sm:$0xf]  ;;  %v903_v27 = vmul.f32 %v16698_v32, %v11868_v15 }
 0x337   :  { %16697 = vst [vmem:[#allocation25_spill] sm:$0xff] %v12171_v25  ;;  %6248 = vmatpush1.bf16.msra.mxu0 %v6247_v31  ;;  %v6355_v25 = vld [vmem:[%s14510_s0 + $0x220] sm:$0xff]  ;;  %v896_v31 = vmul.f32 %v6356_v4, %v16698_v32  ;;  %v897_v23 = vmul.f32 %v6357_v58, %v16698_v32  ;;  %v899_v4 = vmul.f32 %v12209_v60, %v16698_v32  ;;  %v12230_v60 = vld [vmem:[%s14510_s0 + $0x258] sm:$0xf] }
 0x338   :  { %v895_v14 = vmul.f32 %v6355_v25, %v16698_v32  ;;  %6249 = vmatprep.subr.bf16.mxu0 %v16651_v3  ;;  %v898_v25 = vmul.f32 %v6358_v5, %v16698_v32  ;;  %v12216_v3 = vld [vmem:[%s14510_s0 + $0x248] sm:$0xff]  ;;  %v12223_v5 = vld [vmem:[%s14510_s0 + $0x250] sm:$0xff]  ;;  %16702 = vst [vmem:[#allocation86_spill] sm:$0xff] %v12230_v60  ;;  %v902_v51 = vmul.f32 %v12230_v60, %v16698_v32 }
 0x339   :  { %16700 = vst [vmem:[#allocation112_spill] sm:$0xff] %v12216_v3  ;;  %v900_v58 = vmul.f32 %v12216_v3, %v16698_v32  ;;  %16701 = vst [vmem:[#allocation132_spill] sm:$0xff] %v12223_v5  ;;  %v901_v57 = vmul.f32 %v12223_v5, %v16698_v32  ;;  %v904_v3 = vmul.f32 %v16698_v32, %v11876_v0  ;;  %v16709_v0 = vld [vmem:[#allocation125_spill] sm:$0xff] }
 0x33a   :  { %v905_v37 = vmul.f32 %v16698_v32, %v11881_v33  ;;  %v906_v5 = vmul.f32 %v16698_v32, %v11886_v63  ;;  %v907_v16 = vmul.f32 %v16698_v32, %v11897_v48  ;;  %v908_v8 = vmul.f32 %v16698_v32, %v11902_v34  ;;  %v16705_v34 = vld [vmem:[#allocation95_spill] sm:$0xff]  ;;  %v16706_v48 = vld [vmem:[#allocation96_spill] sm:$0xff] }
 0x33b   :  { %v909_v60 = vmul.f32 %v16698_v32, %v11909_v29  ;;  %v910_v43 = vmul.f32 %v16698_v32, %v11915_v59  ;;  %v911_v62 = vmul.f32 %v16698_v32, %v11924_v46  ;;  %v912_v7 = vmul.f32 %v16698_v32, %v11929_v42  ;;  %v16703_v59 = vld [vmem:[#allocation97_spill] sm:$0xff]  ;;  %v16704_v29 = vld [vmem:[#allocation27_spill] sm:$0xff]  ;;  %v16708_v33 = vld [vmem:[#allocation88_spill] sm:$0xff] }
 0x33c   :  { %v913_v49 = vmul.f32 %v16698_v32, %v11934_v20  ;;  %v914_v38 = vmul.f32 %v16698_v32, %v11941_v50  ;;  %v915_v61 = vmul.f32 %v16698_v32, %v11958_v2  ;;  %v916_v22 = vmul.f32 %v16698_v32, %v11963_v40  ;;  %v16707_v63 = vld [vmem:[#allocation99_spill] sm:$0xff] }
 0x33d   :  { %v917_v10 = vmul.f32 %v16698_v32, %v11972_v45  ;;  %v918_v46 = vmul.f32 %v16698_v32, %v12012_v24  ;;  %v920_v42 = vmul.f32 %v16698_v32, %v11988_v30  ;;  %v921_v20 = vmul.f32 %v16698_v32, %v11997_v19 }
 0x33e   :  { %v924_v50 = vmul.f32 %v16698_v32, %v12031_v55  ;;  %v925_v2 = vmul.f32 %v16698_v32, %v12042_v11  ;;  %v12275_v40 = vadd.f32 %v895_v14, %v16703_v59  ;;  %v12278_v45 = vadd.f32 %v896_v31, %v16704_v29  ;;  %v16710_v14 = vld [vmem:[#allocation16_spill] sm:$0xff] }
 0x33f   :  { %v12281_v24 = vadd.f32 %v897_v23, %v16705_v34  ;;  %v12284_v30 = vadd.f32 %v898_v25, %v16706_v48  ;;  %v12287_v19 = vadd.f32 %v899_v4, %v16707_v63  ;;  %v12290_v55 = vadd.f32 %v900_v58, %v16708_v33  ;;  %v16712_v23 = vld [vmem:[#allocation117_spill] sm:$0xff]  ;;  %v16729_v4 = vld [vmem:[#allocation136_spill] sm:$0xff] }
 0x340   :  { %v12293_v32 = vadd.f32 %v901_v57, %v16709_v0  ;;  %v12296_v59 = vadd.f32 %v902_v51, %v16710_v14  ;;  %v12299_v29 = vadd.f32 %v903_v27, %v12104_v6  ;;  %v12302_v34 = vadd.f32 %v904_v3, %v12108_v44 }
 0x341   :  { %v12305_v48 = vadd.f32 %v905_v37, %v12112_v17  ;;  %v12308_v63 = vadd.f32 %v906_v5, %v12116_v1  ;;  %v12311_v33 = vadd.f32 %v907_v16, %v12120_v41  ;;  %v12314_v0 = vadd.f32 %v908_v8, %v12124_v52  ;;  %v16714_v17 = vld [vmem:[#allocation115_spill] sm:$0xff]  ;;  %v16715_v1 = vld [vmem:[#allocation118_spill] sm:$0xff]  ;;  %v16718_v52 = vld [vmem:[#allocation116_spill] sm:$0xff] }
 0x342   :  { %v12317_v51 = vadd.f32 %v909_v60, %v12128_v12  ;;  %v12320_v27 = vadd.f32 %v910_v43, %v12132_v53  ;;  %v12323_v3 = vadd.f32 %v911_v62, %v12136_v21  ;;  %v12326_v37 = vadd.f32 %v912_v7, %v12140_v47  ;;  %v16730_v5 = vld [vmem:[#allocation50_spill] sm:$0xff] }
 0x343   :  { %v12329_v57 = vadd.f32 %v913_v49, %v12147_v9  ;;  %v12332_v16 = vadd.f32 %v914_v38, %v12151_v18  ;;  %v12335_v8 = vadd.f32 %v915_v61, %v12155_v35  ;;  %v12338_v60 = vadd.f32 %v916_v22, %v12159_v26  ;;  %v16711_v26 = vld [vmem:[#allocation114_spill] sm:$0xff]  ;;  %v16723_v9 = vld [vmem:[#allocation119_spill] sm:$0xff] }
 0x344   :  { %v12341_v43 = vadd.f32 %v917_v10, %v12163_v56  ;;  %v12344_v62 = vadd.f32 %v918_v46, %v12167_v36  ;;  %v12347_v7 = vadd.f32 %v920_v42, %v12175_v13  ;;  %v12350_v49 = vadd.f32 %v921_v20, %v12179_v28  ;;  %v16713_v46 = vld [vmem:[#allocation108_spill] sm:$0xff]  ;;  %v16726_v36 = vld [vmem:[#allocation45_spill] sm:$0xff] }
 0x345   :  { %v12353_v38 = vadd.f32 %v924_v50, %v12183_v54  ;;  %v12356_v61 = vadd.f32 %v925_v2, %v12187_v39  ;;  %v1182_v22 = vrot.slane %v11868_v15, 1  ;;  %v1183_v10 = vrot.slane %v16711_v26, 1  ;;  %v16717_v50 = vld [vmem:[#allocation133_spill] sm:$0xff]  ;;  %v16719_v2 = vld [vmem:[#allocation134_spill] sm:$0xff]  ;;  %v16727_v28 = vld [vmem:[#allocation120_spill] sm:$0xff] }
 0x346   :  { %v1185_v6 = vrot.slane %v16712_v23, 1  ;;  %v1187_v44 = vrot.slane %v16713_v46, 1  ;;  %v1189_v42 = vrot.slane %v16714_v17, 1  ;;  %v1190_v41 = vrot.slane %v16715_v1, 1  ;;  %v16743_v1 = vld [vmem:[#allocation64_spill] sm:$0xff] }
 0x347   :  { %v12365_v20 = vsel %vm1046_vm1, %v1182_v22, %v1183_v10  ;;  %v1192_v54 = vrot.slane %v16717_v50, 1  ;;  %v1194_v39 = vrot.slane %v16718_v52, 1  ;;  %v1196_v12 = vrot.slane %v16719_v2, 1  ;;  %v16731_v22 = vld [vmem:[#allocation102_spill] sm:$0xff]  ;;  %v16740_v2 = vld [vmem:[#allocation51_spill] sm:$0xff]  ;;  %v16742_v50 = vld [vmem:[#allocation12_spill] sm:$0xff] }
 0x348   :  { %16716 = vst [vmem:[#allocation113_spill] sm:$0xff] %v12365_v20  ;;  %v12371_v53 = vsel %vm1046_vm1, %v1183_v10, %v1185_v6  ;;  %v12374_v21 = vsel %vm1046_vm1, %v1185_v6, %v1187_v44  ;;  %v12377_v47 = vsel %vm1046_vm1, %v1189_v42, %v1190_v41  ;;  %v1197_v18 = vrot.slane %v16723_v9, 1  ;;  %v12397_v6 = vld [vmem:[%s14510_s0 + $0x318] sm:$0xf] }
 0x349   :  { %16720 = vst [vmem:[#allocation105_spill] sm:$0xff] %v12371_v53  ;;  %16721 = vst [vmem:[#allocation90_spill] sm:$0xff] %v12374_v21  ;;  %v12381_v35 = vsel %vm1046_vm1, %v1190_v41, %v1192_v54  ;;  %v12384_v56 = vsel %vm1046_vm1, %v1192_v54, %v1194_v39  ;;  %v1199_v13 = vrot.slane %v16726_v36, 1  ;;  %v1201_v31 = vrot.slane %v16727_v28, 1  ;;  %v16735_v54 = vld [vmem:[#allocation92_spill] sm:$0xff] }
 0x34a   :  { %16722 = vst [vmem:[#allocation62_spill] sm:$0xff] %v12377_v47  ;;  %16724 = vst [vmem:[#allocation106_spill] sm:$0xff] %v12381_v35  ;;  %v12389_v25 = vsel %vm1046_vm1, %v1196_v12, %v1197_v18  ;;  %v1203_v58 = vrot.slane %v16729_v4, 1  ;;  %v1204_v14 = vrot.slane %v16730_v5, 1  ;;  %v1206_v10 = vrot.slane %v16731_v22, 1  ;;  %v16736_v28 = vld [vmem:[#allocation84_spill] sm:$0xff] }
 0x34b   :  { %16725 = vst [vmem:[#allocation130_spill] sm:$0xff] %v12384_v56  ;;  %16728 = vst [vmem:[#allocation14_spill] sm:$0xff] %v12389_v25  ;;  %v12400_v42 = vsel %vm1046_vm1, %v1197_v18, %v1199_v13  ;;  %v12403_v41 = vsel %vm1046_vm1, %v1199_v13, %v1201_v31  ;;  %v1208_v12 = vrot.slane %v16735_v54, 1  ;;  %v1210_v36 = vrot.slane %v16736_v28, 1  ;;  %v16739_v5 = vld [vmem:[#allocation85_spill] sm:$0xff]  ;;  %v16744_v54 = vld [vmem:[#allocation35_spill] sm:$0xff] }
 0x34c   :  { %16732 = vst [vmem:[#allocation82_spill] sm:$0xff] %v12397_v6  ;;  %16733 = vst [vmem:[#allocation8_spill] sm:$0xff] %v12400_v42  ;;  %v12408_v4 = vsel %vm1046_vm1, %v1203_v58, %v1204_v14  ;;  %v12411_v22 = vsel %vm1046_vm1, %v1204_v14, %v1206_v10  ;;  %v1211_v9 = vrot.slane %v16739_v5, 1  ;;  %v1213_v52 = vrot.slane %v16740_v2, 1 }
 0x34d   :  { %16734 = vst [vmem:[#allocation18_spill] sm:$0xff] %v12403_v41  ;;  %16737 = vst [vmem:[#allocation13_spill] sm:$0xff] %v12408_v4  ;;  %v12416_v18 = vsel %vm1046_vm1, %v1206_v10, %v1208_v12  ;;  %v15239_v13 = vrot.slane %v16742_v50, 1  ;;  %v1217_v17 = vrot.slane %v16743_v1, 1  ;;  %v1218_v46 = vrot.slane %v16744_v54, 1 }
 0x34e   :  { %16738 = vst [vmem:[#allocation97_spill] sm:$0xff] %v12411_v22  ;;  %16741 = vst [vmem:[#allocation27_spill] sm:$0xff] %v12416_v18  ;;  %v12422_v28 = vsel %vm1046_vm1, %v1210_v36, %v1211_v9  ;;  %v12425_v58 = vsel %vm1046_vm1, %v1211_v9, %v1213_v52  ;;  %v1220_v14 = vrot.slane %v12042_v11, 1  ;;  %v15241_v5 = vrot.slane %v12397_v6, 1 }
 0x34f   :  { %16745 = vst [vmem:[#allocation95_spill] sm:$0xff] %v12422_v28  ;;  %16746 = vst [vmem:[#allocation96_spill] sm:$0xff] %v12425_v58  ;;  %v12432_v10 = vsel %vm1046_vm1, %v1213_v52, %v15239_v13  ;;  %v12435_v2 = vsel %vm1046_vm1, %v1217_v17, %v1218_v46  ;;  %v12438_v54 = vsel %vm1348_vm2, %v1187_v44, 0.0  ;;  %v12441_v36 = vsel %vm1348_vm2, %v1194_v39, 0.0  ;;  %v16755_v44 = vld [vmem:[#allocation126_spill] sm:$0xff] }
 0x350   :  { %16747 = vst [vmem:[#allocation99_spill] sm:$0xff] %v12432_v10  ;;  %16748 = vst [vmem:[#allocation88_spill] sm:$0xff] %v12435_v2  ;;  %v12444_v9 = vsel %vm1046_vm1, %v1218_v46, %v1220_v14  ;;  %v12449_v11 = vsel %vm1046_vm1, %v1220_v14, %v15241_v5  ;;  %v12452_v52 = vsel %vm1348_vm2, %v1201_v31, 0.0  ;;  %v12455_v17 = vsel %vm1348_vm2, %v1208_v12, 0.0 }
 0x351   :  { %16749 = vst [vmem:[#allocation125_spill] sm:$0xff] %v12438_v54  ;;  %16750 = vst [vmem:[#allocation16_spill] sm:$0xff] %v12441_v36  ;;  %v1456_v13 = vmul.f32 %v16755_v44, %v12365_v20  ;;  %v1457_v39 = vmul.f32 %v16755_v44, %v12371_v53  ;;  %v1458_v46 = vmul.f32 %v16755_v44, %v12374_v21 }
 0x352   :  { %16751 = vst [vmem:[#allocation150_spill] sm:$0xff] %v12444_v9  ;;  %16752 = vst [vmem:[#allocation151_spill] sm:$0xff] %v12449_v11  ;;  %v1459_v6 = vmul.f32 %v16755_v44, %v12438_v54  ;;  %v1460_v14 = vmul.f32 %v16755_v44, %v12377_v47  ;;  %v1461_v31 = vmul.f32 %v16755_v44, %v12381_v35 }
 0x353   :  { %16753 = vst [vmem:[#allocation152_spill] sm:$0xff] %v12452_v52  ;;  %16754 = vst [vmem:[#allocation153_spill] sm:$0xff] %v12455_v17  ;;  %v1462_v12 = vmul.f32 %v16755_v44, %v12384_v56  ;;  %v1463_v5 = vmul.f32 %v16755_v44, %v12441_v36  ;;  %v1464_v50 = vmul.f32 %v16755_v44, %v12389_v25 }
 0x354   :  { %v1465_v2 = vmul.f32 %v16755_v44, %v12400_v42  ;;  %v1466_v1 = vmul.f32 %v16755_v44, %v12403_v41  ;;  %v1467_v28 = vmul.f32 %v16755_v44, %v12452_v52  ;;  %v1468_v35 = vmul.f32 %v16755_v44, %v12408_v4 }
 0x355   :  { %v1469_v56 = vmul.f32 %v16755_v44, %v12411_v22  ;;  %v1470_v36 = vmul.f32 %v16755_v44, %v12416_v18  ;;  %v1471_v25 = vmul.f32 %v16755_v44, %v12455_v17  ;;  %v1473_v42 = vmul.f32 %v16755_v44, %v12425_v58  ;;  %v16756_v22 = vld [vmem:[#allocation66_spill] sm:$0xff]  ;;  %v16757_v18 = vld [vmem:[#allocation81_spill] sm:$0xff]  ;;  %v16758_v17 = vld [vmem:[#allocation72_spill] sm:$0xff] }
 0x356   :  { %v1474_v41 = vmul.f32 %v16755_v44, %v12432_v10  ;;  %v1477_v52 = vmul.f32 %v16755_v44, %v12444_v9  ;;  %v1478_v4 = vmul.f32 %v16755_v44, %v12449_v11  ;;  %v1559_v47 = vadd.f32 %v16756_v22, %v12275_v40  ;;  %v16759_v58 = vld [vmem:[#allocation145_spill] sm:$0xff]  ;;  %v16761_v9 = vld [vmem:[#allocation38_spill] sm:$0xff]  ;;  %v16762_v44 = vld [vmem:[#allocation107_spill] sm:$0xff] }
 0x357   :  { %v1560_v54 = vadd.f32 %v16757_v18, %v12278_v45  ;;  %v1561_v21 = vadd.f32 %v16758_v17, %v12281_v24  ;;  %v1562_v53 = vadd.f32 %v16759_v58, %v12284_v30  ;;  %v16760_v10 = vld [vmem:[#allocation33_spill] sm:$0xff]  ;;  %v1564_v23 = vadd.f32 %v16761_v9, %v12290_v55  ;;  %v16763_v40 = vld [vmem:[#allocation148_spill] sm:$0xff] }
 0x358   :  { %v1563_v20 = vadd.f32 %v16760_v10, %v12287_v19  ;;  %v1565_v11 = vadd.f32 %v16762_v44, %v12293_v32  ;;  %v1566_v22 = vadd.f32 %v16763_v40, %v12296_v59  ;;  %v1567_v45 = vadd.f32 %v1456_v13, %v12299_v29  ;;  %v16782_v44 = vld [vmem:[#allocation31_spill] sm:$0xff] }
 0x359   :  { %v1568_v18 = vadd.f32 %v1457_v39, %v12302_v34  ;;  %v1569_v24 = vadd.f32 %v1458_v46, %v12305_v48  ;;  %v1570_v30 = vadd.f32 %v1459_v6, %v12308_v63  ;;  %v1571_v58 = vadd.f32 %v1460_v14, %v12311_v33  ;;  %v16778_v6 = vld [vmem:[#allocation28_spill] sm:$0xff]  ;;  %v16783_v46 = vld [vmem:[#allocation58_spill] sm:$0xff]  ;;  %v16785_v40 = vld [vmem:[#allocation75_spill] sm:$0xff] }
 0x35a   :  { %v1572_v19 = vadd.f32 %v1461_v31, %v12314_v0  ;;  %v1573_v55 = vadd.f32 %v1462_v12, %v12317_v51  ;;  %v1574_v10 = vadd.f32 %v1463_v5, %v12320_v27  ;;  %v1575_v32 = vadd.f32 %v1464_v50, %v12323_v3  ;;  %v16784_v31 = vld [vmem:[#allocation11_spill] sm:$0xff] }
 0x35b   :  { %v1576_v59 = vadd.f32 %v1465_v2, %v12326_v37  ;;  %v1577_v29 = vadd.f32 %v1466_v1, %v12329_v57  ;;  %v1578_v34 = vadd.f32 %v1467_v28, %v12332_v16  ;;  %v1579_v48 = vadd.f32 %v1468_v35, %v12335_v8  ;;  %v16768_v57 = vld [vmem:[#allocation39_spill] sm:$0xff]  ;;  %v16769_v16 = vld [vmem:[#allocation100_spill] sm:$0xff]  ;;  %v16771_v1 = vld [vmem:[#allocation10_spill] sm:$0xff] }
 0x35c   :  { %v1580_v63 = vadd.f32 %v1469_v56, %v12338_v60  ;;  %v1581_v33 = vadd.f32 %v1470_v36, %v12341_v43  ;;  %v1582_v0 = vadd.f32 %v1471_v25, %v12344_v62  ;;  %v12530_v51 = vadd.f32 %v1473_v42, %v12347_v7  ;;  %v16770_v60 = vld [vmem:[#allocation9_spill] sm:$0xff]  ;;  %v16772_v7 = vld [vmem:[#allocation63_spill] sm:$0xff]  ;;  %v16776_v28 = vld [vmem:[#allocation48_spill] sm:$0xff] }
 0x35d   :  { %v12533_v27 = vadd.f32 %v1474_v41, %v12350_v49  ;;  %v12536_v3 = vadd.f32 %v1477_v52, %v12353_v38  ;;  %v12539_v37 = vadd.f32 %v1478_v4, %v12356_v61  ;;  %v1689_v8 = vmul.f32 %v16769_v16, %v16768_v57  ;;  %v16773_v49 = vld [vmem:[#allocation36_spill] sm:$0xff]  ;;  %v16775_v61 = vld [vmem:[#allocation129_spill] sm:$0xff]  ;;  %v16779_v41 = vld [vmem:[#allocation83_spill] sm:$0xff] }
 0x35e   :  { %16764 = vst [vmem:[#allocation66_spill] sm:$0xff] %v12530_v51  ;;  %v1690_v43 = vmul.f32 %v16769_v16, %v16770_v60  ;;  %v1691_v62 = vmul.f32 %v16769_v16, %v16771_v1  ;;  %v1692_v50 = vmul.f32 %v16769_v16, %v16772_v7  ;;  %v1693_v2 = vmul.f32 %v16769_v16, %v16773_v49  ;;  %v16774_v38 = vld [vmem:[#allocation52_spill] sm:$0xff]  ;;  %v16777_v4 = vld [vmem:[#allocation41_spill] sm:$0xff]  ;;  %v16780_v36 = vld [vmem:[#allocation47_spill] sm:$0xff] }
 0x35f   :  { %16765 = vst [vmem:[#allocation81_spill] sm:$0xff] %v12533_v27  ;;  %16766 = vst [vmem:[#allocation72_spill] sm:$0xff] %v12536_v3  ;;  %v1694_v35 = vmul.f32 %v16769_v16, %v16774_v38  ;;  %v1695_v56 = vmul.f32 %v16769_v16, %v16775_v61  ;;  %v1696_v25 = vmul.f32 %v16769_v16, %v16776_v28  ;;  %v16781_v52 = vld [vmem:[#allocation140_spill] sm:$0xff]  ;;  %v16786_v60 = vld [vmem:[#allocation89_spill] sm:$0xff] }
 0x360   :  { %16767 = vst [vmem:[#allocation145_spill] sm:$0xff] %v12539_v37  ;;  %v1697_v5 = vmul.f32 %v16769_v16, %v16777_v4  ;;  %v1698_v42 = vmul.f32 %v16769_v16, %v16778_v6  ;;  %v1699_v13 = vmul.f32 %v16769_v16, %v16779_v41  ;;  %v1700_v9 = vmul.f32 %v16769_v16, %v16780_v36  ;;  %v16787_v7 = vld [vmem:[#allocation22_spill] sm:$0xff]  ;;  %v16792_v41 = vld [vmem:[#allocation147_spill] sm:$0xff] }
 0x361   :  { %v1701_v17 = vmul.f32 %v16769_v16, %v16781_v52  ;;  %v1702_v39 = vmul.f32 %v16769_v16, %v16782_v44  ;;  %v1703_v14 = vmul.f32 %v16769_v16, %v16783_v46  ;;  %v1704_v12 = vmul.f32 %v16769_v16, %v16784_v31  ;;  %v16788_v3 = vld [vmem:[#allocation142_spill] sm:$0xff]  ;;  %v16790_v52 = vld [vmem:[#allocation143_spill] sm:$0xff] }
 0x362   :  { %v1705_v57 = vmul.f32 %v16769_v16, %v16785_v40  ;;  %v1706_v1 = vmul.f32 %v16769_v16, %v16786_v60  ;;  %v1707_v37 = vmul.f32 %v16769_v16, %v16787_v7  ;;  %v1708_v27 = vmul.f32 %v16769_v16, %v16788_v3  ;;  %v16789_v51 = vld [vmem:[#allocation30_spill] sm:$0xff] }
 0x363   :  { %v1709_v44 = vmul.f32 %v16769_v16, %v16789_v51  ;;  %v1710_v46 = vmul.f32 %v16769_v16, %v16790_v52  ;;  %v16791_v36 = vld [vmem:[#allocation146_spill] sm:$0xff]  ;;  %v1712_v40 = vmul.f32 %v16769_v16, %v16792_v41  ;;  %v1801_v6 = vadd.f32 %v1689_v8, %v1559_v47 }
 0x364   :  { %v1711_v31 = vmul.f32 %v16769_v16, %v16791_v36  ;;  %v1802_v60 = vadd.f32 %v1690_v43, %v1560_v54  ;;  %v1803_v4 = vadd.f32 %v1691_v62, %v1561_v21  ;;  %v1804_v28 = vadd.f32 %v1692_v50, %v1562_v53 }
 0x365   :  { %v1805_v7 = vadd.f32 %v1693_v2, %v1563_v20  ;;  %v1806_v61 = vadd.f32 %v1694_v35, %v1564_v23  ;;  %v1807_v38 = vadd.f32 %v1695_v56, %v1565_v11  ;;  %v1808_v3 = vadd.f32 %v1696_v25, %v1566_v22  ;;  %v16794_v23 = vld [vmem:[#allocation101_spill] sm:$0xff]  ;;  %v16795_v11 = vld [vmem:[#allocation111_spill] sm:$0xff]  ;;  %v16796_v22 = vld [vmem:[#allocation112_spill] sm:$0xff] }
 0x366   :  { %v1809_v49 = vadd.f32 %v1697_v5, %v1567_v45  ;;  %v1810_v26 = vadd.f32 %v1698_v42, %v1568_v18  ;;  %v1811_v51 = vadd.f32 %v1699_v13, %v1569_v24  ;;  %v1812_v15 = vadd.f32 %v1700_v9, %v1570_v30  ;;  %v16797_v18 = vld [vmem:[#allocation132_spill] sm:$0xff]  ;;  %v16798_v30 = vld [vmem:[#allocation86_spill] sm:$0xff]  ;;  %v16808_v42 = vld [vmem:[#allocation119_spill] sm:$0xff] }
 0x367   :  { %v1813_v52 = vadd.f32 %v1701_v17, %v1571_v58  ;;  %v1814_v36 = vadd.f32 %v1702_v39, %v1572_v19  ;;  %v1815_v16 = vadd.f32 %v1703_v14, %v1573_v55  ;;  %v1816_v41 = vadd.f32 %v1704_v12, %v1574_v10  ;;  %v16799_v19 = vld [vmem:[#allocation71_spill] sm:$0xff]  ;;  %v16800_v10 = vld [vmem:[#allocation114_spill] sm:$0xff]  ;;  %v16806_v35 = vld [vmem:[#allocation116_spill] sm:$0xff] }
 0x368   :  { %v1817_v8 = vadd.f32 %v1705_v57, %v1575_v32  ;;  %v1818_v47 = vadd.f32 %v1706_v1, %v1576_v59  ;;  %v1819_v43 = vadd.f32 %v1707_v37, %v1577_v29  ;;  %v1820_v54 = vadd.f32 %v1708_v27, %v1578_v34  ;;  %v16801_v59 = vld [vmem:[#allocation117_spill] sm:$0xff]  ;;  %v16802_v34 = vld [vmem:[#allocation108_spill] sm:$0xff]  ;;  %v16807_v25 = vld [vmem:[#allocation134_spill] sm:$0xff] }
 0x369   :  { %v1821_v21 = vadd.f32 %v1709_v44, %v1579_v48  ;;  %v1822_v62 = vadd.f32 %v1710_v46, %v1580_v63  ;;  %v1823_v50 = vadd.f32 %v1711_v31, %v1581_v33  ;;  %v12589_v53 = vadd.f32 %v1712_v40, %v1582_v0  ;;  %v16803_v63 = vld [vmem:[#allocation115_spill] sm:$0xff]  ;;  %v16804_v0 = vld [vmem:[#allocation118_spill] sm:$0xff]  ;;  %v16805_v37 = vld [vmem:[#allocation133_spill] sm:$0xff] }
 0x36a   :  { %v1915_v20 = vmul.f32 %v16795_v11, %v16794_v23  ;;  %v1916_v45 = vmul.f32 %v16796_v22, %v16794_v23  ;;  %v1917_v24 = vmul.f32 %v16797_v18, %v16794_v23  ;;  %v1918_v58 = vmul.f32 %v16798_v30, %v16794_v23  ;;  %v16809_v9 = vld [vmem:[#allocation45_spill] sm:$0xff]  ;;  %v16810_v44 = vld [vmem:[#allocation120_spill] sm:$0xff]  ;;  %v16812_v31 = vld [vmem:[#allocation50_spill] sm:$0xff] }
 0x36b   :  { %16793 = vst [vmem:[#allocation33_spill] sm:$0xff] %v12589_v53  ;;  %v1919_v55 = vmul.f32 %v16794_v23, %v16799_v19  ;;  %v1920_v32 = vmul.f32 %v16794_v23, %v16800_v10  ;;  %v1921_v29 = vmul.f32 %v16794_v23, %v16801_v59  ;;  %v1922_v48 = vmul.f32 %v16794_v23, %v16802_v34  ;;  %v16811_v46 = vld [vmem:[#allocation136_spill] sm:$0xff]  ;;  %v16813_v40 = vld [vmem:[#allocation102_spill] sm:$0xff]  ;;  %v16816_v30 = vld [vmem:[#allocation85_spill] sm:$0xff] }
 0x36c   :  { %v1923_v33 = vmul.f32 %v16794_v23, %v16803_v63  ;;  %v1924_v27 = vmul.f32 %v16794_v23, %v16804_v0  ;;  %v1925_v2 = vmul.f32 %v16794_v23, %v16805_v37  ;;  %v1926_v56 = vmul.f32 %v16794_v23, %v16806_v35  ;;  %v16814_v1 = vld [vmem:[#allocation92_spill] sm:$0xff] }
 0x36d   :  { %v1927_v5 = vmul.f32 %v16794_v23, %v16807_v25  ;;  %v1928_v13 = vmul.f32 %v16794_v23, %v16808_v42  ;;  %v1929_v17 = vmul.f32 %v16794_v23, %v16809_v9  ;;  %v1930_v39 = vmul.f32 %v16794_v23, %v16810_v44  ;;  %v16815_v22 = vld [vmem:[#allocation84_spill] sm:$0xff]  ;;  %v16817_v9 = vld [vmem:[#allocation51_spill] sm:$0xff] }
 0x36e   :  { %v1931_v14 = vmul.f32 %v16794_v23, %v16811_v46  ;;  %v1932_v12 = vmul.f32 %v16794_v23, %v16812_v31  ;;  %v1933_v57 = vmul.f32 %v16794_v23, %v16813_v40  ;;  %v1934_v11 = vmul.f32 %v16794_v23, %v16814_v1 }
 0x36f   :  { %v1935_v18 = vmul.f32 %v16794_v23, %v16815_v22  ;;  %v1936_v53 = vmul.f32 %v16794_v23, %v16816_v30  ;;  %v1937_v44 = vmul.f32 %v16794_v23, %v16817_v9  ;;  %v2027_v42 = vadd.f32 %v1915_v20, %v1801_v6 }
 0x370   :  { %v2028_v46 = vadd.f32 %v1916_v45, %v1802_v60  ;;  %v2029_v25 = vadd.f32 %v1917_v24, %v1803_v4  ;;  %v2030_v35 = vadd.f32 %v1918_v58, %v1804_v28  ;;  %v2031_v31 = vadd.f32 %v1919_v55, %v1805_v7  ;;  %v16818_v28 = vld [vmem:[#allocation26_spill] sm:$0xff]  ;;  %v16819_v7 = vld [vmem:[#allocation73_spill] sm:$0xff]  ;;  %v16830_v55 = vld [vmem:[#allocation16_spill] sm:$0xff] }
 0x371   :  { %v2032_v37 = vadd.f32 %v1920_v32, %v1806_v61  ;;  %v2033_v0 = vadd.f32 %v1921_v29, %v1807_v38  ;;  %v2034_v40 = vadd.f32 %v1922_v48, %v1808_v3  ;;  %v2035_v63 = vadd.f32 %v1923_v33, %v1809_v49  ;;  %v16820_v38 = vld [vmem:[#allocation23_spill] sm:$0xff]  ;;  %v16823_v49 = vld [vmem:[#allocation113_spill] sm:$0xff]  ;;  %v16829_v24 = vld [vmem:[#allocation130_spill] sm:$0xff] }
 0x372   :  { %v2036_v34 = vadd.f32 %v1924_v27, %v1810_v26  ;;  %v2037_v1 = vadd.f32 %v1925_v2, %v1811_v51  ;;  %v2038_v59 = vadd.f32 %v1926_v56, %v1812_v15  ;;  %v2039_v10 = vadd.f32 %v1927_v5, %v1813_v52  ;;  %v16821_v26 = vld [vmem:[#allocation24_spill] sm:$0xff]  ;;  %v16831_v29 = vld [vmem:[#allocation14_spill] sm:$0xff] }
 0x373   :  { %v2040_v22 = vadd.f32 %v1928_v13, %v1814_v36  ;;  %v2041_v19 = vadd.f32 %v1929_v17, %v1815_v16  ;;  %v2042_v30 = vadd.f32 %v1930_v39, %v1816_v41  ;;  %v2043_v9 = vadd.f32 %v1931_v14, %v1817_v8  ;;  %v16822_v51 = vld [vmem:[#allocation144_spill] sm:$0xff]  ;;  %v16824_v36 = vld [vmem:[#allocation105_spill] sm:$0xff]  ;;  %v16825_v8 = vld [vmem:[#allocation90_spill] sm:$0xff] }
 0x374   :  { %v2044_v23 = vadd.f32 %v1932_v12, %v1818_v47  ;;  %v2045_v6 = vadd.f32 %v1933_v57, %v1819_v43  ;;  %v2046_v20 = vadd.f32 %v1934_v11, %v1820_v54  ;;  %v2047_v45 = vadd.f32 %v1935_v18, %v1821_v21  ;;  %v16826_v43 = vld [vmem:[#allocation125_spill] sm:$0xff]  ;;  %v16827_v21 = vld [vmem:[#allocation62_spill] sm:$0xff]  ;;  %v16832_v33 = vld [vmem:[#allocation8_spill] sm:$0xff] }
 0x375   :  { %v2048_v60 = vadd.f32 %v1936_v53, %v1822_v62  ;;  %v2049_v4 = vadd.f32 %v1937_v44, %v1823_v50  ;;  %v2153_v61 = vmul.f32 %v16819_v7, %v16818_v28  ;;  %v2154_v3 = vmul.f32 %v16819_v7, %v16820_v38  ;;  %v16828_v50 = vld [vmem:[#allocation106_spill] sm:$0xff]  ;;  %v16834_v5 = vld [vmem:[#allocation152_spill] sm:$0xff]  ;;  %v16835_v17 = vld [vmem:[#allocation13_spill] sm:$0xff] }
 0x376   :  { %v2155_v15 = vmul.f32 %v16819_v7, %v16821_v26  ;;  %v2156_v16 = vmul.f32 %v16819_v7, %v16822_v51  ;;  %v2157_v41 = vmul.f32 %v16819_v7, %v16823_v49  ;;  %v2158_v52 = vmul.f32 %v16819_v7, %v16824_v36  ;;  %v16833_v2 = vld [vmem:[#allocation18_spill] sm:$0xff]  ;;  %v16836_v39 = vld [vmem:[#allocation97_spill] sm:$0xff]  ;;  %v16837_v12 = vld [vmem:[#allocation27_spill] sm:$0xff] }
 0x377   :  { %v2159_v47 = vmul.f32 %v16819_v7, %v16825_v8  ;;  %v2160_v54 = vmul.f32 %v16819_v7, %v16826_v43  ;;  %v2161_v62 = vmul.f32 %v16819_v7, %v16827_v21  ;;  %v2162_v53 = vmul.f32 %v16819_v7, %v16828_v50  ;;  %v16838_v11 = vld [vmem:[#allocation153_spill] sm:$0xff]  ;;  %v16839_v28 = vld [vmem:[#allocation95_spill] sm:$0xff]  ;;  %v16840_v26 = vld [vmem:[#allocation96_spill] sm:$0xff] }
 0x378   :  { %v2163_v58 = vmul.f32 %v16819_v7, %v16829_v24  ;;  %v2164_v32 = vmul.f32 %v16819_v7, %v16830_v55  ;;  %v2165_v48 = vmul.f32 %v16819_v7, %v16831_v29  ;;  %v2166_v27 = vmul.f32 %v16819_v7, %v16832_v33 }
 0x379   :  { %v2167_v56 = vmul.f32 %v16819_v7, %v16833_v2  ;;  %v2168_v13 = vmul.f32 %v16819_v7, %v16834_v5  ;;  %v2169_v44 = vmul.f32 %v16819_v7, %v16835_v17  ;;  %v2170_v14 = vmul.f32 %v16819_v7, %v16836_v39  ;;  %v16841_v2 = vld [vmem:[#allocation99_spill] sm:$0xff] }
 0x37a   :  { %v2171_v57 = vmul.f32 %v16819_v7, %v16837_v12  ;;  %v2172_v18 = vmul.f32 %v16819_v7, %v16838_v11  ;;  %v2173_v38 = vmul.f32 %v16819_v7, %v16839_v28  ;;  %v2174_v51 = vmul.f32 %v16819_v7, %v16840_v26 }
 0x37b   :  { %v2175_v5 = vmul.f32 %v16819_v7, %v16841_v2  ;;  %v2265_v33 = vadd.f32 %v2153_v61, %v2027_v42  ;;  %v2266_v17 = vadd.f32 %v2154_v3, %v2028_v46  ;;  %v2267_v29 = vadd.f32 %v2155_v15, %v2029_v25  ;;  %v16853_v3 = vld [vmem:[#allocation31_spill] sm:$0xff] }
 0x37c   :  { %v2268_v55 = vadd.f32 %v2156_v16, %v2030_v35  ;;  %v2269_v39 = vadd.f32 %v2157_v41, %v2031_v31  ;;  %v2270_v24 = vadd.f32 %v2158_v52, %v2032_v37  ;;  %v2271_v50 = vadd.f32 %v2159_v47, %v2033_v0  ;;  %v16843_v31 = vld [vmem:[#allocation36_spill] sm:$0xff]  ;;  %v16844_v37 = vld [vmem:[#allocation141_spill] sm:$0xff]  ;;  %v16854_v16 = vld [vmem:[#allocation58_spill] sm:$0xff] }
 0x37d   :  { %v2272_v12 = vadd.f32 %v2160_v54, %v2034_v40  ;;  %v2273_v21 = vadd.f32 %v2161_v62, %v2035_v63  ;;  %v2274_v43 = vadd.f32 %v2162_v53, %v2036_v34  ;;  %v2275_v11 = vadd.f32 %v2163_v58, %v2037_v1  ;;  %v16845_v40 = vld [vmem:[#allocation52_spill] sm:$0xff]  ;;  %v16846_v63 = vld [vmem:[#allocation129_spill] sm:$0xff]  ;;  %v16855_v52 = vld [vmem:[#allocation11_spill] sm:$0xff] }
 0x37e   :  { %v2276_v8 = vadd.f32 %v2164_v32, %v2038_v59  ;;  %v2277_v36 = vadd.f32 %v2165_v48, %v2039_v10  ;;  %v2278_v28 = vadd.f32 %v2166_v27, %v2040_v22  ;;  %v2279_v49 = vadd.f32 %v2167_v56, %v2041_v19  ;;  %v16847_v59 = vld [vmem:[#allocation48_spill] sm:$0xff]  ;;  %v16856_v54 = vld [vmem:[#allocation75_spill] sm:$0xff]  ;;  %v16857_v53 = vld [vmem:[#allocation89_spill] sm:$0xff] }
 0x37f   :  { %v2280_v26 = vadd.f32 %v2168_v13, %v2042_v30  ;;  %v2281_v2 = vadd.f32 %v2169_v44, %v2043_v9  ;;  %v2282_v7 = vadd.f32 %v2170_v14, %v2044_v23  ;;  %v2283_v42 = vadd.f32 %v2171_v57, %v2045_v6  ;;  %v16848_v9 = vld [vmem:[#allocation41_spill] sm:$0xff]  ;;  %v16849_v1 = vld [vmem:[#allocation28_spill] sm:$0xff]  ;;  %v16850_v30 = vld [vmem:[#allocation83_spill] sm:$0xff] }
 0x380   :  { %v12683_v61 = vadd.f32 %v2172_v18, %v2046_v20  ;;  %v2285_v46 = vadd.f32 %v2173_v38, %v2047_v45  ;;  %v2286_v25 = vadd.f32 %v2174_v51, %v2048_v60  ;;  %v2287_v35 = vadd.f32 %v2175_v5, %v2049_v4  ;;  %v16851_v20 = vld [vmem:[#allocation47_spill] sm:$0xff]  ;;  %v16852_v60 = vld [vmem:[#allocation140_spill] sm:$0xff]  ;;  %v16858_v32 = vld [vmem:[#allocation22_spill] sm:$0xff] }
 0x381   :  { %v2379_v0 = vmul.f32 %v16844_v37, %v16843_v31  ;;  %v2380_v34 = vmul.f32 %v16844_v37, %v16845_v40  ;;  %v2381_v10 = vmul.f32 %v16844_v37, %v16846_v63  ;;  %v2382_v19 = vmul.f32 %v16844_v37, %v16847_v59  ;;  %v16859_v27 = vld [vmem:[#allocation142_spill] sm:$0xff]  ;;  %v16861_v44 = vld [vmem:[#allocation143_spill] sm:$0xff]  ;;  %v16863_v38 = vld [vmem:[#allocation32_spill] sm:$0xff] }
 0x382   :  { %16842 = vst [vmem:[#allocation38_spill] sm:$0xff] %v12683_v61  ;;  %v2383_v23 = vmul.f32 %v16844_v37, %v16848_v9  ;;  %v2384_v22 = vmul.f32 %v16844_v37, %v16849_v1  ;;  %v2385_v6 = vmul.f32 %v16844_v37, %v16850_v30  ;;  %v2386_v45 = vmul.f32 %v16844_v37, %v16851_v20  ;;  %v16860_v5 = vld [vmem:[#allocation30_spill] sm:$0xff]  ;;  %v16864_v31 = vld [vmem:[#allocation87_spill] sm:$0xff] }
 0x383   :  { %v2387_v4 = vmul.f32 %v16844_v37, %v16852_v60  ;;  %v2388_v15 = vmul.f32 %v16844_v37, %v16853_v3  ;;  %v2389_v41 = vmul.f32 %v16844_v37, %v16854_v16  ;;  %v2390_v47 = vmul.f32 %v16844_v37, %v16855_v52  ;;  %v16862_v57 = vld [vmem:[#allocation146_spill] sm:$0xff]  ;;  %v16865_v63 = vld [vmem:[#allocation139_spill] sm:$0xff] }
 0x384   :  { %v2391_v62 = vmul.f32 %v16844_v37, %v16856_v54  ;;  %v2392_v58 = vmul.f32 %v16844_v37, %v16857_v53  ;;  %v2393_v48 = vmul.f32 %v16844_v37, %v16858_v32  ;;  %v2394_v56 = vmul.f32 %v16844_v37, %v16859_v27 }
 0x385   :  { %v2395_v13 = vmul.f32 %v16844_v37, %v16860_v5  ;;  %v2396_v14 = vmul.f32 %v16844_v37, %v16861_v44  ;;  %v2397_v18 = vmul.f32 %v16844_v37, %v16862_v57  ;;  %v2399_v51 = vmul.f32 %v16844_v37, %v16863_v38 }
 0x386   :  { %v2400_v40 = vmul.f32 %v16844_v37, %v16864_v31  ;;  %v2401_v59 = vmul.f32 %v16844_v37, %v16865_v63  ;;  %v2489_v9 = vadd.f32 %v2379_v0, %v2265_v33  ;;  %v2490_v1 = vadd.f32 %v2380_v34, %v2266_v17  ;;  %v16877_v34 = vld [vmem:[#allocation45_spill] sm:$0xff] }
 0x387   :  { %v2491_v30 = vadd.f32 %v2381_v10, %v2267_v29  ;;  %v2492_v20 = vadd.f32 %v2382_v19, %v2268_v55  ;;  %v2493_v60 = vadd.f32 %v2383_v23, %v2269_v39  ;;  %v2494_v3 = vadd.f32 %v2384_v22, %v2270_v24  ;;  %v16866_v29 = vld [vmem:[#allocation71_spill] sm:$0xff]  ;;  %v16867_v55 = vld [vmem:[#allocation42_spill] sm:$0xff]  ;;  %v16878_v19 = vld [vmem:[#allocation120_spill] sm:$0xff] }
 0x388   :  { %v2495_v16 = vadd.f32 %v2385_v6, %v2271_v50  ;;  %v2496_v52 = vadd.f32 %v2386_v45, %v2272_v12  ;;  %v2497_v54 = vadd.f32 %v2387_v4, %v2273_v21  ;;  %v2498_v53 = vadd.f32 %v2388_v15, %v2274_v43  ;;  %v16868_v24 = vld [vmem:[#allocation114_spill] sm:$0xff]  ;;  %v16869_v21 = vld [vmem:[#allocation117_spill] sm:$0xff]  ;;  %v16879_v22 = vld [vmem:[#allocation136_spill] sm:$0xff] }
 0x389   :  { %v2499_v32 = vadd.f32 %v2389_v41, %v2275_v11  ;;  %v2500_v27 = vadd.f32 %v2390_v47, %v2276_v8  ;;  %v2501_v5 = vadd.f32 %v2391_v62, %v2277_v36  ;;  %v2502_v44 = vadd.f32 %v2392_v58, %v2278_v28  ;;  %v16870_v8 = vld [vmem:[#allocation108_spill] sm:$0xff]  ;;  %v16873_v11 = vld [vmem:[#allocation133_spill] sm:$0xff]  ;;  %v16880_v45 = vld [vmem:[#allocation50_spill] sm:$0xff] }
 0x38a   :  { %v2503_v57 = vadd.f32 %v2393_v48, %v2279_v49  ;;  %v2504_v61 = vadd.f32 %v2394_v56, %v2280_v26  ;;  %v2505_v31 = vadd.f32 %v2395_v13, %v2281_v2  ;;  %v2506_v38 = vadd.f32 %v2396_v14, %v2282_v7  ;;  %v16871_v49 = vld [vmem:[#allocation115_spill] sm:$0xff]  ;;  %v16872_v7 = vld [vmem:[#allocation118_spill] sm:$0xff]  ;;  %v16874_v26 = vld [vmem:[#allocation116_spill] sm:$0xff] }
 0x38b   :  { %v2507_v37 = vadd.f32 %v2397_v18, %v2283_v42  ;;  %v2509_v63 = vadd.f32 %v2399_v51, %v2285_v46  ;;  %v2510_v33 = vadd.f32 %v2400_v40, %v2286_v25  ;;  %v2511_v17 = vadd.f32 %v2401_v59, %v2287_v35  ;;  %v16875_v46 = vld [vmem:[#allocation134_spill] sm:$0xff]  ;;  %v16876_v35 = vld [vmem:[#allocation119_spill] sm:$0xff]  ;;  %v16882_v47 = vld [vmem:[#allocation92_spill] sm:$0xff] }
 0x38c   :  { %v2603_v39 = vmul.f32 %v16867_v55, %v16866_v29  ;;  %v2604_v50 = vmul.f32 %v16867_v55, %v16868_v24  ;;  %v2605_v43 = vmul.f32 %v16867_v55, %v16869_v21  ;;  %v2606_v36 = vmul.f32 %v16867_v55, %v16870_v8  ;;  %v16881_v15 = vld [vmem:[#allocation102_spill] sm:$0xff]  ;;  %v16883_v58 = vld [vmem:[#allocation84_spill] sm:$0xff]  ;;  %v16884_v56 = vld [vmem:[#allocation85_spill] sm:$0xff] }
 0x38d   :  { %v2607_v2 = vmul.f32 %v16867_v55, %v16871_v49  ;;  %v2608_v12 = vmul.f32 %v16867_v55, %v16872_v7  ;;  %v2609_v28 = vmul.f32 %v16867_v55, %v16873_v11  ;;  %v2610_v42 = vmul.f32 %v16867_v55, %v16874_v26  ;;  %v16885_v14 = vld [vmem:[#allocation51_spill] sm:$0xff]  ;;  %v16886_v51 = vld [vmem:[#allocation64_spill] sm:$0xff]  ;;  %v16888_v24 = vld [vmem:[#allocation46_spill] sm:$0xff] }
 0x38e   :  { %v2611_v25 = vmul.f32 %v16867_v55, %v16875_v46  ;;  %v2612_v0 = vmul.f32 %v16867_v55, %v16876_v35  ;;  %v2613_v10 = vmul.f32 %v16867_v55, %v16877_v34  ;;  %v2614_v23 = vmul.f32 %v16867_v55, %v16878_v19  ;;  %v16887_v59 = vld [vmem:[#allocation35_spill] sm:$0xff] }
 0x38f   :  { %v2615_v6 = vmul.f32 %v16867_v55, %v16879_v22  ;;  %v2616_v4 = vmul.f32 %v16867_v55, %v16880_v45  ;;  %v2617_v41 = vmul.f32 %v16867_v55, %v16881_v15  ;;  %v2618_v62 = vmul.f32 %v16867_v55, %v16882_v47 }
 0x390   :  { %v2619_v48 = vmul.f32 %v16867_v55, %v16883_v58  ;;  %v2620_v13 = vmul.f32 %v16867_v55, %v16884_v56  ;;  %v2621_v18 = vmul.f32 %v16867_v55, %v16885_v14  ;;  %v2623_v40 = vmul.f32 %v16867_v55, %v16886_v51 }
 0x391   :  { %v2624_v29 = vmul.f32 %v16867_v55, %v16887_v59  ;;  %v2625_v21 = vmul.f32 %v16867_v55, %v16888_v24  ;;  %v2712_v8 = vadd.f32 %v2603_v39, %v2489_v9  ;;  %v2713_v49 = vadd.f32 %v2604_v50, %v2490_v1  ;;  %v16900_v50 = vld [vmem:[#allocation18_spill] sm:$0xff] }
 0x392   :  { %v2714_v7 = vadd.f32 %v2605_v43, %v2491_v30  ;;  %v2715_v11 = vadd.f32 %v2606_v36, %v2492_v20  ;;  %v2716_v26 = vadd.f32 %v2607_v2, %v2493_v60  ;;  %v2717_v46 = vadd.f32 %v2608_v12, %v2494_v3  ;;  %v16889_v30 = vld [vmem:[#allocation113_spill] sm:$0xff]  ;;  %v16890_v20 = vld [vmem:[#allocation43_spill] sm:$0xff]  ;;  %v16901_v36 = vld [vmem:[#allocation152_spill] sm:$0xff] }
 0x393   :  { %v2718_v35 = vadd.f32 %v2609_v28, %v2495_v16  ;;  %v2719_v34 = vadd.f32 %v2610_v42, %v2496_v52  ;;  %v2720_v19 = vadd.f32 %v2611_v25, %v2497_v54  ;;  %v2721_v22 = vadd.f32 %v2612_v0, %v2498_v53  ;;  %v16891_v3 = vld [vmem:[#allocation105_spill] sm:$0xff]  ;;  %v16892_v52 = vld [vmem:[#allocation90_spill] sm:$0xff]  ;;  %v16904_v0 = vld [vmem:[#allocation27_spill] sm:$0xff] }
 0x394   :  { %v2722_v45 = vadd.f32 %v2613_v10, %v2499_v32  ;;  %v2723_v15 = vadd.f32 %v2614_v23, %v2500_v27  ;;  %v2724_v47 = vadd.f32 %v2615_v6, %v2501_v5  ;;  %v2725_v58 = vadd.f32 %v2616_v4, %v2502_v44  ;;  %v16893_v53 = vld [vmem:[#allocation125_spill] sm:$0xff]  ;;  %v16894_v27 = vld [vmem:[#allocation62_spill] sm:$0xff]  ;;  %v16897_v5 = vld [vmem:[#allocation16_spill] sm:$0xff] }
 0x395   :  { %v2726_v56 = vadd.f32 %v2617_v41, %v2503_v57  ;;  %v2727_v14 = vadd.f32 %v2618_v62, %v2504_v61  ;;  %v2728_v51 = vadd.f32 %v2619_v48, %v2505_v31  ;;  %v2729_v59 = vadd.f32 %v2620_v13, %v2506_v38  ;;  %v16895_v38 = vld [vmem:[#allocation106_spill] sm:$0xff]  ;;  %v16902_v12 = vld [vmem:[#allocation13_spill] sm:$0xff]  ;;  %v16906_v4 = vld [vmem:[#allocation95_spill] sm:$0xff] }
 0x396   :  { %v2730_v24 = vadd.f32 %v2621_v18, %v2507_v37  ;;  %v2732_v55 = vadd.f32 %v2623_v40, %v2509_v63  ;;  %v2733_v9 = vadd.f32 %v2624_v29, %v2510_v33  ;;  %v2734_v1 = vadd.f32 %v2625_v21, %v2511_v17  ;;  %v16896_v31 = vld [vmem:[#allocation130_spill] sm:$0xff]  ;;  %v16899_v17 = vld [vmem:[#allocation8_spill] sm:$0xff]  ;;  %v16903_v42 = vld [vmem:[#allocation97_spill] sm:$0xff] }
 0x397   :  { %v2826_v60 = vmul.f32 %v16890_v20, %v16889_v30  ;;  %v2827_v16 = vmul.f32 %v16890_v20, %v16891_v3  ;;  %v2828_v54 = vmul.f32 %v16890_v20, %v16892_v52  ;;  %v2829_v32 = vmul.f32 %v16890_v20, %v16893_v53  ;;  %v16898_v57 = vld [vmem:[#allocation14_spill] sm:$0xff]  ;;  %v16905_v23 = vld [vmem:[#allocation153_spill] sm:$0xff]  ;;  %v16907_v62 = vld [vmem:[#allocation96_spill] sm:$0xff] }
 0x398   :  { %v2830_v61 = vmul.f32 %v16890_v20, %v16894_v27  ;;  %v2831_v37 = vmul.f32 %v16890_v20, %v16895_v38  ;;  %v2832_v63 = vmul.f32 %v16890_v20, %v16896_v31  ;;  %v2833_v44 = vmul.f32 %v16890_v20, %v16897_v5  ;;  %v16908_v13 = vld [vmem:[#allocation99_spill] sm:$0xff]  ;;  %v16909_v40 = vld [vmem:[#allocation88_spill] sm:$0xff]  ;;  %v16910_v21 = vld [vmem:[#allocation150_spill] sm:$0xff] }
 0x399   :  { %v2834_v33 = vmul.f32 %v16890_v20, %v16898_v57  ;;  %v2835_v39 = vmul.f32 %v16890_v20, %v16899_v17  ;;  %v2836_v43 = vmul.f32 %v16890_v20, %v16900_v50  ;;  %v2837_v2 = vmul.f32 %v16890_v20, %v16901_v36  ;;  %v16911_v3 = vld [vmem:[#allocation151_spill] sm:$0xff] }
 0x39a   :  { %v2838_v28 = vmul.f32 %v16890_v20, %v16902_v12  ;;  %v2839_v25 = vmul.f32 %v16890_v20, %v16903_v42  ;;  %v2840_v10 = vmul.f32 %v16890_v20, %v16904_v0  ;;  %v2841_v6 = vmul.f32 %v16890_v20, %v16905_v23 }
 0x39b   :  { %v2842_v41 = vmul.f32 %v16890_v20, %v16906_v4  ;;  %v2843_v48 = vmul.f32 %v16890_v20, %v16907_v62  ;;  %v2844_v18 = vmul.f32 %v16890_v20, %v16908_v13  ;;  %v2846_v29 = vmul.f32 %v16890_v20, %v16909_v40 }
 0x39c   :  { %v2847_v30 = vmul.f32 %v16890_v20, %v16910_v21  ;;  %v2848_v52 = vmul.f32 %v16890_v20, %v16911_v3  ;;  %v2936_v53 = vadd.f32 %v2826_v60, %v2712_v8  ;;  %v2937_v27 = vadd.f32 %v2827_v16, %v2713_v49 }
 0x39d   :  { %v2938_v38 = vadd.f32 %v2828_v54, %v2714_v7  ;;  %v2939_v31 = vadd.f32 %v2829_v32, %v2715_v11  ;;  %v2940_v5 = vadd.f32 %v2830_v61, %v2716_v26  ;;  %v2941_v57 = vadd.f32 %v2831_v37, %v2717_v46  ;;  %v16912_v7 = vld [vmem:[#allocation44_spill] sm:$0xff] }
 0x39e   :  { %v2942_v17 = vadd.f32 %v2832_v63, %v2718_v35  ;;  %v2943_v50 = vadd.f32 %v2833_v44, %v2719_v34  ;;  %v2944_v36 = vadd.f32 %v2834_v33, %v2720_v19  ;;  %v2945_v12 = vadd.f32 %v2835_v39, %v2721_v22 }
 0x39f   :  { %v2946_v42 = vadd.f32 %v2836_v43, %v2722_v45  ;;  %v2947_v0 = vadd.f32 %v2837_v2, %v2723_v15  ;;  %v2948_v23 = vadd.f32 %v2838_v28, %v2724_v47  ;;  %v2949_v62 = vadd.f32 %v2839_v25, %v2725_v58 }
 0x3a0   :  { %v2950_v13 = vadd.f32 %v2840_v10, %v2726_v56  ;;  %v2951_v40 = vadd.f32 %v2841_v6, %v2727_v14  ;;  %v2952_v21 = vadd.f32 %v2842_v41, %v2728_v51  ;;  %v2953_v4 = vadd.f32 %v2843_v48, %v2729_v59 }
 0x3a1   :  { %v2954_v3 = vadd.f32 %v2844_v18, %v2730_v24  ;;  %v2956_v20 = vadd.f32 %v2846_v29, %v2732_v55  ;;  %v2957_v8 = vadd.f32 %v2847_v30, %v2733_v9  ;;  %v2958_v49 = vadd.f32 %v2848_v52, %v2734_v1 }
 0x3a2   :  { %v12818_v11 = vadd.f32 %v16912_v7, %v2936_v53  ;;  %v12821_v26 = vadd.f32 %v16912_v7, %v2937_v27  ;;  %v12824_v46 = vadd.f32 %v16912_v7, %v2938_v38  ;;  %v12827_v35 = vadd.f32 %v16912_v7, %v2939_v31 }
 0x3a3   :  { %v12830_v34 = vadd.f32 %v16912_v7, %v2940_v5  ;;  %v12833_v24 = vadd.f32 %v16912_v7, %v2941_v57  ;;  %v12836_v55 = vadd.f32 %v16912_v7, %v2942_v17  ;;  %v12839_v19 = vadd.f32 %v16912_v7, %v2943_v50 }
 0x3a4   :  { %v12842_v22 = vadd.f32 %v16912_v7, %v2944_v36  ;;  %v12845_v45 = vadd.f32 %v16912_v7, %v2945_v12  ;;  %v12848_v15 = vadd.f32 %v16912_v7, %v2946_v42  ;;  %v12851_v47 = vadd.f32 %v16912_v7, %v2947_v0 }
 0x3a5   :  { %v12854_v58 = vadd.f32 %v16912_v7, %v2948_v23  ;;  %v12857_v56 = vadd.f32 %v16912_v7, %v2949_v62  ;;  %v12860_v14 = vadd.f32 %v16912_v7, %v2950_v13  ;;  %v12863_v51 = vadd.f32 %v16912_v7, %v2951_v40 }
 0x3a6   :  { %v12866_v59 = vadd.f32 %v16912_v7, %v2952_v21  ;;  %v12869_v9 = vadd.f32 %v16912_v7, %v2953_v4  ;;  %v12872_v1 = vadd.f32 %v16912_v7, %v2954_v3  ;;  %v12875_v60 = vadd.f32 %v16912_v7, %v2956_v20 }
 0x3a7   :  { %v12878_v16 = vadd.f32 %v16912_v7, %v2957_v8  ;;  %v12881_v54 = vadd.f32 %v16912_v7, %v2958_v49  ;;  %v3162_v32 = vmax.f32 %v12818_v11, 0.0  ;;  %v3163_v61 = vmax.f32 %v12821_v26, 0.0 }
 0x3a8   :  { %16913 = vst [vmem:[#allocation107_spill] sm:$0xff] %v12872_v1  ;;  %v3164_v37 = vmax.f32 %v12824_v46, 0.0  ;;  %v3165_v63 = vmax.f32 %v12827_v35, 0.0  ;;  %v3166_v44 = vmax.f32 %v12830_v34, 0.0  ;;  %v3167_v33 = vmax.f32 %v12833_v24, 0.0 }
 0x3a9   :  { %16914 = vst [vmem:[#allocation148_spill] sm:$0xff] %v12881_v54  ;;  %v3168_v20 = vmax.f32 %v12836_v55, 0.0  ;;  %v3169_v39 = vmax.f32 %v12839_v19, 0.0  ;;  %v3170_v43 = vmax.f32 %v12842_v22, 0.0  ;;  %v3171_v2 = vmax.f32 %v12845_v45, 0.0 }
 0x3aa   :  { %v15297_v28 = vmax.f32 %v12848_v15, 0.0  ;;  %v15294_v25 = vmax.f32 %v12851_v47, 0.0  ;;  %v15295_v10 = vmax.f32 %v12854_v58, 0.0  ;;  %v15296_v6 = vmax.f32 %v12857_v56, 0.0 }
 0x3ab   :  { %v15298_v4 = vmax.f32 %v12860_v14, 0.0  ;;  %v3177_v41 = vmax.f32 %v12863_v51, 0.0  ;;  %v15299_v48 = vmax.f32 %v12866_v59, 0.0  ;;  %v15301_v18 = vmax.f32 %v12869_v9, 0.0 }
 0x3ac   :  { %v15300_v40 = vmax.f32 %v12872_v1, 0.0  ;;  %v15302_v29 = vmax.f32 %v12875_v60, 0.0  ;;  %v15303_v21 = vmax.f32 %v12878_v16, 0.0  ;;  %v15304_v30 = vmax.f32 %v12881_v54, 0.0  ;;  %v16959_v54 = vld [vmem:[#allocation80_spill] sm:$0xff] }
 0x3ad   :  { %v3440_v3 = vrot.slane %v3162_v32, 1  ;;  %v3441_v52 = vrot.slane %v3163_v61, 1  ;;  %v3443_v53 = vrot.slane %v3164_v37, 1  ;;  %v3445_v27 = vrot.slane %v3165_v63, 1 }
 0x3ae   :  { %v3447_v38 = vrot.slane %v3166_v44, 1  ;;  %v3448_v31 = vrot.slane %v3167_v33, 1  ;;  %v3450_v5 = vrot.slane %v3168_v20, 1  ;;  %v3452_v57 = vrot.slane %v3169_v39, 1 }
 0x3af   :  { %v3442_v17 = vsel %vm1046_vm1, %v3440_v3, %v3441_v52  ;;  %v3444_v50 = vsel %vm1046_vm1, %v3441_v52, %v3443_v53  ;;  %v3446_v36 = vsel %vm1046_vm1, %v3443_v53, %v3445_v27  ;;  %v3454_v12 = vrot.slane %v3170_v43, 1 }
 0x3b0   :  { %v3449_v42 = vsel %vm1046_vm1, %v3447_v38, %v3448_v31  ;;  %v3451_v0 = vsel %vm1046_vm1, %v3448_v31, %v3450_v5  ;;  %v3453_v23 = vsel %vm1046_vm1, %v3450_v5, %v3452_v57  ;;  %v3455_v62 = vrot.slane %v3171_v2, 1 }
 0x3b1   :  { %v3457_v13 = vrot.slane %v15297_v28, 1  ;;  %v3459_v8 = vrot.slane %v15294_v25, 1  ;;  %v3461_v49 = vrot.slane %v15295_v10, 1  ;;  %v3462_v3 = vrot.slane %v15296_v6, 1 }
 0x3b2   :  { %v3456_v52 = vsel %vm1046_vm1, %v3454_v12, %v3455_v62  ;;  %v3464_v53 = vrot.slane %v15298_v4, 1  ;;  %v3466_v38 = vrot.slane %v3177_v41, 1  ;;  %v3468_v31 = vrot.slane %v15299_v48, 1 }
 0x3b3   :  { %v3458_v5 = vsel %vm1046_vm1, %v3455_v62, %v3457_v13  ;;  %v3460_v25 = vsel %vm1046_vm1, %v3457_v13, %v3459_v8  ;;  %v3463_v10 = vsel %vm1046_vm1, %v3461_v49, %v3462_v3  ;;  %v3469_v6 = vrot.slane %v15301_v18, 1 }
 0x3b4   :  { %v3465_v12 = vsel %vm1046_vm1, %v3462_v3, %v3464_v53  ;;  %v3467_v28 = vsel %vm1046_vm1, %v3464_v53, %v3466_v38  ;;  %v12955_v4 = vrot.slane %v15300_v40, 1  ;;  %v3475_v48 = vrot.slane %v15302_v29, 1 }
 0x3b5   :  { %v3470_v62 = vsel %vm1046_vm1, %v3468_v31, %v3469_v6  ;;  %v3476_v13 = vrot.slane %v15303_v21, 1  ;;  %v12964_v49 = vrot.slane %v15304_v30, 1  ;;  %v3640_v3 = vsel %vm1348_vm2, %v3445_v27, 0.0 }
 0x3b6   :  { %16915 = vst [vmem:[#allocation39_spill] sm:$0xff] %v12955_v4  ;;  %v3472_v53 = vsel %vm1046_vm1, %v3469_v6, %v12955_v4  ;;  %v3641_v40 = vsel %vm1348_vm2, %v3452_v57, 0.0  ;;  %v3642_v18 = vsel %vm1348_vm2, %v3459_v8, 0.0  ;;  %v3643_v29 = vsel %vm1348_vm2, %v3466_v38, 0.0  ;;  %v17018_v4 = vld [vmem:[#allocation150_spill] sm:$0xff] }
 0x3b7   :  { %16916 = vst [vmem:[#allocation9_spill] sm:$0xff] %v12964_v49  ;;  %v3477_v31 = vsel %vm1046_vm1, %v3475_v48, %v3476_v13  ;;  %v3479_v21 = vsel %vm1046_vm1, %v3476_v13, %v12964_v49  ;;  %v3722_v30 = vmax.f32 %v3162_v32, %v3442_v17  ;;  %v3723_v27 = vmax.f32 %v3163_v61, %v3444_v50  ;;  %v16935_v13 = vld [vmem:[#allocation49_spill] sm:$0xff] }
 0x3b8   :  { %v3724_v6 = vmax.f32 %v3164_v37, %v3446_v36  ;;  %v3725_v57 = vmax.f32 %v3165_v63, %v3640_v3  ;;  %v3726_v8 = vmax.f32 %v3166_v44, %v3449_v42  ;;  %v3727_v48 = vmax.f32 %v3167_v33, %v3451_v0 }
 0x3b9   :  { %v3728_v38 = vmax.f32 %v3168_v20, %v3453_v23  ;;  %v3729_v11 = vmax.f32 %v3169_v39, %v3641_v40  ;;  %v3730_v26 = vmax.f32 %v3170_v43, %v3456_v52  ;;  %v3731_v46 = vmax.f32 %v3171_v2, %v3458_v5 }
 0x3ba   :  { %v16917_v35 = vmax.f32 %v12848_v15, 0.0  ;;  %v16918_v34 = vmax.f32 %v12851_v47, 0.0  ;;  %v16919_v24 = vmax.f32 %v12854_v58, 0.0  ;;  %v16920_v55 = vmax.f32 %v12857_v56, 0.0 }
 0x3bb   :  { %v16921_v19 = vmax.f32 %v12860_v14, 0.0  ;;  %v3737_v22 = vmax.f32 %v3177_v41, %v3643_v29  ;;  %v16922_v45 = vmax.f32 %v12866_v59, 0.0  ;;  %v16923_v15 = vmax.f32 %v12869_v9, 0.0 }
 0x3bc   :  { %v3732_v32 = vmax.f32 %v16917_v35, %v3460_v25  ;;  %v3733_v61 = vmax.f32 %v16918_v34, %v3642_v18  ;;  %v3734_v37 = vmax.f32 %v16919_v24, %v3463_v10  ;;  %v3735_v63 = vmax.f32 %v16920_v55, %v3465_v12 }
 0x3bd   :  { %v3736_v44 = vmax.f32 %v16921_v19, %v3467_v28  ;;  %v3738_v33 = vmax.f32 %v16922_v45, %v3470_v62  ;;  %v3739_v20 = vmax.f32 %v16923_v15, %v3472_v53  ;;  %v16924_v47 = vmax.f32 %v12875_v60, 0.0  ;;  %v16934_v62 = vld [vmem:[#allocation37_spill] sm:$0xff] }
 0x3be   :  { %v16925_v58 = vmax.f32 %v12878_v16, 0.0  ;;  %v13015_v56 = vmax.f32 %v3722_v30, %v3726_v8  ;;  %v13017_v2 = vmax.f32 %v3723_v27, %v3727_v48  ;;  %v13019_v14 = vmax.f32 %v3724_v6, %v3728_v38  ;;  %v16936_v38 = vld [vmem:[#allocation29_spill] sm:$0xff] }
 0x3bf   :  { %v3742_v39 = vmax.f32 %v16924_v47, %v3477_v31  ;;  %v13021_v51 = vmax.f32 %v3725_v57, %v3729_v11  ;;  %v13023_v28 = vmax.f32 %v3730_v26, %v3734_v37  ;;  %v13025_v59 = vmax.f32 %v3731_v46, %v3735_v63  ;;  %v16937_v11 = vld [vmem:[#allocation53_spill] sm:$0xff]  ;;  %v16938_v46 = vld [vmem:[#allocation15_spill] sm:$0xff]  ;;  %v16942_v47 = vld [vmem:[#allocation110_spill] sm:$0xff] }
 0x3c0   :  { %v3743_v43 = vmax.f32 %v16925_v58, %v3479_v21  ;;  %16926 = vst [vmem:[#allocation10_spill] sm:$0xff] %v13019_v14  ;;  %v13027_v9 = vmax.f32 %v3732_v32, %v3736_v44  ;;  %v13029_v25 = vmax.f32 %v3733_v61, %v3737_v22  ;;  %v3937_v10 = vrot.slane %v13015_v56, 6  ;;  %v16939_v32 = vld [vmem:[#allocation109_spill] sm:$0xff]  ;;  %v16940_v61 = vld [vmem:[#allocation131_spill] sm:$0xff] }
 0x3c1   :  { %16927 = vst [vmem:[#allocation63_spill] sm:$0xff] %v13021_v51  ;;  %v13031_v60 = vmax.f32 %v3738_v33, %v3742_v39  ;;  %v3938_v41 = vrot.slane %v13017_v2, 6  ;;  %v15307_v18 = vrot.slane %v13019_v14, 6  ;;  %v3944_v40 = vrot.slane %v13023_v28, 6  ;;  %v16941_v37 = vld [vmem:[#allocation149_spill] sm:$0xff] }
 0x3c2   :  { %16928 = vst [vmem:[#allocation111_spill] sm:$0xff] %v13027_v9  ;;  %16929 = vst [vmem:[#allocation112_spill] sm:$0xff] %v13029_v25  ;;  %v13033_v16 = vmax.f32 %v3739_v20, %v3743_v43  ;;  %v3945_v29 = vrot.slane %v13025_v59, 6  ;;  %v15306_v21 = vrot.slane %v13027_v9, 6  ;;  %v13052_v42 = vsel %vm3871_vm3, 0.0, %v3937_v10  ;;  %v16943_v58 = vld [vmem:[#allocation57_spill] sm:$0xff] }
 0x3c3   :  { %16930 = vst [vmem:[#allocation132_spill] sm:$0xff] %v13031_v60  ;;  %v3951_v30 = vrot.slane %v13031_v60, 6  ;;  %v13044_v50 = vsel %vm3871_vm3, %v3937_v10, %v3938_v41  ;;  %v13049_v36 = vsel %vm3871_vm3, %v3938_v41, %v15307_v18  ;;  %v13055_v0 = vsel %vm3871_vm3, 0.0, %v3944_v40  ;;  %v16944_v10 = vld [vmem:[#allocation124_spill] sm:$0xff] }
 0x3c4   :  { %16931 = vst [vmem:[#allocation86_spill] sm:$0xff] %v13033_v16  ;;  %v15305_v17 = vrot.slane %v13033_v16, 6  ;;  %v13058_v23 = vsel %vm3871_vm3, %v3944_v40, %v3945_v29  ;;  %v13063_v52 = vsel %vm3871_vm3, %v3945_v29, %v15306_v21  ;;  %v4064_v3 = vmul.f32 %v16935_v13, %v16934_v62  ;;  %v16945_v40 = vld [vmem:[#allocation59_spill] sm:$0xff] }
 0x3c5   :  { %16932 = vst [vmem:[#allocation26_spill] sm:$0xff] %v13063_v52  ;;  %v13071_v12 = vsel %vm3871_vm3, 0.0, %v3951_v30  ;;  %v4072_v53 = vmul.f32 %v16935_v13, %v13052_v42  ;;  %v4073_v31 = vmul.f32 %v16935_v13, %v13044_v50  ;;  %v4074_v27 = vmul.f32 %v16935_v13, %v13049_v36 }
 0x3c6   :  { %v13068_v5 = vsel %vm3871_vm3, %v3951_v30, %v15305_v17  ;;  %16933 = vst [vmem:[#allocation23_spill] sm:$0xff] %v13071_v12  ;;  %v4076_v6 = vmul.f32 %v16935_v13, %v13055_v0  ;;  %v4077_v57 = vmul.f32 %v16935_v13, %v13058_v23  ;;  %v4078_v8 = vmul.f32 %v16935_v13, %v13063_v52 }
 0x3c7   :  { %v4081_v48 = vmul.f32 %v16935_v13, %v13068_v5  ;;  %v4173_v26 = vmul.f32 %v16937_v11, %v16936_v38  ;;  %v4174_v35 = vmul.f32 %v16937_v11, %v16938_v46  ;;  %v4177_v34 = vmul.f32 %v16937_v11, %v16939_v32 }
 0x3c8   :  { %v4178_v24 = vmul.f32 %v16937_v11, %v16940_v61  ;;  %v4179_v55 = vmul.f32 %v16937_v11, %v16941_v37  ;;  %v4181_v63 = vmul.f32 %v16937_v11, %v13015_v56  ;;  %v4182_v19 = vmul.f32 %v16937_v11, %v13017_v2 }
 0x3c9   :  { %v4183_v44 = vmul.f32 %v16937_v11, %v13019_v14  ;;  %v4185_v22 = vmul.f32 %v16937_v11, %v13023_v28  ;;  %v4186_v45 = vmul.f32 %v16937_v11, %v13025_v59  ;;  %v4187_v33 = vmul.f32 %v16937_v11, %v13027_v9 }
 0x3ca   :  { %v4190_v15 = vmul.f32 %v16937_v11, %v13033_v16  ;;  %v4227_v20 = vadd.f32 %v4173_v26, %v4064_v3  ;;  %v4228_v39 = vadd.f32 %v4174_v35, %v16942_v47  ;;  %v4231_v43 = vadd.f32 %v4177_v34, %v16943_v58  ;;  %v16950_v47 = vld [vmem:[#allocation138_spill] sm:$0xff] }
 0x3cb   :  { %v4232_v41 = vadd.f32 %v4178_v24, %v16944_v10  ;;  %v4233_v29 = vadd.f32 %v4179_v55, %v16945_v40  ;;  %v4235_v30 = vadd.f32 %v4181_v63, %v4072_v53  ;;  %v4236_v62 = vadd.f32 %v4182_v19, %v4073_v31  ;;  %v16949_v19 = vld [vmem:[#allocation61_spill] sm:$0xff]  ;;  %v16951_v10 = vld [vmem:[#allocation74_spill] sm:$0xff]  ;;  %v16952_v40 = vld [vmem:[#allocation56_spill] sm:$0xff] }
 0x3cc   :  { %v4237_v38 = vadd.f32 %v4183_v44, %v4074_v27  ;;  %v4239_v46 = vadd.f32 %v4185_v22, %v4076_v6  ;;  %v4240_v17 = vadd.f32 %v4186_v45, %v4077_v57  ;;  %v4241_v21 = vadd.f32 %v4187_v33, %v4078_v8  ;;  %v16947_v8 = vld [vmem:[#allocation128_spill] sm:$0xff] }
 0x3cd   :  { %v13117_v18 = vadd.f32 %v4190_v15, %v4081_v48  ;;  %v4318_v60 = vrot.slane %v13015_v56, 2  ;;  %v4319_v3 = vrot.slane %v13017_v2, 2  ;;  %v4321_v26 = vrot.slane %v13019_v14, 2 }
 0x3ce   :  { %v15311_v35 = vrot.slane %v13021_v51, 2  ;;  %v4325_v34 = vrot.slane %v13023_v28, 2  ;;  %v4326_v24 = vrot.slane %v13025_v59, 2  ;;  %v4328_v53 = vrot.slane %v13027_v9, 2 }
 0x3cf   :  { %16946 = vst [vmem:[#allocation24_spill] sm:$0xff] %v13117_v18  ;;  %v15310_v31 = vrot.slane %v13029_v25, 2  ;;  %v13128_v27 = vsel %vm4252_vm4, %v4318_v60, %v4319_v3  ;;  %v13131_v6 = vsel %vm4252_vm4, %v4319_v3, %v4321_v26  ;;  %v4500_v48 = vadd.f32 %v16947_v8, %v4227_v20  ;;  %v16955_v8 = vld [vmem:[#allocation93_spill] sm:$0xff] }
 0x3d0   :  { %v13136_v57 = vsel %vm4252_vm4, %v4321_v26, %v15311_v35  ;;  %v13140_v55 = vsel %vm4252_vm4, %v4325_v34, %v4326_v24  ;;  %v13143_v63 = vsel %vm4252_vm4, %v4326_v24, %v4328_v53  ;;  %v4453_v44 = vmul.f32 %v16949_v19, %v13128_v27  ;;  %v16953_v26 = vld [vmem:[#allocation122_spill] sm:$0xff]  ;;  %v16954_v24 = vld [vmem:[#allocation123_spill] sm:$0xff] }
 0x3d1   :  { %v13148_v60 = vsel %vm4252_vm4, %v4328_v53, %v15310_v31  ;;  %v4454_v22 = vmul.f32 %v16949_v19, %v13131_v6  ;;  %v4455_v45 = vmul.f32 %v16949_v19, %v13136_v57  ;;  %v4457_v33 = vmul.f32 %v16949_v19, %v13140_v55 }
 0x3d2   :  { %16948 = vst [vmem:[#allocation144_spill] sm:$0xff] %v13148_v60  ;;  %v4458_v15 = vmul.f32 %v16949_v19, %v13143_v63  ;;  %v4459_v20 = vmul.f32 %v16949_v19, %v13148_v60  ;;  %v4501_v58 = vadd.f32 %v16950_v47, %v4228_v39  ;;  %v4502_v3 = vadd.f32 %v16952_v40, %v16951_v10  ;;  %v16958_v19 = vld [vmem:[#allocation135_spill] sm:$0xff]  ;;  %v16960_v47 = vld [vmem:[#allocation121_spill] sm:$0xff]  ;;  %v16961_v40 = vld [vmem:[#allocation54_spill] sm:$0xff] }
 0x3d3   :  { %v4504_v34 = vadd.f32 %v16953_v26, %v4231_v43  ;;  %v4505_v53 = vadd.f32 %v16954_v24, %v4232_v41  ;;  %v4506_v31 = vadd.f32 %v16955_v8, %v4233_v29  ;;  %v4508_v35 = vadd.f32 %v4453_v44, %v4235_v30  ;;  %v16963_v8 = vld [vmem:[#allocation67_spill] sm:$0xff] }
 0x3d4   :  { %v4509_v18 = vadd.f32 %v4454_v22, %v4236_v62  ;;  %v13168_v13 = vadd.f32 %v4455_v45, %v4237_v38  ;;  %v4512_v11 = vadd.f32 %v4457_v33, %v4239_v46  ;;  %v4513_v25 = vadd.f32 %v4458_v15, %v4240_v17 }
 0x3d5   :  { %v13170_v51 = vadd.f32 %v4459_v20, %v4241_v21  ;;  %v4574_v39 = vmul.f32 %v16959_v54, %v16958_v19  ;;  %v4575_v10 = vmul.f32 %v16959_v54, %v16960_v47  ;;  %v4576_v43 = vmul.f32 %v16959_v54, %v16961_v40 }
 0x3d6   :  { %16956 = vst [vmem:[#allocation36_spill] sm:$0xff] %v13168_v13  ;;  %v4578_v41 = vmul.f32 %v16959_v54, %v13052_v42  ;;  %v4579_v29 = vmul.f32 %v16959_v54, %v13044_v50  ;;  %v4580_v17 = vmul.f32 %v16959_v54, %v13049_v36  ;;  %v4582_v21 = vmul.f32 %v16959_v54, %v13055_v0 }
 0x3d7   :  { %16957 = vst [vmem:[#allocation52_spill] sm:$0xff] %v13170_v51  ;;  %v4583_v30 = vmul.f32 %v16959_v54, %v13058_v23  ;;  %v4586_v62 = vmul.f32 %v16959_v54, %v13071_v12  ;;  %v4587_v38 = vmul.f32 %v16959_v54, %v13068_v5  ;;  %v4630_v46 = vadd.f32 %v4574_v39, %v4500_v48  ;;  %v17012_v54 = vld [vmem:[#allocation81_spill] sm:$0xff] }
 0x3d8   :  { %v4631_v19 = vadd.f32 %v4575_v10, %v4501_v58  ;;  %v4632_v44 = vadd.f32 %v4576_v43, %v4502_v3  ;;  %v4634_v22 = vadd.f32 %v4578_v41, %v4504_v34  ;;  %v4635_v45 = vadd.f32 %v4579_v29, %v4505_v53  ;;  %v16965_v43 = vld [vmem:[#allocation127_spill] sm:$0xff]  ;;  %v16966_v41 = vld [vmem:[#allocation68_spill] sm:$0xff] }
 0x3d9   :  { %v4636_v33 = vadd.f32 %v4580_v17, %v4506_v31  ;;  %v4638_v15 = vadd.f32 %v4582_v21, %v4508_v35  ;;  %v4639_v20 = vadd.f32 %v4583_v30, %v4509_v18  ;;  %v13192_v26 = vadd.f32 %v4586_v62, %v4512_v11  ;;  %v16967_v17 = vld [vmem:[#allocation65_spill] sm:$0xff] }
 0x3da   :  { %v4643_v24 = vadd.f32 %v4587_v38, %v4513_v25  ;;  %v4688_v47 = vmul.f32 %v16963_v8, %v16939_v32  ;;  %v4689_v40 = vmul.f32 %v16963_v8, %v16940_v61  ;;  %v4690_v51 = vmul.f32 %v16963_v8, %v16941_v37  ;;  %v16968_v30 = vld [vmem:[#allocation137_spill] sm:$0xff] }
 0x3db   :  { %16962 = vst [vmem:[#allocation129_spill] sm:$0xff] %v13192_v26  ;;  %v4692_v48 = vmul.f32 %v16963_v8, %v13015_v56  ;;  %v4693_v31 = vmul.f32 %v16963_v8, %v13017_v2  ;;  %v4694_v18 = vmul.f32 %v16963_v8, %v13019_v14  ;;  %v4696_v25 = vmul.f32 %v16963_v8, %v13023_v28 }
 0x3dc   :  { %v4697_v11 = vmul.f32 %v16963_v8, %v13025_v59  ;;  %v4701_v32 = vmul.f32 %v16963_v8, %v13033_v16  ;;  %v4744_v61 = vadd.f32 %v4688_v47, %v4630_v46  ;;  %v4745_v37 = vadd.f32 %v4689_v40, %v4631_v19  ;;  %v17015_v16 = vld [vmem:[#allocation101_spill] sm:$0xff] }
 0x3dd   :  { %v4746_v35 = vadd.f32 %v4690_v51, %v4632_v44  ;;  %v4748_v58 = vadd.f32 %v4692_v48, %v4634_v22  ;;  %v4749_v3 = vadd.f32 %v4693_v31, %v4635_v45  ;;  %v4750_v34 = vadd.f32 %v4694_v18, %v4636_v33  ;;  %v16970_v48 = vld [vmem:[#allocation69_spill] sm:$0xff] }
 0x3de   :  { %v4752_v53 = vadd.f32 %v4696_v25, %v4638_v15  ;;  %v4753_v39 = vadd.f32 %v4697_v11, %v4639_v20  ;;  %v13212_v10 = vadd.f32 %v4701_v32, %v4643_v24  ;;  %v4814_v29 = vmul.f32 %v16966_v41, %v16965_v43 }
 0x3df   :  { %v4815_v21 = vmul.f32 %v16966_v41, %v16967_v17  ;;  %v4816_v62 = vmul.f32 %v16966_v41, %v16968_v30  ;;  %v4818_v38 = vmul.f32 %v16966_v41, %v13128_v27  ;;  %v4819_v51 = vmul.f32 %v16966_v41, %v13131_v6  ;;  %v16973_v17 = vld [vmem:[#allocation19_spill] sm:$0xff] }
 0x3e0   :  { %16964 = vst [vmem:[#allocation48_spill] sm:$0xff] %v13212_v10  ;;  %v4820_v46 = vmul.f32 %v16966_v41, %v13136_v57  ;;  %v4822_v19 = vmul.f32 %v16966_v41, %v13140_v55  ;;  %v4823_v44 = vmul.f32 %v16966_v41, %v13143_v63  ;;  %v4870_v22 = vadd.f32 %v4814_v29, %v4744_v61  ;;  %v17011_v41 = vld [vmem:[#allocation66_spill] sm:$0xff] }
 0x3e1   :  { %v4871_v45 = vadd.f32 %v4815_v21, %v4745_v37  ;;  %v4872_v33 = vadd.f32 %v4816_v62, %v4746_v35  ;;  %v4874_v15 = vadd.f32 %v4818_v38, %v4748_v58  ;;  %v4875_v20 = vadd.f32 %v4819_v51, %v4749_v3  ;;  %v16971_v58 = vld [vmem:[#allocation17_spill] sm:$0xff] }
 0x3e2   :  { %v4876_v24 = vadd.f32 %v4820_v46, %v4750_v34  ;;  %v13230_v47 = vadd.f32 %v4822_v19, %v4752_v53  ;;  %v4879_v40 = vadd.f32 %v4823_v44, %v4753_v39  ;;  %v4928_v31 = vmul.f32 %v16970_v48, %v13052_v42 }
 0x3e3   :  { %v4929_v18 = vmul.f32 %v16970_v48, %v13044_v50  ;;  %v4930_v25 = vmul.f32 %v16970_v48, %v13049_v36  ;;  %v4932_v11 = vmul.f32 %v16970_v48, %v13055_v0  ;;  %v4933_v32 = vmul.f32 %v16970_v48, %v13058_v23 }
 0x3e4   :  { %16969 = vst [vmem:[#allocation41_spill] sm:$0xff] %v13230_v47  ;;  %v4934_v61 = vmul.f32 %v16970_v48, %v13063_v52  ;;  %v4937_v37 = vmul.f32 %v16970_v48, %v13068_v5  ;;  %v4982_v35 = vadd.f32 %v4928_v31, %v4870_v22  ;;  %v5040_v50 = vmul.f32 %v16971_v58, %v13015_v56 }
 0x3e5   :  { %v4983_v42 = vadd.f32 %v4929_v18, %v4871_v45  ;;  %v4984_v3 = vadd.f32 %v4930_v25, %v4872_v33  ;;  %v4986_v34 = vadd.f32 %v4932_v11, %v4874_v15  ;;  %v4987_v36 = vadd.f32 %v4933_v32, %v4875_v20  ;;  %v13280_v45 = vld [vmem:[%s14510_s0 + $0x328] sm:$0xff]  ;;  %v13294_v25 = vld [vmem:[%s14510_s0 + $0x330] sm:$0xff] }
 0x3e6   :  { %v4988_v53 = vadd.f32 %v4934_v61, %v4876_v24  ;;  %v13248_v39 = vadd.f32 %v4937_v37, %v4879_v40  ;;  %v5041_v0 = vmul.f32 %v16971_v58, %v13017_v2  ;;  %v5042_v23 = vmul.f32 %v16971_v58, %v13019_v14  ;;  %v16974_v40 = vld [vmem:[#allocation21_spill] sm:$0xff]  ;;  %16975 = vst [vmem:[#allocation83_spill] sm:$0xff] %v13294_v25  ;;  %v16977_v61 = vld [vmem:[#allocation46_spill] sm:$0xff] }
 0x3e7   :  { %v5044_v5 = vmul.f32 %v16971_v58, %v13023_v28  ;;  %v5045_v43 = vmul.f32 %v16971_v58, %v13025_v59  ;;  %v5046_v56 = vmul.f32 %v16971_v58, %v13027_v9  ;;  %v5093_v29 = vadd.f32 %v5040_v50, %v4982_v35  ;;  %v13267_v28 = vld [vmem:[%s14510_s0 + $0x320] sm:$0xff] }
 0x3e8   :  { %16972 = vst [vmem:[#allocation28_spill] sm:$0xff] %v13248_v39  ;;  %v5151_v21 = vmul.f32 %v16973_v17, %v13128_v27  ;;  %v5094_v30 = vadd.f32 %v5041_v0, %v4983_v42  ;;  %v5095_v62 = vadd.f32 %v5042_v23, %v4984_v3  ;;  %v5152_v2 = vmul.f32 %v16973_v17, %v13131_v6 }
 0x3e9   :  { %v5097_v38 = vadd.f32 %v5044_v5, %v4986_v34  ;;  %v5098_v51 = vadd.f32 %v5045_v43, %v4987_v36  ;;  %v5099_v59 = vadd.f32 %v5046_v56, %v4988_v53  ;;  %v5153_v46 = vmul.f32 %v16973_v17, %v13136_v57  ;;  %v13285_v57 = vld [vmem:[%s14510_s0 + $0x318] sm:$0xf]  ;;  %v13319_v5 = vld [vmem:[%s14510_s0 + $0x340] sm:$0xff] }
 0x3ea   :  { %v5155_v19 = vmul.f32 %v16973_v17, %v13140_v55  ;;  %v5156_v27 = vmul.f32 %v16973_v17, %v13143_v63  ;;  %v5157_v44 = vmul.f32 %v16973_v17, %v13148_v60  ;;  %v5205_v6 = vadd.f32 %v5151_v21, %v5093_v29  ;;  %v13313_v53 = vld [vmem:[%s14510_s0 + $0x338] sm:$0xf]  ;;  %16981 = vst [vmem:[#allocation58_spill] sm:$0xff] %v13319_v5 }
 0x3eb   :  { %v5206_v22 = vadd.f32 %v5152_v2, %v5094_v30  ;;  %v5207_v33 = vadd.f32 %v5153_v46, %v5095_v62  ;;  %v449_v55 = vrot.slane %v13285_v57, 7  ;;  %v451_v63 = vrot.slane %v13267_v28, 7  ;;  %16980 = vst [vmem:[#allocation31_spill] sm:$0xff] %v13313_v53 }
 0x3ec   :  { %v5209_v15 = vadd.f32 %v5155_v19, %v5097_v38  ;;  %v5210_v20 = vadd.f32 %v5156_v27, %v5098_v51  ;;  %v5211_v24 = vadd.f32 %v5157_v44, %v5099_v59  ;;  %v5263_v31 = vadd.f32 %v16974_v40, %v5205_v6  ;;  %v13329_v38 = vld [vmem:[%s14510_s0 + $0x348] sm:$0xff]  ;;  %v13338_v59 = vld [vmem:[%s14510_s0 + $0x350] sm:$0xff] }
 0x3ed   :  { %v5264_v18 = vadd.f32 %v16974_v40, %v5206_v22  ;;  %v13297_v11 = vadd.f32 %v16974_v40, %v5207_v33  ;;  %v16978_v37 = vrot.slane %v16977_v61, 7  ;;  %v452_v42 = vrot.slane %v13280_v45, 7  ;;  %16982 = vst [vmem:[#allocation11_spill] sm:$0xff] %v13329_v38  ;;  %16984 = vst [vmem:[#allocation89_spill] sm:$0xff] %v13338_v59 }
 0x3ee   :  { %v5267_v32 = vadd.f32 %v16974_v40, %v5209_v15  ;;  %v5268_v50 = vadd.f32 %v16974_v40, %v5210_v20  ;;  %v13308_v3 = vadd.f32 %v16974_v40, %v5211_v24  ;;  %v5319_v34 = vmax.f32 %v5263_v31, 0.0 }
 0x3ef   :  { %16976 = vst [vmem:[#allocation47_spill] sm:$0xff] %v13297_v11  ;;  %v13303_v35 = vsel %vm273_vm0, %v16978_v37, %v449_v55  ;;  %v5320_v36 = vmax.f32 %v5264_v18, 0.0  ;;  %v15321_v0 = vmax.f32 %v13297_v11, 0.0  ;;  %v13322_v43 = vsel %vm273_vm0, %v451_v63, %v452_v42 }
 0x3f0   :  { %16979 = vst [vmem:[#allocation140_spill] sm:$0xff] %v13308_v3  ;;  %v5323_v23 = vmax.f32 %v5267_v32, 0.0  ;;  %v454_v56 = vrot.slane %v13294_v25, 7  ;;  %v5324_v29 = vmax.f32 %v5268_v50, 0.0  ;;  %v15320_v21 = vmax.f32 %v13308_v3, 0.0 }
 0x3f1   :  { %v5455_v30 = vrot.slane %v5319_v34, 2  ;;  %v5456_v62 = vrot.slane %v5320_v36, 2  ;;  %v13333_v2 = vrot.slane %v15321_v0, 2  ;;  %v456_v19 = vrot.slane %v13313_v53, 7  ;;  %v13362_v32 = vld [vmem:[%s14510_s0 + $0x358] sm:$0xf] }
 0x3f2   :  { %v5462_v51 = vrot.slane %v5323_v23, 2  ;;  %v13341_v46 = vsel %vm273_vm0, %v452_v42, %v454_v56  ;;  %v5463_v44 = vrot.slane %v5324_v29, 2  ;;  %v13347_v6 = vrot.slane %v15320_v21, 2  ;;  %16986 = vst [vmem:[#allocation142_spill] sm:$0xff] %v13362_v32  ;;  %v16991_v21 = vld [vmem:[#allocation25_spill] sm:$0xff] }
 0x3f3   :  { %16983 = vst [vmem:[#allocation75_spill] sm:$0xff] %v13333_v2  ;;  %v5457_v27 = vsel %vm4252_vm4, %v5455_v30, %v5456_v62  ;;  %v458_v22 = vrot.slane %v13319_v5, 7  ;;  %v5459_v33 = vsel %vm4252_vm4, %v5456_v62, %v13333_v2  ;;  %v13353_v55 = vsel %vm273_vm0, %v454_v56, %v456_v19  ;;  %v16987_v62 = vld [vmem:[#allocation147_spill] sm:$0xff] }
 0x3f4   :  { %16985 = vst [vmem:[#allocation22_spill] sm:$0xff] %v13347_v6  ;;  %v5599_v15 = vmax.f32 %v5319_v34, %v5457_v27  ;;  %v459_v20 = vrot.slane %v13329_v38, 7  ;;  %v5464_v24 = vsel %vm4252_vm4, %v5462_v51, %v5463_v44  ;;  %v5466_v31 = vsel %vm4252_vm4, %v5463_v44, %v13347_v6  ;;  %v16988_v51 = vld [vmem:[#allocation55_spill] sm:$0xff]  ;;  %v16989_v44 = vld [vmem:[#allocation32_spill] sm:$0xff] }
 0x3f5   :  { %v5600_v18 = vmax.f32 %v5320_v36, %v5459_v33  ;;  %v461_v61 = vrot.slane %v13338_v59, 7  ;;  %v5603_v37 = vmax.f32 %v5323_v23, %v5464_v24  ;;  %v5604_v42 = vmax.f32 %v5324_v29, %v5466_v31 }
 0x3f6   :  { %v13366_v50 = vsel %vm273_vm0, %v458_v22, %v459_v20  ;;  %v463_v34 = vrot.slane %v13362_v32, 7  ;;  %v13373_v30 = vsel %vm273_vm0, 0.0, %v451_v63  ;;  %v13376_v36 = vsel %vm273_vm0, 0.0, %v458_v22  ;;  %v6364_v63 = vld [vmem:[%s14510_s0 + $0x2e0] sm:$0xff]  ;;  %v16990_v22 = vld [vmem:[#allocation98_spill] sm:$0xff] }
 0x3f7   :  { %v13370_v56 = vsel %vm273_vm0, %v459_v20, %v461_v61  ;;  %v701_v19 = vmul.f32 %v16988_v51, %v16987_v62  ;;  %v5639_v27 = vmax.f32 %v5599_v15, %v5603_v37  ;;  %v5640_v23 = vmax.f32 %v5600_v18, %v5604_v42  ;;  %v13394_v15 = vld [vmem:[%s14510_s0 + $0x2f8] sm:$0xf]  ;;  %v6366_v18 = vld [vmem:[%s14510_s0 + $0x300] sm:$0xff] }
 0x3f8   :  { %v13381_v29 = vsel %vm273_vm0, %v461_v61, %v463_v34  ;;  %v702_v33 = vmul.f32 %v16988_v51, %v16989_v44  ;;  %v705_v20 = vmul.f32 %v16988_v51, %v13303_v35  ;;  %v919_v24 = vmul.f32 %v6364_v63, %v16990_v22 }
 0x3f9   :  { %v922_v31 = vmul.f32 %v13394_v15, %v16990_v22  ;;  %v923_v61 = vmul.f32 %v6366_v18, %v16990_v22  ;;  %v6250_v37 = vpack.c.bf16 %v5640_v23, %v5639_v27  ;;  %v926_v42 = vmul.f32 %v13285_v57, %v16990_v22 }
 0x3fa   :  { %v1224_v34 = vrot.slane %v13267_v28, 1  ;;  %v1225_v63 = vrot.slane %v13280_v45, 1  ;;  %v1029_v0 = vadd.f32 %v919_v24, %v16991_v21  ;;  %v1227_v60 = vrot.slane %v13294_v25, 1  ;;  %v16996_v24 = vld [vmem:[#allocation12_spill] sm:$0xff] }
 0x3fb   :  { %v1032_v51 = vadd.f32 %v922_v31, %v701_v19  ;;  %v1033_v13 = vadd.f32 %v923_v61, %v702_v33  ;;  %6251 = vmatpush1.bf16.msra.mxu0 %v6250_v37  ;;  %v1036_v52 = vadd.f32 %v926_v42, %v705_v20  ;;  %v1229_v27 = vrot.slane %v13313_v53, 1  ;;  %v16998_v37 = vld [vmem:[#allocation82_spill] sm:$0xff] }
 0x3fc   :  { %v13409_v3 = vsel %vm1046_vm1, %v1224_v34, %v1225_v63  ;;  %v1231_v23 = vrot.slane %v13319_v5, 1  ;;  %v16993_v22 = vmov 0.0|0.0   ;;  %v13415_v11 = vsel %vm1046_vm1, %v1225_v63, %v1227_v60 }
 0x3fd   :  { %16992 = vst [vmem:[#allocation30_spill] sm:$0xff] %v13409_v3  ;;  %6252 = vmatprep.subr.bf16.mxu0 %v16993_v22  ;;  %16994 = vst [vmem:[#allocation143_spill] sm:$0xff] %v13415_v11  ;;  %v1232_v21 = vrot.slane %v13329_v38, 1  ;;  %v1234_v19 = vrot.slane %v13338_v59, 1  ;;  %v1236_v33 = vrot.slane %v13362_v32, 1  ;;  %v13421_v20 = vsel %vm1046_vm1, %v1227_v60, %v1229_v27 }
 0x3fe   :  { %16995 = vst [vmem:[#allocation146_spill] sm:$0xff] %v13421_v20  ;;  %v16997_v31 = vrot.slane %v16996_v24, 1  ;;  %v16999_v42 = vrot.slane %v16998_v37, 1  ;;  %v13434_v63 = vsel %vm1348_vm2, %v1229_v27, 0.0  ;;  %v17006_v37 = vld [vmem:[#allocation126_spill] sm:$0xff]  ;;  %v17007_v27 = vld [vmem:[#allocation88_spill] sm:$0xff]  ;;  %v1938_v9 = vmul.f32 %v13394_v15, %v17015_v16 }
 0x3ff   :  { %17000 = vst [vmem:[#allocation71_spill] sm:$0xff] %v13434_v63  ;;  %v13437_v22 = vsel %vm1046_vm1, %v1231_v23, %v1232_v21  ;;  %v13440_v6 = vsel %vm1046_vm1, %v1232_v21, %v1234_v19  ;;  %v13443_v60 = vsel %vm1046_vm1, %v1234_v19, %v1236_v33  ;;  %v13446_v24 = vsel %vm1348_vm2, %v1236_v33, 0.0  ;;  %v17008_v21 = vld [vmem:[#allocation100_spill] sm:$0xff]  ;;  %v17009_v19 = vld [vmem:[#allocation87_spill] sm:$0xff] }
 0x400   :  { %v13426_v61 = vsel %vm1348_vm2, %v16997_v31, 0.0  ;;  %v13431_v34 = vsel %vm1348_vm2, %v16999_v42, 0.0  ;;  %17001 = vst [vmem:[#allocation114_spill] sm:$0xff] %v13437_v22  ;;  %17002 = vst [vmem:[#allocation117_spill] sm:$0xff] %v13440_v6  ;;  %v17005_v31 = vld [vmem:[#allocation95_spill] sm:$0xff]  ;;  %v1476_v40 = vmul.f32 %v17006_v37, %v17007_v27  ;;  %v1713_v17 = vmul.f32 %v17008_v21, %v16989_v44 }
 0x401   :  { %17003 = vst [vmem:[#allocation108_spill] sm:$0xff] %v13443_v60  ;;  %17004 = vst [vmem:[#allocation115_spill] sm:$0xff] %v13446_v24  ;;  %v1472_v2 = vmul.f32 %v17006_v37, %v17005_v31  ;;  %v1475_v42 = vmul.f32 %v17006_v37, %v13426_v61  ;;  %v1479_v23 = vmul.f32 %v17006_v37, %v13431_v34  ;;  %v17010_v33 = vld [vmem:[#allocation139_spill] sm:$0xff] }
 0x402   :  { %v1714_v39 = vmul.f32 %v17008_v21, %v17009_v19  ;;  %v1715_v58 = vmul.f32 %v17008_v21, %v17010_v33  ;;  %v1716_v31 = vmul.f32 %v17008_v21, %v13303_v35  ;;  %v1587_v10 = vadd.f32 %v1476_v40, %v1033_v13 }
 0x403   :  { %v1583_v47 = vadd.f32 %v1472_v2, %v1029_v0  ;;  %v1586_v12 = vadd.f32 %v1475_v42, %v1032_v51  ;;  %v1590_v48 = vadd.f32 %v1479_v23, %v1036_v52  ;;  %v1717_v26 = vmul.f32 %v17008_v21, %v13373_v30  ;;  %v17013_v52 = vld [vmem:[#allocation72_spill] sm:$0xff]  ;;  %v17014_v51 = vld [vmem:[#allocation145_spill] sm:$0xff] }
 0x404   :  { %v1718_v37 = vmul.f32 %v17008_v21, %v13322_v43  ;;  %v1719_v44 = vmul.f32 %v17008_v21, %v13341_v46  ;;  %v1720_v19 = vmul.f32 %v17008_v21, %v13353_v55  ;;  %v1826_v8 = vadd.f32 %v1714_v39, %v17011_v41  ;;  %v17017_v21 = vld [vmem:[#allocation73_spill] sm:$0xff] }
 0x405   :  { %v1825_v33 = vadd.f32 %v1713_v17, %v1583_v47  ;;  %v1827_v0 = vadd.f32 %v1715_v58, %v17012_v54  ;;  %v1828_v2 = vadd.f32 %v1716_v31, %v1586_v12  ;;  %v1829_v13 = vadd.f32 %v1717_v26, %v1587_v10  ;;  %v6367_v47 = vld [vmem:[%s14510_s0 + $0x308] sm:$0xff]  ;;  %v6368_v54 = vld [vmem:[%s14510_s0 + $0x310] sm:$0xff] }
 0x406   :  { %v1830_v40 = vadd.f32 %v1718_v37, %v17013_v52  ;;  %v1831_v42 = vadd.f32 %v1719_v44, %v17014_v51  ;;  %v1832_v23 = vadd.f32 %v1720_v19, %v1590_v48  ;;  %v1939_v14 = vmul.f32 %v6366_v18, %v17015_v16  ;;  %v17016_v17 = vld [vmem:[#allocation33_spill] sm:$0xff] }
 0x407   :  { %v1940_v41 = vmul.f32 %v6367_v47, %v17015_v16  ;;  %v1941_v12 = vmul.f32 %v6368_v54, %v17015_v16  ;;  %v1942_v26 = vmul.f32 %v13285_v57, %v17015_v16  ;;  %v1943_v10 = vmul.f32 %v17015_v16, %v13267_v28 }
 0x408   :  { %v1944_v48 = vmul.f32 %v17015_v16, %v13280_v45  ;;  %v1945_v58 = vmul.f32 %v17015_v16, %v13294_v25  ;;  %v1946_v39 = vmul.f32 %v17015_v16, %v13313_v53  ;;  %v2050_v18 = vadd.f32 %v1938_v9, %v17016_v17  ;;  %v17019_v16 = vld [vmem:[#allocation151_spill] sm:$0xff] }
 0x409   :  { %v2051_v37 = vadd.f32 %v1939_v14, %v1825_v33  ;;  %v2052_v31 = vadd.f32 %v1940_v41, %v1826_v8  ;;  %v2053_v44 = vadd.f32 %v1941_v12, %v1827_v0  ;;  %v2054_v19 = vadd.f32 %v1942_v26, %v1828_v2  ;;  %v17020_v26 = vld [vmem:[#allocation141_spill] sm:$0xff] }
 0x40a   :  { %v2055_v52 = vadd.f32 %v1943_v10, %v1829_v13  ;;  %v2056_v51 = vadd.f32 %v1944_v48, %v1830_v40  ;;  %v2057_v47 = vadd.f32 %v1945_v58, %v1831_v42  ;;  %v2058_v54 = vadd.f32 %v1946_v39, %v1832_v23 }
 0x40b   :  { %v2176_v1 = vmul.f32 %v17017_v21, %v13426_v61  ;;  %v2177_v49 = vmul.f32 %v17017_v21, %v17007_v27  ;;  %v2178_v7 = vmul.f32 %v17017_v21, %v17018_v4  ;;  %v2179_v9 = vmul.f32 %v17017_v21, %v17019_v16 }
 0x40c   :  { %v2180_v14 = vmul.f32 %v17017_v21, %v13431_v34  ;;  %v2181_v8 = vmul.f32 %v17017_v21, %v13409_v3  ;;  %v2182_v33 = vmul.f32 %v17017_v21, %v13415_v11  ;;  %v2183_v0 = vmul.f32 %v17017_v21, %v13421_v20 }
 0x40d   :  { %v2184_v27 = vmul.f32 %v17017_v21, %v13434_v63  ;;  %v2288_v2 = vadd.f32 %v2176_v1, %v2050_v18  ;;  %v2289_v4 = vadd.f32 %v2177_v49, %v2051_v37  ;;  %v2290_v13 = vadd.f32 %v2178_v7, %v2052_v31  ;;  %v17021_v18 = vld [vmem:[#allocation38_spill] sm:$0xff] }
 0x40e   :  { %v2291_v40 = vadd.f32 %v2179_v9, %v2053_v44  ;;  %v2292_v16 = vadd.f32 %v2180_v14, %v2054_v19  ;;  %v2293_v42 = vadd.f32 %v2181_v8, %v2055_v52  ;;  %v2294_v23 = vadd.f32 %v2182_v33, %v2056_v51  ;;  %v17022_v8 = vld [vmem:[#allocation42_spill] sm:$0xff] }
 0x40f   :  { %v2295_v41 = vadd.f32 %v2183_v0, %v2057_v47  ;;  %v2296_v12 = vadd.f32 %v2184_v27, %v2058_v54  ;;  %v2398_v10 = vmul.f32 %v17020_v26, %v16987_v62  ;;  %v2402_v48 = vmul.f32 %v17020_v26, %v13303_v35 }
 0x410   :  { %v2403_v58 = vmul.f32 %v17020_v26, %v13373_v30  ;;  %v2404_v1 = vmul.f32 %v17020_v26, %v13322_v43  ;;  %v2405_v7 = vmul.f32 %v17020_v26, %v13341_v46  ;;  %v2406_v49 = vmul.f32 %v17020_v26, %v13353_v55 }
 0x411   :  { %v2407_v39 = vmul.f32 %v17020_v26, %v13376_v36  ;;  %v2408_v62 = vmul.f32 %v17020_v26, %v13366_v50  ;;  %v2409_v35 = vmul.f32 %v17020_v26, %v13370_v56  ;;  %v2410_v17 = vmul.f32 %v17020_v26, %v13381_v29 }
 0x412   :  { %v2508_v37 = vadd.f32 %v2398_v10, %v17021_v18  ;;  %v2512_v31 = vadd.f32 %v2402_v48, %v2288_v2  ;;  %v2513_v44 = vadd.f32 %v2403_v58, %v2289_v4  ;;  %v2514_v19 = vadd.f32 %v2404_v1, %v2290_v13 }
 0x413   :  { %v2515_v52 = vadd.f32 %v2405_v7, %v2291_v40  ;;  %v2516_v51 = vadd.f32 %v2406_v49, %v2292_v16  ;;  %v2517_v47 = vadd.f32 %v2407_v39, %v2293_v42  ;;  %v2518_v54 = vadd.f32 %v2408_v62, %v2294_v23  ;;  %v17023_v39 = vld [vmem:[#allocation43_spill] sm:$0xff] }
 0x414   :  { %v2519_v9 = vadd.f32 %v2409_v35, %v2295_v41  ;;  %v2520_v14 = vadd.f32 %v2410_v17, %v2296_v12  ;;  %v2622_v33 = vmul.f32 %v13394_v15, %v17022_v8  ;;  %v2626_v0 = vmul.f32 %v13285_v57, %v17022_v8 }
 0x415   :  { %v2627_v27 = vmul.f32 %v17022_v8, %v13267_v28  ;;  %v2628_v2 = vmul.f32 %v17022_v8, %v13280_v45  ;;  %v2629_v4 = vmul.f32 %v17022_v8, %v13294_v25  ;;  %v2630_v13 = vmul.f32 %v17022_v8, %v13313_v53  ;;  %v17064_v53 = vld [vmem:[#allocation69_spill] sm:$0xff] }
 0x416   :  { %v2631_v40 = vmul.f32 %v17022_v8, %v13319_v5  ;;  %v2632_v15 = vmul.f32 %v17022_v8, %v13329_v38  ;;  %v2633_v57 = vmul.f32 %v17022_v8, %v13338_v59  ;;  %v2634_v16 = vmul.f32 %v17022_v8, %v13362_v32 }
 0x417   :  { %v2731_v42 = vadd.f32 %v2622_v33, %v2508_v37  ;;  %v2735_v23 = vadd.f32 %v2626_v0, %v2512_v31  ;;  %v2736_v41 = vadd.f32 %v2627_v27, %v2513_v44  ;;  %v2737_v12 = vadd.f32 %v2628_v2, %v2514_v19 }
 0x418   :  { %v2738_v10 = vadd.f32 %v2629_v4, %v2515_v52  ;;  %v2739_v48 = vadd.f32 %v2630_v13, %v2516_v51  ;;  %v2740_v58 = vadd.f32 %v2631_v40, %v2517_v47  ;;  %v2741_v1 = vadd.f32 %v2632_v15, %v2518_v54  ;;  %v17024_v4 = vld [vmem:[#allocation44_spill] sm:$0xff] }
 0x419   :  { %v2742_v7 = vadd.f32 %v2633_v57, %v2519_v9  ;;  %v2743_v49 = vadd.f32 %v2634_v16, %v2520_v14  ;;  %v2845_v62 = vmul.f32 %v17023_v39, %v13426_v61  ;;  %v2849_v35 = vmul.f32 %v17023_v39, %v13431_v34 }
 0x41a   :  { %v2850_v17 = vmul.f32 %v17023_v39, %v13409_v3  ;;  %v2851_v18 = vmul.f32 %v17023_v39, %v13415_v11  ;;  %v2852_v37 = vmul.f32 %v17023_v39, %v13421_v20  ;;  %v2853_v31 = vmul.f32 %v17023_v39, %v13434_v63  ;;  %v17059_v63 = vld [vmem:[#allocation76_spill] sm:$0xff]  ;;  %v17060_v20 = vld [vmem:[#allocation67_spill] sm:$0xff]  ;;  %v17062_v3 = vld [vmem:[#allocation129_spill] sm:$0xff] }
 0x41b   :  { %v2854_v44 = vmul.f32 %v17023_v39, %v13437_v22  ;;  %v2855_v61 = vmul.f32 %v17023_v39, %v13440_v6  ;;  %v2856_v34 = vmul.f32 %v17023_v39, %v13443_v60  ;;  %v2857_v19 = vmul.f32 %v17023_v39, %v13446_v24  ;;  %v17057_v60 = vld [vmem:[#allocation94_spill] sm:$0xff]  ;;  %v17058_v6 = vld [vmem:[#allocation60_spill] sm:$0xff] }
 0x41c   :  { %v2955_v52 = vadd.f32 %v2845_v62, %v2731_v42  ;;  %v2959_v51 = vadd.f32 %v2849_v35, %v2735_v23  ;;  %v2960_v47 = vadd.f32 %v2850_v17, %v2736_v41  ;;  %v2961_v54 = vadd.f32 %v2851_v18, %v2737_v12 }
 0x41d   :  { %v2962_v9 = vadd.f32 %v2852_v37, %v2738_v10  ;;  %v2963_v14 = vadd.f32 %v2853_v31, %v2739_v48  ;;  %v2964_v33 = vadd.f32 %v2854_v44, %v2740_v58  ;;  %v2965_v0 = vadd.f32 %v2855_v61, %v2741_v1 }
 0x41e   :  { %v2966_v27 = vadd.f32 %v2856_v34, %v2742_v7  ;;  %v2967_v2 = vadd.f32 %v2857_v19, %v2743_v49  ;;  %v3069_v13 = vadd.f32 %v17024_v4, %v2955_v52  ;;  %v3073_v40 = vadd.f32 %v17024_v4, %v2959_v51 }
 0x41f   :  { %v3074_v15 = vadd.f32 %v17024_v4, %v2960_v47  ;;  %v3075_v57 = vadd.f32 %v17024_v4, %v2961_v54  ;;  %v3076_v16 = vadd.f32 %v17024_v4, %v2962_v9  ;;  %v13583_v42 = vadd.f32 %v17024_v4, %v2963_v14  ;;  %v17025_v54 = vld [vmem:[#allocation39_spill] sm:$0xff]  ;;  %v17026_v14 = vld [vmem:[#allocation9_spill] sm:$0xff] }
 0x420   :  { %v3078_v23 = vadd.f32 %v17024_v4, %v2964_v33  ;;  %v3079_v41 = vadd.f32 %v17024_v4, %v2965_v0  ;;  %v3080_v12 = vadd.f32 %v17024_v4, %v2966_v27  ;;  %v13589_v10 = vadd.f32 %v17024_v4, %v2967_v2 }
 0x421   :  { %v3181_v48 = vmax.f32 %v3069_v13, 0.0  ;;  %v3185_v58 = vmax.f32 %v3073_v40, 0.0  ;;  %v3186_v1 = vmax.f32 %v3074_v15, 0.0  ;;  %v3187_v7 = vmax.f32 %v3075_v57, 0.0 }
 0x422   :  { %v3188_v49 = vmax.f32 %v3076_v16, 0.0  ;;  %v15351_v62 = vmax.f32 %v13583_v42, 0.0  ;;  %v3190_v35 = vmax.f32 %v3078_v23, 0.0  ;;  %v3191_v17 = vmax.f32 %v3079_v41, 0.0  ;;  %v17027_v41 = vld [vmem:[#allocation107_spill] sm:$0xff] }
 0x423   :  { %v3192_v18 = vmax.f32 %v3080_v12, 0.0  ;;  %v15353_v37 = vmax.f32 %v13589_v10, 0.0  ;;  %v3473_v31 = vrot.slane %v3181_v48, 1  ;;  %v3480_v44 = vrot.slane %v3185_v58, 1 }
 0x424   :  { %v3482_v61 = vrot.slane %v3186_v1, 1  ;;  %v3483_v34 = vrot.slane %v3187_v7, 1  ;;  %v3485_v19 = vrot.slane %v3188_v49, 1  ;;  %v13595_v52 = vrot.slane %v15351_v62, 1 }
 0x425   :  { %v3489_v51 = vrot.slane %v3190_v35, 1  ;;  %v3490_v47 = vrot.slane %v3191_v17, 1  ;;  %v3474_v9 = vsel %vm1046_vm1, %v17025_v54, %v3473_v31  ;;  %v3481_v33 = vsel %vm1046_vm1, %v17026_v14, %v3480_v44 }
 0x426   :  { %v3484_v0 = vsel %vm1046_vm1, %v3482_v61, %v3483_v34  ;;  %v3492_v27 = vrot.slane %v3192_v18, 1  ;;  %v3486_v2 = vsel %vm1046_vm1, %v3483_v34, %v3485_v19  ;;  %v3488_v13 = vsel %vm1046_vm1, %v3485_v19, %v13595_v52  ;;  %v17029_v19 = vld [vmem:[#allocation148_spill] sm:$0xff] }
 0x427   :  { %v3491_v40 = vsel %vm1046_vm1, %v3489_v51, %v3490_v47  ;;  %v13608_v15 = vrot.slane %v15353_v37, 1  ;;  %v3644_v16 = vsel %vm1348_vm2, %v3473_v31, 0.0  ;;  %v3645_v23 = vsel %vm1348_vm2, %v3480_v44, 0.0 }
 0x428   :  { %v3493_v57 = vsel %vm1046_vm1, %v3490_v47, %v3492_v27  ;;  %v17028_v12 = vmax.f32 %v17027_v41, 0.0  ;;  %v3741_v54 = vmax.f32 %v3181_v48, %v3644_v16  ;;  %v17030_v14 = vmax.f32 %v17029_v19, 0.0  ;;  %v17033_v16 = vld [vmem:[#allocation53_spill] sm:$0xff] }
 0x429   :  { %v3495_v34 = vsel %vm1046_vm1, %v3492_v27, %v13608_v15  ;;  %v3745_v62 = vmax.f32 %v3185_v58, %v3645_v23  ;;  %v3746_v4 = vmax.f32 %v3186_v1, %v3484_v0  ;;  %v3747_v37 = vmax.f32 %v3187_v7, %v3486_v2  ;;  %v17032_v27 = vld [vmem:[#allocation112_spill] sm:$0xff]  ;;  %v17038_v2 = vld [vmem:[#allocation49_spill] sm:$0xff] }
 0x42a   :  { %v3740_v61 = vmax.f32 %v17028_v12, %v3474_v9  ;;  %v3744_v51 = vmax.f32 %v17030_v14, %v3481_v33  ;;  %v3748_v39 = vmax.f32 %v3188_v49, %v3488_v13  ;;  %v3750_v8 = vmax.f32 %v3190_v35, %v3491_v40  ;;  %v17031_v9 = vld [vmem:[#allocation63_spill] sm:$0xff]  ;;  %v17034_v35 = vld [vmem:[#allocation10_spill] sm:$0xff] }
 0x42b   :  { %v3751_v47 = vmax.f32 %v3191_v17, %v3493_v57  ;;  %v3752_v26 = vmax.f32 %v3192_v18, %v3495_v34  ;;  %v13621_v44 = vmax.f32 %v3741_v54, %v3745_v62  ;;  %v3942_v12 = vrot.slane %v17031_v9, 6  ;;  %v17041_v54 = vld [vmem:[#allocation86_spill] sm:$0xff] }
 0x42c   :  { %v13619_v31 = vmax.f32 %v3740_v61, %v3744_v51  ;;  %v13623_v41 = vmax.f32 %v3746_v4, %v3750_v8  ;;  %v3949_v48 = vrot.slane %v17032_v27, 6  ;;  %v4184_v33 = vmul.f32 %v17033_v16, %v17031_v9  ;;  %v17036_v4 = vld [vmem:[#allocation111_spill] sm:$0xff]  ;;  %v17040_v61 = vld [vmem:[#allocation132_spill] sm:$0xff] }
 0x42d   :  { %v13629_v58 = vmax.f32 %v3747_v37, %v3751_v47  ;;  %v13631_v1 = vmax.f32 %v3748_v39, %v3752_v26  ;;  %v3956_v49 = vrot.slane %v13621_v44, 6  ;;  %v17035_v62 = vrot.slane %v17034_v35, 6 }
 0x42e   :  { %v15358_v7 = vrot.slane %v13619_v31, 6  ;;  %v17037_v17 = vrot.slane %v17036_v4, 6  ;;  %v3958_v0 = vrot.slane %v13623_v41, 6  ;;  %v4188_v37 = vmul.f32 %v17033_v16, %v17032_v27 }
 0x42f   :  { %v3943_v8 = vsel %vm3871_vm3, %v17035_v62, %v3942_v12  ;;  %v15357_v39 = vrot.slane %v13629_v58, 6  ;;  %v4332_v34 = vrot.slane %v17040_v61, 2  ;;  %v4333_v19 = vrot.slane %v17041_v54, 2 }
 0x430   :  { %v3950_v18 = vsel %vm3871_vm3, %v17037_v17, %v3949_v48  ;;  %v13647_v26 = vsel %vm3871_vm3, %v15358_v7, %v3956_v49  ;;  %v4075_v13 = vmul.f32 %v17038_v2, %v3943_v8  ;;  %v13653_v57 = vsel %vm3871_vm3, 0.0, %v3958_v0 }
 0x431   :  { %v4079_v40 = vmul.f32 %v17038_v2, %v3950_v18  ;;  %v13657_v23 = vmul.f32 %v17038_v2, %v13647_v26  ;;  %v13664_v14 = vsel %vm3871_vm3, %v3958_v0, %v15357_v39  ;;  %v13668_v51 = vmul.f32 %v17038_v2, %v13653_v57 }
 0x432   :  { %17042 = vst [vmem:[#allocation133_spill] sm:$0xff] %v13664_v14  ;;  %v4238_v47 = vadd.f32 %v4184_v33, %v4075_v13  ;;  %v13672_v48 = vmul.f32 %v17038_v2, %v13664_v14  ;;  %v13675_v49 = vsel %vm4252_vm4, %v4332_v34, %v4333_v19  ;;  %v15359_v35 = vrot.slane %v13619_v31, 2  ;;  %v17047_v34 = vld [vmem:[#allocation61_spill] sm:$0xff] }
 0x433   :  { %17039 = vst [vmem:[#allocation118_spill] sm:$0xff] %v13657_v23  ;;  %17043 = vst [vmem:[#allocation116_spill] sm:$0xff] %v13668_v51  ;;  %v4242_v12 = vadd.f32 %v4188_v37, %v4079_v40  ;;  %v4339_v62 = vrot.slane %v13623_v41, 2  ;;  %v4340_v17 = vrot.slane %v13629_v58, 2  ;;  %v17045_v39 = vrot.slane %v17031_v9, 2 }
 0x434   :  { %17044 = vst [vmem:[#allocation134_spill] sm:$0xff] %v13672_v48  ;;  %v17046_v37 = vrot.slane %v17032_v27, 2  ;;  %v4336_v40 = vsel %vm4252_vm4, %v4333_v19, %v15359_v35  ;;  %v13694_v48 = vmul.f32 %v17047_v34, %v13675_v49  ;;  %v17053_v19 = vld [vmem:[#allocation80_spill] sm:$0xff]  ;;  %v4691_v11 = vmul.f32 %v17060_v20, %v17059_v63 }
 0x435   :  { %v4410_v33 = vsel %vm3871_vm3, %v17045_v39, 0.0  ;;  %v13697_v0 = vsel %vm4252_vm4, %v4339_v62, %v4340_v17  ;;  %v17050_v39 = vrot.slane %v13631_v1, 2  ;;  %v4581_v35 = vmul.f32 %v17053_v19, %v3943_v8 }
 0x436   :  { %v4411_v13 = vsel %vm3871_vm3, %v17046_v37, 0.0  ;;  %v4456_v7 = vmul.f32 %v17047_v34, %v4410_v33  ;;  %17048 = vst [vmem:[#allocation119_spill] sm:$0xff] %v13694_v48  ;;  %17049 = vst [vmem:[#allocation45_spill] sm:$0xff] %v13697_v0  ;;  %v13705_v37 = vmul.f32 %v17047_v34, %v4336_v40  ;;  %v13710_v16 = vmul.f32 %v17047_v34, %v13697_v0 }
 0x437   :  { %v4460_v23 = vmul.f32 %v17047_v34, %v4411_v13  ;;  %v13702_v51 = vsel %vm4252_vm4, %v4340_v17, %v17050_v39  ;;  %v4585_v24 = vmul.f32 %v17053_v19, %v3950_v18  ;;  %v4589_v17 = vmul.f32 %v17053_v19, %v13647_v26  ;;  %v17056_v39 = vld [vmem:[#allocation91_spill] sm:$0xff] }
 0x438   :  { %17051 = vst [vmem:[#allocation120_spill] sm:$0xff] %v13702_v51  ;;  %17052 = vst [vmem:[#allocation136_spill] sm:$0xff] %v13705_v37  ;;  %v13714_v48 = vmul.f32 %v17047_v34, %v13702_v51  ;;  %v4511_v62 = vadd.f32 %v4456_v7, %v4238_v47  ;;  %v4633_v37 = vadd.f32 %v17057_v60, %v17056_v39  ;;  %v17061_v60 = vld [vmem:[#allocation68_spill] sm:$0xff] }
 0x439   :  { %17054 = vst [vmem:[#allocation50_spill] sm:$0xff] %v13710_v16  ;;  %v4515_v21 = vadd.f32 %v4460_v23, %v4242_v12  ;;  %v4637_v22 = vadd.f32 %v4581_v35, %v17058_v6  ;;  %v4695_v16 = vmul.f32 %v17060_v20, %v17031_v9  ;;  %v4699_v7 = vmul.f32 %v17060_v20, %v17032_v27 }
 0x43a   :  { %17055 = vst [vmem:[#allocation102_spill] sm:$0xff] %v13714_v48  ;;  %v4700_v23 = vmul.f32 %v17060_v20, %v17040_v61  ;;  %v4641_v47 = vadd.f32 %v4585_v24, %v4511_v62  ;;  %v4703_v48 = vmul.f32 %v17060_v20, %v13621_v44  ;;  %v4821_v39 = vmul.f32 %v17061_v60, %v4410_v33 }
 0x43b   :  { %v4645_v12 = vadd.f32 %v4589_v17, %v4515_v21  ;;  %v4747_v6 = vadd.f32 %v4691_v11, %v4633_v37  ;;  %v4751_v35 = vadd.f32 %v4695_v16, %v4637_v22  ;;  %v4825_v32 = vmul.f32 %v17061_v60, %v4411_v13  ;;  %v17063_v21 = vld [vmem:[#allocation34_spill] sm:$0xff]  ;;  %v17065_v16 = vld [vmem:[#allocation48_spill] sm:$0xff] }
 0x43c   :  { %v4756_v63 = vadd.f32 %v4700_v23, %v17062_v3  ;;  %v4755_v59 = vadd.f32 %v4699_v7, %v4641_v47  ;;  %v4826_v5 = vmul.f32 %v17061_v60, %v13675_v49  ;;  %v4827_v24 = vmul.f32 %v17061_v60, %v4336_v40  ;;  %v17066_v7 = vld [vmem:[#allocation23_spill] sm:$0xff] }
 0x43d   :  { %v13735_v38 = vadd.f32 %v4703_v48, %v4645_v12  ;;  %v4873_v62 = vadd.f32 %v17063_v21, %v4747_v6  ;;  %v4877_v17 = vadd.f32 %v4821_v39, %v4751_v35  ;;  %v4931_v25 = vmul.f32 %v17064_v53, %v3943_v8  ;;  %v17067_v6 = vld [vmem:[#allocation41_spill] sm:$0xff] }
 0x43e   :  { %v4935_v11 = vmul.f32 %v17064_v53, %v3950_v18  ;;  %v13743_v22 = vadd.f32 %v4825_v32, %v4755_v59  ;;  %v4882_v3 = vadd.f32 %v4826_v5, %v4756_v63  ;;  %v4883_v37 = vadd.f32 %v4827_v24, %v17065_v16  ;;  %v17068_v18 = vld [vmem:[#allocation17_spill] sm:$0xff] }
 0x43f   :  { %v4936_v48 = vmul.f32 %v17064_v53, %v17066_v7  ;;  %v4940_v23 = vmul.f32 %v17064_v53, %v13653_v57  ;;  %v4941_v47 = vmul.f32 %v17064_v53, %v13664_v14  ;;  %v4985_v12 = vadd.f32 %v4931_v25, %v4873_v62 }
 0x440   :  { %v4989_v39 = vadd.f32 %v4935_v11, %v4877_v17  ;;  %v5043_v59 = vmul.f32 %v17068_v18, %v17031_v9  ;;  %v5047_v5 = vmul.f32 %v17068_v18, %v17032_v27  ;;  %v5048_v32 = vmul.f32 %v17068_v18, %v17040_v61  ;;  %v17069_v11 = vld [vmem:[#allocation28_spill] sm:$0xff] }
 0x441   :  { %v4990_v8 = vadd.f32 %v4936_v48, %v17067_v6  ;;  %v4994_v35 = vadd.f32 %v4940_v23, %v4882_v3  ;;  %v4995_v63 = vadd.f32 %v4941_v47, %v4883_v37  ;;  %v5049_v24 = vmul.f32 %v17068_v18, %v17041_v54  ;;  %v17070_v48 = vld [vmem:[#allocation19_spill] sm:$0xff] }
 0x442   :  { %v5052_v25 = vmul.f32 %v17068_v18, %v13623_v41  ;;  %v5053_v21 = vmul.f32 %v17068_v18, %v13629_v58  ;;  %v5096_v62 = vadd.f32 %v5043_v59, %v4985_v12  ;;  %v5100_v17 = vadd.f32 %v5047_v5, %v4989_v39 }
 0x443   :  { %v5101_v9 = vadd.f32 %v5048_v32, %v4990_v8  ;;  %v5102_v16 = vadd.f32 %v5049_v24, %v17069_v11  ;;  %v5154_v6 = vmul.f32 %v17070_v48, %v4410_v33  ;;  %v5158_v3 = vmul.f32 %v17070_v48, %v4411_v13 }
 0x444   :  { %v5105_v27 = vadd.f32 %v5052_v25, %v4994_v35  ;;  %v5106_v37 = vadd.f32 %v5053_v21, %v4995_v63  ;;  %v5159_v23 = vmul.f32 %v17070_v48, %v13675_v49  ;;  %v5160_v47 = vmul.f32 %v17070_v48, %v4336_v40  ;;  %v17071_v35 = vld [vmem:[#allocation21_spill] sm:$0xff] }
 0x445   :  { %v5163_v14 = vmul.f32 %v17070_v48, %v13697_v0  ;;  %v5164_v12 = vmul.f32 %v17070_v48, %v13702_v51  ;;  %v5208_v39 = vadd.f32 %v5154_v6, %v5096_v62  ;;  %v5212_v8 = vadd.f32 %v5158_v3, %v5100_v17 }
 0x446   :  { %v3646_v59 = vsel %vm1348_vm2, %v13595_v52, 0.0  ;;  %v5213_v33 = vadd.f32 %v5159_v23, %v5101_v9  ;;  %v5214_v5 = vadd.f32 %v5160_v47, %v5102_v16  ;;  %v3647_v32 = vsel %vm1348_vm2, %v13608_v15, 0.0 }
 0x447   :  { %v5217_v13 = vadd.f32 %v5163_v14, %v5105_v27  ;;  %v5218_v49 = vadd.f32 %v5164_v12, %v5106_v37  ;;  %v5266_v40 = vadd.f32 %v17071_v35, %v5208_v39  ;;  %v5270_v63 = vadd.f32 %v17071_v35, %v5212_v8 }
 0x448   :  { %v17072_v24 = vmax.f32 %v13583_v42, 0.0  ;;  %v5271_v21 = vadd.f32 %v17071_v35, %v5213_v33  ;;  %v13785_v62 = vadd.f32 %v17071_v35, %v5214_v5  ;;  %v17073_v14 = vmax.f32 %v13589_v10, 0.0  ;;  %v17077_v5 = vld [vmem:[#allocation75_spill] sm:$0xff] }
 0x449   :  { %v5275_v52 = vadd.f32 %v17071_v35, %v5217_v13  ;;  %v13791_v15 = vadd.f32 %v17071_v35, %v5218_v49  ;;  %v5322_v9 = vmax.f32 %v5266_v40, 0.0  ;;  %v5326_v11 = vmax.f32 %v5270_v63, 0.0 }
 0x44a   :  { %v3749_v25 = vmax.f32 %v17072_v24, %v3646_v59  ;;  %v3753_v17 = vmax.f32 %v17073_v14, %v3647_v32  ;;  %v17074_v16 = vrot.slane %v13619_v31, 6  ;;  %v17075_v42 = vrot.slane %v17041_v54, 6  ;;  %v17078_v32 = vld [vmem:[#allocation22_spill] sm:$0xff] }
 0x44b   :  { %v5327_v6 = vmax.f32 %v5271_v21, 0.0  ;;  %v15381_v3 = vmax.f32 %v13785_v62, 0.0  ;;  %v5331_v37 = vmax.f32 %v5275_v52, 0.0  ;;  %v15382_v10 = vmax.f32 %v13791_v15, 0.0  ;;  %v17079_v21 = vld [vmem:[#allocation47_spill] sm:$0xff] }
 0x44c   :  { %v3955_v27 = vsel %vm3871_vm3, %v17075_v42, %v17074_v16  ;;  %v13799_v23 = vmax.f32 %v3749_v25, %v3753_v17  ;;  %v5460_v47 = vrot.slane %v5322_v9, 2  ;;  %v5467_v12 = vrot.slane %v5326_v11, 2  ;;  %v17081_v42 = vld [vmem:[#allocation140_spill] sm:$0xff] }
 0x44d   :  { %v3961_v39 = vrot.slane %v13631_v1, 6  ;;  %v5469_v8 = vrot.slane %v5327_v6, 2  ;;  %v13805_v59 = vrot.slane %v15381_v3, 2  ;;  %v5476_v54 = vrot.slane %v5331_v37, 2 }
 0x44e   :  { %17076 = vst [vmem:[#allocation92_spill] sm:$0xff] %v13799_v23  ;;  %v3963_v33 = vrot.slane %v13799_v23, 6  ;;  %v5461_v13 = vsel %vm4252_vm4, %v17077_v5, %v5460_v47  ;;  %v5468_v49 = vsel %vm4252_vm4, %v17078_v32, %v5467_v12  ;;  %v13814_v40 = vrot.slane %v15382_v10, 2 }
 0x44f   :  { %v5561_v63 = vsel %vm3871_vm3, %v5460_v47, 0.0  ;;  %v5471_v24 = vsel %vm4252_vm4, %v5469_v8, %v13805_v59  ;;  %v5562_v25 = vsel %vm3871_vm3, %v5467_v12, 0.0  ;;  %v17080_v52 = vmax.f32 %v17079_v21, 0.0 }
 0x450   :  { %v5602_v17 = vmax.f32 %v5322_v9, %v5561_v63  ;;  %v5478_v16 = vsel %vm4252_vm4, %v5476_v54, %v13814_v40  ;;  %v17082_v5 = vmax.f32 %v17081_v42, 0.0  ;;  %v5606_v3 = vmax.f32 %v5326_v11, %v5562_v25  ;;  %v17090_v25 = vld [vmem:[#allocation144_spill] sm:$0xff] }
 0x451   :  { %v5601_v14 = vmax.f32 %v17080_v52, %v5461_v13  ;;  %v5607_v10 = vmax.f32 %v5327_v6, %v5471_v24  ;;  %v5611_v51 = vmax.f32 %v5331_v37, %v5478_v16  ;;  %v17083_v47 = vrot.slane %v13629_v58, 6 }
 0x452   :  { %v5605_v32 = vmax.f32 %v17082_v5, %v5468_v49  ;;  %v13832_v12 = vsel %vm3871_vm3, %v3961_v39, %v3963_v33  ;;  %v13835_v8 = vmul.f32 %v17038_v2, %v3955_v27  ;;  %v5642_v13 = vmax.f32 %v5602_v17, %v5606_v3 }
 0x453   :  { %v13829_v0 = vsel %vm3871_vm3, %v17083_v47, %v3961_v39  ;;  %17085 = vst [vmem:[#allocation85_spill] sm:$0xff] %v13832_v12  ;;  %v13843_v11 = vmul.f32 %v17038_v2, %v13832_v12  ;;  %v5643_v6 = vmax.f32 %v5607_v10, %v5611_v51  ;;  %v4337_v37 = vrot.slane %v13621_v44, 2  ;;  %v17089_v39 = vld [vmem:[#allocation26_spill] sm:$0xff] }
 0x454   :  { %17084 = vst [vmem:[#allocation84_spill] sm:$0xff] %v13829_v0  ;;  %17086 = vst [vmem:[#allocation51_spill] sm:$0xff] %v13835_v8  ;;  %v5641_v9 = vmax.f32 %v5601_v14, %v5605_v32  ;;  %v13839_v54 = vmul.f32 %v17038_v2, %v13829_v0  ;;  %v4344_v49 = vrot.slane %v13799_v23, 2  ;;  %v4584_v33 = vmul.f32 %v17053_v19, %v17089_v39  ;;  %v17100_v39 = vld [vmem:[#allocation52_spill] sm:$0xff] }
 0x455   :  { %17088 = vst [vmem:[#allocation35_spill] sm:$0xff] %v13843_v11  ;;  %v4588_v63 = vmul.f32 %v17053_v19, %v3955_v27  ;;  %v4698_v3 = vmul.f32 %v17060_v20, %v17036_v4  ;;  %v4702_v24 = vmul.f32 %v17060_v20, %v13619_v31  ;;  %v4824_v21 = vmul.f32 %v17061_v60, %v17090_v25 }
 0x456   :  { %17087 = vst [vmem:[#allocation64_spill] sm:$0xff] %v13839_v54  ;;  %v13856_v52 = vrot.slane %v5643_v6, 4  ;;  %v17091_v51 = vrot.slane %v13619_v31, 2  ;;  %v17092_v14 = vrot.slane %v13631_v1, 2  ;;  %v4412_v16 = vsel %vm3871_vm3, %v4337_v37, 0.0 }
 0x457   :  { %v13868_v4 = vsel %vm3871_vm3, %v4344_v49, 0.0  ;;  %v13874_v5 = vmul.f32 %v17047_v34, %v4412_v16  ;;  %v4644_v25 = vadd.f32 %v4588_v63, %v17100_v39  ;;  %v5050_v63 = vmul.f32 %v17068_v18, %v13619_v31 }
 0x458   :  { %v4338_v10 = vsel %vm4252_vm4, %v17091_v51, %v4337_v37  ;;  %v13864_v17 = vsel %vm4252_vm4, %v17092_v14, %v4344_v49  ;;  %17094 = vst [vmem:[#allocation105_spill] sm:$0xff] %v13868_v4  ;;  %v5699_v47 = vsel %vm5655_vm5, %v5642_v13, %v13856_v52  ;;  %v13884_v6 = vmul.f32 %v17047_v34, %v13868_v4  ;;  %v17099_v37 = vld [vmem:[#allocation36_spill] sm:$0xff] }
 0x459   :  { %17093 = vst [vmem:[#allocation113_spill] sm:$0xff] %v13864_v17  ;;  %v13871_v42 = vmul.f32 %v17047_v34, %v4338_v10  ;;  %17096 = vst [vmem:[#allocation125_spill] sm:$0xff] %v13874_v5  ;;  %v13878_v32 = vmul.f32 %v17047_v34, %v13864_v17  ;;  %v4640_v49 = vadd.f32 %v4584_v33, %v17099_v37 }
 0x45a   :  { %17098 = vst [vmem:[#allocation106_spill] sm:$0xff] %v13884_v6  ;;  %v6253_v51 = vpack.c.bf16 %v5699_v47, %v5641_v9  ;;  %v4828_v14 = vmul.f32 %v17061_v60, %v4338_v10  ;;  %v4829_v5 = vmul.f32 %v17061_v60, %v4412_v16  ;;  %v4939_v13 = vmul.f32 %v17064_v53, %v13647_v26 }
 0x45b   :  { %17095 = vst [vmem:[#allocation90_spill] sm:$0xff] %v13871_v42  ;;  %17097 = vst [vmem:[#allocation62_spill] sm:$0xff] %v13878_v32  ;;  %v4938_v42 = vmul.f32 %v17064_v53, %v3955_v27  ;;  %v4754_v11 = vadd.f32 %v4698_v3, %v4640_v49  ;;  %v4758_v32 = vadd.f32 %v4702_v24, %v4644_v25  ;;  %v17101_v3 = vmov 0.0|0.0  }
 0x45c   :  { %v4942_v34 = vmul.f32 %v17064_v53, %v13829_v0  ;;  %6254 = vmatpush1.bf16.msra.mxu0 %v6253_v51  ;;  %v4885_v33 = vadd.f32 %v4829_v5, %v13735_v38  ;;  %v4943_v9 = vmul.f32 %v17064_v53, %v13832_v12  ;;  %v5051_v27 = vmul.f32 %v17068_v18, %v13621_v44 }
 0x45d   :  { %6255 = vmatprep.subr.bf16.mxu0 %v17101_v3  ;;  %v4880_v24 = vadd.f32 %v4824_v21, %v4754_v11  ;;  %v4884_v47 = vadd.f32 %v4828_v14, %v4758_v32  ;;  %v4993_v26 = vadd.f32 %v4939_v13, %v13743_v22  ;;  %v5054_v37 = vmul.f32 %v17068_v18, %v13631_v1  ;;  %v17102_v32 = vld [vmem:[#allocation55_spill] sm:$0xff] }
 0x45e   :  { %v4997_v49 = vadd.f32 %v4943_v9, %v4885_v33  ;;  %v5055_v38 = vmul.f32 %v17068_v18, %v13799_v23  ;;  %v5161_v5 = vmul.f32 %v17070_v48, %v4338_v10  ;;  %v5162_v39 = vmul.f32 %v17070_v48, %v4412_v16 }
 0x45f   :  { %v4992_v25 = vadd.f32 %v4938_v42, %v4880_v24  ;;  %v4996_v51 = vadd.f32 %v4942_v34, %v4884_v47  ;;  %v5104_v12 = vadd.f32 %v5051_v27, %v4993_v26  ;;  %v5165_v11 = vmul.f32 %v17070_v48, %v13864_v17 }
 0x460   :  { %v5108_v21 = vadd.f32 %v5055_v38, %v4997_v49  ;;  %v5166_v22 = vmul.f32 %v17070_v48, %v13868_v4  ;;  %v706_v14 = vmul.f32 %v17102_v32, %v13373_v30  ;;  %v707_v13 = vmul.f32 %v17102_v32, %v13322_v43 }
 0x461   :  { %v5103_v33 = vadd.f32 %v5050_v63, %v4992_v25  ;;  %v5107_v10 = vadd.f32 %v5054_v37, %v4996_v51  ;;  %v5216_v9 = vadd.f32 %v5162_v39, %v5104_v12  ;;  %v708_v16 = vmul.f32 %v17102_v32, %v13341_v46  ;;  %v17103_v63 = vld [vmem:[#allocation98_spill] sm:$0xff]  ;;  %v17104_v39 = vld [vmem:[#allocation83_spill] sm:$0xff] }
 0x462   :  { %v5220_v42 = vadd.f32 %v5166_v22, %v5108_v21  ;;  %v709_v34 = vmul.f32 %v17102_v32, %v13353_v55  ;;  %v710_v27 = vmul.f32 %v17102_v32, %v13376_v36  ;;  %v711_v24 = vmul.f32 %v17102_v32, %v13366_v50  ;;  %v17106_v22 = vld [vmem:[#allocation58_spill] sm:$0xff] }
 0x463   :  { %v5215_v30 = vadd.f32 %v5161_v5, %v5103_v33  ;;  %v5219_v47 = vadd.f32 %v5165_v11, %v5107_v10  ;;  %v13927_v43 = vadd.f32 %v17071_v35, %v5216_v9  ;;  %v712_v12 = vmul.f32 %v17102_v32, %v13370_v56  ;;  %v17105_v11 = vld [vmem:[#allocation31_spill] sm:$0xff] }
 0x464   :  { %v13932_v46 = vadd.f32 %v17071_v35, %v5220_v42  ;;  %v713_v55 = vmul.f32 %v17102_v32, %v13381_v29  ;;  %v927_v26 = vmul.f32 %v17103_v63, %v13267_v28  ;;  %v928_v37 = vmul.f32 %v17103_v63, %v13280_v45  ;;  %v17107_v32 = vld [vmem:[#allocation11_spill] sm:$0xff]  ;;  %v17108_v42 = vld [vmem:[#allocation89_spill] sm:$0xff] }
 0x465   :  { %v5273_v49 = vadd.f32 %v17071_v35, %v5215_v30  ;;  %v5277_v38 = vadd.f32 %v17071_v35, %v5219_v47  ;;  %v15389_v5 = vmax.f32 %v13927_v43, 0.0  ;;  %v929_v25 = vmul.f32 %v17103_v63, %v17104_v39  ;;  %v17109_v39 = vld [vmem:[#allocation142_spill] sm:$0xff] }
 0x466   :  { %v15390_v51 = vmax.f32 %v13932_v46, 0.0  ;;  %v930_v21 = vmul.f32 %v17103_v63, %v17105_v11  ;;  %v931_v28 = vmul.f32 %v17103_v63, %v17106_v22  ;;  %v932_v45 = vmul.f32 %v17103_v63, %v17107_v32 }
 0x467   :  { %v5329_v33 = vmax.f32 %v5273_v49, 0.0  ;;  %v5333_v10 = vmax.f32 %v5277_v38, 0.0  ;;  %v13954_v9 = vrot.slane %v15389_v5, 2  ;;  %v933_v30 = vmul.f32 %v17103_v63, %v17108_v42 }
 0x468   :  { %v13960_v47 = vrot.slane %v15390_v51, 2  ;;  %v934_v11 = vmul.f32 %v17103_v63, %v17109_v39  ;;  %v1037_v22 = vadd.f32 %v927_v26, %v706_v14  ;;  %v1038_v4 = vadd.f32 %v928_v37, %v707_v13  ;;  %v17113_v63 = vld [vmem:[#allocation126_spill] sm:$0xff]  ;;  %v17114_v26 = vld [vmem:[#allocation143_spill] sm:$0xff] }
 0x469   :  { %v5472_v17 = vrot.slane %v5329_v33, 2  ;;  %v5479_v32 = vrot.slane %v5333_v10, 2  ;;  %v1039_v49 = vadd.f32 %v929_v25, %v708_v16  ;;  %v1040_v38 = vadd.f32 %v930_v21, %v709_v34  ;;  %v17115_v37 = vld [vmem:[#allocation146_spill] sm:$0xff]  ;;  %v17116_v25 = vld [vmem:[#allocation71_spill] sm:$0xff] }
 0x46a   :  { %v1041_v0 = vadd.f32 %v931_v28, %v710_v27  ;;  %v1042_v6 = vadd.f32 %v932_v45, %v711_v24  ;;  %v1043_v5 = vadd.f32 %v933_v30, %v712_v12  ;;  %v1044_v54 = vadd.f32 %v934_v11, %v713_v55  ;;  %v17112_v55 = vld [vmem:[#allocation30_spill] sm:$0xff]  ;;  %v17119_v30 = vld [vmem:[#allocation108_spill] sm:$0xff]  ;;  %v17120_v11 = vld [vmem:[#allocation115_spill] sm:$0xff] }
 0x46b   :  { %v5473_v42 = vsel %vm4252_vm4, %v13805_v59, %v5472_v17  ;;  %v5475_v51 = vsel %vm4252_vm4, %v5472_v17, %v13954_v9  ;;  %v5480_v8 = vsel %vm4252_vm4, %v13814_v40, %v5479_v32  ;;  %v5482_v14 = vsel %vm4252_vm4, %v5479_v32, %v13960_v47  ;;  %v17117_v45 = vld [vmem:[#allocation114_spill] sm:$0xff] }
 0x46c   :  { %v17110_v13 = vmax.f32 %v13785_v62, 0.0  ;;  %v5609_v34 = vmax.f32 %v5329_v33, %v5475_v51  ;;  %v17111_v27 = vmax.f32 %v13791_v15, 0.0  ;;  %v5613_v12 = vmax.f32 %v5333_v10, %v5482_v14  ;;  %v17118_v15 = vld [vmem:[#allocation117_spill] sm:$0xff]  ;;  %v13991_v33 = vld [vmem:[%s14510_s0 + $0x360] sm:$0xff] }
 0x46d   :  { %v1480_v59 = vmul.f32 %v17113_v63, %v17112_v55  ;;  %v1481_v17 = vmul.f32 %v17113_v63, %v17114_v26  ;;  %v1482_v40 = vmul.f32 %v17113_v63, %v17115_v37  ;;  %v1483_v21 = vmul.f32 %v17113_v63, %v17116_v25  ;;  %v13996_v10 = vld [vmem:[%s14510_s0 + $0x368] sm:$0xff] }
 0x46e   :  { %v5608_v16 = vmax.f32 %v17110_v13, %v5473_v42  ;;  %v5612_v24 = vmax.f32 %v17111_v27, %v5480_v8  ;;  %v5645_v62 = vmax.f32 %v5609_v34, %v5613_v12  ;;  %v1484_v51 = vmul.f32 %v17113_v63, %v17117_v45  ;;  %v14007_v34 = vld [vmem:[%s14510_s0 + $0x370] sm:$0xff]  ;;  %v14012_v27 = vld [vmem:[%s14510_s0 + $0x378] sm:$0xf] }
 0x46f   :  { %v1485_v8 = vmul.f32 %v17113_v63, %v17118_v15  ;;  %v1486_v39 = vmul.f32 %v17113_v63, %v17119_v30  ;;  %v1487_v32 = vmul.f32 %v17113_v63, %v17120_v11  ;;  %v1591_v42 = vadd.f32 %v1480_v59, %v1037_v22 }
 0x470   :  { %v5644_v28 = vmax.f32 %v5608_v16, %v5612_v24  ;;  %v1592_v14 = vadd.f32 %v1481_v17, %v1038_v4  ;;  %v14002_v16 = vrot.slane %v5645_v62, 4  ;;  %v1593_v24 = vadd.f32 %v1482_v40, %v1039_v49 }
 0x471   :  { %v1594_v12 = vadd.f32 %v1483_v21, %v1040_v38  ;;  %v1595_v55 = vadd.f32 %v1484_v51, %v1041_v0  ;;  %v1596_v26 = vadd.f32 %v1485_v8, %v1042_v6  ;;  %v1597_v63 = vadd.f32 %v1486_v39, %v1043_v5  ;;  %v17122_v0 = vld [vmem:[#allocation100_spill] sm:$0xff] }
 0x472   :  { %v5687_v13 = vrot.slane %v5644_v28, 4  ;;  %17121 = vst [vmem:[#allocation130_spill] sm:$0xff] %v14002_v16  ;;  %v1598_v22 = vadd.f32 %v1487_v32, %v1044_v54  ;;  %v1604_v17 = vrot.slane %v13991_v33, 7  ;;  %v1605_v37 = vrot.slane %v13996_v10, 7 }
 0x473   :  { %v1607_v28 = vrot.slane %v14007_v34, 7  ;;  %v1609_v49 = vrot.slane %v14012_v27, 7  ;;  %v1721_v6 = vmul.f32 %v17122_v0, %v13376_v36  ;;  %v1722_v5 = vmul.f32 %v17122_v0, %v13366_v50 }
 0x474   :  { %v5688_v4 = vsel %vm5655_vm5, %v13856_v52, %v5687_v13  ;;  %v5690_v59 = vsel %vm5655_vm5, %v5687_v13, %v14002_v16  ;;  %v14025_v54 = vsel %vm273_vm0, %v1604_v17, %v1605_v37  ;;  %v1615_v52 = vsel %vm273_vm0, 0.0, %v1604_v17  ;;  %v17127_v16 = vld [vmem:[#allocation20_spill] sm:$0xff] }
 0x475   :  { %v6256_v25 = vpack.c.bf16 %v5690_v59, %v5688_v4  ;;  %v1723_v38 = vmul.f32 %v17122_v0, %v13370_v56  ;;  %v1608_v40 = vsel %vm273_vm0, %v1605_v37, %v1607_v28  ;;  %v1610_v21 = vsel %vm273_vm0, %v1607_v28, %v1609_v49  ;;  %v6370_v49 = vld [vmem:[%s14510_s0 + $0x348] sm:$0xff] }
 0x476   :  { %v1724_v62 = vmul.f32 %v17122_v0, %v13381_v29  ;;  %v1725_v36 = vmul.f32 %v17122_v0, %v1615_v52  ;;  %v1726_v51 = vmul.f32 %v17122_v0, %v14025_v54  ;;  %v1727_v50 = vmul.f32 %v17122_v0, %v1608_v40  ;;  %v6369_v29 = vld [vmem:[%s14510_s0 + $0x340] sm:$0xff] }
 0x477   :  { %6257 = vmatpush1.bf16.msra.mxu0 %v6256_v25  ;;  %v1728_v8 = vmul.f32 %v17122_v0, %v1610_v21  ;;  %v1833_v56 = vadd.f32 %v1721_v6, %v1591_v42  ;;  %v1834_v39 = vadd.f32 %v1722_v5, %v1592_v14  ;;  %v1835_v32 = vadd.f32 %v1723_v38, %v1593_v24  ;;  %v17123_v25 = vld [vmem:[#allocation101_spill] sm:$0xff]  ;;  %v6371_v42 = vld [vmem:[%s14510_s0 + $0x350] sm:$0xff]  ;;  %v6372_v24 = vld [vmem:[%s14510_s0 + $0x358] sm:$0xf] }
 0x478   :  { %6258 = vmatprep.subr.bf16.mxu0 %v17101_v3  ;;  %v1836_v13 = vadd.f32 %v1724_v62, %v1594_v12  ;;  %v1837_v4 = vadd.f32 %v1725_v36, %v1595_v55  ;;  %v1838_v59 = vadd.f32 %v1726_v51, %v1596_v26  ;;  %v1839_v17 = vadd.f32 %v1727_v50, %v1597_v63  ;;  %v17124_v3 = vld [vmem:[#allocation73_spill] sm:$0xff] }
 0x479   :  { %v1840_v37 = vadd.f32 %v1728_v8, %v1598_v22  ;;  %v1947_v28 = vmul.f32 %v6369_v29, %v17123_v25  ;;  %v1948_v0 = vmul.f32 %v6370_v49, %v17123_v25  ;;  %v1949_v14 = vmul.f32 %v6371_v42, %v17123_v25 }
 0x47a   :  { %v1950_v12 = vmul.f32 %v6372_v24, %v17123_v25  ;;  %v1951_v55 = vmul.f32 %v17123_v25, %v13991_v33  ;;  %v1952_v26 = vmul.f32 %v17123_v25, %v13996_v10  ;;  %v1953_v63 = vmul.f32 %v17123_v25, %v14007_v34 }
 0x47b   :  { %v1954_v22 = vmul.f32 %v17123_v25, %v14012_v27  ;;  %v2059_v6 = vadd.f32 %v1947_v28, %v1833_v56  ;;  %v2060_v5 = vadd.f32 %v1948_v0, %v1834_v39  ;;  %v2061_v38 = vadd.f32 %v1949_v14, %v1835_v32 }
 0x47c   :  { %v2062_v62 = vadd.f32 %v1950_v12, %v1836_v13  ;;  %v2063_v36 = vadd.f32 %v1951_v55, %v1837_v4  ;;  %v2064_v51 = vadd.f32 %v1952_v26, %v1838_v59  ;;  %v2065_v50 = vadd.f32 %v1953_v63, %v1839_v17  ;;  %v17125_v13 = vld [vmem:[#allocation141_spill] sm:$0xff] }
 0x47d   :  { %v2066_v8 = vadd.f32 %v1954_v22, %v1840_v37  ;;  %v2068_v29 = vrot.slane %v13991_v33, 1  ;;  %v2069_v49 = vrot.slane %v13996_v10, 1  ;;  %v2071_v42 = vrot.slane %v14007_v34, 1 }
 0x47e   :  { %v2073_v24 = vrot.slane %v14012_v27, 1  ;;  %v2185_v23 = vmul.f32 %v17124_v3, %v17117_v45  ;;  %v2186_v56 = vmul.f32 %v17124_v3, %v17118_v15  ;;  %v2187_v39 = vmul.f32 %v17124_v3, %v17119_v30 }
 0x47f   :  { %v2188_v32 = vmul.f32 %v17124_v3, %v17120_v11  ;;  %v2411_v4 = vmul.f32 %v17125_v13, %v1615_v52  ;;  %v2070_v59 = vsel %vm1046_vm1, %v2068_v29, %v2069_v49  ;;  %v2072_v17 = vsel %vm1046_vm1, %v2069_v49, %v2071_v42 }
 0x480   :  { %v2074_v37 = vsel %vm1046_vm1, %v2071_v42, %v2073_v24  ;;  %v2079_v25 = vsel %vm1348_vm2, %v2073_v24, 0.0  ;;  %v2189_v45 = vmul.f32 %v17124_v3, %v2070_v59  ;;  %v2190_v15 = vmul.f32 %v17124_v3, %v2072_v17  ;;  %v17126_v42 = vld [vmem:[#allocation70_spill] sm:$0xff] }
 0x481   :  { %v2191_v28 = vmul.f32 %v17124_v3, %v2074_v37  ;;  %v2192_v30 = vmul.f32 %v17124_v3, %v2079_v25  ;;  %v2297_v0 = vadd.f32 %v2185_v23, %v2059_v6  ;;  %v2298_v11 = vadd.f32 %v2186_v56, %v2060_v5  ;;  %v17128_v6 = vld [vmem:[#allocation42_spill] sm:$0xff] }
 0x482   :  { %v2299_v14 = vadd.f32 %v2187_v39, %v2061_v38  ;;  %v2300_v52 = vadd.f32 %v2188_v32, %v2062_v62  ;;  %v2301_v12 = vadd.f32 %v2189_v45, %v2063_v36  ;;  %v2302_v55 = vadd.f32 %v2190_v15, %v2064_v51 }
 0x483   :  { %v2303_v26 = vadd.f32 %v2191_v28, %v2065_v50  ;;  %v2304_v63 = vadd.f32 %v2192_v30, %v2066_v8  ;;  %v2412_v22 = vmul.f32 %v17125_v13, %v14025_v54  ;;  %v2413_v29 = vmul.f32 %v17125_v13, %v1608_v40 }
 0x484   :  { %v2414_v49 = vmul.f32 %v17125_v13, %v1610_v21  ;;  %v2415_v24 = vmul.f32 %v17125_v13, %v17126_v42  ;;  %v2416_v23 = vmul.f32 %v17125_v13, %v17127_v16  ;;  %v2521_v3 = vadd.f32 %v2411_v4, %v2297_v0  ;;  %v17129_v13 = vld [vmem:[#allocation43_spill] sm:$0xff] }
 0x485   :  { %v2635_v5 = vmul.f32 %v17128_v6, %v13991_v33  ;;  %v2636_v38 = vmul.f32 %v17128_v6, %v13996_v10  ;;  %v2522_v62 = vadd.f32 %v2412_v22, %v2298_v11  ;;  %v2523_v36 = vadd.f32 %v2413_v29, %v2299_v14  ;;  %v17130_v14 = vld [vmem:[#allocation103_spill] sm:$0xff] }
 0x486   :  { %v2524_v54 = vadd.f32 %v2414_v49, %v2300_v52  ;;  %v2525_v51 = vadd.f32 %v2415_v24, %v2301_v12  ;;  %v2526_v40 = vadd.f32 %v2416_v23, %v2302_v55  ;;  %v2527_v50 = vadd.f32 %v2416_v23, %v2303_v26  ;;  %v17132_v49 = vld [vmem:[#allocation104_spill] sm:$0xff] }
 0x487   :  { %v2528_v21 = vadd.f32 %v2416_v23, %v2304_v63  ;;  %v2637_v8 = vmul.f32 %v17128_v6, %v14007_v34  ;;  %v2638_v16 = vmul.f32 %v17128_v6, %v14012_v27  ;;  %v2639_v56 = vmul.f32 0.0, %v17128_v6  ;;  %v17133_v24 = vld [vmem:[#allocation44_spill] sm:$0xff] }
 0x488   :  { %v2744_v39 = vadd.f32 %v2635_v5, %v2521_v3  ;;  %v2745_v33 = vadd.f32 %v2636_v38, %v2522_v62  ;;  %v2858_v10 = vmul.f32 %v17129_v13, %v2070_v59  ;;  %v2859_v4 = vmul.f32 %v17129_v13, %v2072_v17  ;;  %v17131_v17 = vld [vmem:[#allocation53_spill] sm:$0xff] }
 0x489   :  { %v2746_v32 = vadd.f32 %v2637_v8, %v2523_v36  ;;  %v2860_v45 = vmul.f32 %v17129_v13, %v2074_v37  ;;  %v2747_v15 = vadd.f32 %v2638_v16, %v2524_v54  ;;  %v2748_v28 = vadd.f32 %v2639_v56, %v2525_v51 }
 0x48a   :  { %v2749_v30 = vadd.f32 %v2639_v56, %v2526_v40  ;;  %v2750_v0 = vadd.f32 %v2639_v56, %v2527_v50  ;;  %v2751_v11 = vadd.f32 %v2639_v56, %v2528_v21  ;;  %v2861_v34 = vmul.f32 %v17129_v13, %v2079_v25 }
 0x48b   :  { %v2862_v27 = vmul.f32 %v17129_v13, %v17130_v14  ;;  %v2968_v52 = vadd.f32 %v2858_v10, %v2744_v39  ;;  %v2969_v12 = vadd.f32 %v2859_v4, %v2745_v33  ;;  %v2970_v55 = vadd.f32 %v2860_v45, %v2746_v32 }
 0x48c   :  { %v4080_v59 = vmul.f32 %v17038_v2, %v17066_v7  ;;  %v4189_v26 = vmul.f32 %v17131_v17, %v17040_v61  ;;  %v2971_v37 = vadd.f32 %v2861_v34, %v2747_v15  ;;  %v2975_v42 = vadd.f32 %v17132_v49, %v2751_v11 }
 0x48d   :  { %v2972_v63 = vadd.f32 %v2862_v27, %v2748_v28  ;;  %v2973_v22 = vadd.f32 %v2862_v27, %v2749_v30  ;;  %v2974_v29 = vadd.f32 %v2862_v27, %v2750_v0  ;;  %v3082_v25 = vadd.f32 %v17133_v24, %v2968_v52 }
 0x48e   :  { %v3083_v23 = vadd.f32 %v17133_v24, %v2969_v12  ;;  %v3084_v3 = vadd.f32 %v17133_v24, %v2970_v55  ;;  %v14119_v6 = vadd.f32 %v17133_v24, %v2971_v37  ;;  %v14125_v5 = vadd.f32 %v17133_v24, %v2975_v42  ;;  %v17135_v42 = vld [vmem:[#allocation24_spill] sm:$0xff] }
 0x48f   :  { %v3086_v2 = vadd.f32 %v17133_v24, %v2972_v63  ;;  %v3087_v7 = vadd.f32 %v17133_v24, %v2973_v22  ;;  %v3088_v61 = vadd.f32 %v17133_v24, %v2974_v29  ;;  %v3194_v38 = vmax.f32 %v3082_v25, 0.0  ;;  %v17134_v29 = vld [vmem:[#allocation116_spill] sm:$0xff] }
 0x490   :  { %v3195_v62 = vmax.f32 %v3083_v23, 0.0  ;;  %v3196_v36 = vmax.f32 %v3084_v3, 0.0  ;;  %v3197_v54 = vmax.f32 %v14119_v6, 0.0  ;;  %v3201_v21 = vmax.f32 %v14125_v5, 0.0  ;;  %v17136_v24 = vld [vmem:[#allocation136_spill] sm:$0xff] }
 0x491   :  { %v3198_v51 = vmax.f32 %v3086_v2, 0.0  ;;  %v3199_v40 = vmax.f32 %v3087_v7, 0.0  ;;  %v3200_v50 = vmax.f32 %v3088_v61, 0.0  ;;  %v3496_v8 = vrot.slane %v3194_v38, 1  ;;  %v17137_v7 = vld [vmem:[#allocation134_spill] sm:$0xff] }
 0x492   :  { %v3497_v16 = vrot.slane %v3195_v62, 1  ;;  %v3499_v56 = vrot.slane %v3196_v36, 1  ;;  %v14131_v39 = vrot.slane %v3197_v54, 1  ;;  %v14137_v45 = vrot.slane %v3201_v21, 1 }
 0x493   :  { %v3503_v33 = vrot.slane %v3198_v51, 1  ;;  %v3504_v32 = vrot.slane %v3199_v40, 1  ;;  %v3506_v13 = vrot.slane %v3200_v50, 1  ;;  %v4193_v15 = vmul.f32 %v17131_v17, %v13623_v41 }
 0x494   :  { %v3498_v10 = vsel %vm1046_vm1, %v3496_v8, %v3497_v16  ;;  %v3500_v4 = vsel %vm1046_vm1, %v3497_v16, %v3499_v56  ;;  %v3502_v28 = vsel %vm1046_vm1, %v3499_v56, %v14131_v39  ;;  %v4194_v37 = vmul.f32 %v17131_v17, %v13629_v58  ;;  %v17141_v8 = vld [vmem:[#allocation102_spill] sm:$0xff] }
 0x495   :  { %v3505_v30 = vsel %vm1046_vm1, %v3503_v33, %v3504_v32  ;;  %v3507_v0 = vsel %vm1046_vm1, %v3504_v32, %v3506_v13  ;;  %v3754_v11 = vmax.f32 %v3194_v38, %v3498_v10  ;;  %v3509_v34 = vsel %vm1046_vm1, %v3506_v13, %v14137_v45  ;;  %v17138_v38 = vld [vmem:[#allocation119_spill] sm:$0xff] }
 0x496   :  { %v3755_v14 = vmax.f32 %v3195_v62, %v3500_v4  ;;  %v3756_v27 = vmax.f32 %v3196_v36, %v3502_v28  ;;  %v3758_v52 = vmax.f32 %v3198_v51, %v3505_v30  ;;  %v3759_v12 = vmax.f32 %v3199_v40, %v3507_v0  ;;  %v17139_v36 = vld [vmem:[#allocation50_spill] sm:$0xff] }
 0x497   :  { %v3760_v55 = vmax.f32 %v3200_v50, %v3509_v34  ;;  %v4243_v63 = vadd.f32 %v4189_v26, %v4080_v59  ;;  %v4247_v49 = vadd.f32 %v4193_v15, %v17134_v29  ;;  %v4517_v25 = vadd.f32 %v17136_v24, %v17135_v42  ;;  %v17140_v26 = vld [vmem:[#allocation133_spill] sm:$0xff] }
 0x498   :  { %v3814_v22 = vmax.f32 %v3754_v11, %v3758_v52  ;;  %v4590_v23 = vmul.f32 %v17053_v19, %v13653_v57  ;;  %v14154_v3 = vmax.f32 %v3755_v14, %v3759_v12  ;;  %v4248_v61 = vadd.f32 %v4194_v37, %v17137_v7  ;;  %v17143_v12 = vld [vmem:[#allocation120_spill] sm:$0xff] }
 0x499   :  { %v14156_v2 = vmax.f32 %v3756_v27, %v3760_v55  ;;  %v4516_v62 = vadd.f32 %v17138_v38, %v4243_v63  ;;  %v4520_v51 = vadd.f32 %v17139_v36, %v4247_v49  ;;  %v4591_v40 = vmul.f32 %v17053_v19, %v17140_v26  ;;  %v17142_v27 = vld [vmem:[#allocation45_spill] sm:$0xff] }
 0x49a   :  { %v4529_v59 = vrot.slane %v3814_v22, 6  ;;  %v4704_v50 = vmul.f32 %v17060_v20, %v13623_v41  ;;  %v4521_v16 = vadd.f32 %v17141_v8, %v4248_v61  ;;  %v4530_v57 = vrot.slane %v14154_v3, 6 }
 0x49b   :  { %v4646_v56 = vadd.f32 %v4590_v23, %v4516_v62  ;;  %v4705_v33 = vmul.f32 %v17060_v20, %v13629_v58  ;;  %v4647_v13 = vadd.f32 %v4591_v40, %v4517_v25  ;;  %v4708_v10 = vmul.f32 %v17060_v20, %v3814_v22  ;;  %v17144_v62 = vld [vmem:[#allocation77_spill] sm:$0xff] }
 0x49c   :  { %v4540_v32 = vsel %vm3871_vm3, 0.0, %v4529_v59  ;;  %v4709_v4 = vmul.f32 %v17060_v20, %v14154_v3  ;;  %v4531_v41 = vsel %vm3871_vm3, %v4529_v59, %v4530_v57  ;;  %v4769_v30 = vrot.slane %v3814_v22, 2 }
 0x49d   :  { %v4594_v15 = vmul.f32 %v17053_v19, %v4540_v32  ;;  %v4760_v28 = vadd.f32 %v4704_v50, %v4646_v56  ;;  %v4595_v0 = vmul.f32 %v17053_v19, %v4531_v41  ;;  %v4761_v11 = vadd.f32 %v4705_v33, %v4647_v13 }
 0x49e   :  { %v4770_v58 = vrot.slane %v14154_v3, 2  ;;  %v4772_v34 = vrot.slane %v14156_v2, 2  ;;  %v4830_v52 = vmul.f32 %v17061_v60, %v17142_v27  ;;  %v4831_v55 = vmul.f32 %v17061_v60, %v17143_v12 }
 0x49f   :  { %v4650_v14 = vadd.f32 %v4594_v15, %v4520_v51  ;;  %v4944_v37 = vmul.f32 %v17064_v53, %v4540_v32  ;;  %v4651_v63 = vadd.f32 %v4595_v0, %v4521_v16  ;;  %v4945_v42 = vmul.f32 %v17064_v53, %v4531_v41  ;;  %v17145_v51 = vld [vmem:[#allocation40_spill] sm:$0xff]  ;;  %v17146_v41 = vld [vmem:[#allocation78_spill] sm:$0xff] }
 0x4a0   :  { %v4771_v29 = vsel %vm4252_vm4, %v4769_v30, %v4770_v58  ;;  %v4773_v49 = vsel %vm4252_vm4, %v4770_v58, %v4772_v34  ;;  %v4886_v7 = vadd.f32 %v4830_v52, %v4760_v28  ;;  %v4887_v38 = vadd.f32 %v4831_v55, %v4761_v11 }
 0x4a1   :  { %v4764_v24 = vadd.f32 %v4708_v10, %v4650_v14  ;;  %v4834_v25 = vmul.f32 %v17061_v60, %v4771_v29  ;;  %v4835_v23 = vmul.f32 %v17061_v60, %v4773_v49  ;;  %v4765_v61 = vadd.f32 %v4709_v4, %v4651_v63 }
 0x4a2   :  { %v4948_v36 = vmul.f32 %v17064_v53, %v17144_v62  ;;  %v14196_v59 = vmul.f32 %v17064_v53, %v17145_v51  ;;  %v4998_v40 = vadd.f32 %v4944_v37, %v4886_v7  ;;  %v5056_v50 = vmul.f32 %v17068_v18, %v3814_v22  ;;  %v17149_v62 = vld [vmem:[#allocation130_spill] sm:$0xff] }
 0x4a3   :  { %v4890_v26 = vadd.f32 %v4834_v25, %v4764_v24  ;;  %v5057_v8 = vmul.f32 %v17068_v18, %v14154_v3  ;;  %v4891_v16 = vadd.f32 %v4835_v23, %v4765_v61  ;;  %v4999_v56 = vadd.f32 %v4945_v42, %v4887_v38 }
 0x4a4   :  { %v14202_v33 = vmul.f32 0.0, %v17068_v18  ;;  %v5167_v32 = vmul.f32 %v17070_v48, %v4771_v29  ;;  %v5109_v10 = vadd.f32 %v5056_v50, %v4998_v40  ;;  %v5168_v4 = vmul.f32 %v17070_v48, %v4773_v49  ;;  %v17151_v40 = vld [vmem:[#allocation51_spill] sm:$0xff] }
 0x4a5   :  { %v5002_v13 = vadd.f32 %v4948_v36, %v4890_v26  ;;  %v14208_v15 = vmul.f32 %v17070_v48, %v17146_v41  ;;  %v5003_v22 = vadd.f32 %v14196_v59, %v4891_v16  ;;  %v5110_v28 = vadd.f32 %v5057_v8, %v4999_v56  ;;  %v17150_v36 = vld [vmem:[#allocation92_spill] sm:$0xff]  ;;  %v17152_v8 = vld [vmem:[#allocation118_spill] sm:$0xff] }
 0x4a6   :  { %v5563_v30 = vsel %vm3871_vm3, %v13954_v9, 0.0  ;;  %v5564_v0 = vsel %vm3871_vm3, %v13960_v47, 0.0  ;;  %v5221_v58 = vadd.f32 %v5167_v32, %v5109_v10  ;;  %v17147_v14 = vmax.f32 %v13927_v43, 0.0  ;;  %v17153_v32 = vld [vmem:[#allocation64_spill] sm:$0xff]  ;;  %v17154_v10 = vld [vmem:[#allocation35_spill] sm:$0xff] }
 0x4a7   :  { %v5113_v11 = vadd.f32 %v14202_v33, %v5002_v13  ;;  %v17148_v52 = vmax.f32 %v13932_v46, 0.0  ;;  %v5114_v55 = vadd.f32 %v14202_v33, %v5003_v22  ;;  %v5222_v37 = vadd.f32 %v5168_v4, %v5110_v28  ;;  %v17155_v28 = vld [vmem:[#allocation90_spill] sm:$0xff] }
 0x4a8   :  { %v5610_v27 = vmax.f32 %v17147_v14, %v5563_v30  ;;  %v3648_v63 = vsel %vm1348_vm2, %v14131_v39, 0.0  ;;  %v3649_v9 = vsel %vm1348_vm2, %v14137_v45, 0.0  ;;  %v5279_v29 = vadd.f32 %v17071_v35, %v5221_v58  ;;  %v17157_v14 = vld [vmem:[#allocation62_spill] sm:$0xff] }
 0x4a9   :  { %v5614_v12 = vmax.f32 %v17148_v52, %v5564_v0  ;;  %v5225_v47 = vadd.f32 %v14208_v15, %v5113_v11  ;;  %v3757_v43 = vmax.f32 %v3197_v54, %v3648_v63  ;;  %v5226_v46 = vadd.f32 %v14208_v15, %v5114_v55  ;;  %v17156_v0 = vld [vmem:[#allocation125_spill] sm:$0xff]  ;;  %v17158_v52 = vld [vmem:[#allocation106_spill] sm:$0xff] }
 0x4aa   :  { %v14231_v42 = vadd.f32 %v17071_v35, %v5222_v37  ;;  %v3761_v24 = vmax.f32 %v3201_v21, %v3649_v9  ;;  %v4191_v39 = vmul.f32 %v17131_v17, %v13619_v31  ;;  %v5335_v25 = vmax.f32 %v5279_v29, 0.0  ;;  %v17159_v9 = vld [vmem:[#allocation84_spill] sm:$0xff]  ;;  %v17160_v29 = vld [vmem:[#allocation85_spill] sm:$0xff] }
 0x4ab   :  { %v5646_v49 = vmax.f32 %v5610_v27, %v5614_v12  ;;  %v5283_v45 = vadd.f32 %v17071_v35, %v5225_v47  ;;  %v4192_v7 = vmul.f32 %v17131_v17, %v13621_v44  ;;  %v14241_v6 = vadd.f32 %v17071_v35, %v5226_v46 }
 0x4ac   :  { %v5336_v54 = vmax.f32 %v14231_v42, 0.0  ;;  %v3817_v61 = vmax.f32 %v3757_v43, %v3761_v24  ;;  %v4195_v5 = vmul.f32 %v17131_v17, %v13631_v1  ;;  %v5483_v38 = vrot.slane %v5335_v25, 2 }
 0x4ad   :  { %v5691_v23 = vrot.slane %v5646_v49, 4  ;;  %v5339_v21 = vmax.f32 %v5283_v45, 0.0  ;;  %v4196_v51 = vmul.f32 %v17131_v17, %v17150_v36  ;;  %v5340_v26 = vmax.f32 %v14241_v6, 0.0 }
 0x4ae   :  { %v14253_v44 = vrot.slane %v5336_v54, 2  ;;  %v4245_v50 = vadd.f32 %v4191_v39, %v17151_v40  ;;  %v4246_v16 = vadd.f32 %v4192_v7, %v17152_v8  ;;  %v4249_v13 = vadd.f32 %v4195_v5, %v17153_v32 }
 0x4af   :  { %v5692_v31 = vsel %vm5655_vm5, %v17149_v62, %v5691_v23  ;;  %v5490_v56 = vrot.slane %v5339_v21, 2  ;;  %v4250_v4 = vadd.f32 %v4196_v51, %v17154_v10  ;;  %v4532_v41 = vrot.slane %v14156_v2, 6 }
 0x4b0   :  { %v5485_v17 = vsel %vm4252_vm4, %v5483_v38, %v14253_v44  ;;  %v14264_v22 = vrot.slane %v5340_v26, 2  ;;  %v4518_v30 = vadd.f32 %v17155_v28, %v4245_v50  ;;  %v4519_v11 = vadd.f32 %v17156_v0, %v4246_v16  ;;  %v17162_v16 = vld [vmem:[#allocation105_spill] sm:$0xff] }
 0x4b1   :  { %v5615_v58 = vmax.f32 %v5335_v25, %v5485_v17  ;;  %v4522_v27 = vadd.f32 %v17157_v14, %v4249_v13  ;;  %v4523_v12 = vadd.f32 %v17158_v52, %v4250_v4  ;;  %v4533_v55 = vsel %vm3871_vm3, %v4530_v57, %v4532_v41 }
 0x4b2   :  { %v5492_v37 = vsel %vm4252_vm4, %v5490_v56, %v14264_v22  ;;  %v4534_v63 = vrot.slane %v3817_v61, 6  ;;  %v4592_v47 = vmul.f32 %v17053_v19, %v17159_v9  ;;  %v4593_v49 = vmul.f32 %v17053_v19, %v17160_v29 }
 0x4b3   :  { %v5619_v43 = vmax.f32 %v5339_v21, %v5492_v37  ;;  %v4596_v46 = vmul.f32 %v17053_v19, %v4533_v55  ;;  %v4706_v24 = vmul.f32 %v17060_v20, %v13631_v1  ;;  %v4707_v3 = vmul.f32 %v17060_v20, %v17150_v36  ;;  %v17161_v1 = vld [vmem:[#allocation113_spill] sm:$0xff] }
 0x4b4   :  { %v4535_v57 = vsel %vm3871_vm3, %v4532_v41, %v4534_v63  ;;  %v4648_v39 = vadd.f32 %v4592_v47, %v4518_v30  ;;  %v4649_v45 = vadd.f32 %v4593_v49, %v4519_v11  ;;  %v4710_v25 = vmul.f32 %v17060_v20, %v14156_v2  ;;  %v5701_v11 = vld [vmem:[%s14513_s3 + $0x8] sm:$0xff] }
 0x4b5   :  { %v5647_v23 = vmax.f32 %v5615_v58, %v5619_v43  ;;  %v4597_v7 = vmul.f32 %v17053_v19, %v4535_v57  ;;  %v4652_v5 = vadd.f32 %v4596_v46, %v4522_v27  ;;  %v4711_v21 = vmul.f32 %v17060_v20, %v3817_v61  ;;  %6159 = vmatprep.mubr.msk.f32.mxu0 %vm5828_vm6, %v5701_v11  ;;  %v5702_v11 = vld [vmem:[%s14513_s3 + $0x10] sm:$0xff] }
 0x4b6   :  { %v4762_v38 = vadd.f32 %v4706_v24, %v4648_v39  ;;  %v4763_v62 = vadd.f32 %v4707_v3, %v4649_v45  ;;  %v4774_v51 = vrot.slane %v3817_v61, 2  ;;  %v4832_v40 = vmul.f32 %v17061_v60, %v17161_v1 }
 0x4b7   :  { %v6259_v36 = vpack.c.bf16 %v5647_v23, %v5692_v31  ;;  %v4653_v50 = vadd.f32 %v4597_v7, %v4523_v12  ;;  %v4766_v8 = vadd.f32 %v4710_v25, %v4652_v5  ;;  %v4833_v56 = vmul.f32 %v17061_v60, %v17162_v16  ;;  %v5736_v7 = vld [vmem:[%s14514_s4 + $0x20] sm:$0xff] }
 0x4b8   :  { %v4775_v32 = vsel %vm4252_vm4, %v4772_v34, %v4774_v51  ;;  %v4780_v19 = vsel %vm3871_vm3, %v4774_v51, 0.0  ;;  %v4888_v13 = vadd.f32 %v4832_v40, %v4762_v38  ;;  %v4946_v20 = vmul.f32 %v17064_v53, %v4533_v55  ;;  %v17164_v55 = vld [vmem:[#allocation79_spill] sm:$0xff] }
 0x4b9   :  { %6260 = vmatpush1.bf16.msra.mxu0 %v6259_v36  ;;  %v4767_v10 = vadd.f32 %v4711_v21, %v4653_v50  ;;  %v4836_v4 = vmul.f32 %v17061_v60, %v4775_v32  ;;  %v4837_v31 = vmul.f32 %v17061_v60, %v4780_v19  ;;  %v4889_v41 = vadd.f32 %v4833_v56, %v4763_v62  ;;  %v5738_v50 = vld [vmem:[%s14514_s4 + $0x30] sm:$0xff] }
 0x4ba   :  { %v17163_v17 = vmov 0.0|0.0   ;;  %v4947_v28 = vmul.f32 %v17064_v53, %v4535_v57  ;;  %v5000_v30 = vadd.f32 %v4946_v20, %v4888_v13  ;;  %v5058_v34 = vmul.f32 %v17068_v18, %v14156_v2  ;;  %v5732_v53 = vld [vmem:[%s14514_s4] sm:$0xff] }
 0x4bb   :  { %6261 = vmatprep.subr.bf16.mxu0 %v17163_v17  ;;  %v5059_v0 = vmul.f32 %v17068_v18, %v3817_v61  ;;  %v4892_v58 = vadd.f32 %v4836_v4, %v4766_v8  ;;  %v4893_v14 = vadd.f32 %v4837_v31, %v4767_v10  ;;  %v5169_v27 = vmul.f32 %v17070_v48, %v4775_v32  ;;  %v5734_v18 = vld [vmem:[%s14514_s4 + $0x10] sm:$0xff]  ;;  %v5740_v4 = vld [vmem:[%s14514_s4 + $0x40] sm:$0xff] }
 0x4bc   :  { %v5001_v60 = vadd.f32 %v4947_v28, %v4889_v41  ;;  %v5111_v52 = vadd.f32 %v5058_v34, %v5000_v30  ;;  %v5170_v12 = vmul.f32 %v17070_v48, %v4780_v19  ;;  %v5172_v37 = vmul.f32 %v17070_v48, %v17164_v55  ;;  %v5733_v48 = vld [vmem:[%s14514_s4 + $0x8] sm:$0xff]  ;;  %v5743_v41 = vld [vmem:[%s14514_s4 + $0x58] sm:$0xff]  ;;  %v5700_v28 = vld [vmem:[%s14513_s3] sm:$0xff] }
 0x4bd   :  { %v5004_v2 = vadd.f32 %v14196_v59, %v4892_v58  ;;  %v5005_v61 = vadd.f32 %v14196_v59, %v4893_v14  ;;  %v6405_v47 = vmov 0   ;;  %v5735_v59 = vld [vmem:[%s14514_s4 + $0x18] sm:$0xff]  ;;  %v17165_v17 = vmov 0.0   ;;  %v5744_v34 = vld [vmem:[%s14514_s4 + $0x60] sm:$0xff]  ;;  %v5705_v58 = vld [vmem:[%s14513_s3 + $0x28] sm:$0xff] }
 0x4be   :  { %v5112_v63 = vadd.f32 %v5059_v0, %v5001_v60  ;;  %v5223_v9 = vadd.f32 %v5169_v27, %v5111_v52  ;;  %6301 = vset.pattern.permute.xlu0 %v6405_v47  ;;  %6302 = vset.pattern.permute.xlu1 %v6405_v47  ;;  %v5703_v30 = vld [vmem:[%s14513_s3 + $0x18] sm:$0xff]  ;;  %v5745_v0 = vld [vmem:[%s14514_s4 + $0x68] sm:$0xff]  ;;  %v5746_v14 = vld [vmem:[%s14514_s4 + $0x70] sm:$0xff] }
 0x4bf   :  { %v5115_v29 = vadd.f32 %v14202_v33, %v5004_v2  ;;  %v5116_v49 = vadd.f32 %v14202_v33, %v5005_v61  ;;  %5750 = vperm.xlu0 %6301, %v5732_v53   ;;  %5760 = vperm.xlu1 %6302, %v5734_v18   ;;  %v5747_v27 = vld [vmem:[%s14514_s4 + $0x78] sm:$0xff]  ;;  %v5704_v60 = vld [vmem:[%s14513_s3 + $0x20] sm:$0xff]  ;;  %v6044_v53 = vld [vmem:[%s14516_s6 + $0x8] sm:$0x3] }
 0x4c0   :  { %v5224_v43 = vadd.f32 %v5170_v12, %v5112_v63  ;;  %v5281_v46 = vadd.f32 %v17071_v35, %v5223_v9  ;;  %v5707_v52 = vld [vmem:[%s14513_s3 + $0x38] sm:$0xff]  ;;  %v6043_v12 = vld [vmem:[%s14516_s6] sm:$0xff]  ;;  %v5706_v18 = vld [vmem:[%s14513_s3 + $0x30] sm:$0xff] }
 0x4c1   :  { %v5227_v24 = vadd.f32 %v14208_v15, %v5115_v29  ;;  %v5228_v3 = vadd.f32 %v5172_v37, %v5116_v49  ;;  %v5737_v15 = vld [vmem:[%s14514_s4 + $0x28] sm:$0xff]  ;;  %v5708_v61 = vld [vmem:[%s14513_s3 + $0x40] sm:$0xff]  ;;  %v5711_v55 = vld [vmem:[%s14513_s3 + $0x58] sm:$0xff] }
 0x4c2   :  { %v5282_v57 = vadd.f32 %v17071_v35, %v5224_v43  ;;  %v5337_v39 = vmax.f32 %v5281_v46, 0.0  ;;  %v5709_v2 = vld [vmem:[%s14513_s3 + $0x48] sm:$0xff]  ;;  %v5710_v37 = vld [vmem:[%s14513_s3 + $0x50] sm:$0xff]  ;;  %v5712_v9 = vld [vmem:[%s14513_s3 + $0x60] sm:$0xff] }
 0x4c3   :  { %v5285_v33 = vadd.f32 %v17071_v35, %v5227_v24  ;;  %v5286_v45 = vadd.f32 %v17071_v35, %v5228_v3  ;;  %5755 = vperm.xlu0 %6301, %v5733_v48   ;;  %5765 = vperm.xlu1 %6302, %v5735_v59   ;;  %v5713_v63 = vld [vmem:[%s14513_s3 + $0x68] sm:$0xff]  ;;  %v5715_v47 = vld [vmem:[%s14513_s3 + $0x78] sm:$0xff]  ;;  %v5714_v29 = vld [vmem:[%s14513_s3 + $0x70] sm:$0xff] }
 0x4c4   :  { %v5338_v25 = vmax.f32 %v5282_v57, 0.0  ;;  %v5486_v23 = vrot.slane %v5337_v39, 2  ;;  %v5717_v49 = vld [vmem:[%s14513_s3 + $0x88] sm:$0xff]  ;;  %v5716_v43 = vld [vmem:[%s14513_s3 + $0x80] sm:$0xff]  ;;  %v5719_v46 = vld [vmem:[%s14513_s3 + $0x98] sm:$0xff] }
 0x4c5   :  { %v5341_v5 = vmax.f32 %v5285_v33, 0.0  ;;  %v5342_v21 = vmax.f32 %v5286_v45, 0.0  ;;  %v5718_v48 = vld [vmem:[%s14513_s3 + $0x90] sm:$0xff]  ;;  %v5721_v59 = vld [vmem:[%s14513_s3 + $0xa8] sm:$0xff]  ;;  %v5720_v24 = vld [vmem:[%s14513_s3 + $0xa0] sm:$0xff] }
 0x4c6   :  { %v5487_v38 = vsel %vm4252_vm4, %v14253_v44, %v5486_v23  ;;  %v5488_v62 = vrot.slane %v5338_v25, 2  ;;  %v5739_v44 = vld [vmem:[%s14514_s4 + $0x38] sm:$0xff]  ;;  %v5722_v57 = vld [vmem:[%s14513_s3 + $0xb0] sm:$0xff]  ;;  %v5724_v33 = vld [vmem:[%s14513_s3 + $0xc0] sm:$0xff] }
 0x4c7   :  { %v5493_v51 = vrot.slane %v5341_v5, 2  ;;  %v5495_v35 = vrot.slane %v5342_v21, 2  ;;  %v5616_v1 = vmax.f32 %v5336_v54, %v5487_v38  ;;  %5770 = vperm.xlu0 %6301, %v5736_v7   ;;  %5775 = vperm.xlu1 %6302, %v5737_v15   ;;  %v5723_v3 = vld [vmem:[%s14513_s3 + $0xb8] sm:$0xff]  ;;  %v5728_v7 = vld [vmem:[%s14513_s3 + $0xe0] sm:$0xff] }
 0x4c8   :  { %v5489_v40 = vsel %vm4252_vm4, %v5486_v23, %v5488_v62  ;;  %v5565_v36 = vsel %vm3871_vm3, %v5488_v62, 0.0  ;;  %v5727_v45 = vld [vmem:[%s14513_s3 + $0xd8] sm:$0xff]  ;;  %v5729_v23 = vld [vmem:[%s14513_s3 + $0xe8] sm:$0xff] }
 0x4c9   :  { %v5494_v8 = vsel %vm4252_vm4, %v14264_v22, %v5493_v51  ;;  %v5496_v42 = vsel %vm4252_vm4, %v5493_v51, %v5495_v35  ;;  %v5617_v54 = vmax.f32 %v5337_v39, %v5489_v40  ;;  %v5566_v16 = vsel %vm3871_vm3, %v5495_v35, 0.0  ;;  %v5741_v22 = vld [vmem:[%s14514_s4 + $0x48] sm:$0xff]  ;;  %v5731_v15 = vld [vmem:[%s14513_s3 + $0xf8] sm:$0xff] }
 0x4ca   :  { %v5620_v56 = vmax.f32 %v5340_v26, %v5494_v8  ;;  %v5621_v32 = vmax.f32 %v5341_v5, %v5496_v42  ;;  %v5618_v20 = vmax.f32 %v5338_v25, %v5565_v36  ;;  %v5622_v10 = vmax.f32 %v5342_v21, %v5566_v16  ;;  %v5742_v26 = vld [vmem:[%s14514_s4 + $0x50] sm:$0xff]  ;;  %v5725_v39 = vld [vmem:[%s14513_s3 + $0xc8] sm:$0xff]  ;;  %v6041_v21 = vld [vmem:[%s14515_s5] sm:$0xff] }
 0x4cb   :  { %5780 = vperm.xlu0 %6301, %v5738_v50   ;;  %5785 = vperm.xlu1 %6302, %v5739_v44   ;;  %v5726_v25 = vld [vmem:[%s14513_s3 + $0xd0] sm:$0xff] }
 0x4cc   :  { %v5648_v19 = vmax.f32 %v5616_v1, %v5620_v56  ;;  %v5649_v13 = vmax.f32 %v5617_v54, %v5621_v32  ;;  %v5650_v6 = vmax.f32 %v5618_v20, %v5622_v10  ;;  %v5730_v5 = vld [vmem:[%s14513_s3 + $0xf0] sm:$0xff]  ;;  %6225 = vmatprep.mubr.f32.mxu1 %v6041_v21 }
 0x4ce   :  { %v6262_v31 = vpack.c.bf16 %v5649_v13, %v5648_v19 }
 0x4cf   :  { %5790 = vperm.xlu0 %6301, %v5740_v4   ;;  %5795 = vperm.xlu1 %6302, %v5741_v22  }
 0x4d0   :  { %6263 = vmatpush1.bf16.msra.mxu0 %v6262_v31 }
 0x4d1   :  { %5928 = vmatprep.subr.mxu0 %v17165_v17 }
 0x4d3   :  { %5800 = vperm.xlu0 %6301, %v5742_v26   ;;  %5805 = vperm.xlu1 %6302, %v5743_v41  }
 0x4d4   :  { %6158 = vmatpush1.msk.msra.mxu0 %vm5655_vm5, %v5650_v6 }
 0x4d5   :  { %5945 = vmatmul.mubr.f32.vlgmr.msra.gmra.mrb[0].mxu0 %v5700_v28 }
 0x4d6   :  { %6160 = vmatprep.mubr.msk.f32.mxu0 %vm5828_vm6, %v5703_v30 }
 0x4d7   :  { %5810 = vperm.xlu0 %6301, %v5744_v34   ;;  %5815 = vperm.xlu1 %6302, %v5745_v0  }
 0x4d9   :  { %5950 = vmatmul.mubr.f32.gmra.mrb[2].mxu0 %v5702_v11 }
 0x4da   :  { %6161 = vmatprep.mubr.msk.f32.mxu0 %vm5828_vm6, %v5705_v58 }
 0x4db   :  { %5820 = vperm.xlu0 %6301, %v5746_v14   ;;  %5825 = vperm.xlu1 %6302, %v5747_v27  }
 0x4dd   :  { %5955 = vmatmul.mubr.f32.gmra.mrb[4].mxu0 %v5704_v60 }
 0x4de   :  { %6162 = vmatprep.mubr.msk.f32.mxu0 %vm5828_vm6, %v5707_v52 }
 0x4df   :  { %6047 = vperm.xlu0 %6301, %v6043_v12   ;;  %6052 = vperm.xlu1 %6302, %v6044_v53  }
 0x4e1   :  { %5960 = vmatmul.mubr.f32.gmra.mrb[6].mxu0 %v5706_v18 }
 0x4e2   :  { %6163 = vmatprep.mubr.msk.f32.mxu0 %vm5828_vm6, %v5709_v2 }
 0x4e5   :  { %5965 = vmatmul.mubr.f32.gmra.mrb[8].mxu0 %v5708_v61 }
 0x4e6   :  { %6164 = vmatprep.mubr.msk.f32.mxu0 %vm5828_vm6, %v5711_v55 }
 0x4e9   :  { %5970 = vmatmul.mubr.f32.gmra.mrb[10].mxu0 %v5710_v37 }
 0x4ea   :  { %6165 = vmatprep.mubr.msk.f32.mxu0 %vm5828_vm6, %v5713_v63 }
 0x4ed   :  { %5975 = vmatmul.mubr.f32.gmra.mrb[12].mxu0 %v5712_v9 }
 0x4ee   :  { %6166 = vmatprep.mubr.msk.f32.mxu0 %vm5828_vm6, %v5715_v47 }
 0x4f1   :  { %5980 = vmatmul.mubr.f32.gmra.mrb[14].mxu0 %v5714_v29 }
 0x4f2   :  { %6167 = vmatprep.mubr.msk.f32.mxu0 %vm5828_vm6, %v5717_v49 }
 0x4f5   :  { %5985 = vmatmul.mubr.f32.gmra.mrb[16].mxu0 %v5716_v43 }
 0x4f6   :  { %6168 = vmatprep.mubr.msk.f32.mxu0 %vm5828_vm6, %v5719_v46 }
 0x4f9   :  { %5990 = vmatmul.mubr.f32.gmra.mrb[18].mxu0 %v5718_v48 }
 0x4fa   :  { %6169 = vmatprep.mubr.msk.f32.mxu0 %vm5828_vm6, %v5721_v59 }
 0x4fd   :  { %5995 = vmatmul.mubr.f32.gmra.mrb[20].mxu0 %v5720_v24 }
 0x4fe   :  { %6170 = vmatprep.mubr.msk.f32.mxu0 %vm5828_vm6, %v5723_v3 }
 0x501   :  { %6000 = vmatmul.mubr.f32.gmra.mrb[22].mxu0 %v5722_v57 }
 0x502   :  { %6171 = vmatprep.mubr.msk.f32.mxu0 %vm5828_vm6, %v5725_v39 }
 0x505   :  { %6005 = vmatmul.mubr.f32.gmra.mrb[24].mxu0 %v5724_v33 }
 0x506   :  { %6172 = vmatprep.mubr.msk.f32.mxu0 %vm5828_vm6, %v5727_v45 }
 0x509   :  { %6010 = vmatmul.mubr.f32.gmra.mrb[26].mxu0 %v5726_v25 }
 0x50a   :  { %6173 = vmatprep.mubr.msk.f32.mxu0 %vm5828_vm6, %v5729_v23 }
 0x50d   :  { %6015 = vmatmul.mubr.f32.gmra.mrb[28].mxu0 %v5728_v7 }
 0x50e   :  { %6174 = vmatprep.mubr.msk.f32.mxu0 %vm5828_vm6, %v5731_v15 }
 0x511   :  { %6020 = vmatmul.mubr.f32.gmra.mrb[30].mxu0 %v5730_v5 }
 0x53e   :  { %v5751_v38 = vpop.permute.xlu0 %5750  ;;  %v5761_v44 = vpop.permute.xlu1 %5760 }
 0x542   :  { %v5756_v1 = vpop.permute.xlu0 %5755  ;;  %v5766_v19 = vpop.permute.xlu1 %5765 }
 0x546   :  { %v5771_v41 = vpop.permute.xlu0 %5770  ;;  %v5776_v28 = vpop.permute.xlu1 %5775 }
 0x54a   :  { %v5781_v52 = vpop.permute.xlu0 %5780  ;;  %v5786_v53 = vpop.permute.xlu1 %5785 }
 0x54e   :  { %v5791_v29 = vpop.permute.xlu0 %5790  ;;  %v5796_v43 = vpop.permute.xlu1 %5795 }
 0x552   :  { %v5801_v45 = vpop.permute.xlu0 %5800  ;;  %v5806_v23 = vpop.permute.xlu1 %5805 }
 0x5a8   :  { %v5946_v62 = vpop.f32.mrb[0].mxu0 }
 0x5a9   :  { %v5948_v51 = vpop.f32.mrb[1].mxu0  ;;  %v5947_v35 = vadd.f32 %v5946_v62, %v5751_v38 }
 0x5ab   :  { %v6025_v8 = vmax.f32 %v5947_v35, 0.0 }
 0x5ac   :  { %v5951_v40 = vpop.f32.mrb[2].mxu0 }
 0x5ad   :  { %v5952_v36 = vadd.f32 %v5951_v40, %v5756_v1  ;;  %v5953_v50 = vpop.f32.mrb[3].mxu0  ;;  %v5811_v1 = vpop.permute.xlu0 %5810 }
 0x5af   :  { %v6026_v42 = vmax.f32 %v5952_v36, 0.0  ;;  %v5816_v36 = vpop.permute.xlu1 %5815 }
 0x5b0   :  { %v5956_v54 = vpop.f32.mrb[4].mxu0 }
 0x5b1   :  { %v5958_v16 = vpop.f32.mrb[5].mxu0  ;;  %v6264_v56 = vpack.c.bf16 %v6026_v42, %v6025_v8  ;;  %v5957_v32 = vadd.f32 %v5956_v54, %v5761_v44 }
 0x5b3   :  { %6265 = vmatprep.subr.bf16.mxu1 %v6264_v56  ;;  %v6027_v4 = vmax.f32 %v5957_v32, 0.0 }
 0x5b4   :  { %v5961_v13 = vpop.f32.mrb[6].mxu0  ;;  %6267 = vmatpush3.bf16.msra.mxu1 %v6264_v56 }
 0x5b5   :  { %v5962_v20 = vadd.f32 %v5961_v13, %v5766_v19  ;;  %v5963_v10 = vpop.f32.mrb[7].mxu0  ;;  %v5821_v19 = vpop.permute.xlu0 %5820 }
 0x5b7   :  { %v6028_v22 = vmax.f32 %v5962_v20, 0.0  ;;  %v5826_v20 = vpop.permute.xlu1 %5825 }
 0x5b8   :  { %v5966_v31 = vpop.f32.mrb[8].mxu0 }
 0x5b9   :  { %v6268_v6 = vpack.c.bf16 %v6028_v22, %v6027_v4  ;;  %v5968_v26 = vpop.f32.mrb[9].mxu0  ;;  %v5967_v17 = vadd.f32 %v5966_v31, %v5771_v41  ;;  %v6042_v41 = vld [vmem:[%s14515_s5 + $0x8] sm:$0x3] }
 0x5bb   :  { %6269 = vmatprep.subr.bf16.mxu1 %v6268_v6  ;;  %v6029_v11 = vmax.f32 %v5967_v17, 0.0  ;;  %v6053_v17 = vpop.permute.xlu1 %6052 }
 0x5bc   :  { %v5971_v30 = vpop.f32.mrb[10].mxu0  ;;  %6271 = vmatpush3.bf16.msra.mxu1 %v6268_v6 }
 0x5bd   :  { %v5972_v34 = vadd.f32 %v5971_v30, %v5776_v28  ;;  %v5973_v0 = vpop.f32.mrb[11].mxu0  ;;  %v6048_v30 = vpop.permute.xlu0 %6047 }
 0x5bf   :  { %v6030_v58 = vmax.f32 %v5972_v34, 0.0 }
 0x5c0   :  { %v5976_v14 = vpop.f32.mrb[12].mxu0 }
 0x5c1   :  { %v6272_v27 = vpack.c.bf16 %v6030_v58, %v6029_v11  ;;  %v5978_v60 = vpop.f32.mrb[13].mxu0  ;;  %v5977_v12 = vadd.f32 %v5976_v14, %v5781_v52 }
 0x5c3   :  { %6273 = vmatprep.subr.bf16.mxu1 %v6272_v27  ;;  %v6031_v55 = vmax.f32 %v5977_v12, 0.0 }
 0x5c4   :  { %v5981_v18 = vpop.f32.mrb[14].mxu0  ;;  %6275 = vmatpush3.bf16.msra.mxu1 %v6272_v27 }
 0x5c5   :  { %v5982_v2 = vadd.f32 %v5981_v18, %v5786_v53  ;;  %v5983_v61 = vpop.f32.mrb[15].mxu0 }
 0x5c7   :  { %v6032_v37 = vmax.f32 %v5982_v2, 0.0 }
 0x5c8   :  { %v5986_v63 = vpop.f32.mrb[16].mxu0 }
 0x5c9   :  { %v6276_v9 = vpack.c.bf16 %v6032_v37, %v6031_v55  ;;  %v5988_v47 = vpop.f32.mrb[17].mxu0  ;;  %v5987_v49 = vadd.f32 %v5986_v63, %v5791_v29 }
 0x5cb   :  { %6277 = vmatprep.subr.bf16.mxu1 %v6276_v9  ;;  %v6033_v24 = vmax.f32 %v5987_v49, 0.0 }
 0x5cc   :  { %v5991_v46 = vpop.f32.mrb[18].mxu0  ;;  %6279 = vmatpush3.bf16.msra.mxu1 %v6276_v9 }
 0x5cd   :  { %v5992_v48 = vadd.f32 %v5991_v46, %v5796_v43  ;;  %v5993_v59 = vpop.f32.mrb[19].mxu0 }
 0x5cf   :  { %v6034_v3 = vmax.f32 %v5992_v48, 0.0 }
 0x5d0   :  { %v5996_v57 = vpop.f32.mrb[20].mxu0 }
 0x5d1   :  { %v6280_v39 = vpack.c.bf16 %v6034_v3, %v6033_v24  ;;  %v5998_v33 = vpop.f32.mrb[21].mxu0  ;;  %v5997_v25 = vadd.f32 %v5996_v57, %v5801_v45 }
 0x5d3   :  { %6281 = vmatprep.subr.bf16.mxu1 %v6280_v39  ;;  %v6035_v21 = vmax.f32 %v5997_v25, 0.0 }
 0x5d4   :  { %v6001_v7 = vpop.f32.mrb[22].mxu0  ;;  %6283 = vmatpush3.bf16.msra.mxu1 %v6280_v39 }
 0x5d5   :  { %v6002_v15 = vadd.f32 %v6001_v7, %v5806_v23  ;;  %v6003_v5 = vpop.f32.mrb[23].mxu0 }
 0x5d7   :  { %v6036_v38 = vmax.f32 %v6002_v15, 0.0 }
 0x5d8   :  { %v6006_v62 = vpop.f32.mrb[24].mxu0 }
 0x5d9   :  { %v6284_v51 = vpack.c.bf16 %v6036_v38, %v6035_v21  ;;  %v6008_v35 = vpop.f32.mrb[25].mxu0  ;;  %v6007_v40 = vadd.f32 %v6006_v62, %v5811_v1 }
 0x5db   :  { %6285 = vmatprep.subr.bf16.mxu1 %v6284_v51  ;;  %v6037_v42 = vmax.f32 %v6007_v40, 0.0 }
 0x5dc   :  { %v6011_v50 = vpop.f32.mrb[26].mxu0  ;;  %6287 = vmatpush3.bf16.msra.mxu1 %v6284_v51 }
 0x5dd   :  { %v6012_v44 = vadd.f32 %v6011_v50, %v5816_v36  ;;  %v6013_v8 = vpop.f32.mrb[27].mxu0 }
 0x5df   :  { %v6038_v54 = vmax.f32 %v6012_v44, 0.0 }
 0x5e0   :  { %v6016_v16 = vpop.f32.mrb[28].mxu0 }
 0x5e1   :  { %v6288_v56 = vpack.c.bf16 %v6038_v54, %v6037_v42  ;;  %v6018_v32 = vpop.f32.mrb[29].mxu0  ;;  %v6017_v13 = vadd.f32 %v6016_v16, %v5821_v19 }
 0x5e3   :  { %6289 = vmatprep.subr.bf16.mxu1 %v6288_v56  ;;  %v6039_v31 = vmax.f32 %v6017_v13, 0.0 }
 0x5e4   :  { %v6021_v10 = vpop.f32.mrb[30].mxu0  ;;  %6291 = vmatpush3.bf16.msra.mxu1 %v6288_v56 }
 0x5e5   :  { %v6022_v4 = vadd.f32 %v6021_v10, %v5826_v20  ;;  %v6023_v22 = vpop.f32.mrb[31].mxu0 }
 0x5e7   :  { %v6040_v6 = vmax.f32 %v6022_v4, 0.0 }
 0x5e9   :  { %v6292_v26 = vpack.c.bf16 %v6040_v6, %v6039_v31 }
 0x5eb   :  { %6293 = vmatprep.subr.bf16.mxu1 %v6292_v26 }
 0x5ec   :  { %6295 = vmatpush3.bf16.msra.mxu1 %v6292_v26 }
 0x5ef   :  { %6226 = vmatmul.mubr.f32.vlgmr.msra.gmra.mrb[0].mxu1 %v6042_v41 }
 0x6c2   :  { %v6227_v28 = vpop.f32.mrb[0].mxu1 }
 0x6c3   :  { %v6127_v34 = vadd.f32 %v6227_v28, %v6053_v17  ;;  %v6121_v0 = vpop.f32.mrb[1].mxu1 }
 0x6c4   :  { %v6122_v11 = vadd.f32 %v6121_v0, %v6048_v30 }
 0x6c5   :  { %6133 = vst.msk [vmem:[%s14517_s7 + $0x8] sm:$0x3] %vm6132_vm7, %v6127_v34 }
 0x6c6   :  { %6131 = vst.msk [vmem:[%s14517_s7] sm:$0xff] %vm6130_vm8, %v6122_v11 }
 0x6c7   :  { %6138 = vsyncpa [#allocation3], 1 }
 0x6c8   :  { %6139 = vsyncpa [#allocation5], 1 }

</bundles_post_ra>
